<compile_context>
chip_gen: v6e
topology: v6e:2x2x1
jax: 0.10.0
libtpu: 0.0.40
codegen_flags: <defaults>
</compile_context>

<pallas_src>
import functools

import jax
import jax.numpy as jnp
from jax.experimental import pallas as pl
from jax.experimental.pallas import tpu as pltpu

NUM_GROUPS = 32
EPS = 1e-5
ACT_DTYPE = jnp.bfloat16
VMEM_LIMIT = 48 * 1024 * 1024     # safe on v5e/v6e (128 MiB phys) and v7x (64 MiB phys)


# ----------------------------------------------------------------------------
# Pallas kernels
# ----------------------------------------------------------------------------
def gn_stats_kernel(x_ref, g_ref, b_ref, p_ref, pt_ref, sc_ref, sh_ref):
    # Per-sample GroupNorm statistics -> per-channel affine so that
    #   norm(x) = x * scale + shift.
    # x: (1,H,W,C) bf16; g/b: (1,C) f32; p: (C,G) one-hot; pt: (G,C);
    # outputs sc/sh: (1,1,C) f32.
    h, w, c = x_ref.shape[1], x_ref.shape[2], x_ref.shape[3]
    hw = h * w
    cg = c // NUM_GROUPS
    inv_n = 1.0 / float(hw * cg)

    x = x_ref[0].reshape(hw, c)                                        # bf16
    ones_b = jnp.ones((1, hw), jnp.bfloat16)
    s1 = jnp.dot(ones_b, x, preferred_element_type=jnp.float32)        # (1,C)
    gmean = jnp.dot(s1, p_ref[...], preferred_element_type=jnp.float32) * inv_n
    mean_c = jnp.dot(gmean, pt_ref[...], preferred_element_type=jnp.float32)

    d = x.astype(jnp.float32) - mean_c                                 # centered, f32
    ones_f = jnp.ones((1, hw), jnp.float32)
    s2 = jnp.dot(ones_f, d * d, preferred_element_type=jnp.float32)    # (1,C)
    gvar = jnp.dot(s2, p_ref[...], preferred_element_type=jnp.float32) * inv_n
    inv_std = jax.lax.rsqrt(gvar + EPS)                                # (1,G)
    inv_c = jnp.dot(inv_std, pt_ref[...], preferred_element_type=jnp.float32)

    scale = g_ref[...] * inv_c                                         # (1,C)
    sc_ref[0] = scale
    sh_ref[0] = b_ref[...] - mean_c * scale


def _silu(y):
    # y * sigmoid(y); reciprocal goes to the EUP (approx is plenty for inference).
    return y * pl.reciprocal(1.0 + jnp.exp(-y), approx=True)


def conv3x3_kernel(x_ref, sc_ref, sh_ref, w_ref, b_ref, add_ref, o_ref, xn_ref,
                   *, add_is_row):
    # Fused GroupNorm+SiLU prologue -> 3x3 conv (stride 1, pad 1) -> bias
    # (+ temb row | + residual) epilogue.
    #   x: (1,H,W,Ci) bf16 raw activation, sc/sh: (1,1,Ci) f32 GN affine,
    #   w: (3, 3*Ci, tco) bf16 (3 kw taps concatenated along K per kernel row),
    #   b: (1,tco) f32, add: (1,1,tco) f32 temb row or (1,H,W,tco) bf16 residual,
    #   o: (1,H,W,tco) bf16, xn: VMEM scratch (H,W,Ci) bf16.
    h, wd, ci = x_ref.shape[1], x_ref.shape[2], x_ref.shape[3]
    tco = w_ref.shape[2]

    # Normalized activation computed once per sample (Co-tile axis is innermost).
    @pl.when(pl.program_id(1) == 0)
    def _():
        y = x_ref[0].astype(jnp.float32) * sc_ref[...] + sh_ref[...]
        xn_ref[...] = _silu(y).astype(jnp.bfloat16)

    xn = xn_ref[...]                                         # (H,W,Ci) bf16
    zrow = jnp.zeros((1, wd, ci), jnp.bfloat16)
    rows = (jnp.concatenate([zrow, xn[:-1]], axis=0),        # tap row i-1 (zero pad)
            xn,                                              # tap row i
            jnp.concatenate([xn[1:], zrow], axis=0))         # tap row i+1 (zero pad)
    zcol = jnp.zeros((h, 1, ci), jnp.bfloat16)

    acc = jnp.zeros((h * wd, tco), jnp.float32)
    for kh in range(3):
        r = rows[kh]
        band = jnp.concatenate(
            [jnp.concatenate([zcol, r[:, :-1, :]], axis=1),  # col j-1 (kw=0)
             r,                                              # col j   (kw=1)
             jnp.concatenate([r[:, 1:, :], zcol], axis=1)],  # col j+1 (kw=2)
            axis=2)                                          # (H,W,3*Ci)
        acc = acc + jnp.dot(band.reshape(h * wd, 3 * ci), w_ref[kh],
                            preferred_element_type=jnp.float32)

    acc = acc + b_ref[...]
    if add_is_row:
        acc = acc + add_ref[0]                               # broadcast temb projection
    else:
        acc = acc + add_ref[0].reshape(h * wd, tco).astype(jnp.float32)  # residual
    o_ref[0] = acc.reshape(h, wd, tco).astype(o_ref.dtype)


def down_kernel(x_ref, w_ref, b_ref, o_ref):
    # 3x3 conv, stride 2, pad 1, + bias.
    #   x: (1, H, W/2, 2*Ci) bf16 with the column parity pre-folded into channels
    #      (channels [0:Ci] = even input cols, [Ci:2Ci] = odd input cols).
    #   w: (3, 3*Ci, tco) bf16, b: (1,tco) f32, o: (1, H/2, W/2, tco) bf16.
    h2, wo, ci2 = x_ref.shape[1], x_ref.shape[2], x_ref.shape[3]
    ho = h2 // 2
    ci = ci2 // 2
    tco = w_ref.shape[2]

    xv = x_ref[0]                                  # (H, W/2, 2Ci)
    x4 = xv.reshape(ho, 2, wo, ci2)                # split row parity (leading dims only)
    xe = x4[:, 0]                                  # even input rows  (ho, wo, 2Ci)
    xo = x4[:, 1]                                  # odd input rows

    zrow = jnp.zeros((1, wo, ci2), jnp.bfloat16)
    rows = (jnp.concatenate([zrow, xo[:-1]], axis=0),   # kh=0 -> input row 2i-1
            xe,                                         # kh=1 -> input row 2i
            xo)                                         # kh=2 -> input row 2i+1
    zcol = jnp.zeros((ho, 1, ci), jnp.bfloat16)

    acc = jnp.zeros((ho * wo, tco), jnp.float32)
    for kh in range(3):
        r = rows[kh]
        even_c = r[:, :, :ci]                      # input col 2j    (kw=1)
        odd_c = r[:, :, ci:]                       # input col 2j+1  (kw=2)
        left = jnp.concatenate([zcol, odd_c[:, :-1, :]], axis=1)   # col 2j-1 (kw=0)
        band = jnp.concatenate([left, even_c, odd_c], axis=2)      # (ho, wo, 3Ci)
        acc = acc + jnp.dot(band.reshape(ho * wo, 3 * ci), w_ref[kh],
                            preferred_element_type=jnp.float32)

    acc = acc + b_ref[...]
    o_ref[0] = acc.reshape(ho, wo, tco).astype(o_ref.dtype)


# ----------------------------------------------------------------------------
# pallas_call wrappers (activations live as (N, H, W, C) bf16 between kernels)
# ----------------------------------------------------------------------------
def _pick_co_tile(co, ci, hw):
    # Largest multiple-of-128 Co tile whose rough per-step VMEM working set fits
    # half the scoped-VMEM budget; falls back to the smallest legal divisor.
    cands = [t for t in (co, 640, 512, 448, 384, 320, 256, 192, 128)
             if t <= co and co % t == 0]
    budget = VMEM_LIMIT // 2
    for t in cands:
        est = hw * ci * 14 + hw * t * 8 + 9 * ci * t * 2   # bytes, crude
        if est <= budget:
            return t
    return cands[-1]


def gn_stats(x, gamma, beta, p, pt):
    n, h, w, c = x.shape
    return pl.pallas_call(
        gn_stats_kernel,
        out_shape=(jax.ShapeDtypeStruct((n, 1, c), jnp.float32),
                   jax.ShapeDtypeStruct((n, 1, c), jnp.float32)),
        grid=(n,),
        in_specs=[
            pl.BlockSpec((1, h, w, c), lambda i: (i, 0, 0, 0)),
            pl.BlockSpec((1, c), lambda i: (0, 0)),
            pl.BlockSpec((1, c), lambda i: (0, 0)),
            pl.BlockSpec((c, NUM_GROUPS), lambda i: (0, 0)),
            pl.BlockSpec((NUM_GROUPS, c), lambda i: (0, 0)),
        ],
        out_specs=(pl.BlockSpec((1, 1, c), lambda i: (i, 0, 0)),
                   pl.BlockSpec((1, 1, c), lambda i: (i, 0, 0))),
        compiler_params=pltpu.CompilerParams(
            dimension_semantics=("parallel",), vmem_limit_bytes=VMEM_LIMIT),
    )(x, gamma, beta, p, pt)


def conv3x3_gn_silu(x, scale, shift, w3, b, add, *, add_is_row):
    n, h, wd, ci = x.shape
    co = w3.shape[-1]
    tco = _pick_co_tile(co, ci, h * wd)
    n_co = co // tco
    kern = functools.partial(conv3x3_kernel, add_is_row=add_is_row)
    in_specs = [
        pl.BlockSpec((1, h, wd, ci), lambda i, c: (i, 0, 0, 0)),
        pl.BlockSpec((1, 1, ci), lambda i, c: (i, 0, 0)),
        pl.BlockSpec((1, 1, ci), lambda i, c: (i, 0, 0)),
        pl.BlockSpec((3, 3 * ci, tco), lambda i, c: (0, 0, c)),
        pl.BlockSpec((1, tco), lambda i, c: (0, c)),
    ]
    if add_is_row:
        in_specs.append(pl.BlockSpec((1, 1, tco), lambda i, c: (i, 0, c)))
    else:
        in_specs.append(pl.BlockSpec((1, h, wd, tco), lambda i, c: (i, 0, 0, c)))
    return pl.pallas_call(
        kern,
        out_shape=jax.ShapeDtypeStruct((n, h, wd, co), ACT_DTYPE),
        grid=(n, n_co),
        in_specs=in_specs,
        out_specs=pl.BlockSpec((1, h, wd, tco), lambda i, c: (i, 0, 0, c)),
        scratch_shapes=[pltpu.VMEM((h, wd, ci), jnp.bfloat16)],
        compiler_params=pltpu.CompilerParams(
            dimension_semantics=("parallel", "parallel"),
            vmem_limit_bytes=VMEM_LIMIT),
    )(x, scale, shift, w3, b, add)


def downsample_conv(x, w3, b):
    n, h, wd, ci = x.shape
    assert h % 2 == 0 and wd % 2 == 0
    co = w3.shape[-1]
    ho, wo = h // 2, wd // 2
    tco = _pick_co_tile(co, ci, h * wd)
    n_co = co // tco
    # Fold column parity into channels (free contiguous reshape) so the kernel only
    # needs unit-stride windows -- no padded HBM copy, no strided HBM phase slices.
    xf = x.reshape(n, h, wo, 2 * ci)
    return pl.pallas_call(
        down_kernel,
        out_shape=jax.ShapeDtypeStruct((n, ho, wo, co), ACT_DTYPE),
        grid=(n, n_co),
        in_specs=[
            pl.BlockSpec((1, h, wo, 2 * ci), lambda i, c: (i, 0, 0, 0)),
            pl.BlockSpec((3, 3 * ci, tco), lambda i, c: (0, 0, c)),
            pl.BlockSpec((1, tco), lambda i, c: (0, c)),
        ],
        out_specs=pl.BlockSpec((1, ho, wo, tco), lambda i, c: (i, 0, 0, c)),
        compiler_params=pltpu.CompilerParams(
            dimension_semantics=("parallel", "parallel"),
            vmem_limit_bytes=VMEM_LIMIT),
    )(xf, w3, b)


# ----------------------------------------------------------------------------
# Module-level forward
# ----------------------------------------------------------------------------
def resnet_block_2d(x, temb_act, rp, p, pt):
    n = x.shape[0]
    co = rp["conv1_b"].shape[-1]
    # temb projection hoisted out of the conv grid (one tiny XLA matmul per block).
    tproj = (jnp.dot(temb_act, rp["time_w"]) + rp["time_b"]).reshape(n, 1, co)
    sc1, sh1 = gn_stats(x, rp["norm1_g"], rp["norm1_b"], p, pt)
    h = conv3x3_gn_silu(x, sc1, sh1, rp["conv1_w3"], rp["conv1_b"], tproj,
                        add_is_row=True)
    sc2, sh2 = gn_stats(h, rp["norm2_g"], rp["norm2_b"], p, pt)
    # dropout p=0.0 -> identity; conv_shortcut=False -> residual is the raw block input.
    return conv3x3_gn_silu(h, sc2, sh2, rp["conv2_w3"], rp["conv2_b"], x,
                           add_is_row=False)


@jax.jit
def down_block_2d(x_nchw, temb, prep):
    n, c, h, w = x_nchw.shape
    x = jnp.transpose(x_nchw, (0, 2, 3, 1)).astype(ACT_DTYPE)   # NHWC bf16
    temb_act = jax.nn.silu(temb.astype(jnp.float32))
    feats = []
    for rp in prep["resnets"]:
        x = resnet_block_2d(x, temb_act, rp, prep["p"], prep["pt"])
        feats.append(x)
    y = downsample_conv(x, prep["down_w3"], prep["down_b"])

    def to_nchw(a):
        return jnp.transpose(a, (0, 3, 1, 2)).astype(jnp.float32)

    output_states = [to_nchw(feats[0]), to_nchw(feats[1]), to_nchw(y)]
    return output_states[-1], output_states


# ----------------------------------------------------------------------------
# Parameters: deterministic init + one-time preprocessing (outside jit)
# ----------------------------------------------------------------------------
def init_params(key, channels, temb_dim=1280):
    def resnet_params(k):
        ks = jax.random.split(k, 3)
        return {
            "norm1_g": jnp.ones((channels,), jnp.float32),
            "norm1_b": jnp.zeros((channels,), jnp.float32),
            # HWIO layout; PyTorch OIHW checkpoints need w.transpose(2, 3, 1, 0).
            "conv1_w": 0.05 * jax.random.normal(ks[0], (3, 3, channels, channels), jnp.float32),
            "conv1_b": jnp.zeros((channels,), jnp.float32),
            "time_w": 0.02 * jax.random.normal(ks[1], (temb_dim, channels), jnp.float32),
            "time_b": jnp.zeros((channels,), jnp.float32),
            "norm2_g": jnp.ones((channels,), jnp.float32),
            "norm2_b": jnp.zeros((channels,), jnp.float32),
            "conv2_w": 0.05 * jax.random.normal(ks[2], (3, 3, channels, channels), jnp.float32),
            "conv2_b": jnp.zeros((channels,), jnp.float32),
        }

    k1, k2, k3 = jax.random.split(key, 3)
    return {
        "resnets": [resnet_params(k1), resnet_params(k2)],
        "down_w": 0.05 * jax.random.normal(k3, (3, 3, channels, channels), jnp.float32),
        "down_b": jnp.zeros((channels,), jnp.float32),
    }


def prepare_params(params, channels):
    """One-time weight preprocessing: cast conv weights to bf16 and concatenate the
    3 kw taps along K -> (3, 3*Ci, Co); build the (C,G) group one-hot matrices."""
    c = channels
    cg = c // NUM_GROUPS
    gid = jnp.arange(c, dtype=jnp.int32) // cg
    p = (gid[:, None] == jnp.arange(NUM_GROUPS, dtype=jnp.int32)[None, :]).astype(jnp.float32)

    def prep_conv(w):                              # (3, 3, Ci, Co) HWIO
        ci, co = w.shape[2], w.shape[3]
        return w.reshape(3, 3 * ci, co).astype(jnp.bfloat16)

    def prep_resnet(r):
        return {
            "norm1_g": r["norm1_g"].reshape(1, c).astype(jnp.float32),
            "norm1_b": r["norm1_b"].reshape(1, c).astype(jnp.float32),
            "conv1_w3": prep_conv(r["conv1_w"]),
            "conv1_b": r["conv1_b"].reshape(1, -1).astype(jnp.float32),
            "time_w": r["time_w"].astype(jnp.float32),
            "time_b": r["time_b"].astype(jnp.float32),
            "norm2_g": r["norm2_g"].reshape(1, c).astype(jnp.float32),
            "norm2_b": r["norm2_b"].reshape(1, c).astype(jnp.float32),
            "conv2_w3": prep_conv(r["conv2_w"]),
            "conv2_b": r["conv2_b"].reshape(1, -1).astype(jnp.float32),
        }

    return {
        "p": p,
        "pt": p.T,
        "resnets": [prep_resnet(r) for r in params["resnets"]],
        "down_w3": prep_conv(params["down_w"]),
        "down_b": params["down_b"].reshape(1, -1).astype(jnp.float32),
    }


# ----------------------------------------------------------------------------
if __name__ == "__main__":
    # GroupNorm(32, C) needs C % 32 == 0 and conv_shortcut=False needs in_ch == out_ch.
    # C=128 keeps the channel axis exactly one 128-wide lane group.
    N, C, H, W = 2, 128, 16, 16
    TEMB = 1280

    key = jax.random.PRNGKey(0)
    kx, kt, kp = jax.random.split(key, 3)
    x = jax.random.normal(kx, (N, C, H, W), jnp.float32)     # NCHW like PyTorch
    temb = jax.random.normal(kt, (N, TEMB), jnp.float32)
    params = init_params(kp, C, TEMB)
    prep = prepare_params(params, C)

    hidden, output_states = down_block_2d(x, temb, prep)
    hidden = jax.block_until_ready(hidden)
    for o in output_states:
        jax.block_until_ready(o)

    assert hidden.shape == (N, C, H // 2, W // 2)
    assert output_states[0].shape == (N, C, H, W)
    assert output_states[1].shape == (N, C, H, W)
    assert output_states[2].shape == (N, C, H // 2, W // 2)
    assert all(bool(jnp.isfinite(o).all()) for o in output_states)
    print("KERNEL_OK")
</pallas_src>

<mosaic_0001>
module attributes {stable_mosaic.version = 11 : i64} {
  func.func @gn_stats_kernel(%arg0: i32, %arg1: memref<1x16x16x128xbf16, #tpu.memory_space<vmem>>, %arg2: memref<1x128xf32, #tpu.memory_space<vmem>>, %arg3: memref<1x128xf32, #tpu.memory_space<vmem>>, %arg4: memref<128x32xf32, #tpu.memory_space<vmem>>, %arg5: memref<32x128xf32, #tpu.memory_space<vmem>>, %arg6: memref<1x1x128xf32, #tpu.memory_space<vmem>>, %arg7: memref<1x1x128xf32, #tpu.memory_space<vmem>>) attributes {dimension_semantics = [#tpu.dimension_semantics<parallel>], iteration_bounds = array<i64: 2>, scalar_prefetch = 0 : i64, scratch_operands = 0 : i64, tpu.core_type = #tpu.core_type<tc>, window_params = [{transform_indices = @transform_0, window_bounds = array<i64: 1, 16, 16, 128>}, {pipeline_mode = #tpu.pipeline_mode<synchronous>, transform_indices = @transform_1, window_bounds = array<i64: 1, 128>}, {pipeline_mode = #tpu.pipeline_mode<synchronous>, transform_indices = @transform_2, window_bounds = array<i64: 1, 128>}, {pipeline_mode = #tpu.pipeline_mode<synchronous>, transform_indices = @transform_3, window_bounds = array<i64: 128, 32>}, {pipeline_mode = #tpu.pipeline_mode<synchronous>, transform_indices = @transform_4, window_bounds = array<i64: 32, 128>}, {transform_indices = @transform_5, window_bounds = array<i64: 1, 1, 128>}, {transform_indices = @transform_6, window_bounds = array<i64: 1, 1, 128>}]} {
    %c0 = arith.constant 0 : index
    %c0_0 = arith.constant 0 : index
    %c0_1 = arith.constant 0 : index
    %c0_2 = arith.constant 0 : index
    %0 = vector.load %arg1[%c0, %c0_0, %c0_1, %c0_2] : memref<1x16x16x128xbf16, #tpu.memory_space<vmem>>, vector<1x16x16x128xbf16>
    %1 = vector.shape_cast %0 : vector<1x16x16x128xbf16> to vector<16x16x128xbf16>
    %2 = vector.shape_cast %1 : vector<16x16x128xbf16> to vector<256x128xbf16>
    %cst = arith.constant 1.000000e+00 : bf16
    %3 = vector.broadcast %cst : bf16 to vector<1x256xbf16>
    %cst_3 = arith.constant dense<0.000000e+00> : vector<1x128xf32>
    %4 = tpu.matmul %3, %2, %cst_3 {dimension_numbers = #tpu.dot_dimension_numbers<[1], [0], [0], [1], [0, 0, 1, 1], [], []>} : vector<1x256xbf16>, vector<256x128xbf16>, vector<1x128xf32> -> vector<1x128xf32>
    %c0_4 = arith.constant 0 : index
    %c0_5 = arith.constant 0 : index
    %5 = vector.load %arg4[%c0_4, %c0_5] : memref<128x32xf32, #tpu.memory_space<vmem>>, vector<128x32xf32>
    %cst_6 = arith.constant dense<0.000000e+00> : vector<1x32xf32>
    %6 = tpu.matmul %4, %5, %cst_6 {dimension_numbers = #tpu.dot_dimension_numbers<[1], [0], [0], [1], [0, 0, 1, 1], [], []>} : vector<1x128xf32>, vector<128x32xf32>, vector<1x32xf32> -> vector<1x32xf32>
    %cst_7 = arith.constant 9.765625E-4 : f32
    %7 = vector.broadcast %cst_7 : f32 to vector<1x32xf32>
    %8 = arith.mulf %6, %7 : vector<1x32xf32>
    %c0_8 = arith.constant 0 : index
    %c0_9 = arith.constant 0 : index
    %9 = vector.load %arg5[%c0_8, %c0_9] : memref<32x128xf32, #tpu.memory_space<vmem>>, vector<32x128xf32>
    %cst_10 = arith.constant dense<0.000000e+00> : vector<1x128xf32>
    %10 = tpu.matmul %8, %9, %cst_10 {dimension_numbers = #tpu.dot_dimension_numbers<[1], [0], [0], [1], [0, 0, 1, 1], [], []>} : vector<1x32xf32>, vector<32x128xf32>, vector<1x128xf32> -> vector<1x128xf32>
    %11 = arith.extf %2 : vector<256x128xbf16> to vector<256x128xf32>
    %12 = vector.broadcast %10 : vector<1x128xf32> to vector<256x128xf32>
    %13 = arith.subf %11, %12 : vector<256x128xf32>
    %cst_11 = arith.constant 1.000000e+00 : f32
    %14 = vector.broadcast %cst_11 : f32 to vector<1x256xf32>
    %15 = arith.mulf %13, %13 : vector<256x128xf32>
    %cst_12 = arith.constant dense<0.000000e+00> : vector<1x128xf32>
    %16 = tpu.matmul %14, %15, %cst_12 {dimension_numbers = #tpu.dot_dimension_numbers<[1], [0], [0], [1], [0, 0, 1, 1], [], []>} : vector<1x256xf32>, vector<256x128xf32>, vector<1x128xf32> -> vector<1x128xf32>
    %c0_13 = arith.constant 0 : index
    %c0_14 = arith.constant 0 : index
    %17 = vector.load %arg4[%c0_13, %c0_14] : memref<128x32xf32, #tpu.memory_space<vmem>>, vector<128x32xf32>
    %cst_15 = arith.constant dense<0.000000e+00> : vector<1x32xf32>
    %18 = tpu.matmul %16, %17, %cst_15 {dimension_numbers = #tpu.dot_dimension_numbers<[1], [0], [0], [1], [0, 0, 1, 1], [], []>} : vector<1x128xf32>, vector<128x32xf32>, vector<1x32xf32> -> vector<1x32xf32>
    %cst_16 = arith.constant 9.765625E-4 : f32
    %19 = vector.broadcast %cst_16 : f32 to vector<1x32xf32>
    %20 = arith.mulf %18, %19 : vector<1x32xf32>
    %cst_17 = arith.constant 9.99999974E-6 : f32
    %21 = vector.broadcast %cst_17 : f32 to vector<1x32xf32>
    %22 = arith.addf %20, %21 : vector<1x32xf32>
    %23 = math.rsqrt %22 : vector<1x32xf32>
    %c0_18 = arith.constant 0 : index
    %c0_19 = arith.constant 0 : index
    %24 = vector.load %arg5[%c0_18, %c0_19] : memref<32x128xf32, #tpu.memory_space<vmem>>, vector<32x128xf32>
    %cst_20 = arith.constant dense<0.000000e+00> : vector<1x128xf32>
    %25 = tpu.matmul %23, %24, %cst_20 {dimension_numbers = #tpu.dot_dimension_numbers<[1], [0], [0], [1], [0, 0, 1, 1], [], []>} : vector<1x32xf32>, vector<32x128xf32>, vector<1x128xf32> -> vector<1x128xf32>
    %c0_21 = arith.constant 0 : index
    %c0_22 = arith.constant 0 : index
    %26 = vector.load %arg2[%c0_21, %c0_22] : memref<1x128xf32, #tpu.memory_space<vmem>>, vector<1x128xf32>
    %27 = arith.mulf %26, %25 : vector<1x128xf32>
    %c0_23 = arith.constant 0 : index
    %c0_24 = arith.constant 0 : index
    %c0_25 = arith.constant 0 : index
    %28 = vector.load %arg6[%c0_23, %c0_24, %c0_25] : memref<1x1x128xf32, #tpu.memory_space<vmem>>, vector<1x1x128xf32>
    %29 = vector.shape_cast %28 : vector<1x1x128xf32> to vector<1x128xf32>
    %30 = vector.shape_cast %27 : vector<1x128xf32> to vector<1x1x128xf32>
    tpu.vector_store %arg6[%c0_23, %c0_24, %c0_25], %30 {strides = array<i32>} : memref<1x1x128xf32, #tpu.memory_space<vmem>>, vector<1x1x128xf32>,
    %c0_26 = arith.constant 0 : index
    %c0_27 = arith.constant 0 : index
    %31 = vector.load %arg3[%c0_26, %c0_27] : memref<1x128xf32, #tpu.memory_space<vmem>>, vector<1x128xf32>
    %32 = arith.mulf %10, %27 : vector<1x128xf32>
    %33 = arith.subf %31, %32 : vector<1x128xf32>
    %c0_28 = arith.constant 0 : index
    %c0_29 = arith.constant 0 : index
    %c0_30 = arith.constant 0 : index
    %34 = vector.load %arg7[%c0_28, %c0_29, %c0_30] : memref<1x1x128xf32, #tpu.memory_space<vmem>>, vector<1x1x128xf32>
    %35 = vector.shape_cast %34 : vector<1x1x128xf32> to vector<1x128xf32>
    %36 = vector.shape_cast %33 : vector<1x128xf32> to vector<1x1x128xf32>
    tpu.vector_store %arg7[%c0_28, %c0_29, %c0_30], %36 {strides = array<i32>} : memref<1x1x128xf32, #tpu.memory_space<vmem>>, vector<1x1x128xf32>,
    return
  }
  func.func @transform_0(%arg0: i32) -> (i32, i32, i32, i32) {
    %c0_i32 = arith.constant 0 : i32
    %c0_i32_0 = arith.constant 0 : i32
    %c0_i32_1 = arith.constant 0 : i32
    %c0_i32_2 = arith.constant 0 : i32
    return %arg0, %c0_i32, %c0_i32_0, %c0_i32_1 : i32, i32, i32, i32
  }
  func.func @transform_1(%arg0: i32) -> (i32, i32) {
    %c0_i32 = arith.constant 0 : i32
    %c0_i32_0 = arith.constant 0 : i32
    %c0_i32_1 = arith.constant 0 : i32
    return %c0_i32, %c0_i32_0 : i32, i32
  }
  func.func @transform_2(%arg0: i32) -> (i32, i32) {
    %c0_i32 = arith.constant 0 : i32
    %c0_i32_0 = arith.constant 0 : i32
    %c0_i32_1 = arith.constant 0 : i32
    return %c0_i32, %c0_i32_0 : i32, i32
  }
  func.func @transform_3(%arg0: i32) -> (i32, i32) {
    %c0_i32 = arith.constant 0 : i32
    %c0_i32_0 = arith.constant 0 : i32
    %c0_i32_1 = arith.constant 0 : i32
    return %c0_i32, %c0_i32_0 : i32, i32
  }
  func.func @transform_4(%arg0: i32) -> (i32, i32) {
    %c0_i32 = arith.constant 0 : i32
    %c0_i32_0 = arith.constant 0 : i32
    %c0_i32_1 = arith.constant 0 : i32
    return %c0_i32, %c0_i32_0 : i32, i32
  }
  func.func @transform_5(%arg0: i32) -> (i32, i32, i32) {
    %c0_i32 = arith.constant 0 : i32
    %c0_i32_0 = arith.constant 0 : i32
    %c0_i32_1 = arith.constant 0 : i32
    return %arg0, %c0_i32, %c0_i32_0 : i32, i32, i32
  }
  func.func @transform_6(%arg0: i32) -> (i32, i32, i32) {
    %c0_i32 = arith.constant 0 : i32
    %c0_i32_0 = arith.constant 0 : i32
    %c0_i32_1 = arith.constant 0 : i32
    return %arg0, %c0_i32, %c0_i32_0 : i32, i32, i32
  }
}

module attributes {stable_mosaic.version = 11 : i64} {
  func.func @conv3x3_kernel(%arg0: i32, %arg1: i32, %arg2: memref<1x16x16x128xbf16, #tpu.memory_space<vmem>>, %arg3: memref<1x1x128xf32, #tpu.memory_space<vmem>>, %arg4: memref<1x1x128xf32, #tpu.memory_space<vmem>>, %arg5: memref<3x384x128xbf16, #tpu.memory_space<vmem>>, %arg6: memref<1x128xf32, #tpu.memory_space<vmem>>, %arg7: memref<1x1x128xf32, #tpu.memory_space<vmem>>, %arg8: memref<1x16x16x128xbf16, #tpu.memory_space<vmem>>, %arg9: memref<16x16x128xbf16, #tpu.memory_space<vmem>>) attributes {dimension_semantics = [#tpu.dimension_semantics<parallel>, #tpu.dimension_semantics<parallel>], iteration_bounds = array<i64: 2, 1>, scalar_prefetch = 0 : i64, scratch_operands = 1 : i64, tpu.core_type = #tpu.core_type<tc>, window_params = [{transform_indices = @transform_0, window_bounds = array<i64: 1, 16, 16, 128>}, {transform_indices = @transform_1, window_bounds = array<i64: 1, 1, 128>}, {transform_indices = @transform_2, window_bounds = array<i64: 1, 1, 128>}, {transform_indices = @transform_3, window_bounds = array<i64: 3, 384, 128>}, {transform_indices = @transform_4, window_bounds = array<i64: 1, 128>}, {transform_indices = @transform_5, window_bounds = array<i64: 1, 1, 128>}, {transform_indices = @transform_6, window_bounds = array<i64: 1, 16, 16, 128>}]} {
    %c0_i32 = arith.constant 0 : i32
    %0 = arith.cmpi eq, %arg1, %c0_i32 : i32
    %1 = arith.extui %0 : i1 to i32
    %c0_i32_0 = arith.constant 0 : i32
    %2 = arith.cmpi ne, %1, %c0_i32_0 : i32
    scf.if %2 {
      %c0_24 = arith.constant 0 : index
      %c0_25 = arith.constant 0 : index
      %c0_26 = arith.constant 0 : index
      %c0_27 = arith.constant 0 : index
      %53 = vector.load %arg2[%c0_24, %c0_25, %c0_26, %c0_27] : memref<1x16x16x128xbf16, #tpu.memory_space<vmem>>, vector<1x16x16x128xbf16>
      %54 = vector.shape_cast %53 : vector<1x16x16x128xbf16> to vector<16x16x128xbf16>
      %55 = arith.extf %54 : vector<16x16x128xbf16> to vector<16x16x128xf32>
      %c0_28 = arith.constant 0 : index
      %c0_29 = arith.constant 0 : index
      %c0_30 = arith.constant 0 : index
      %56 = vector.load %arg3[%c0_28, %c0_29, %c0_30] : memref<1x1x128xf32, #tpu.memory_space<vmem>>, vector<1x1x128xf32>
      %57 = vector.broadcast %56 : vector<1x1x128xf32> to vector<16x16x128xf32>
      %58 = arith.mulf %55, %57 : vector<16x16x128xf32>
      %c0_31 = arith.constant 0 : index
      %c0_32 = arith.constant 0 : index
      %c0_33 = arith.constant 0 : index
      %59 = vector.load %arg4[%c0_31, %c0_32, %c0_33] : memref<1x1x128xf32, #tpu.memory_space<vmem>>, vector<1x1x128xf32>
      %60 = vector.broadcast %59 : vector<1x1x128xf32> to vector<16x16x128xf32>
      %61 = arith.addf %58, %60 : vector<16x16x128xf32>
      %cst_34 = arith.constant 0.000000e+00 : f32
      %62 = vector.broadcast %cst_34 : f32 to vector<16x16x128xf32>
      %63 = arith.subf %62, %61 : vector<16x16x128xf32>
      %64 = math.exp %63 : vector<16x16x128xf32>
      %cst_35 = arith.constant 1.000000e+00 : f32
      %65 = vector.broadcast %cst_35 : f32 to vector<16x16x128xf32>
      %66 = arith.addf %65, %64 : vector<16x16x128xf32>
      %67 = tpu.reciprocal %66 {approx = true} : vector<16x16x128xf32> -> vector<16x16x128xf32>
      %68 = arith.mulf %61, %67 : vector<16x16x128xf32>
      %69 = arith.truncf %68 : vector<16x16x128xf32> to vector<16x16x128xbf16>
      %c0_36 = arith.constant 0 : index
      %c0_37 = arith.constant 0 : index
      %c0_38 = arith.constant 0 : index
      %70 = vector.load %arg9[%c0_36, %c0_37, %c0_38] : memref<16x16x128xbf16, #tpu.memory_space<vmem>>, vector<16x16x128xbf16>
      tpu.vector_store %arg9[%c0_36, %c0_37, %c0_38], %69 {strides = array<i32>} : memref<16x16x128xbf16, #tpu.memory_space<vmem>>, vector<16x16x128xbf16>,
    } else {
    }
    %c0 = arith.constant 0 : index
    %c0_1 = arith.constant 0 : index
    %c0_2 = arith.constant 0 : index
    %3 = vector.load %arg9[%c0, %c0_1, %c0_2] : memref<16x16x128xbf16, #tpu.memory_space<vmem>>, vector<16x16x128xbf16>
    %cst = arith.constant 0.000000e+00 : bf16
    %4 = vector.broadcast %cst : bf16 to vector<1x16x128xbf16>
    %5 = vector.extract_strided_slice %3 {offsets = [0, 0, 0], sizes = [15, 16, 128], strides = [1, 1, 1]} : vector<16x16x128xbf16> to vector<15x16x128xbf16>
    %6 = tpu.concatenate %4, %5 in 0 : vector<1x16x128xbf16>, vector<15x16x128xbf16> -> vector<16x16x128xbf16>
    %7 = vector.extract_strided_slice %3 {offsets = [1, 0, 0], sizes = [15, 16, 128], strides = [1, 1, 1]} : vector<16x16x128xbf16> to vector<15x16x128xbf16>
    %8 = tpu.concatenate %7, %4 in 0 : vector<15x16x128xbf16>, vector<1x16x128xbf16> -> vector<16x16x128xbf16>
    %cst_3 = arith.constant 0.000000e+00 : bf16
    %9 = vector.broadcast %cst_3 : bf16 to vector<16x1x128xbf16>
    %cst_4 = arith.constant 0.000000e+00 : f32
    %10 = vector.broadcast %cst_4 : f32 to vector<256x128xf32>
    %11 = vector.extract_strided_slice %6 {offsets = [0, 0, 0], sizes = [16, 15, 128], strides = [1, 1, 1]} : vector<16x16x128xbf16> to vector<16x15x128xbf16>
    %12 = tpu.concatenate %9, %11 in 1 : vector<16x1x128xbf16>, vector<16x15x128xbf16> -> vector<16x16x128xbf16>
    %13 = vector.extract_strided_slice %6 {offsets = [0, 1, 0], sizes = [16, 15, 128], strides = [1, 1, 1]} : vector<16x16x128xbf16> to vector<16x15x128xbf16>
    %14 = tpu.concatenate %13, %9 in 1 : vector<16x15x128xbf16>, vector<16x1x128xbf16> -> vector<16x16x128xbf16>
    %15 = tpu.concatenate %12, %6, %14 in 2 : vector<16x16x128xbf16>, vector<16x16x128xbf16>, vector<16x16x128xbf16> -> vector<16x16x384xbf16>
    %16 = vector.shape_cast %15 : vector<16x16x384xbf16> to vector<256x384xbf16>
    %c0_5 = arith.constant 0 : index
    %c0_6 = arith.constant 0 : index
    %c0_7 = arith.constant 0 : index
    %17 = vector.load %arg5[%c0_5, %c0_6, %c0_7] : memref<3x384x128xbf16, #tpu.memory_space<vmem>>, vector<1x384x128xbf16>
    %18 = vector.shape_cast %17 : vector<1x384x128xbf16> to vector<384x128xbf16>
    %cst_8 = arith.constant dense<0.000000e+00> : vector<256x128xf32>
    %19 = tpu.matmul %16, %18, %cst_8 {dimension_numbers = #tpu.dot_dimension_numbers<[1], [0], [0], [1], [0, 0, 1, 1], [], []>} : vector<256x384xbf16>, vector<384x128xbf16>, vector<256x128xf32> -> vector<256x128xf32>
    %20 = arith.addf %10, %19 : vector<256x128xf32>
    %21 = vector.extract_strided_slice %3 {offsets = [0, 0, 0], sizes = [16, 15, 128], strides = [1, 1, 1]} : vector<16x16x128xbf16> to vector<16x15x128xbf16>
    %22 = tpu.concatenate %9, %21 in 1 : vector<16x1x128xbf16>, vector<16x15x128xbf16> -> vector<16x16x128xbf16>
    %23 = vector.extract_strided_slice %3 {offsets = [0, 1, 0], sizes = [16, 15, 128], strides = [1, 1, 1]} : vector<16x16x128xbf16> to vector<16x15x128xbf16>
    %24 = tpu.concatenate %23, %9 in 1 : vector<16x15x128xbf16>, vector<16x1x128xbf16> -> vector<16x16x128xbf16>
    %25 = tpu.concatenate %22, %3, %24 in 2 : vector<16x16x128xbf16>, vector<16x16x128xbf16>, vector<16x16x128xbf16> -> vector<16x16x384xbf16>
    %26 = vector.shape_cast %25 : vector<16x16x384xbf16> to vector<256x384xbf16>
    %c1 = arith.constant 1 : index
    %c0_9 = arith.constant 0 : index
    %c0_10 = arith.constant 0 : index
    %27 = vector.load %arg5[%c1, %c0_9, %c0_10] : memref<3x384x128xbf16, #tpu.memory_space<vmem>>, vector<1x384x128xbf16>
    %28 = vector.shape_cast %27 : vector<1x384x128xbf16> to vector<384x128xbf16>
    %cst_11 = arith.constant dense<0.000000e+00> : vector<256x128xf32>
    %29 = tpu.matmul %26, %28, %cst_11 {dimension_numbers = #tpu.dot_dimension_numbers<[1], [0], [0], [1], [0, 0, 1, 1], [], []>} : vector<256x384xbf16>, vector<384x128xbf16>, vector<256x128xf32> -> vector<256x128xf32>
    %30 = arith.addf %20, %29 : vector<256x128xf32>
    %31 = vector.extract_strided_slice %8 {offsets = [0, 0, 0], sizes = [16, 15, 128], strides = [1, 1, 1]} : vector<16x16x128xbf16> to vector<16x15x128xbf16>
    %32 = tpu.concatenate %9, %31 in 1 : vector<16x1x128xbf16>, vector<16x15x128xbf16> -> vector<16x16x128xbf16>
    %33 = vector.extract_strided_slice %8 {offsets = [0, 1, 0], sizes = [16, 15, 128], strides = [1, 1, 1]} : vector<16x16x128xbf16> to vector<16x15x128xbf16>
    %34 = tpu.concatenate %33, %9 in 1 : vector<16x15x128xbf16>, vector<16x1x128xbf16> -> vector<16x16x128xbf16>
    %35 = tpu.concatenate %32, %8, %34 in 2 : vector<16x16x128xbf16>, vector<16x16x128xbf16>, vector<16x16x128xbf16> -> vector<16x16x384xbf16>
    %36 = vector.shape_cast %35 : vector<16x16x384xbf16> to vector<256x384xbf16>
    %c2 = arith.constant 2 : index
    %c0_12 = arith.constant 0 : index
    %c0_13 = arith.constant 0 : index
    %37 = vector.load %arg5[%c2, %c0_12, %c0_13] : memref<3x384x128xbf16, #tpu.memory_space<vmem>>, vector<1x384x128xbf16>
    %38 = vector.shape_cast %37 : vector<1x384x128xbf16> to vector<384x128xbf16>
    %cst_14 = arith.constant dense<0.000000e+00> : vector<256x128xf32>
    %39 = tpu.matmul %36, %38, %cst_14 {dimension_numbers = #tpu.dot_dimension_numbers<[1], [0], [0], [1], [0, 0, 1, 1], [], []>} : vector<256x384xbf16>, vector<384x128xbf16>, vector<256x128xf32> -> vector<256x128xf32>
    %40 = arith.addf %30, %39 : vector<256x128xf32>
    %c0_15 = arith.constant 0 : index
    %c0_16 = arith.constant 0 : index
    %41 = vector.load %arg6[%c0_15, %c0_16] : memref<1x128xf32, #tpu.memory_space<vmem>>, vector<1x128xf32>
    %42 = vector.broadcast %41 : vector<1x128xf32> to vector<256x128xf32>
    %43 = arith.addf %40, %42 : vector<256x128xf32>
    %c0_17 = arith.constant 0 : index
    %c0_18 = arith.constant 0 : index
    %c0_19 = arith.constant 0 : index
    %44 = vector.load %arg7[%c0_17, %c0_18, %c0_19] : memref<1x1x128xf32, #tpu.memory_space<vmem>>, vector<1x1x128xf32>
    %45 = vector.shape_cast %44 : vector<1x1x128xf32> to vector<1x128xf32>
    %46 = vector.broadcast %45 : vector<1x128xf32> to vector<256x128xf32>
    %47 = arith.addf %43, %46 : vector<256x128xf32>
    %48 = vector.shape_cast %47 : vector<256x128xf32> to vector<16x16x128xf32>
    %49 = arith.truncf %48 : vector<16x16x128xf32> to vector<16x16x128xbf16>
    %c0_20 = arith.constant 0 : index
    %c0_21 = arith.constant 0 : index
    %c0_22 = arith.constant 0 : index
    %c0_23 = arith.constant 0 : index
    %50 = vector.load %arg8[%c0_20, %c0_21, %c0_22, %c0_23] : memref<1x16x16x128xbf16, #tpu.memory_space<vmem>>, vector<1x16x16x128xbf16>
    %51 = vector.shape_cast %50 : vector<1x16x16x128xbf16> to vector<16x16x128xbf16>
    %52 = vector.shape_cast %49 : vector<16x16x128xbf16> to vector<1x16x16x128xbf16>
    tpu.vector_store %arg8[%c0_20, %c0_21, %c0_22, %c0_23], %52 {strides = array<i32>} : memref<1x16x16x128xbf16, #tpu.memory_space<vmem>>, vector<1x16x16x128xbf16>,
    return
  }
  func.func @transform_0(%arg0: i32, %arg1: i32) -> (i32, i32, i32, i32) {
    %c0_i32 = arith.constant 0 : i32
    %c0_i32_0 = arith.constant 0 : i32
    %c0_i32_1 = arith.constant 0 : i32
    %c0_i32_2 = arith.constant 0 : i32
    return %arg0, %c0_i32, %c0_i32_0, %c0_i32_1 : i32, i32, i32, i32
  }
  func.func @transform_1(%arg0: i32, %arg1: i32) -> (i32, i32, i32) {
    %c0_i32 = arith.constant 0 : i32
    %c0_i32_0 = arith.constant 0 : i32
    %c0_i32_1 = arith.constant 0 : i32
    return %arg0, %c0_i32, %c0_i32_0 : i32, i32, i32
  }
  func.func @transform_2(%arg0: i32, %arg1: i32) -> (i32, i32, i32) {
    %c0_i32 = arith.constant 0 : i32
    %c0_i32_0 = arith.constant 0 : i32
    %c0_i32_1 = arith.constant 0 : i32
    return %arg0, %c0_i32, %c0_i32_0 : i32, i32, i32
  }
  func.func @transform_3(%arg0: i32, %arg1: i32) -> (i32, i32, i32) {
    %c0_i32 = arith.constant 0 : i32
    %c0_i32_0 = arith.constant 0 : i32
    %c0_i32_1 = arith.constant 0 : i32
    return %c0_i32, %c0_i32_0, %arg1 : i32, i32, i32
  }
  func.func @transform_4(%arg0: i32, %arg1: i32) -> (i32, i32) {
    %c0_i32 = arith.constant 0 : i32
    %c0_i32_0 = arith.constant 0 : i32
    return %c0_i32, %arg1 : i32, i32
  }
  func.func @transform_5(%arg0: i32, %arg1: i32) -> (i32, i32, i32) {
    %c0_i32 = arith.constant 0 : i32
    %c0_i32_0 = arith.constant 0 : i32
    return %arg0, %c0_i32, %arg1 : i32, i32, i32
  }
  func.func @transform_6(%arg0: i32, %arg1: i32) -> (i32, i32, i32, i32) {
    %c0_i32 = arith.constant 0 : i32
    %c0_i32_0 = arith.constant 0 : i32
    %c0_i32_1 = arith.constant 0 : i32
    return %arg0, %c0_i32, %c0_i32_0, %arg1 : i32, i32, i32, i32
  }
}

module attributes {stable_mosaic.version = 11 : i64} {
  func.func @conv3x3_kernel(%arg0: i32, %arg1: i32, %arg2: memref<1x16x16x128xbf16, #tpu.memory_space<vmem>>, %arg3: memref<1x1x128xf32, #tpu.memory_space<vmem>>, %arg4: memref<1x1x128xf32, #tpu.memory_space<vmem>>, %arg5: memref<3x384x128xbf16, #tpu.memory_space<vmem>>, %arg6: memref<1x128xf32, #tpu.memory_space<vmem>>, %arg7: memref<1x16x16x128xbf16, #tpu.memory_space<vmem>>, %arg8: memref<1x16x16x128xbf16, #tpu.memory_space<vmem>>, %arg9: memref<16x16x128xbf16, #tpu.memory_space<vmem>>) attributes {dimension_semantics = [#tpu.dimension_semantics<parallel>, #tpu.dimension_semantics<parallel>], iteration_bounds = array<i64: 2, 1>, scalar_prefetch = 0 : i64, scratch_operands = 1 : i64, tpu.core_type = #tpu.core_type<tc>, window_params = [{transform_indices = @transform_0, window_bounds = array<i64: 1, 16, 16, 128>}, {transform_indices = @transform_1, window_bounds = array<i64: 1, 1, 128>}, {transform_indices = @transform_2, window_bounds = array<i64: 1, 1, 128>}, {transform_indices = @transform_3, window_bounds = array<i64: 3, 384, 128>}, {transform_indices = @transform_4, window_bounds = array<i64: 1, 128>}, {transform_indices = @transform_5, window_bounds = array<i64: 1, 16, 16, 128>}, {transform_indices = @transform_6, window_bounds = array<i64: 1, 16, 16, 128>}]} {
    %c0_i32 = arith.constant 0 : i32
    %0 = arith.cmpi eq, %arg1, %c0_i32 : i32
    %1 = arith.extui %0 : i1 to i32
    %c0_i32_0 = arith.constant 0 : i32
    %2 = arith.cmpi ne, %1, %c0_i32_0 : i32
    scf.if %2 {
      %c0_25 = arith.constant 0 : index
      %c0_26 = arith.constant 0 : index
      %c0_27 = arith.constant 0 : index
      %c0_28 = arith.constant 0 : index
      %54 = vector.load %arg2[%c0_25, %c0_26, %c0_27, %c0_28] : memref<1x16x16x128xbf16, #tpu.memory_space<vmem>>, vector<1x16x16x128xbf16>
      %55 = vector.shape_cast %54 : vector<1x16x16x128xbf16> to vector<16x16x128xbf16>
      %56 = arith.extf %55 : vector<16x16x128xbf16> to vector<16x16x128xf32>
      %c0_29 = arith.constant 0 : index
      %c0_30 = arith.constant 0 : index
      %c0_31 = arith.constant 0 : index
      %57 = vector.load %arg3[%c0_29, %c0_30, %c0_31] : memref<1x1x128xf32, #tpu.memory_space<vmem>>, vector<1x1x128xf32>
      %58 = vector.broadcast %57 : vector<1x1x128xf32> to vector<16x16x128xf32>
      %59 = arith.mulf %56, %58 : vector<16x16x128xf32>
      %c0_32 = arith.constant 0 : index
      %c0_33 = arith.constant 0 : index
      %c0_34 = arith.constant 0 : index
      %60 = vector.load %arg4[%c0_32, %c0_33, %c0_34] : memref<1x1x128xf32, #tpu.memory_space<vmem>>, vector<1x1x128xf32>
      %61 = vector.broadcast %60 : vector<1x1x128xf32> to vector<16x16x128xf32>
      %62 = arith.addf %59, %61 : vector<16x16x128xf32>
      %cst_35 = arith.constant 0.000000e+00 : f32
      %63 = vector.broadcast %cst_35 : f32 to vector<16x16x128xf32>
      %64 = arith.subf %63, %62 : vector<16x16x128xf32>
      %65 = math.exp %64 : vector<16x16x128xf32>
      %cst_36 = arith.constant 1.000000e+00 : f32
      %66 = vector.broadcast %cst_36 : f32 to vector<16x16x128xf32>
      %67 = arith.addf %66, %65 : vector<16x16x128xf32>
      %68 = tpu.reciprocal %67 {approx = true} : vector<16x16x128xf32> -> vector<16x16x128xf32>
      %69 = arith.mulf %62, %68 : vector<16x16x128xf32>
      %70 = arith.truncf %69 : vector<16x16x128xf32> to vector<16x16x128xbf16>
      %c0_37 = arith.constant 0 : index
      %c0_38 = arith.constant 0 : index
      %c0_39 = arith.constant 0 : index
      %71 = vector.load %arg9[%c0_37, %c0_38, %c0_39] : memref<16x16x128xbf16, #tpu.memory_space<vmem>>, vector<16x16x128xbf16>
      tpu.vector_store %arg9[%c0_37, %c0_38, %c0_39], %70 {strides = array<i32>} : memref<16x16x128xbf16, #tpu.memory_space<vmem>>, vector<16x16x128xbf16>,
    } else {
    }
    %c0 = arith.constant 0 : index
    %c0_1 = arith.constant 0 : index
    %c0_2 = arith.constant 0 : index
    %3 = vector.load %arg9[%c0, %c0_1, %c0_2] : memref<16x16x128xbf16, #tpu.memory_space<vmem>>, vector<16x16x128xbf16>
    %cst = arith.constant 0.000000e+00 : bf16
    %4 = vector.broadcast %cst : bf16 to vector<1x16x128xbf16>
    %5 = vector.extract_strided_slice %3 {offsets = [0, 0, 0], sizes = [15, 16, 128], strides = [1, 1, 1]} : vector<16x16x128xbf16> to vector<15x16x128xbf16>
    %6 = tpu.concatenate %4, %5 in 0 : vector<1x16x128xbf16>, vector<15x16x128xbf16> -> vector<16x16x128xbf16>
    %7 = vector.extract_strided_slice %3 {offsets = [1, 0, 0], sizes = [15, 16, 128], strides = [1, 1, 1]} : vector<16x16x128xbf16> to vector<15x16x128xbf16>
    %8 = tpu.concatenate %7, %4 in 0 : vector<15x16x128xbf16>, vector<1x16x128xbf16> -> vector<16x16x128xbf16>
    %cst_3 = arith.constant 0.000000e+00 : bf16
    %9 = vector.broadcast %cst_3 : bf16 to vector<16x1x128xbf16>
    %cst_4 = arith.constant 0.000000e+00 : f32
    %10 = vector.broadcast %cst_4 : f32 to vector<256x128xf32>
    %11 = vector.extract_strided_slice %6 {offsets = [0, 0, 0], sizes = [16, 15, 128], strides = [1, 1, 1]} : vector<16x16x128xbf16> to vector<16x15x128xbf16>
    %12 = tpu.concatenate %9, %11 in 1 : vector<16x1x128xbf16>, vector<16x15x128xbf16> -> vector<16x16x128xbf16>
    %13 = vector.extract_strided_slice %6 {offsets = [0, 1, 0], sizes = [16, 15, 128], strides = [1, 1, 1]} : vector<16x16x128xbf16> to vector<16x15x128xbf16>
    %14 = tpu.concatenate %13, %9 in 1 : vector<16x15x128xbf16>, vector<16x1x128xbf16> -> vector<16x16x128xbf16>
    %15 = tpu.concatenate %12, %6, %14 in 2 : vector<16x16x128xbf16>, vector<16x16x128xbf16>, vector<16x16x128xbf16> -> vector<16x16x384xbf16>
    %16 = vector.shape_cast %15 : vector<16x16x384xbf16> to vector<256x384xbf16>
    %c0_5 = arith.constant 0 : index
    %c0_6 = arith.constant 0 : index
    %c0_7 = arith.constant 0 : index
    %17 = vector.load %arg5[%c0_5, %c0_6, %c0_7] : memref<3x384x128xbf16, #tpu.memory_space<vmem>>, vector<1x384x128xbf16>
    %18 = vector.shape_cast %17 : vector<1x384x128xbf16> to vector<384x128xbf16>
    %cst_8 = arith.constant dense<0.000000e+00> : vector<256x128xf32>
    %19 = tpu.matmul %16, %18, %cst_8 {dimension_numbers = #tpu.dot_dimension_numbers<[1], [0], [0], [1], [0, 0, 1, 1], [], []>} : vector<256x384xbf16>, vector<384x128xbf16>, vector<256x128xf32> -> vector<256x128xf32>
    %20 = arith.addf %10, %19 : vector<256x128xf32>
    %21 = vector.extract_strided_slice %3 {offsets = [0, 0, 0], sizes = [16, 15, 128], strides = [1, 1, 1]} : vector<16x16x128xbf16> to vector<16x15x128xbf16>
    %22 = tpu.concatenate %9, %21 in 1 : vector<16x1x128xbf16>, vector<16x15x128xbf16> -> vector<16x16x128xbf16>
    %23 = vector.extract_strided_slice %3 {offsets = [0, 1, 0], sizes = [16, 15, 128], strides = [1, 1, 1]} : vector<16x16x128xbf16> to vector<16x15x128xbf16>
    %24 = tpu.concatenate %23, %9 in 1 : vector<16x15x128xbf16>, vector<16x1x128xbf16> -> vector<16x16x128xbf16>
    %25 = tpu.concatenate %22, %3, %24 in 2 : vector<16x16x128xbf16>, vector<16x16x128xbf16>, vector<16x16x128xbf16> -> vector<16x16x384xbf16>
    %26 = vector.shape_cast %25 : vector<16x16x384xbf16> to vector<256x384xbf16>
    %c1 = arith.constant 1 : index
    %c0_9 = arith.constant 0 : index
    %c0_10 = arith.constant 0 : index
    %27 = vector.load %arg5[%c1, %c0_9, %c0_10] : memref<3x384x128xbf16, #tpu.memory_space<vmem>>, vector<1x384x128xbf16>
    %28 = vector.shape_cast %27 : vector<1x384x128xbf16> to vector<384x128xbf16>
    %cst_11 = arith.constant dense<0.000000e+00> : vector<256x128xf32>
    %29 = tpu.matmul %26, %28, %cst_11 {dimension_numbers = #tpu.dot_dimension_numbers<[1], [0], [0], [1], [0, 0, 1, 1], [], []>} : vector<256x384xbf16>, vector<384x128xbf16>, vector<256x128xf32> -> vector<256x128xf32>
    %30 = arith.addf %20, %29 : vector<256x128xf32>
    %31 = vector.extract_strided_slice %8 {offsets = [0, 0, 0], sizes = [16, 15, 128], strides = [1, 1, 1]} : vector<16x16x128xbf16> to vector<16x15x128xbf16>
    %32 = tpu.concatenate %9, %31 in 1 : vector<16x1x128xbf16>, vector<16x15x128xbf16> -> vector<16x16x128xbf16>
    %33 = vector.extract_strided_slice %8 {offsets = [0, 1, 0], sizes = [16, 15, 128], strides = [1, 1, 1]} : vector<16x16x128xbf16> to vector<16x15x128xbf16>
    %34 = tpu.concatenate %33, %9 in 1 : vector<16x15x128xbf16>, vector<16x1x128xbf16> -> vector<16x16x128xbf16>
    %35 = tpu.concatenate %32, %8, %34 in 2 : vector<16x16x128xbf16>, vector<16x16x128xbf16>, vector<16x16x128xbf16> -> vector<16x16x384xbf16>
    %36 = vector.shape_cast %35 : vector<16x16x384xbf16> to vector<256x384xbf16>
    %c2 = arith.constant 2 : index
    %c0_12 = arith.constant 0 : index
    %c0_13 = arith.constant 0 : index
    %37 = vector.load %arg5[%c2, %c0_12, %c0_13] : memref<3x384x128xbf16, #tpu.memory_space<vmem>>, vector<1x384x128xbf16>
    %38 = vector.shape_cast %37 : vector<1x384x128xbf16> to vector<384x128xbf16>
    %cst_14 = arith.constant dense<0.000000e+00> : vector<256x128xf32>
    %39 = tpu.matmul %36, %38, %cst_14 {dimension_numbers = #tpu.dot_dimension_numbers<[1], [0], [0], [1], [0, 0, 1, 1], [], []>} : vector<256x384xbf16>, vector<384x128xbf16>, vector<256x128xf32> -> vector<256x128xf32>
    %40 = arith.addf %30, %39 : vector<256x128xf32>
    %c0_15 = arith.constant 0 : index
    %c0_16 = arith.constant 0 : index
    %41 = vector.load %arg6[%c0_15, %c0_16] : memref<1x128xf32, #tpu.memory_space<vmem>>, vector<1x128xf32>
    %42 = vector.broadcast %41 : vector<1x128xf32> to vector<256x128xf32>
    %43 = arith.addf %40, %42 : vector<256x128xf32>
    %c0_17 = arith.constant 0 : index
    %c0_18 = arith.constant 0 : index
    %c0_19 = arith.constant 0 : index
    %c0_20 = arith.constant 0 : index
    %44 = vector.load %arg7[%c0_17, %c0_18, %c0_19, %c0_20] : memref<1x16x16x128xbf16, #tpu.memory_space<vmem>>, vector<1x16x16x128xbf16>
    %45 = vector.shape_cast %44 : vector<1x16x16x128xbf16> to vector<16x16x128xbf16>
    %46 = vector.shape_cast %45 : vector<16x16x128xbf16> to vector<256x128xbf16>
    %47 = arith.extf %46 : vector<256x128xbf16> to vector<256x128xf32>
    %48 = arith.addf %43, %47 : vector<256x128xf32>
    %49 = vector.shape_cast %48 : vector<256x128xf32> to vector<16x16x128xf32>
    %50 = arith.truncf %49 : vector<16x16x128xf32> to vector<16x16x128xbf16>
    %c0_21 = arith.constant 0 : index
    %c0_22 = arith.constant 0 : index
    %c0_23 = arith.constant 0 : index
    %c0_24 = arith.constant 0 : index
    %51 = vector.load %arg8[%c0_21, %c0_22, %c0_23, %c0_24] : memref<1x16x16x128xbf16, #tpu.memory_space<vmem>>, vector<1x16x16x128xbf16>
    %52 = vector.shape_cast %51 : vector<1x16x16x128xbf16> to vector<16x16x128xbf16>
    %53 = vector.shape_cast %50 : vector<16x16x128xbf16> to vector<1x16x16x128xbf16>
    tpu.vector_store %arg8[%c0_21, %c0_22, %c0_23, %c0_24], %53 {strides = array<i32>} : memref<1x16x16x128xbf16, #tpu.memory_space<vmem>>, vector<1x16x16x128xbf16>,
    return
  }
  func.func @transform_0(%arg0: i32, %arg1: i32) -> (i32, i32, i32, i32) {
    %c0_i32 = arith.constant 0 : i32
    %c0_i32_0 = arith.constant 0 : i32
    %c0_i32_1 = arith.constant 0 : i32
    %c0_i32_2 = arith.constant 0 : i32
    return %arg0, %c0_i32, %c0_i32_0, %c0_i32_1 : i32, i32, i32, i32
  }
  func.func @transform_1(%arg0: i32, %arg1: i32) -> (i32, i32, i32) {
    %c0_i32 = arith.constant 0 : i32
    %c0_i32_0 = arith.constant 0 : i32
    %c0_i32_1 = arith.constant 0 : i32
    return %arg0, %c0_i32, %c0_i32_0 : i32, i32, i32
  }
  func.func @transform_2(%arg0: i32, %arg1: i32) -> (i32, i32, i32) {
    %c0_i32 = arith.constant 0 : i32
    %c0_i32_0 = arith.constant 0 : i32
    %c0_i32_1 = arith.constant 0 : i32
    return %arg0, %c0_i32, %c0_i32_0 : i32, i32, i32
  }
  func.func @transform_3(%arg0: i32, %arg1: i32) -> (i32, i32, i32) {
    %c0_i32 = arith.constant 0 : i32
    %c0_i32_0 = arith.constant 0 : i32
    %c0_i32_1 = arith.constant 0 : i32
    return %c0_i32, %c0_i32_0, %arg1 : i32, i32, i32
  }
  func.func @transform_4(%arg0: i32, %arg1: i32) -> (i32, i32) {
    %c0_i32 = arith.constant 0 : i32
    %c0_i32_0 = arith.constant 0 : i32
    return %c0_i32, %arg1 : i32, i32
  }
  func.func @transform_5(%arg0: i32, %arg1: i32) -> (i32, i32, i32, i32) {
    %c0_i32 = arith.constant 0 : i32
    %c0_i32_0 = arith.constant 0 : i32
    %c0_i32_1 = arith.constant 0 : i32
    return %arg0, %c0_i32, %c0_i32_0, %arg1 : i32, i32, i32, i32
  }
  func.func @transform_6(%arg0: i32, %arg1: i32) -> (i32, i32, i32, i32) {
    %c0_i32 = arith.constant 0 : i32
    %c0_i32_0 = arith.constant 0 : i32
    %c0_i32_1 = arith.constant 0 : i32
    return %arg0, %c0_i32, %c0_i32_0, %arg1 : i32, i32, i32, i32
  }
}

module attributes {stable_mosaic.version = 11 : i64} {
  func.func @down_kernel(%arg0: i32, %arg1: i32, %arg2: memref<1x16x8x256xbf16, #tpu.memory_space<vmem>>, %arg3: memref<3x384x128xbf16, #tpu.memory_space<vmem>>, %arg4: memref<1x128xf32, #tpu.memory_space<vmem>>, %arg5: memref<1x8x8x128xbf16, #tpu.memory_space<vmem>>) attributes {dimension_semantics = [#tpu.dimension_semantics<parallel>, #tpu.dimension_semantics<parallel>], iteration_bounds = array<i64: 2, 1>, scalar_prefetch = 0 : i64, scratch_operands = 0 : i64, tpu.core_type = #tpu.core_type<tc>, window_params = [{transform_indices = @transform_0, window_bounds = array<i64: 1, 16, 8, 256>}, {transform_indices = @transform_1, window_bounds = array<i64: 3, 384, 128>}, {transform_indices = @transform_2, window_bounds = array<i64: 1, 128>}, {transform_indices = @transform_3, window_bounds = array<i64: 1, 8, 8, 128>}]} {
    %c0 = arith.constant 0 : index
    %c0_0 = arith.constant 0 : index
    %c0_1 = arith.constant 0 : index
    %c0_2 = arith.constant 0 : index
    %0 = vector.load %arg2[%c0, %c0_0, %c0_1, %c0_2] : memref<1x16x8x256xbf16, #tpu.memory_space<vmem>>, vector<1x16x8x256xbf16>
    %1 = vector.shape_cast %0 : vector<1x16x8x256xbf16> to vector<16x8x256xbf16>
    %2 = vector.shape_cast %1 : vector<16x8x256xbf16> to vector<8x2x8x256xbf16>
    %3 = vector.extract_strided_slice %2 {offsets = [0, 0, 0, 0], sizes = [8, 1, 8, 256], strides = [1, 1, 1, 1]} : vector<8x2x8x256xbf16> to vector<8x1x8x256xbf16>
    %4 = vector.shape_cast %3 : vector<8x1x8x256xbf16> to vector<8x8x256xbf16>
    %5 = vector.extract_strided_slice %2 {offsets = [0, 1, 0, 0], sizes = [8, 1, 8, 256], strides = [1, 1, 1, 1]} : vector<8x2x8x256xbf16> to vector<8x1x8x256xbf16>
    %6 = vector.shape_cast %5 : vector<8x1x8x256xbf16> to vector<8x8x256xbf16>
    %cst = arith.constant 0.000000e+00 : bf16
    %7 = vector.broadcast %cst : bf16 to vector<1x8x256xbf16>
    %8 = vector.extract_strided_slice %6 {offsets = [0, 0, 0], sizes = [7, 8, 256], strides = [1, 1, 1]} : vector<8x8x256xbf16> to vector<7x8x256xbf16>
    %9 = tpu.concatenate %7, %8 in 0 : vector<1x8x256xbf16>, vector<7x8x256xbf16> -> vector<8x8x256xbf16>
    %cst_3 = arith.constant 0.000000e+00 : bf16
    %10 = vector.broadcast %cst_3 : bf16 to vector<8x1x128xbf16>
    %cst_4 = arith.constant 0.000000e+00 : f32
    %11 = vector.broadcast %cst_4 : f32 to vector<64x128xf32>
    %12 = vector.extract_strided_slice %9 {offsets = [0, 0, 0], sizes = [8, 8, 128], strides = [1, 1, 1]} : vector<8x8x256xbf16> to vector<8x8x128xbf16>
    %13 = vector.extract_strided_slice %9 {offsets = [0, 0, 128], sizes = [8, 8, 128], strides = [1, 1, 1]} : vector<8x8x256xbf16> to vector<8x8x128xbf16>
    %14 = vector.extract_strided_slice %13 {offsets = [0, 0, 0], sizes = [8, 7, 128], strides = [1, 1, 1]} : vector<8x8x128xbf16> to vector<8x7x128xbf16>
    %15 = tpu.concatenate %10, %14 in 1 : vector<8x1x128xbf16>, vector<8x7x128xbf16> -> vector<8x8x128xbf16>
    %16 = tpu.concatenate %15, %12, %13 in 2 : vector<8x8x128xbf16>, vector<8x8x128xbf16>, vector<8x8x128xbf16> -> vector<8x8x384xbf16>
    %17 = vector.shape_cast %16 : vector<8x8x384xbf16> to vector<64x384xbf16>
    %c0_5 = arith.constant 0 : index
    %c0_6 = arith.constant 0 : index
    %c0_7 = arith.constant 0 : index
    %18 = vector.load %arg3[%c0_5, %c0_6, %c0_7] : memref<3x384x128xbf16, #tpu.memory_space<vmem>>, vector<1x384x128xbf16>
    %19 = vector.shape_cast %18 : vector<1x384x128xbf16> to vector<384x128xbf16>
    %cst_8 = arith.constant dense<0.000000e+00> : vector<64x128xf32>
    %20 = tpu.matmul %17, %19, %cst_8 {dimension_numbers = #tpu.dot_dimension_numbers<[1], [0], [0], [1], [0, 0, 1, 1], [], []>} : vector<64x384xbf16>, vector<384x128xbf16>, vector<64x128xf32> -> vector<64x128xf32>
    %21 = arith.addf %11, %20 : vector<64x128xf32>
    %22 = vector.extract_strided_slice %4 {offsets = [0, 0, 0], sizes = [8, 8, 128], strides = [1, 1, 1]} : vector<8x8x256xbf16> to vector<8x8x128xbf16>
    %23 = vector.extract_strided_slice %4 {offsets = [0, 0, 128], sizes = [8, 8, 128], strides = [1, 1, 1]} : vector<8x8x256xbf16> to vector<8x8x128xbf16>
    %24 = vector.extract_strided_slice %23 {offsets = [0, 0, 0], sizes = [8, 7, 128], strides = [1, 1, 1]} : vector<8x8x128xbf16> to vector<8x7x128xbf16>
    %25 = tpu.concatenate %10, %24 in 1 : vector<8x1x128xbf16>, vector<8x7x128xbf16> -> vector<8x8x128xbf16>
    %26 = tpu.concatenate %25, %22, %23 in 2 : vector<8x8x128xbf16>, vector<8x8x128xbf16>, vector<8x8x128xbf16> -> vector<8x8x384xbf16>
    %27 = vector.shape_cast %26 : vector<8x8x384xbf16> to vector<64x384xbf16>
    %c1 = arith.constant 1 : index
    %c0_9 = arith.constant 0 : index
    %c0_10 = arith.constant 0 : index
    %28 = vector.load %arg3[%c1, %c0_9, %c0_10] : memref<3x384x128xbf16, #tpu.memory_space<vmem>>, vector<1x384x128xbf16>
    %29 = vector.shape_cast %28 : vector<1x384x128xbf16> to vector<384x128xbf16>
    %cst_11 = arith.constant dense<0.000000e+00> : vector<64x128xf32>
    %30 = tpu.matmul %27, %29, %cst_11 {dimension_numbers = #tpu.dot_dimension_numbers<[1], [0], [0], [1], [0, 0, 1, 1], [], []>} : vector<64x384xbf16>, vector<384x128xbf16>, vector<64x128xf32> -> vector<64x128xf32>
    %31 = arith.addf %21, %30 : vector<64x128xf32>
    %32 = vector.extract_strided_slice %6 {offsets = [0, 0, 0], sizes = [8, 8, 128], strides = [1, 1, 1]} : vector<8x8x256xbf16> to vector<8x8x128xbf16>
    %33 = vector.extract_strided_slice %6 {offsets = [0, 0, 128], sizes = [8, 8, 128], strides = [1, 1, 1]} : vector<8x8x256xbf16> to vector<8x8x128xbf16>
    %34 = vector.extract_strided_slice %33 {offsets = [0, 0, 0], sizes = [8, 7, 128], strides = [1, 1, 1]} : vector<8x8x128xbf16> to vector<8x7x128xbf16>
    %35 = tpu.concatenate %10, %34 in 1 : vector<8x1x128xbf16>, vector<8x7x128xbf16> -> vector<8x8x128xbf16>
    %36 = tpu.concatenate %35, %32, %33 in 2 : vector<8x8x128xbf16>, vector<8x8x128xbf16>, vector<8x8x128xbf16> -> vector<8x8x384xbf16>
    %37 = vector.shape_cast %36 : vector<8x8x384xbf16> to vector<64x384xbf16>
    %c2 = arith.constant 2 : index
    %c0_12 = arith.constant 0 : index
    %c0_13 = arith.constant 0 : index
    %38 = vector.load %arg3[%c2, %c0_12, %c0_13] : memref<3x384x128xbf16, #tpu.memory_space<vmem>>, vector<1x384x128xbf16>
    %39 = vector.shape_cast %38 : vector<1x384x128xbf16> to vector<384x128xbf16>
    %cst_14 = arith.constant dense<0.000000e+00> : vector<64x128xf32>
    %40 = tpu.matmul %37, %39, %cst_14 {dimension_numbers = #tpu.dot_dimension_numbers<[1], [0], [0], [1], [0, 0, 1, 1], [], []>} : vector<64x384xbf16>, vector<384x128xbf16>, vector<64x128xf32> -> vector<64x128xf32>
    %41 = arith.addf %31, %40 : vector<64x128xf32>
    %c0_15 = arith.constant 0 : index
    %c0_16 = arith.constant 0 : index
    %42 = vector.load %arg4[%c0_15, %c0_16] : memref<1x128xf32, #tpu.memory_space<vmem>>, vector<1x128xf32>
    %43 = vector.broadcast %42 : vector<1x128xf32> to vector<64x128xf32>
    %44 = arith.addf %41, %43 : vector<64x128xf32>
    %45 = vector.shape_cast %44 : vector<64x128xf32> to vector<8x8x128xf32>
    %46 = arith.truncf %45 : vector<8x8x128xf32> to vector<8x8x128xbf16>
    %c0_17 = arith.constant 0 : index
    %c0_18 = arith.constant 0 : index
    %c0_19 = arith.constant 0 : index
    %c0_20 = arith.constant 0 : index
    %47 = vector.load %arg5[%c0_17, %c0_18, %c0_19, %c0_20] : memref<1x8x8x128xbf16, #tpu.memory_space<vmem>>, vector<1x8x8x128xbf16>
    %48 = vector.shape_cast %47 : vector<1x8x8x128xbf16> to vector<8x8x128xbf16>
    %49 = vector.shape_cast %46 : vector<8x8x128xbf16> to vector<1x8x8x128xbf16>
    tpu.vector_store %arg5[%c0_17, %c0_18, %c0_19, %c0_20], %49 {strides = array<i32>} : memref<1x8x8x128xbf16, #tpu.memory_space<vmem>>, vector<1x8x8x128xbf16>,
    return
  }
  func.func @transform_0(%arg0: i32, %arg1: i32) -> (i32, i32, i32, i32) {
    %c0_i32 = arith.constant 0 : i32
    %c0_i32_0 = arith.constant 0 : i32
    %c0_i32_1 = arith.constant 0 : i32
    %c0_i32_2 = arith.constant 0 : i32
    return %arg0, %c0_i32, %c0_i32_0, %c0_i32_1 : i32, i32, i32, i32
  }
  func.func @transform_1(%arg0: i32, %arg1: i32) -> (i32, i32, i32) {
    %c0_i32 = arith.constant 0 : i32
    %c0_i32_0 = arith.constant 0 : i32
    %c0_i32_1 = arith.constant 0 : i32
    return %c0_i32, %c0_i32_0, %arg1 : i32, i32, i32
  }
  func.func @transform_2(%arg0: i32, %arg1: i32) -> (i32, i32) {
    %c0_i32 = arith.constant 0 : i32
    %c0_i32_0 = arith.constant 0 : i32
    return %c0_i32, %arg1 : i32, i32
  }
  func.func @transform_3(%arg0: i32, %arg1: i32) -> (i32, i32, i32, i32) {
    %c0_i32 = arith.constant 0 : i32
    %c0_i32_0 = arith.constant 0 : i32
    %c0_i32_1 = arith.constant 0 : i32
    return %arg0, %c0_i32, %c0_i32_0, %arg1 : i32, i32, i32, i32
  }
}

</mosaic_0001>

<bundles_post_ra>
// kernel: down_block_2d.9
= control target key start
LH: loop header
LB: loop body
LE: loop exit
PB: predicated region body
PF: predicated region fallthrough
CT: control target
= control target key end

     0   :  { %s1301_s21 = smov 0   ;;  %s1650_s0 = inlined_call_operand.vmem [shape: bf16[2,16,16,128], index: 0, kind: input, shape index: {}]   ;;  %s1651_s1 = inlined_call_operand.vmem [shape: f32[1,128], index: 1, kind: input, shape index: {}]   ;;  %s1652_s2 = inlined_call_operand.vmem [shape: f32[1,128], index: 2, kind: input, shape index: {}]   ;;  %s1653_s3 = inlined_call_operand.vmem [shape: f32[128,32], index: 3, kind: input, shape index: {}]   ;;  %s1654_s4 = inlined_call_operand.vmem [shape: f32[32,128], index: 4, kind: input, shape index: {}]   ;;  %s1655_s5 = inlined_call_operand.vmem [shape: f32[2,1,128], index: 5, kind: output, shape index: {0}]   ;;  %s1656_s6 = inlined_call_operand.vmem [shape: f32[2,1,128], index: 6, kind: output, shape index: {1}]  }
   0x1 LB: > { %s987_s22 = sadd.s32 4294967295, %s1260_s21   ;;  %p991_p0 = scmp.ge.s32.totalorder %s1260_s21, 1  ;;  %s1260_s21 = sphi %s1301_s21, %s17_s21  }
   0x2   : > { %p215_p1 = scmp.lt.s32.totalorder %s1260_s21, 3 }
   0x4   : > { %p216_p2 = pnand %p991_p0, %p215_p1 }
   0x5   : > { %p246_p3 = scmp.lt.s32.totalorder (!%p216_p2), %s987_s22, 1 }
   0x6   : > { %219 = sbr.rel (%p216_p2) target bundleno = 1278 (0x4fe), region = 40 }
   0xb   : > { %v1312_v0 = vld [vmem:[%s1653_s3 + $0x78] sm:$0xff]  ;;  %v1262_v1 = vmov 1065369472   ;;  %v1263_v2 = vmov 0.0   ;;  %v1319_v3 = vld [vmem:[%s1653_s3 + $0x70] sm:$0xff]  ;;  %s1658_s22 = smov (!%p246_p3, %s987_s22), 1  ;;  %v624_v47 = vlaneseq }
   0xc   : > { %419 = vmatprep.mubr.bf16.mxu0 %v1262_v1  ;;  %1116 = vmatprep.subr.mxu1 %v1263_v2  ;;  %v1328_v4 = vld [vmem:[%s1653_s3 + $0x68] sm:$0xff]  ;;  %s1014_s29 = sshll.u32 %s1658_s22, 7  ;;  %v1341_v5 = vld [vmem:[%s1653_s3 + $0x60] sm:$0xff]  ;;  %v1360_v10 = vld [vmem:[%s1653_s3 + $0x58] sm:$0xff]  ;;  %vm1264_vm0 = vmmov 0   ;;  %vm518_vm1 = vcmask 261120   ;;  %s253_s27 = scalar_lea.vmem %s1655_s5, %s1658_s22 }
   0xd   : > { %1117 = vmatpush3.msra.mxu1 %v1312_v0  ;;  %s1335_s8 = scalar_lea.vmem %s1650_s0, %s1014_s29  ;;  %v1371_v12 = vld [vmem:[%s1653_s3 + $0x50] sm:$0xff]  ;;  %v1383_v14 = vld [vmem:[%s1653_s3 + $0x48] sm:$0xff]  ;;  %v1393_v16 = vld [vmem:[%s1653_s3 + $0x40] sm:$0xff]  ;;  %1148 = vmatprep.mubr.msk.f32.mxu1 %vm1264_vm0, %v1263_v2  ;;  %v1265_v46 = vmov 1.0   ;;  %v625_v48 = vshrl.u32 %v624_v47, 7  ;;  %s256_s9 = scalar_lea.vmem %s1656_s6, %s1658_s22 }
   0xe   : > { %1118 = vmatprep.subr.mxu1 %v1263_v2  ;;  %v1344_v6 = vld [vmem:[%s1335_s8 + $0x78] sm:$0xff]   ;;  %v1350_v8 = vld [vmem:[%s1335_s8 + $0x70] sm:$0xff]   ;;  %v1363_v11 = vld [vmem:[%s1335_s8 + $0x68] sm:$0xff]  }
   0xf   : > { %1119 = vmatpush3.msra.mxu1 %v1319_v3  ;;  %v1347_v7 = vld [vmem:[%s1335_s8 + $0x38] sm:$0xff]   ;;  %v1354_v9 = vld [vmem:[%s1335_s8 + $0x30] sm:$0xff]   ;;  %1015 = vmatprep.subr.bf16.mxu0 %v1344_v6  ;;  %v1377_v13 = vld [vmem:[%s1335_s8 + $0x28] sm:$0xff]   ;;  %v626_v49 = vsub.s32 0, %v625_v48  ;;  %v622_v50 = vunpack.c.l.bf16 %v1344_v6  ;;  %v623_v51 = vunpack.c.h.bf16 %v1344_v6  ;;  %v621_v55 = vunpack.c.h.bf16 %v1350_v8 }
  0x10   : > { %1120 = vmatprep.subr.mxu1 %v1263_v2  ;;  %1016 = vmatpush3.bf16.msra.mxu0 %v1347_v7  ;;  %v1386_v15 = vld [vmem:[%s1335_s8 + $0x60] sm:$0xff]   ;;  %v1405_v18 = vld [vmem:[%s1653_s3 + $0x38] sm:$0xff]  ;;  %v1415_v20 = vld [vmem:[%s1653_s3 + $0x30] sm:$0xff]  ;;  %v607_v52 = vunpack.c.h.bf16 %v1347_v7  ;;  %v606_v53 = vunpack.c.l.bf16 %v1347_v7  ;;  %v605_v57 = vunpack.c.h.bf16 %v1354_v9  ;;  %v620_v59 = vunpack.c.l.bf16 %v1350_v8 }
  0x11   : > { %1121 = vmatpush3.msra.mxu1 %v1328_v4  ;;  %1017 = vmatprep.subr.bf16.mxu0 %v1350_v8  ;;  %v1399_v17 = vld [vmem:[%s1335_s8 + $0x20] sm:$0xff]   ;;  %v1408_v19 = vld [vmem:[%s1335_s8 + $0x58] sm:$0xff]   ;;  %v1427_v22 = vld [vmem:[%s1653_s3 + $0x28] sm:$0xff]  ;;  %v604_v63 = vunpack.c.l.bf16 %v1354_v9  ;;  %v603_v6 = vunpack.c.h.bf16 %v1377_v13  ;;  %v618_v8 = vunpack.c.l.bf16 %v1363_v11 }
  0x12   : > { %1122 = vmatprep.subr.mxu1 %v1263_v2  ;;  %v1421_v21 = vld [vmem:[%s1335_s8 + $0x18] sm:$0xff]   ;;  %v1430_v23 = vld [vmem:[%s1335_s8 + $0x50] sm:$0xff]   ;;  %v1437_v24 = vld [vmem:[%s1653_s3 + $0x20] sm:$0xff] }
  0x13   : > { %1123 = vmatpush3.msra.mxu1 %v1341_v5  ;;  %v1443_v25 = vld [vmem:[%s1335_s8 + $0x10] sm:$0xff]   ;;  %v1449_v26 = vld [vmem:[%s1653_s3 + $0x18] sm:$0xff]  ;;  %v1452_v27 = vld [vmem:[%s1335_s8 + $0x48] sm:$0xff]   ;;  %v598_v48 = vunpack.c.l.bf16 %v1421_v21 }
  0x14   : > { %1124 = vmatprep.subr.mxu1 %v1263_v2  ;;  %1018 = vmatpush3.bf16.msra.mxu0 %v1354_v9  ;;  %v1460_v28 = vld [vmem:[%s1335_s8 + $0x8] sm:$0xff]   ;;  %v1464_v29 = vld [vmem:[%s1335_s8 + $0x40] sm:$0xff]   ;;  %v429_v31 = vld [vmem:[%s1653_s3 + $0x10] sm:$0xff]  ;;  %v602_v9 = vunpack.c.l.bf16 %v1377_v13 }
  0x15   : > { %1125 = vmatpush3.msra.mxu1 %v1360_v10  ;;  %1019 = vmatprep.subr.bf16.mxu0 %v1363_v11  ;;  %v1469_v30 = vld [vmem:[%s1335_s8] sm:$0xff]   ;;  %v428_v32 = vld [vmem:[%s1653_s3 + $0x8] sm:$0xff]  ;;  %v1494_v34 = vld [vmem:[%s1654_s4 + $0x18] sm:$0xff] }
  0x16   : > { %1126 = vmatprep.subr.mxu1 %v1263_v2  ;;  %v427_v33 = vld [vmem:[%s1653_s3] sm:$0xff]  ;;  %v1499_v35 = vld [vmem:[%s1654_s4 + $0x10] sm:$0xff]  ;;  %v1506_v36 = vld [vmem:[%s1654_s4 + $0x8] sm:$0xff] }
  0x17   : > { %1127 = vmatpush3.msra.mxu1 %v1371_v12  ;;  %v1515_v42 = vld [vmem:[%s1654_s4] sm:$0xff] }
  0x18   : > { %1128 = vmatprep.subr.mxu1 %v1263_v2  ;;  %1020 = vmatpush3.bf16.msra.mxu0 %v1377_v13 }
  0x19   : > { %1129 = vmatpush3.msra.mxu1 %v1383_v14  ;;  %1021 = vmatprep.subr.bf16.mxu0 %v1386_v15 }
  0x1a   : > { %1130 = vmatprep.subr.mxu1 %v1263_v2 }
  0x1b   : > { %1131 = vmatpush3.msra.mxu1 %v1393_v16 }
  0x1c   : > { %1132 = vmatprep.subr.mxu1 %v1263_v2  ;;  %1022 = vmatpush3.bf16.msra.mxu0 %v1399_v17 }
  0x1d   : > { %1133 = vmatpush3.msra.mxu1 %v1405_v18  ;;  %1023 = vmatprep.subr.bf16.mxu0 %v1408_v19 }
  0x1e   : > { %1134 = vmatprep.subr.mxu1 %v1263_v2 }
  0x1f   : > { %1135 = vmatpush3.msra.mxu1 %v1415_v20 }
  0x20   : > { %1136 = vmatprep.subr.mxu1 %v1263_v2  ;;  %1024 = vmatpush3.bf16.msra.mxu0 %v1421_v21 }
  0x21   : > { %1137 = vmatpush3.msra.mxu1 %v1427_v22  ;;  %1025 = vmatprep.subr.bf16.mxu0 %v1430_v23 }
  0x22   : > { %1138 = vmatprep.subr.mxu1 %v1263_v2 }
  0x23   : > { %1139 = vmatpush3.msra.mxu1 %v1437_v24 }
  0x24   : > { %1140 = vmatprep.subr.mxu1 %v1263_v2  ;;  %1026 = vmatpush3.bf16.msra.mxu0 %v1443_v25 }
  0x25   : > { %1141 = vmatpush3.msra.mxu1 %v1449_v26  ;;  %1027 = vmatprep.subr.bf16.mxu0 %v1452_v27 }
  0x26   : > { %1142 = vmatprep.subr.mxu1 %v1263_v2 }
  0x27   : > { %1143 = vmatpush3.msra.mxu1 %v429_v31 }
  0x28   : > { %1028 = vmatpush3.bf16.msra.mxu0 %v1460_v28  ;;  %1144 = vmatprep.subr.mxu1 %v1263_v2 }
  0x29   : > { %1029 = vmatprep.subr.bf16.mxu0 %v1464_v29  ;;  %1145 = vmatpush3.msra.mxu1 %v428_v32 }
  0x2a   : > { %1146 = vmatprep.subr.mxu1 %v1263_v2 }
  0x2b   : > { %1147 = vmatpush3.msra.mxu1 %v427_v33 }
  0x2c   : > { %1030 = vmatpush3.bf16.msra.mxu0 %v1469_v30 }
  0x2d   : > { %1151 = vmatprep.subr.mxu0 %v1263_v2 }
  0x2f   : > { %420 = vmatmul.mubr.bf16.vlgmr.msra.gmra.mxu0 %v1262_v1  ;;  %v619_v1 = vunpack.c.h.bf16 %v1363_v11 }
  0x30   : > { %1159 = vmatprep.mubr.msk.f32.mxu0 %vm1264_vm0, %v1263_v2  ;;  %1152 = vmatpush3.msra.mxu0 %v1494_v34 }
  0x31   : > { %1153 = vmatprep.subr.mxu0 %v1263_v2 }
  0x32   : > { %1154 = vmatpush3.msra.mxu0 %v1499_v35 }
  0x33   : > { %1155 = vmatprep.subr.mxu0 %v1263_v2 }
  0x34   : > { %1156 = vmatpush3.msra.mxu0 %v1506_v36 }
  0x35   : > { %1157 = vmatprep.subr.mxu0 %v1263_v2 }
  0x36   : > { %1158 = vmatpush3.msra.mxu0 %v1515_v42 }
  0x37   : > { %1162 = vmatprep.subr.mxu0 %v1263_v2 }
  0xef   : > { %v1031_v37 = vpop.f32.mrf.mxu0 }
  0xf1   : > { %v1032_v38 = vpop.f32.mrf.mxu0 }
  0xf2   : > { %v1033_v39 = vadd.f32 %v1032_v38, %v1031_v37 }
  0xf3   : > { %v1034_v40 = vpop.f32.mrf.mxu0 }
  0xf4   : > { %1149 = vmatmul.mubr.f32.vlgmr.msra.gmra.mxu1 %v1033_v39  ;;  %v615_v39 = vunpack.c.h.bf16 %v1408_v19 }
  0xf5   : > { %v1035_v41 = vpop.f32.mrf.mxu0  ;;  %756 = vmatprep.mubr.f32.mxu1 %v1265_v46 }
 0x1b4   : > { %v509_v43 = vpop.f32.mrf.mxu1 }
 0x1b5   : > { %v513_v44 = vmul.f32 0.0009765625, %v509_v43  ;;  %v599_v43 = vunpack.c.h.bf16 %v1421_v21 }
 0x1b6   : > { %v1150_v45 = vpop.f32.mrf.mxu1 }
 0x1b7   : > { %1160 = vmatmul.mubr.msk.f32.vlgmr.msra.gmra.mxu0 %vm518_vm1, %v513_v44  ;;  %v614_v45 = vunpack.c.l.bf16 %v1408_v19 }
 0x1b8   : > { %1163 = vmatpush3.msra.mxu0 %v1312_v0  ;;  %1194 = vmatprep.mubr.msk.f32.mxu0 %vm1264_vm0, %v1263_v2 }
 0x1b9   : > { %1164 = vmatprep.subr.mxu0 %v1263_v2 }
 0x1ba   : > { %1165 = vmatpush3.msra.mxu0 %v1319_v3 }
 0x1bb   : > { %1166 = vmatprep.subr.mxu0 %v1263_v2 }
 0x1bc   : > { %1167 = vmatpush3.msra.mxu0 %v1328_v4 }
 0x1bd   : > { %1168 = vmatprep.subr.mxu0 %v1263_v2 }
 0x1be   : > { %1169 = vmatpush3.msra.mxu0 %v1341_v5 }
 0x1bf   : > { %1170 = vmatprep.subr.mxu0 %v1263_v2 }
 0x1c0   : > { %1171 = vmatpush3.msra.mxu0 %v1360_v10 }
 0x1c1   : > { %1172 = vmatprep.subr.mxu0 %v1263_v2 }
 0x1c2   : > { %1173 = vmatpush3.msra.mxu0 %v1371_v12 }
 0x1c3   : > { %1174 = vmatprep.subr.mxu0 %v1263_v2 }
 0x1c4   : > { %1175 = vmatpush3.msra.mxu0 %v1383_v14 }
 0x1c5   : > { %1176 = vmatprep.subr.mxu0 %v1263_v2 }
 0x1c6   : > { %1177 = vmatpush3.msra.mxu0 %v1393_v16 }
 0x1c7   : > { %1178 = vmatprep.subr.mxu0 %v1263_v2 }
 0x1c8   : > { %1179 = vmatpush3.msra.mxu0 %v1405_v18  ;;  %v617_v18 = vunpack.c.h.bf16 %v1386_v15 }
 0x1c9   : > { %1180 = vmatprep.subr.mxu0 %v1263_v2 }
 0x1ca   : > { %1181 = vmatpush3.msra.mxu0 %v1415_v20 }
 0x1cb   : > { %1182 = vmatprep.subr.mxu0 %v1263_v2 }
 0x1cc   : > { %1183 = vmatpush3.msra.mxu0 %v1427_v22 }
 0x1cd   : > { %1184 = vmatprep.subr.mxu0 %v1263_v2 }
 0x1ce   : > { %1185 = vmatpush3.msra.mxu0 %v1437_v24  ;;  %v601_v24 = vunpack.c.h.bf16 %v1399_v17 }
 0x1cf   : > { %1186 = vmatprep.subr.mxu0 %v1263_v2 }
 0x1d0   : > { %1187 = vmatpush3.msra.mxu0 %v1449_v26 }
 0x1d1   : > { %1188 = vmatprep.subr.mxu0 %v1263_v2 }
 0x1d2   : > { %1189 = vmatpush3.msra.mxu0 %v429_v31  ;;  %v616_v31 = vunpack.c.l.bf16 %v1386_v15 }
 0x1d3   : > { %1190 = vmatprep.subr.mxu0 %v1263_v2 }
 0x1d4   : > { %1191 = vmatpush3.msra.mxu0 %v428_v32 }
 0x1d5   : > { %1192 = vmatprep.subr.mxu0 %v1263_v2 }
 0x1d6   : > { %1193 = vmatpush3.msra.mxu0 %v427_v33  ;;  %v600_v33 = vunpack.c.l.bf16 %v1399_v17 }
 0x277   : > { %v1555_v54 = vpop.f32.mrf.mxu0 }
 0x278   : > { %v1559_v56 = vrot.slane %v1555_v54, %v626_v49 }
 0x279   : > { %v1161_v58 = vpop.f32.mrf.mxu0 }
 0x27a   : > { %v643_v60 = vsub.f32 %v607_v52, %v1559_v56  ;;  %v658_v61 = vsub.f32 %v622_v50, %v1559_v56  ;;  %v659_v62 = vsub.f32 %v623_v51, %v1559_v56  ;;  %v642_v0 = vsub.f32 %v606_v53, %v1559_v56 }
 0x27b   : > { %v657_v5 = vsub.f32 %v621_v55, %v1559_v56  ;;  %v641_v7 = vsub.f32 %v605_v57, %v1559_v56  ;;  %v656_v12 = vsub.f32 %v620_v59, %v1559_v56  ;;  %v640_v16 = vsub.f32 %v604_v63, %v1559_v56 }
 0x27c   : > { %v675_v3 = vmul.f32 %v643_v60, %v643_v60  ;;  %v691_v4 = vmul.f32 %v659_v62, %v659_v62  ;;  %v690_v10 = vmul.f32 %v658_v61, %v658_v61  ;;  %v674_v14 = vmul.f32 %v642_v0, %v642_v0 }
 0x27d   : > { %v689_v20 = vmul.f32 %v657_v5, %v657_v5  ;;  %v655_v22 = vsub.f32 %v619_v1, %v1559_v56  ;;  %v673_v11 = vmul.f32 %v641_v7, %v641_v7  ;;  %v639_v26 = vsub.f32 %v603_v6, %v1559_v56 }
 0x27e   : > { %1059 = vmatprep.subr.mxu1 %v691_v4  ;;  %v688_v13 = vmul.f32 %v656_v12, %v656_v12  ;;  %v654_v32 = vsub.f32 %v618_v8, %v1559_v56  ;;  %v672_v37 = vmul.f32 %v640_v16, %v640_v16  ;;  %v638_v38 = vsub.f32 %v602_v9, %v1559_v56 }
 0x27f   : > { %1060 = vmatpush3.msra.mxu1 %v675_v3  ;;  %v687_v40 = vmul.f32 %v655_v22, %v655_v22  ;;  %v653_v41 = vsub.f32 %v617_v18, %v1559_v56  ;;  %v671_v15 = vmul.f32 %v639_v26, %v639_v26  ;;  %v637_v44 = vsub.f32 %v601_v24, %v1559_v56 }
 0x280   : > { %1061 = vmatprep.subr.mxu1 %v690_v10  ;;  %v686_v17 = vmul.f32 %v654_v32, %v654_v32  ;;  %v652_v47 = vsub.f32 %v616_v31, %v1559_v56  ;;  %v670_v49 = vmul.f32 %v638_v38, %v638_v38  ;;  %v636_v50 = vsub.f32 %v600_v33, %v1559_v56 }
 0x281   : > { %1062 = vmatpush3.msra.mxu1 %v674_v14  ;;  %v613_v51 = vunpack.c.h.bf16 %v1430_v23  ;;  %v685_v52 = vmul.f32 %v653_v41, %v653_v41  ;;  %v651_v53 = vsub.f32 %v615_v39, %v1559_v56  ;;  %v597_v55 = vunpack.c.h.bf16 %v1443_v25 }
 0x282   : > { %1063 = vmatprep.subr.mxu1 %v689_v20  ;;  %v669_v19 = vmul.f32 %v637_v44, %v637_v44  ;;  %v635_v57 = vsub.f32 %v599_v43, %v1559_v56  ;;  %v612_v58 = vunpack.c.l.bf16 %v1430_v23  ;;  %v684_v21 = vmul.f32 %v652_v47, %v652_v47  ;;  %v911_v47 = vld [vmem:[%s1652_s2] sm:$0x1] }
 0x283   : > { %1064 = vmatpush3.msra.mxu1 %v673_v11  ;;  %v650_v59 = vsub.f32 %v614_v45, %v1559_v56  ;;  %v596_v60 = vunpack.c.l.bf16 %v1443_v25  ;;  %v668_v61 = vmul.f32 %v636_v50, %v636_v50  ;;  %v634_v62 = vsub.f32 %v598_v48, %v1559_v56 }
 0x284   : > { %1065 = vmatprep.subr.mxu1 %v688_v13  ;;  %v611_v63 = vunpack.c.h.bf16 %v1452_v27  ;;  %v683_v0 = vmul.f32 %v651_v53, %v651_v53  ;;  %v649_v1 = vsub.f32 %v613_v51, %v1559_v56  ;;  %v595_v3 = vunpack.c.h.bf16 %v1460_v28 }
 0x285   : > { %1066 = vmatpush3.msra.mxu1 %v672_v37  ;;  %v667_v23 = vmul.f32 %v635_v57, %v635_v57  ;;  %v633_v4 = vsub.f32 %v597_v55, %v1559_v56  ;;  %v610_v5 = vunpack.c.l.bf16 %v1452_v27  ;;  %v682_v25 = vmul.f32 %v650_v59, %v650_v59 }
 0x286   : > { %1067 = vmatprep.subr.mxu1 %v687_v40  ;;  %v648_v6 = vsub.f32 %v612_v58, %v1559_v56  ;;  %v594_v7 = vunpack.c.l.bf16 %v1460_v28  ;;  %v666_v8 = vmul.f32 %v634_v62, %v634_v62  ;;  %v632_v10 = vsub.f32 %v596_v60, %v1559_v56 }
 0x287   : > { %1068 = vmatpush3.msra.mxu1 %v671_v15  ;;  %v609_v12 = vunpack.c.h.bf16 %v1464_v29  ;;  %v681_v9 = vmul.f32 %v649_v1, %v649_v1  ;;  %v647_v14 = vsub.f32 %v611_v63, %v1559_v56  ;;  %v593_v16 = vunpack.c.h.bf16 %v1469_v30 }
 0x288   : > { %1069 = vmatprep.subr.mxu1 %v686_v17  ;;  %v665_v27 = vmul.f32 %v633_v4, %v633_v4  ;;  %v631_v18 = vsub.f32 %v595_v3, %v1559_v56  ;;  %v608_v20 = vunpack.c.l.bf16 %v1464_v29  ;;  %v680_v28 = vmul.f32 %v648_v6, %v648_v6 }
 0x289   : > { %1070 = vmatpush3.msra.mxu1 %v670_v49  ;;  %v646_v22 = vsub.f32 %v610_v5, %v1559_v56  ;;  %v592_v24 = vunpack.c.l.bf16 %v1469_v30  ;;  %v664_v11 = vmul.f32 %v632_v10, %v632_v10  ;;  %v630_v26 = vsub.f32 %v594_v7, %v1559_v56 }
 0x28a   : > { %1071 = vmatprep.subr.mxu1 %v685_v52  ;;  %v679_v31 = vmul.f32 %v647_v14, %v647_v14  ;;  %v645_v13 = vsub.f32 %v609_v12, %v1559_v56  ;;  %v663_v32 = vmul.f32 %v631_v18, %v631_v18  ;;  %v629_v33 = vsub.f32 %v593_v16, %v1559_v56 }
 0x28b   : > { %1072 = vmatpush3.msra.mxu1 %v669_v19  ;;  %v678_v29 = vmul.f32 %v646_v22, %v646_v22  ;;  %v644_v37 = vsub.f32 %v608_v20, %v1559_v56  ;;  %v662_v38 = vmul.f32 %v630_v26, %v630_v26  ;;  %v628_v30 = vsub.f32 %v592_v24, %v1559_v56 }
 0x28c   : > { %1073 = vmatprep.subr.mxu1 %v684_v21  ;;  %v677_v39 = vmul.f32 %v645_v13, %v645_v13  ;;  %v661_v40 = vmul.f32 %v629_v33, %v629_v33 }
 0x28d   : > { %1074 = vmatpush3.msra.mxu1 %v668_v61  ;;  %v676_v41 = vmul.f32 %v644_v37, %v644_v37  ;;  %v660_v43 = vmul.f32 %v628_v30, %v628_v30 }
 0x28e   : > { %1075 = vmatprep.subr.mxu1 %v683_v0 }
 0x28f   : > { %1076 = vmatpush3.msra.mxu1 %v667_v23 }
 0x290   : > { %1077 = vmatprep.subr.mxu1 %v682_v25 }
 0x291   : > { %1078 = vmatpush3.msra.mxu1 %v666_v8 }
 0x292   : > { %1079 = vmatprep.subr.mxu1 %v681_v9 }
 0x293   : > { %1080 = vmatpush3.msra.mxu1 %v665_v27 }
 0x294   : > { %1081 = vmatprep.subr.mxu1 %v680_v28 }
 0x295   : > { %1082 = vmatpush3.msra.mxu1 %v664_v11 }
 0x296   : > { %1083 = vmatprep.subr.mxu1 %v679_v31 }
 0x297   : > { %1084 = vmatpush3.msra.mxu1 %v663_v32 }
 0x298   : > { %1085 = vmatprep.subr.mxu1 %v678_v29 }
 0x299   : > { %1086 = vmatpush3.msra.mxu1 %v662_v38 }
 0x29a   : > { %1087 = vmatprep.subr.mxu1 %v677_v39 }
 0x29b   : > { %1088 = vmatpush3.msra.mxu1 %v661_v40 }
 0x29c   : > { %1089 = vmatprep.subr.mxu1 %v676_v41 }
 0x29d   : > { %1090 = vmatpush3.msra.mxu1 %v660_v43 }
 0x29e   : > { %757 = vmatmul.mubr.f32.vlgmr.msra.gmra.mxu1 %v1265_v46  ;;  %1197 = vmatprep.subr.mxu1 %v1263_v2 }
 0x29f   : > { %1198 = vmatpush3.msra.mxu1 %v1494_v34  ;;  %1205 = vmatprep.mubr.msk.f32.mxu1 %vm1264_vm0, %v1263_v2 }
 0x2a0   : > { %1199 = vmatprep.subr.mxu1 %v1263_v2 }
 0x2a1   : > { %1200 = vmatpush3.msra.mxu1 %v1499_v35 }
 0x2a2   : > { %1201 = vmatprep.subr.mxu1 %v1263_v2 }
 0x2a3   : > { %1202 = vmatpush3.msra.mxu1 %v1506_v36  ;;  %v908_v36 = vld [vmem:[%s1651_s1] sm:$0x1] }
 0x2a4   : > { %1203 = vmatprep.subr.mxu1 %v1263_v2 }
 0x2a5   : > { %1204 = vmatpush3.msra.mxu1 %v1515_v42 }
 0x35e   : > { %v1091_v46 = vpop.f32.mrf.mxu1 }
 0x360   : > { %v1092_v56 = vpop.f32.mrf.mxu1 }
 0x361   : > { %v1093_v15 = vadd.f32 %v1092_v56, %v1091_v46 }
 0x363   : > { %1195 = vmatmul.mubr.f32.vlgmr.msra.gmra.mxu0 %v1093_v15 }
 0x423   : > { %v828_v34 = vpop.f32.mrf.mxu0 }
 0x424   : > { %v832_v44 = vmul.f32 0.0009765625, %v828_v34 }
 0x425   : > { %v1196_v45 = vpop.f32.mrf.mxu0 }
 0x426   : > { %v833_v17 = vadd.f32 1e-05, %v832_v44 }
 0x428   : > { %1252 = vrsqrt.f32 %v833_v17 }
 0x435   : > { %v1253_v35 = vpop.eup %1252 }
 0x436   : > { %1206 = vmatmul.mubr.msk.f32.vlgmr.msra.gmra.mxu1 %vm518_vm1, %v1253_v35 }
 0x4f6   : > { %v904_v2 = vpop.f32.mrf.mxu1 }
 0x4f7   : > { %v909_v42 = vmul.f32 %v908_v36, %v904_v2 }
 0x4f8   : > { %v1207_v48 = vpop.f32.mrf.mxu1 }
 0x4f9   : > { %910 = vst [vmem:[%s253_s27] sm:$0x1] %v909_v42  ;;  %v912_v49 = vmul.f32 %v909_v42, %v1555_v54 }
 0x4fb   : > { %v913_v50 = vsub.f32 %v911_v47, %v912_v49 }
 0x4fd   : > { %914 = vst [vmem:[%s256_s9] sm:$0x1] %v913_v50 }
 0x4fe PF: > { %s17_s21 = sadd.s32 1, %s1260_s21  }
 0x4ff   : > { %p14_p4 = scmp.ge.s32.totalorder %s17_s21, 4  }
 0x501   :  { %16 = sbr.rel (!%p14_p4) target bundleno = 1 (0x1), region = 82 }

// kernel: down_block_2d.10
= control target key start
LH: loop header
LB: loop body
LE: loop exit
PB: predicated region body
PF: predicated region fallthrough
CT: control target
= control target key end

     0   :  { %s4654_s21 = smov 0   ;;  %s4656_s22 = smov 0   ;;  %s6112_s0 = inlined_call_operand.vmem [shape: bf16[2,16,16,128], index: 0, kind: input, shape index: {}]   ;;  %s6113_s1 = inlined_call_operand.vmem [shape: f32[2,1,128], index: 1, kind: input, shape index: {}]   ;;  %s6114_s2 = inlined_call_operand.vmem [shape: f32[2,1,128], index: 2, kind: input, shape index: {}]   ;;  %s6115_s3 = inlined_call_operand.vmem [shape: bf16[3,384,128], index: 3, kind: input, shape index: {}]   ;;  %s6116_s4 = inlined_call_operand.vmem [shape: f32[1,128], index: 4, kind: input, shape index: {}]   ;;  %s6117_s5 = inlined_call_operand.vmem [shape: f32[2,1,128], index: 5, kind: input, shape index: {}]   ;;  %s6118_s6 = inlined_call_operand.vmem [shape: bf16[2,16,16,128], index: 6, kind: output, shape index: {}]  }
   0x1   :  { %s4658_s23 = smov 0  }
   0x2 LB: > { %s28_s24 = sadd.s32 1, %s4612_s22  ;;  %p3182_p0 = scmp.ge.s32.totalorder %s4616_s23, 1  ;;  %s4616_s23 = sphi %s4658_s23, %s16_s23   ;;  %s4612_s22 = sphi %s4656_s22, %s6158_s22   ;;  %s4608_s21 = sphi %s4654_s21, %s6157_s21  }
   0x3   : > { %p30_p1 = scmp.ge.s32.totalorder %s28_s24, 2  ;;  %p272_p2 = scmp.lt.s32.totalorder %s4616_s23, 3 }
   0x5   : > { %s6160_s24 = smov (%p30_p1, %s28_s24), 0  ;;  %p273_p3 = pnand %p3182_p0, %p272_p2 }
   0x7   : > { %276 = sbr.rel (%p273_p3) target bundleno = 573 (0x23d), region = 44 }
   0xc   : > { %v4370_v0 = vld [vmem:[%s6115_s3 + $0x138] sm:$0xff]   ;;  %v4372_v2 = vld [vmem:[%s6115_s3 + $0x130] sm:$0xff]   ;;  %p324_p4 = scmp.lt.s32.totalorder %s4608_s21, 1  ;;  %v4374_v4 = vld [vmem:[%s6115_s3 + $0x128] sm:$0xff]   ;;  %vm1105_vm0 = vcmask 1040384   ;;  %vm1172_vm3 = vcmask 1047552  }
   0xd   : > { %v4371_v1 = vld [vmem:[%s6115_s3 + $0xf8] sm:$0xff]   ;;  %3777 = vmatprep.subr.bf16.mxu0 %v4370_v0  ;;  %4329 = vmatprep.subr.bf16.mxu1 %v4370_v0  ;;  %v4373_v3 = vld [vmem:[%s6115_s3 + $0xf0] sm:$0xff]   ;;  %v4375_v5 = vld [vmem:[%s6115_s3 + $0xe8] sm:$0xff]   ;;  %vm1106_vm1 = vsmask.f32 256 }
   0xe   : > { %3778 = vmatpush3.bf16.msra.mxu0 %v4371_v1  ;;  %4337 = vmatpush3.bf16.msra.mxu1 %v4371_v1  ;;  %s6162_s21 = smov (!%p324_p4, %s4608_s21), 1  ;;  %v4376_v6 = vld [vmem:[%s6115_s3 + $0x120] sm:$0xff]   ;;  %v4378_v8 = vld [vmem:[%s6115_s3 + $0x118] sm:$0xff]   ;;  %v4380_v10 = vld [vmem:[%s6115_s3 + $0x110] sm:$0xff]   ;;  %vm1173_vm4 = vsmask.f32 7424 }
   0xf   : > { %3779 = vmatprep.subr.bf16.mxu0 %v4372_v2  ;;  %4330 = vmatprep.subr.bf16.mxu1 %v4372_v2  ;;  %s3442_s15 = sshll.u32 %s6162_s21, 7  ;;  %v4377_v7 = vld [vmem:[%s6115_s3 + $0xe0] sm:$0xff]   ;;  %s4713_s29 = scalar_lea.vmem %s6113_s1, %s6162_s21  ;;  %v4379_v9 = vld [vmem:[%s6115_s3 + $0xd8] sm:$0xff]   ;;  %v4381_v19 = vld [vmem:[%s6115_s3 + $0xd0] sm:$0xff]  }
  0x10   : > { %s4707_s26 = scalar_lea.vmem %s6112_s0, %s3442_s15  ;;  %s4722_s10 = scalar_lea.vmem %s6114_s2, %s6162_s21  ;;  %v4729_v12 = vld [vmem:[%s4713_s29] ss:$0 sm:$0xff]  ;;  %v4382_v22 = vld [vmem:[%s6115_s3 + $0x108] sm:$0xff]   ;;  %v4786_v53 = vld [vmem:[%s6115_s3 + $0xb8] sm:$0xff]  }
  0x11   : > { %v3509_v11 = vld [vmem:[%s4707_s26] sm:$0xff]   ;;  %v3732_v27 = vld [vmem:[%s4707_s26 + $0x8] sm:$0xff]   ;;  %v3733_v48 = vld [vmem:[%s4707_s26 + $0x10] sm:$0xff]   ;;  %s347_s8 = scalar_lea.vmem %s6117_s5, %s6162_s21  ;;  %s5943_s14 = scalar_lea.vmem %s6118_s6, %s3442_s15 }
  0x12   : > { %3780 = vmatpush3.bf16.msra.mxu0 %v4373_v3  ;;  %4338 = vmatpush3.bf16.msra.mxu1 %v4373_v3  ;;  %v3510_v13 = vunpack.c.l.bf16 %v3509_v11  ;;  %v3511_v14 = vunpack.c.h.bf16 %v3509_v11  ;;  %v3743_v15 = vld [vmem:[%s4707_s26 + $0x60] sm:$0xff]   ;;  %v3744_v28 = vld [vmem:[%s4707_s26 + $0x68] sm:$0xff]   ;;  %v3514_v31 = vunpack.c.l.bf16 %v3732_v27  ;;  %v3515_v32 = vunpack.c.h.bf16 %v3732_v27  ;;  %v4797_v57 = vld [vmem:[%s6115_s3 + $0x178] sm:$0xff]  }
  0x13   : > { %3781 = vmatprep.subr.bf16.mxu0 %v4374_v4  ;;  %4331 = vmatprep.subr.bf16.mxu1 %v4374_v4  ;;  %v4733_v16 = vld [vmem:[%s4722_s10] ss:$0 sm:$0xff]  ;;  %v3558_v17 = vunpack.c.l.bf16 %v3743_v15  ;;  %v3559_v18 = vunpack.c.h.bf16 %v3743_v15  ;;  %v4383_v33 = vld [vmem:[%s6115_s3 + $0xc8] sm:$0xff]   ;;  %v3562_v37 = vunpack.c.l.bf16 %v3744_v28  ;;  %v3563_v38 = vunpack.c.h.bf16 %v3744_v28  ;;  %v3745_v61 = vld [vmem:[%s4707_s26 + $0x70] sm:$0xff]  }
  0x14   : > { %v432_v20 = vmul.f32 %v3510_v13, %v4729_v12  ;;  %v433_v21 = vmul.f32 %v3511_v14, %v4729_v12  ;;  %v4384_v34 = vld [vmem:[%s6115_s3 + $0x100] sm:$0xff]   ;;  %v434_v41 = vmul.f32 %v3514_v31, %v4729_v12  ;;  %v435_v42 = vmul.f32 %v3515_v32, %v4729_v12  ;;  %v3734_v1 = vld [vmem:[%s4707_s26 + $0x18] sm:$0xff]   ;;  %vm4939_vm2 = vmand %vm1105_vm0, %vm1106_vm1 }
  0x15   : > { %v456_v23 = vmul.f32 %v3558_v17, %v4729_v12  ;;  %v457_v24 = vmul.f32 %v3559_v18, %v4729_v12  ;;  %v4385_v43 = vld [vmem:[%s6115_s3 + $0xc0] sm:$0xff]   ;;  %v458_v46 = vmul.f32 %v3562_v37, %v4729_v12  ;;  %v459_v47 = vmul.f32 %v3563_v38, %v4729_v12  ;;  %v3746_v17 = vld [vmem:[%s4707_s26 + $0x78] sm:$0xff]   ;;  %vm5126_vm5 = vmand %vm1172_vm3, %vm1173_vm4 }
  0x16   : > { %3782 = vmatpush3.bf16.msra.mxu0 %v4375_v5  ;;  %4339 = vmatpush3.bf16.msra.mxu1 %v4375_v5  ;;  %v4746_v25 = vadd.f32 %v4733_v16, %v432_v20  ;;  %v4749_v26 = vadd.f32 %v4733_v16, %v433_v21  ;;  %v4778_v51 = vadd.f32 %v4733_v16, %v434_v41  ;;  %v3518_v56 = vunpack.c.l.bf16 %v3733_v48  ;;  %v3735_v32 = vld [vmem:[%s4707_s26 + $0x20] sm:$0xff]  }
  0x17   : > { %3783 = vmatprep.subr.bf16.mxu0 %v4376_v6  ;;  %4332 = vmatprep.subr.bf16.mxu1 %v4376_v6  ;;  %v4754_v29 = vadd.f32 %v4733_v16, %v456_v23  ;;  %v4757_v30 = vadd.f32 %v4733_v16, %v457_v24  ;;  %v4781_v52 = vadd.f32 %v4733_v16, %v435_v42  ;;  %v3519_v60 = vunpack.c.h.bf16 %v3733_v48 }
  0x18   : > { %v503_v35 = vsub.f32 0.0, %v4746_v25  ;;  %v504_v36 = vsub.f32 0.0, %v4749_v26  ;;  %v4789_v54 = vadd.f32 %v4733_v16, %v458_v46  ;;  %v4792_v55 = vadd.f32 %v4733_v16, %v459_v47 }
  0x19   : > { %v527_v39 = vsub.f32 0.0, %v4754_v29  ;;  %v528_v40 = vsub.f32 0.0, %v4757_v30  ;;  %v505_v58 = vsub.f32 0.0, %v4778_v51  ;;  %v506_v59 = vsub.f32 0.0, %v4781_v52 }
  0x1a   : > { %3784 = vmatpush3.bf16.msra.mxu0 %v4377_v7  ;;  %4340 = vmatpush3.bf16.msra.mxu1 %v4377_v7  ;;  %v535_v44 = vmul.f32 1.442695, %v503_v35  ;;  %v537_v45 = vmul.f32 1.442695, %v504_v36  ;;  %v529_v62 = vsub.f32 0.0, %v4789_v54  ;;  %v530_v63 = vsub.f32 0.0, %v4792_v55 }
  0x1b   : > { %3785 = vmatprep.subr.bf16.mxu0 %v4378_v8  ;;  %4333 = vmatprep.subr.bf16.mxu1 %v4378_v8  ;;  %v583_v49 = vmul.f32 1.442695, %v527_v39  ;;  %v585_v50 = vmul.f32 1.442695, %v528_v40  ;;  %v436_v0 = vmul.f32 %v3518_v56, %v4729_v12  ;;  %v539_v2 = vmul.f32 1.442695, %v505_v58 }
  0x1c   : > { %4458 = vpow2.f32 %v535_v44  ;;  %v541_v3 = vmul.f32 1.442695, %v506_v59  ;;  %v437_v4 = vmul.f32 %v3519_v60, %v4729_v12  ;;  %v587_v5 = vmul.f32 1.442695, %v529_v62  ;;  %v3736_v58 = vld [vmem:[%s4707_s26 + $0x28] sm:$0xff]  }
  0x1d   : > { %4460 = vpow2.f32 %v537_v45  ;;  %v589_v6 = vmul.f32 1.442695, %v530_v63  ;;  %v4808_v7 = vadd.f32 %v4733_v16, %v436_v0  ;;  %v3566_v8 = vunpack.c.l.bf16 %v3745_v61 }
  0x1e   : > { %3786 = vmatpush3.bf16.msra.mxu0 %v4379_v9  ;;  %4341 = vmatpush3.bf16.msra.mxu1 %v4379_v9  ;;  %4462 = vpow2.f32 %v583_v49  ;;  %v4813_v9 = vadd.f32 %v4733_v16, %v437_v4  ;;  %v3522_v11 = vunpack.c.l.bf16 %v3734_v1  ;;  %v3523_v15 = vunpack.c.h.bf16 %v3734_v1 }
  0x1f   : > { %3787 = vmatprep.subr.bf16.mxu0 %v4380_v10  ;;  %4334 = vmatprep.subr.bf16.mxu1 %v4380_v10  ;;  %4464 = vpow2.f32 %v585_v50  ;;  %v3567_v10 = vunpack.c.h.bf16 %v3745_v61  ;;  %v507_v13 = vsub.f32 0.0, %v4808_v7  ;;  %v460_v14 = vmul.f32 %v3566_v8, %v4729_v12 }
  0x20   : > { %4466 = vpow2.f32 %v539_v2  ;;  %v508_v18 = vsub.f32 0.0, %v4813_v9  ;;  %v438_v20 = vmul.f32 %v3522_v11, %v4729_v12  ;;  %v439_v23 = vmul.f32 %v3523_v15, %v4729_v12 }
  0x21   : > { %4468 = vpow2.f32 %v541_v3  ;;  %v543_v21 = vmul.f32 1.442695, %v507_v13  ;;  %v3570_v31 = vunpack.c.l.bf16 %v3746_v17  ;;  %v3571_v35 = vunpack.c.h.bf16 %v3746_v17 }
  0x22   : > { %3788 = vmatpush3.bf16.msra.mxu0 %v4381_v19  ;;  %4342 = vmatpush3.bf16.msra.mxu1 %v4381_v19  ;;  %4470 = vpow2.f32 %v587_v5  ;;  %v461_v19 = vmul.f32 %v3567_v10, %v4729_v12  ;;  %v545_v24 = vmul.f32 1.442695, %v508_v18  ;;  %v4829_v28 = vadd.f32 %v4733_v16, %v438_v20 }
  0x23   : > { %3789 = vmatprep.subr.bf16.mxu0 %v4382_v22  ;;  %4335 = vmatprep.subr.bf16.mxu1 %v4382_v22  ;;  %4472 = vpow2.f32 %v589_v6  ;;  %v4822_v22 = vadd.f32 %v4733_v16, %v460_v14  ;;  %v462_v38 = vmul.f32 %v3570_v31, %v4729_v12  ;;  %v463_v41 = vmul.f32 %v3571_v35, %v4729_v12 }
  0x24   : > { %v4826_v27 = vadd.f32 %v4733_v16, %v461_v19  ;;  %4474 = vpow2.f32 %v543_v21  ;;  %v509_v37 = vsub.f32 0.0, %v4829_v28  ;;  %v3526_v42 = vunpack.c.l.bf16 %v3735_v32  ;;  %v3737_v21 = vld [vmem:[%s4707_s26 + $0x30] sm:$0xff]  }
  0x25   : > { %4476 = vpow2.f32 %v545_v24  ;;  %v4842_v46 = vadd.f32 %v4733_v16, %v462_v38  ;;  %v3527_v47 = vunpack.c.h.bf16 %v3735_v32  ;;  %v4845_v56 = vadd.f32 %v4733_v16, %v463_v41 }
  0x26   : > { %3790 = vmatpush3.bf16.msra.mxu0 %v4383_v33  ;;  %4343 = vmatpush3.bf16.msra.mxu1 %v4383_v33  ;;  %v531_v33 = vsub.f32 0.0, %v4822_v22  ;;  %v532_v36 = vsub.f32 0.0, %v4826_v27  ;;  %v547_v45 = vmul.f32 1.442695, %v509_v37  ;;  %v440_v62 = vmul.f32 %v3526_v42, %v4729_v12 }
  0x27   : > { %3791 = vmatprep.subr.bf16.mxu0 %v4384_v34  ;;  %4336 = vmatprep.subr.bf16.mxu1 %v4384_v34  ;;  %v4834_v34 = vadd.f32 %v4733_v16, %v439_v23  ;;  %v533_v61 = vsub.f32 0.0, %v4842_v46  ;;  %v534_v1 = vsub.f32 0.0, %v4845_v56  ;;  %v441_v2 = vmul.f32 %v3527_v47, %v4729_v12 }
  0x28   : > { %v591_v39 = vmul.f32 1.442695, %v531_v33  ;;  %v593_v44 = vmul.f32 1.442695, %v532_v36  ;;  %v4853_v5 = vadd.f32 %v4733_v16, %v440_v62  ;;  %v3530_v11 = vunpack.c.l.bf16 %v3736_v58  ;;  %v3738_v33 = vld [vmem:[%s4707_s26 + $0x38] sm:$0xff]  }
  0x29   : > { %v510_v40 = vsub.f32 0.0, %v4834_v34  ;;  %v595_v4 = vmul.f32 1.442695, %v533_v61  ;;  %v597_v8 = vmul.f32 1.442695, %v534_v1  ;;  %v4856_v10 = vadd.f32 %v4733_v16, %v441_v2 }
  0x2a   : > { %3792 = vmatpush3.bf16.msra.mxu0 %v4385_v43  ;;  %4344 = vmatpush3.bf16.msra.mxu1 %v4385_v43  ;;  %v4459_v43 = vpop.eup %4458  ;;  %4478 = vpow2.f32 %v591_v39  ;;  %v511_v15 = vsub.f32 0.0, %v4853_v5  ;;  %v3531_v17 = vunpack.c.h.bf16 %v3736_v58  ;;  %v442_v20 = vmul.f32 %v3530_v11, %v4729_v12 }
  0x2b   : > { %4233 = vmatprep.subr.bf16.mxu0 %v4786_v53  ;;  %4185 = vmatprep.subr.bf16.mxu1 %v4797_v57  ;;  %v4461_v48 = vpop.eup %4460  ;;  %v599_v49 = vadd.f32 1.0, %v4459_v43  ;;  %v549_v50 = vmul.f32 1.442695, %v510_v40  ;;  %4480 = vpow2.f32 %v593_v44  ;;  %v512_v31 = vsub.f32 0.0, %v4856_v10 }
  0x2c   : > { %v4463_v59 = vpop.eup %4462  ;;  %v600_v60 = vadd.f32 1.0, %v4461_v48  ;;  %v443_v32 = vmul.f32 %v3531_v17, %v4729_v12  ;;  %v551_v36 = vmul.f32 1.442695, %v511_v15  ;;  %v4865_v37 = vadd.f32 %v4733_v16, %v442_v20 }
  0x2d   : > { %v4465_v63 = vpop.eup %4464  ;;  %4482 = vrcp.f32 %v599_v49  ;;  %v623_v0 = vadd.f32 1.0, %v4463_v59  ;;  %v3534_v40 = vunpack.c.l.bf16 %v3737_v21  ;;  %v3535_v41 = vunpack.c.h.bf16 %v3737_v21 }
  0x2e   : > { %4484 = vrcp.f32 %v600_v60  ;;  %v624_v3 = vadd.f32 1.0, %v4465_v63  ;;  %v4467_v6 = vpop.eup %4466  ;;  %v4868_v39 = vadd.f32 %v4733_v16, %v443_v32  ;;  %v513_v44 = vsub.f32 0.0, %v4865_v37 }
  0x2f   : > { %4486 = vrcp.f32 %v623_v0  ;;  %v4469_v13 = vpop.eup %4468  ;;  %v601_v14 = vadd.f32 1.0, %v4467_v6  ;;  %v553_v48 = vmul.f32 1.442695, %v512_v31  ;;  %v444_v49 = vmul.f32 %v3534_v40, %v4729_v12 }
  0x30   : > { %4488 = vrcp.f32 %v624_v3  ;;  %v4471_v18 = vpop.eup %4470  ;;  %v602_v19 = vadd.f32 1.0, %v4469_v13  ;;  %v514_v58 = vsub.f32 0.0, %v4868_v39  ;;  %v445_v59 = vmul.f32 %v3535_v41, %v4729_v12 }
  0x31   : > { %4490 = vpow2.f32 %v547_v45  ;;  %v4473_v23 = vpop.eup %4472  ;;  %v625_v24 = vadd.f32 1.0, %v4471_v18  ;;  %v3538_v45 = vunpack.c.l.bf16 %v3738_v33  ;;  %v3539_v60 = vunpack.c.h.bf16 %v3738_v33 }
  0x32   : > { %4492 = vrcp.f32 %v601_v14  ;;  %v626_v35 = vadd.f32 1.0, %v4473_v23  ;;  %v4475_v38 = vpop.eup %4474  ;;  %v555_v62 = vmul.f32 1.442695, %v513_v44  ;;  %v4875_v63 = vadd.f32 %v4733_v16, %v444_v49  ;;  %v3739_v23 = vld [vmem:[%s4707_s26 + $0x40] sm:$0xff]   ;;  %v4898_v44 = vld [vmem:[%s4707_s26 + $0x48] sm:$0xff]  }
  0x33   : > { %4494 = vrcp.f32 %v602_v19  ;;  %v4477_v42 = vpop.eup %4476  ;;  %v603_v43 = vadd.f32 1.0, %v4475_v38  ;;  %v446_v0 = vmul.f32 %v3538_v45, %v4729_v12  ;;  %v447_v3 = vmul.f32 %v3539_v60, %v4729_v12 }
  0x34   : > { %4496 = vrcp.f32 %v625_v24  ;;  %v604_v47 = vadd.f32 1.0, %v4477_v42  ;;  %v515_v13 = vsub.f32 0.0, %v4875_v63  ;;  %v557_v21 = vmul.f32 1.442695, %v514_v58 }
  0x35   : > { %4498 = vrcp.f32 %v626_v35  ;;  %v4884_v14 = vadd.f32 %v4733_v16, %v446_v0  ;;  %v4889_v18 = vadd.f32 %v4733_v16, %v447_v3  ;;  %v3546_v0 = vunpack.c.l.bf16 %v4898_v44 }
  0x36   : > { %4500 = vpow2.f32 %v549_v50  ;;  %v4879_v50 = vadd.f32 %v4733_v16, %v445_v59 }
  0x37   : > { %4502 = vrcp.f32 %v603_v43  ;;  %v4479_v61 = vpop.eup %4478  ;;  %v518_v32 = vsub.f32 0.0, %v4889_v18  ;;  %v3542_v43 = vunpack.c.l.bf16 %v3739_v23 }
  0x38   : > { %4504 = vrcp.f32 %v604_v47  ;;  %v4481_v1 = vpop.eup %4480  ;;  %v627_v2 = vadd.f32 1.0, %v4479_v61 }
  0x39   : > { %4506 = vpow2.f32 %v595_v4  ;;  %v628_v11 = vadd.f32 1.0, %v4481_v1  ;;  %v516_v4 = vsub.f32 0.0, %v4879_v50 }
  0x3a   : > { %v4483_v6 = vpop.eup %4482  ;;  %4508 = vpow2.f32 %v597_v8  ;;  %v517_v8 = vsub.f32 0.0, %v4884_v14 }
  0x3b   : > { %v4485_v15 = vpop.eup %4484  ;;  %v663_v17 = vmul.f32 %v4483_v6, %v4746_v25  ;;  %4510 = vrcp.f32 %v627_v2  ;;  %v559_v25 = vmul.f32 1.442695, %v515_v13  ;;  %v561_v40 = vmul.f32 1.442695, %v516_v4 }
  0x3c   : > { %v4487_v19 = vpop.eup %4486  ;;  %v664_v20 = vmul.f32 %v4485_v15, %v4749_v26  ;;  %4512 = vrcp.f32 %v628_v11  ;;  %v563_v42 = vmul.f32 1.442695, %v517_v8  ;;  %v450_v4 = vmul.f32 %v3546_v0, %v4729_v12 }
  0x3d   : > { %v4489_v24 = vpop.eup %4488  ;;  %v687_v31 = vmul.f32 %v4487_v19, %v4754_v29  ;;  %4514 = vpow2.f32 %v551_v36  ;;  %v3543_v36 = vunpack.c.h.bf16 %v3739_v23 }
  0x3e   : > { %v4491_v33 = vpop.eup %4490  ;;  %v3575_v35 = vpack.c.bf16 %v664_v20, %v663_v17  ;;  %v688_v38 = vmul.f32 %v4489_v24, %v4757_v30  ;;  %4516 = vpow2.f32 %v553_v48  ;;  %v565_v30 = vmul.f32 1.442695, %v518_v32 }
  0x3f   : > { %v4493_v26 = vpop.eup %4492  ;;  %v605_v41 = vadd.f32 1.0, %v4491_v33  ;;  %4518 = vpow2.f32 %v555_v62  ;;  %v448_v48 = vmul.f32 %v3542_v43, %v4729_v12  ;;  %v449_v61 = vmul.f32 %v3543_v36, %v4729_v12 }
  0x40   : > { %v4495_v45 = vpop.eup %4494  ;;  %3576 = vst [vmem:[#allocation2] sm:$0xff] %v3575_v35   ;;  %v3635_v47 = vpack.c.bf16 %v688_v38, %v687_v31  ;;  %v665_v29 = vmul.f32 %v4493_v26, %v4778_v51  ;;  %4520 = vpow2.f32 %v557_v21  ;;  %v3547_v38 = vunpack.c.h.bf16 %v4898_v44 }
  0x41   : > { %v4497_v49 = vpop.eup %4496  ;;  %v666_v58 = vmul.f32 %v4495_v45, %v4781_v52  ;;  %4522 = vrcp.f32 %v605_v41  ;;  %v4908_v52 = vadd.f32 %v4733_v16, %v448_v48  ;;  %v4911_v6 = vadd.f32 %v4733_v16, %v449_v61 }
  0x42   : > { %v4499_v59 = vpop.eup %4498  ;;  %3758 = vst [vmem:[#allocation2 + $0x60] sm:$0xff] %v3635_v47   ;;  %v689_v60 = vmul.f32 %v4497_v49, %v4789_v54  ;;  %4524 = vpow2.f32 %v559_v25  ;;  %v4921_v25 = vld [vmem:[%s4707_s26 + $0x50] sm:$0xff]  }
  0x43   : > { %v4501_v1 = vpop.eup %4500  ;;  %v3580_v51 = vpack.c.bf16 %v666_v58, %v665_v29  ;;  %v690_v62 = vmul.f32 %v4499_v59, %v4792_v55  ;;  %4526 = vpow2.f32 %v561_v40  ;;  %v519_v15 = vsub.f32 0.0, %v4908_v52 }
  0x44   : > { %v4503_v2 = vpop.eup %4502  ;;  %v606_v3 = vadd.f32 1.0, %v4501_v1  ;;  %4528 = vpow2.f32 %v563_v42  ;;  %v520_v24 = vsub.f32 0.0, %v4911_v6  ;;  %v4932_v42 = vadd.f32 %v4733_v16, %v450_v4  ;;  %v4390_v1 = vld [vmem:[%s6115_s3 + $0x170] sm:$0xff]  }
  0x45   : > { %v4505_v54 = vpop.eup %4504  ;;  %3747 = vst [vmem:[#allocation2 + $0x8] sm:$0xff] %v3580_v51   ;;  %v3640_v11 = vpack.c.bf16 %v690_v62, %v689_v60  ;;  %v667_v13 = vmul.f32 %v4503_v2, %v4808_v7  ;;  %v567_v31 = vmul.f32 1.442695, %v519_v15  ;;  %v3550_v58 = vunpack.c.l.bf16 %v4921_v25  ;;  %v4394_v60 = vld [vmem:[%s6115_s3 + $0xb0] sm:$0xff]  }
  0x46   : > { %v4507_v55 = vpop.eup %4506  ;;  %v668_v17 = vmul.f32 %v4505_v54, %v4813_v9  ;;  %4530 = vrcp.f32 %v606_v3  ;;  %v569_v61 = vmul.f32 1.442695, %v520_v24 }
  0x47   : > { %v4509_v19 = vpop.eup %4508  ;;  %v4917_v20 = vld [vmem:[#allocation2] sm:$0xff]   ;;  %3759 = vst [vmem:[#allocation2 + $0x68] sm:$0xff] %v3640_v11   ;;  %v629_v21 = vadd.f32 1.0, %v4507_v55  ;;  %4532 = vpow2.f32 %v565_v30  ;;  %v452_v24 = vmul.f32 %v3550_v58, %v4729_v12 }
  0x48   : > { %v4511_v8 = vpop.eup %4510  ;;  %v3585_v23 = vpack.c.bf16 %v668_v17, %v667_v13  ;;  %v630_v7 = vadd.f32 1.0, %v4509_v19  ;;  %1483 = vmatprep.mubr.bf16.mxu0 %v4917_v20  ;;  %v985_v33 = vshrl.u32 %v4917_v20, 16  ;;  %v988_v26 = vshll.u32 %v4917_v20, 16  ;;  %v4402_v19 = vld [vmem:[%s6115_s3 + $0xa8] sm:$0xff]  }
  0x49   : > { %v4513_v32 = vpop.eup %4512  ;;  %v4924_v9 = vld [vmem:[#allocation2 + $0x60] sm:$0xff]   ;;  %v691_v35 = vmul.f32 %v4511_v8, %v4822_v22  ;;  %4534 = vrcp.f32 %v629_v21  ;;  %v3551_v13 = vunpack.c.h.bf16 %v4921_v25  ;;  %v451_v21 = vmul.f32 %v3547_v38, %v4729_v12 }
  0x4a   : > { %v4515_v40 = vpop.eup %4514  ;;  %3748 = vst [vmem:[#allocation2 + $0x10] sm:$0xff] %v3585_v23   ;;  %v692_v41 = vmul.f32 %v4513_v32, %v4826_v27  ;;  %4536 = vrcp.f32 %v630_v7  ;;  %1579 = vmatprep.mubr.bf16.mxu1 %v4924_v9  ;;  %v987_v45 = vrot.slane %v985_v33, 7  ;;  %v1069_v44 = vshrl.u32 %v4924_v9, 16 }
  0x4b   : > { %v4517_v43 = vpop.eup %4516  ;;  %v1072_v27 = vshll.u32 %v4924_v9, 16  ;;  %v607_v47 = vadd.f32 1.0, %v4515_v40  ;;  %4538 = vpow2.f32 %v567_v31  ;;  %v521_v7 = vsub.f32 0.0, %v4932_v42 }
  0x4c   : > { %v4945_v29 = vld [vmem:[#allocation2 + $0x8] sm:$0xff]   ;;  %v3645_v36 = vpack.c.bf16 %v692_v41, %v691_v35  ;;  %v608_v49 = vadd.f32 1.0, %v4517_v43  ;;  %v4519_v30 = vpop.eup %4518  ;;  %v990_v48 = vor.u32 %v988_v26, %v987_v45  ;;  %v1071_v59 = vrot.slane %v1069_v44, 7 }
  0x4d   : > { %4540 = vrcp.f32 %v607_v47  ;;  %v4521_v0 = vpop.eup %4520  ;;  %v992_v62 = vshrl.u32 %v4945_v29, 16  ;;  %v995_v11 = vshll.u32 %v4945_v29, 16  ;;  %v609_v38 = vadd.f32 1.0, %v4519_v30 }
  0x4e   : > { %v4956_v51 = vld [vmem:[#allocation2 + $0x68] sm:$0xff]   ;;  %3760 = vst [vmem:[#allocation2 + $0x70] sm:$0xff] %v3645_v36   ;;  %4542 = vrcp.f32 %v608_v49  ;;  %v4523_v2 = vpop.eup %4522  ;;  %v4961_v3 = vsel %vm4939_vm2, 0, %v990_v48  ;;  %v1074_v54 = vor.u32 %v1072_v27, %v1071_v59  ;;  %v610_v43 = vadd.f32 1.0, %v4521_v0 }
  0x4f   : > { %v4525_v15 = vpop.eup %4524  ;;  %1484 = vmatmul.mubr.bf16.vlgmr.msra.gmra.mxu0 %v4961_v3  ;;  %v994_v55 = vrot.slane %v992_v62, 7  ;;  %v1076_v17 = vshrl.u32 %v4956_v51, 16  ;;  %v1079_v4 = vshll.u32 %v4956_v51, 16  ;;  %4544 = vpow2.f32 %v569_v61 }
  0x50   : > { %v4527_v8 = vpop.eup %4526  ;;  %v4978_v23 = vsel %vm4939_vm2, 0, %v1074_v54  ;;  %4234 = vmatpush3.bf16.msra.mxu0 %v4786_v53  ;;  %1491 = vmatprep.mubr.bf16.mxu0 %v4945_v29  ;;  %v4991_v53 = vrot.slane %v988_v26, 1  ;;  %v669_v41 = vmul.f32 %v4523_v2, %v4829_v28  ;;  %v611_v45 = vadd.f32 1.0, %v4525_v15  ;;  %v4393_v26 = vld [vmem:[%s6115_s3 + $0x168] sm:$0xff]   ;;  %v4395_v2 = vld [vmem:[%s6115_s3 + $0x160] sm:$0xff]  }
  0x51   : > { %v4529_v31 = vpop.eup %4528  ;;  %1580 = vmatmul.mubr.bf16.vlgmr.msra.gmra.mxu1 %v4978_v23  ;;  %v997_v25 = vor.u32 %v995_v11, %v994_v55  ;;  %v1078_v32 = vrot.slane %v1076_v17, 7  ;;  %4235 = vmatprep.subr.bf16.mxu0 %v4394_v60  ;;  %v4989_v35 = vld [vmem:[#allocation2 + $0x10] sm:$0xff]   ;;  %v453_v47 = vmul.f32 %v3551_v13, %v4729_v12  ;;  %v612_v30 = vadd.f32 1.0, %v4527_v8  ;;  %v5030_v13 = vld [vmem:[%s4707_s26 + $0x58] sm:$0xff]  }
  0x52   : > { %4186 = vmatpush3.bf16.msra.mxu1 %v4797_v57  ;;  %1587 = vmatprep.mubr.bf16.mxu1 %v4956_v51  ;;  %v999_v58 = vshrl.u32 %v4989_v35, 16  ;;  %v1002_v57 = vshll.u32 %v4989_v35, 16  ;;  %4546 = vrcp.f32 %v609_v38  ;;  %v5012_v59 = vadd.f32 %v4733_v16, %v451_v21 }
  0x53   : > { %v4531_v40 = vpop.eup %4530  ;;  %4187 = vmatprep.subr.bf16.mxu1 %v4390_v1  ;;  %v1081_v49 = vor.u32 %v1079_v4, %v1078_v32  ;;  %v5006_v28 = vsel %vm4939_vm2, 0, %v997_v25  ;;  %4548 = vrcp.f32 %v610_v43  ;;  %v5027_v54 = vadd.f32 %v4733_v16, %v452_v24 }
  0x54   : > { %v4533_v36 = vpop.eup %4532  ;;  %4236 = vmatpush3.bf16.msra.mxu0 %v4394_v60  ;;  %v670_v48 = vmul.f32 %v4531_v40, %v4834_v34  ;;  %v1001_v60 = vrot.slane %v999_v58, 7  ;;  %v4408_v34 = vld [vmem:[%s6115_s3 + $0xa0] sm:$0xff]   ;;  %4550 = vrcp.f32 %v611_v45  ;;  %v5040_v38 = vadd.f32 %v4733_v16, %v453_v47  ;;  %v4413_v45 = vld [vmem:[%s6115_s3 + $0x98] sm:$0xff]  }
  0x55   : > { %v5008_v12 = vld [vmem:[#allocation2 + $0x70] sm:$0xff]   ;;  %v5016_v0 = vsel %vm4939_vm2, 0, %v1081_v49  ;;  %4237 = vmatprep.subr.bf16.mxu0 %v4402_v19  ;;  %4552 = vrcp.f32 %v612_v30  ;;  %v522_v30 = vsub.f32 0.0, %v5012_v59 }
  0x56   : > { %v4535_v61 = vpop.eup %4534  ;;  %4188 = vmatpush3.bf16.msra.mxu1 %v4390_v1  ;;  %v1083_v55 = vshrl.u32 %v5008_v12, 16  ;;  %v1086_v21 = vshll.u32 %v5008_v12, 16  ;;  %v3590_v8 = vpack.c.bf16 %v670_v48, %v669_v41  ;;  %v1004_v32 = vor.u32 %v1002_v57, %v1001_v60  ;;  %v4398_v48 = vld [vmem:[%s6115_s3 + $0x158] sm:$0xff]  }
  0x57   : > { %v4537_v15 = vpop.eup %4536  ;;  %v693_v25 = vmul.f32 %v4535_v61, %v4842_v46  ;;  %1492 = vmatmul.mubr.bf16.gmra.mxu0 %v5006_v28  ;;  %4189 = vmatprep.subr.bf16.mxu1 %v4393_v26  ;;  %v613_v46 = vadd.f32 1.0, %v4529_v31  ;;  %v614_v41 = vadd.f32 1.0, %v4533_v36  ;;  %v523_v60 = vsub.f32 0.0, %v5027_v54 }
  0x58   : > { %v694_v24 = vmul.f32 %v4537_v15, %v4845_v56  ;;  %v4539_v1 = vpop.eup %4538  ;;  %1499 = vmatprep.mubr.bf16.mxu0 %v4989_v35  ;;  %v1085_v40 = vrot.slane %v1083_v55, 7  ;;  %3749 = vst [vmem:[#allocation2 + $0x18] sm:$0xff] %v3590_v8   ;;  %4238 = vmatpush3.bf16.msra.mxu0 %v4402_v19  ;;  %v5048_v56 = vsel %vm4939_vm2, 0, %v1004_v32  ;;  %v3554_v19 = vunpack.c.l.bf16 %v5030_v13 }
  0x59   : > { %1588 = vmatmul.mubr.bf16.gmra.mxu1 %v5016_v0  ;;  %4239 = vmatprep.subr.bf16.mxu0 %v4408_v34  ;;  %v615_v47 = vadd.f32 1.0, %v4539_v1  ;;  %4554 = vrcp.f32 %v613_v46  ;;  %v573_v15 = vmul.f32 1.442695, %v522_v30  ;;  %v524_v8 = vsub.f32 0.0, %v5040_v38  ;;  %v4586_v46 = vld [vmem:[%s4713_s29] ss:$0 sm:$0xff] }
  0x5a   : > { %v4541_v43 = vpop.eup %4540  ;;  %v3650_v16 = vpack.c.bf16 %v694_v24, %v693_v25  ;;  %4190 = vmatpush3.bf16.msra.mxu1 %v4393_v26  ;;  %1595 = vmatprep.mubr.bf16.mxu1 %v5008_v12  ;;  %v1088_v36 = vor.u32 %v1086_v21, %v1085_v40  ;;  %4556 = vrcp.f32 %v614_v41  ;;  %v571_v26 = vmul.f32 1.442695, %v521_v7 }
  0x5b   : > { %v4543_v31 = vpop.eup %4542  ;;  %v671_v49 = vmul.f32 %v4541_v43, %v4853_v5  ;;  %4191 = vmatprep.subr.bf16.mxu1 %v4395_v2  ;;  %4558 = vrcp.f32 %v615_v47  ;;  %v575_v7 = vmul.f32 1.442695, %v523_v60  ;;  %v3555_v24 = vunpack.c.h.bf16 %v5030_v13  ;;  %v4587_v47 = vld [vmem:[%s4722_s10] ss:$0 sm:$0xff] }
  0x5c   : > { %3761 = vst [vmem:[#allocation2 + $0x78] sm:$0xff] %v3650_v16   ;;  %v672_v61 = vmul.f32 %v4543_v31, %v4856_v10  ;;  %v5068_v5 = vsel %vm4939_vm2, 0, %v1088_v36  ;;  %4240 = vmatpush3.bf16.msra.mxu0 %v4408_v34  ;;  %v4545_v25 = vpop.eup %4544  ;;  %v4399_v10 = vld [vmem:[%s6115_s3 + $0x150] sm:$0xff]   ;;  %4560 = vpow2.f32 %v571_v26  ;;  %v577_v40 = vmul.f32 1.442695, %v524_v8 }
  0x5d   : > { %4241 = vmatprep.subr.bf16.mxu0 %v4413_v45  ;;  %v4419_v34 = vld [vmem:[%s6115_s3 + $0x90] sm:$0xff]   ;;  %v616_v1 = vadd.f32 1.0, %v4545_v25  ;;  %4562 = vpow2.f32 %v573_v15  ;;  %v454_v41 = vmul.f32 %v4586_v46, %v3554_v19  ;;  %v455_v13 = vmul.f32 %v4586_v46, %v3555_v24 }
  0x5e   : > { %v3595_v32 = vpack.c.bf16 %v672_v61, %v671_v49  ;;  %4192 = vmatpush3.bf16.msra.mxu1 %v4395_v2  ;;  %4564 = vpow2.f32 %v575_v7  ;;  %v5085_v2 = vld [vmem:[%s6115_s3 + $0x88] sm:$0xff]   ;;  %v1150_v16 = vrot.slane %v1072_v27, 1  ;;  %v1152_v31 = vrot.slane %v1079_v4, 1 }
  0x5f   : > { %1500 = vmatmul.mubr.bf16.gmra.mxu0 %v5048_v56  ;;  %4193 = vmatprep.subr.bf16.mxu1 %v4398_v48  ;;  %v5080_v43 = vld [vmem:[#allocation2 + $0x18] sm:$0xff]   ;;  %4566 = vrcp.f32 %v616_v1  ;;  %v5090_v19 = vadd.f32 %v4587_v47, %v454_v41  ;;  %v1154_v36 = vrot.slane %v1086_v21, 1  ;;  %v4547_v49 = vpop.eup %4546  ;;  %v1127_v1 = vor.u32 %v4991_v53, %v985_v33  ;;  %v4404_v53 = vld [vmem:[%s6115_s3 + $0x140] sm:$0xff]  }
  0x60   : > { %3750 = vst [vmem:[#allocation2 + $0x20] sm:$0xff] %v3595_v32   ;;  %4242 = vmatpush3.bf16.msra.mxu0 %v4413_v45  ;;  %1507 = vmatprep.mubr.bf16.mxu0 %v5080_v43  ;;  %v1006_v30 = vshrl.u32 %v5080_v43, 16  ;;  %v1009_v27 = vshll.u32 %v5080_v43, 16  ;;  %4568 = vpow2.f32 %v577_v40  ;;  %v5100_v45 = vadd.f32 %v4587_v47, %v455_v13  ;;  %v4549_v61 = vpop.eup %4548 }
  0x61   : > { %1596 = vmatmul.mubr.bf16.gmra.mxu1 %v5068_v5  ;;  %v673_v4 = vmul.f32 %v4547_v49, %v4865_v37  ;;  %4243 = vmatprep.subr.bf16.mxu0 %v4419_v34  ;;  %v525_v21 = vsub.f32 0.0, %v5090_v19  ;;  %v5108_v60 = vor.u32 %v1150_v16, %v1069_v44  ;;  %v5112_v15 = vor.u32 %v1152_v31, %v1076_v17  ;;  %v4551_v32 = vpop.eup %4550 }
  0x62   : > { %4194 = vmatpush3.bf16.msra.mxu1 %v4398_v48  ;;  %v1008_v8 = vrot.slane %v1006_v30, 7  ;;  %v4403_v48 = vld [vmem:[%s6115_s3 + $0x148] sm:$0xff]   ;;  %v674_v37 = vmul.f32 %v4549_v61, %v4868_v39  ;;  %v526_v25 = vsub.f32 0.0, %v5100_v45  ;;  %v4431_v39 = vld [vmem:[%s6115_s3 + $0x80] sm:$0xff]   ;;  %v4553_v7 = vpop.eup %4552  ;;  %v675_v46 = vmul.f32 %v4551_v32, %v4875_v63 }
  0x63   : > { %v5102_v26 = vld [vmem:[#allocation2 + $0x78] sm:$0xff]   ;;  %4195 = vmatprep.subr.bf16.mxu1 %v4399_v10  ;;  %v579_v17 = vmul.f32 1.442695, %v525_v21  ;;  %v676_v13 = vmul.f32 %v4553_v7, %v4879_v50  ;;  %v5147_v16 = vor.u32 %v1154_v36, %v1083_v55  ;;  %v1128_v33 = vrot.slane %v995_v11, 1 }
  0x64   : > { %1603 = vmatprep.mubr.bf16.mxu1 %v5102_v26  ;;  %v1245_v9 = vshrl.u32 %v5102_v26, 16  ;;  %v1248_v44 = vshll.u32 %v5102_v26, 16  ;;  %4244 = vmatpush3.bf16.msra.mxu0 %v4419_v34  ;;  %v1011_v24 = vor.u32 %v1009_v27, %v1008_v8  ;;  %v3600_v40 = vpack.c.bf16 %v674_v37, %v673_v4  ;;  %v4435_v26 = vld [vmem:[%s6115_s3 + $0x1b8] sm:$0xff]  }
  0x65   : > { %4245 = vmatprep.subr.bf16.mxu0 %v5085_v2  ;;  %4570 = vpow2.f32 %v579_v17  ;;  %v1130_v50 = vrot.slane %v1002_v57, 1  ;;  %v581_v12 = vmul.f32 1.442695, %v526_v25  ;;  %v3605_v31 = vpack.c.bf16 %v676_v13, %v675_v46 }
  0x66   : > { %4196 = vmatpush3.bf16.msra.mxu1 %v4399_v10  ;;  %v1247_v34 = vrot.slane %v1245_v9, 7  ;;  %v4555_v20 = vpop.eup %4554  ;;  %v5153_v63 = vsel %vm4939_vm2, 0, %v1011_v24  ;;  %3751 = vst [vmem:[#allocation2 + $0x28] sm:$0xff] %v3600_v40   ;;  %v5168_v49 = vsel %vm5126_vm5, %v1127_v1, 0 }
  0x67   : > { %v5142_v41 = vld [vmem:[#allocation2 + $0x20] sm:$0xff]   ;;  %4197 = vmatprep.subr.bf16.mxu1 %v4403_v48  ;;  %v4557_v55 = vpop.eup %4556  ;;  %1508 = vmatmul.mubr.bf16.gmra.mxu0 %v5153_v63  ;;  %v677_v57 = vmul.f32 %v4555_v20, %v4884_v14  ;;  %4572 = vpow2.f32 %v581_v12  ;;  %3752 = vst [vmem:[#allocation2 + $0x30] sm:$0xff] %v3605_v31   ;;  %v4434_v14 = vld [vmem:[%s6115_s3 + $0x1f8] sm:$0xff]   ;;  %v4410_v12 = vld [vmem:[%s6115_s3 + $0x70] sm:$0xff]  }
  0x68   : > { %v1250_v11 = vor.u32 %v1248_v44, %v1247_v34  ;;  %v1013_v10 = vshrl.u32 %v5142_v41, 16  ;;  %v1016_v47 = vshll.u32 %v5142_v41, 16  ;;  %v4559_v36 = vpop.eup %4558  ;;  %1515 = vmatprep.mubr.bf16.mxu0 %v5142_v41  ;;  %v678_v61 = vmul.f32 %v4557_v55, %v4889_v18  ;;  %4246 = vmatpush3.bf16.msra.mxu0 %v5085_v2  ;;  %v4406_v2 = vld [vmem:[%s6115_s3 + $0x78] sm:$0xff]  }
  0x69   : > { %v4561_v4 = vpop.eup %4560  ;;  %4247 = vmatprep.subr.bf16.mxu0 %v4431_v39  ;;  %v1129_v18 = vor.u32 %v1128_v33, %v992_v62  ;;  %v679_v24 = vmul.f32 %v4559_v36, %v4908_v52  ;;  %v4407_v33 = vld [vmem:[%s6115_s3 + $0x38] sm:$0xff]  }
  0x6a   : > { %v5175_v21 = vsel %vm4939_vm2, 0, %v1250_v11  ;;  %4198 = vmatpush3.bf16.msra.mxu1 %v4403_v48  ;;  %v1015_v8 = vrot.slane %v1013_v10, 7  ;;  %v4563_v37 = vpop.eup %4562  ;;  %v1131_v48 = vor.u32 %v1130_v50, %v999_v58  ;;  %v3610_v25 = vpack.c.bf16 %v678_v61, %v677_v57 }
  0x6b   : > { %1604 = vmatmul.mubr.bf16.gmra.mxu1 %v5175_v21  ;;  %4199 = vmatprep.subr.bf16.mxu1 %v4404_v53  ;;  %v617_v32 = vadd.f32 1.0, %v4561_v4  ;;  %v4565_v17 = vpop.eup %4564  ;;  %v618_v1 = vadd.f32 1.0, %v4563_v37  ;;  %v5201_v52 = vsel %vm5126_vm5, %v1129_v18, 0  ;;  %v1132_v50 = vrot.slane %v1009_v27, 1  ;;  %v4411_v27 = vld [vmem:[%s6115_s3 + $0x30] sm:$0xff]  }
  0x6c   : > { %4201 = vmatprep.mubr.bf16.mxu1 %v5168_v49  ;;  %v1018_v7 = vor.u32 %v1016_v47, %v1015_v8  ;;  %v4567_v40 = vpop.eup %4566  ;;  %3753 = vst [vmem:[#allocation2 + $0x38] sm:$0xff] %v3610_v25   ;;  %v619_v62 = vadd.f32 1.0, %v4565_v17  ;;  %4248 = vmatpush3.bf16.msra.mxu0 %v4431_v39  ;;  %v5205_v39 = vsel %vm5126_vm5, %v1131_v48, 0  ;;  %v1134_v31 = vrot.slane %v1016_v47, 1  ;;  %v4414_v48 = vld [vmem:[%s6115_s3 + $0x68] sm:$0xff]  }
  0x6d   : > { %4574 = vrcp.f32 %v617_v32  ;;  %v4569_v46 = vpop.eup %4568  ;;  %v5196_v58 = vld [vmem:[#allocation2 + $0x28] sm:$0xff]   ;;  %v680_v13 = vmul.f32 %v4567_v40, %v4911_v6  ;;  %4049 = vmatprep.subr.bf16.mxu0 %v4434_v14  ;;  %v1133_v8 = vor.u32 %v1132_v50, %v1006_v30 }
  0x6e   : > { %4200 = vmatpush3.bf16.msra.mxu1 %v4404_v53  ;;  %v5194_v34 = vsel %vm4939_vm2, 0, %v1018_v7  ;;  %4576 = vrcp.f32 %v618_v1  ;;  %v620_v20 = vadd.f32 1.0, %v4569_v46  ;;  %v1020_v6 = vshrl.u32 %v5196_v58, 16  ;;  %v5219_v11 = vld [vmem:[#allocation2 + $0x30] sm:$0xff]   ;;  %v4415_v7 = vld [vmem:[%s6115_s3 + $0x28] sm:$0xff]   ;;  %v4417_v46 = vld [vmem:[%s6115_s3 + $0x60] sm:$0xff]  }
  0x6f   : > { %3913 = vmatprep.subr.bf16.mxu1 %v4406_v2  ;;  %4578 = vrcp.f32 %v619_v62  ;;  %1516 = vmatmul.mubr.bf16.gmra.mxu0 %v5194_v34  ;;  %v1023_v53 = vshll.u32 %v5196_v58, 16  ;;  %v3615_v55 = vpack.c.bf16 %v680_v13, %v679_v24  ;;  %v1027_v61 = vshrl.u32 %v5219_v11, 16 }
  0x70   : > { %1523 = vmatprep.mubr.bf16.mxu0 %v5196_v58  ;;  %4580 = vrcp.f32 %v620_v20  ;;  %v1022_v36 = vrot.slane %v1020_v6, 7  ;;  %v1135_v37 = vor.u32 %v1134_v31, %v1013_v10  ;;  %v1030_v2 = vshll.u32 %v5219_v11, 16 }
  0x71   : > { %3754 = vst [vmem:[#allocation2 + $0x40] sm:$0xff] %v3615_v55   ;;  %v1029_v18 = vrot.slane %v1027_v61, 7  ;;  %v5244_v17 = vsel %vm5126_vm5, %v1133_v8, 0  ;;  %v1136_v10 = vrot.slane %v1023_v53, 1 }
  0x72   : > { %v4571_v57 = vpop.eup %4570  ;;  %v1025_v4 = vor.u32 %v1023_v53, %v1022_v36  ;;  %v1138_v24 = vrot.slane %v1030_v2, 1  ;;  %v5253_v40 = vsel %vm5126_vm5, %v1135_v37, 0 }
  0x73   : > { %4202 = vmatmul.mubr.bf16.vlgmr.msra.gmra.mxu1 %v5201_v52  ;;  %v5229_v47 = vld [vmem:[#allocation2 + $0x38] sm:$0xff]   ;;  %v621_v14 = vadd.f32 1.0, %v4571_v57  ;;  %v1032_v62 = vor.u32 %v1030_v2, %v1029_v18  ;;  %v4418_v57 = vld [vmem:[%s6115_s3 + $0x20] sm:$0xff]  }
  0x74   : > { %3914 = vmatpush3.bf16.msra.mxu1 %v4407_v33  ;;  %4205 = vmatprep.mubr.bf16.mxu1 %v5205_v39  ;;  %v4573_v25 = vpop.eup %4572  ;;  %v5239_v32 = vsel %vm4939_vm2, 0, %v1025_v4  ;;  %v1034_v1 = vshrl.u32 %v5229_v47, 16  ;;  %v1139_v55 = vor.u32 %v1138_v24, %v1027_v61  ;;  %v1037_v36 = vshll.u32 %v5229_v47, 16 }
  0x75   : > { %3915 = vmatprep.subr.bf16.mxu1 %v4410_v12  ;;  %v622_v30 = vadd.f32 1.0, %v4573_v25  ;;  %4582 = vrcp.f32 %v621_v14  ;;  %v1137_v12 = vor.u32 %v1136_v10, %v1020_v6  ;;  %v4422_v6 = vld [vmem:[%s6115_s3 + $0x58] sm:$0xff]   ;;  %v4427_v10 = vld [vmem:[%s6115_s3 + $0x50] sm:$0xff]  }
  0x76   : > { %v1036_v31 = vrot.slane %v1034_v1, 7  ;;  %v5285_v2 = vsel %vm5126_vm5, %v1139_v55, 0  ;;  %v4430_v55 = vld [vmem:[%s6115_s3 + $0x8] sm:$0xff]  }
  0x77   : > { %1524 = vmatmul.mubr.bf16.gmra.mxu0 %v5239_v32  ;;  %4584 = vrcp.f32 %v622_v30  ;;  %v5281_v18 = vsel %vm5126_vm5, %v1137_v12, 0 }
  0x78   : > { %3916 = vmatpush3.bf16.msra.mxu1 %v4411_v27  ;;  %1531 = vmatprep.mubr.bf16.mxu0 %v5219_v11  ;;  %v5258_v20 = vld [vmem:[#allocation2 + $0x40] sm:$0xff]   ;;  %v5269_v27 = vsel %vm4939_vm2, 0, %v1032_v62  ;;  %v4428_v62 = vld [vmem:[%s6115_s3 + $0x10] sm:$0xff]  }
  0x79   : > { %3917 = vmatprep.subr.bf16.mxu1 %v4414_v48  ;;  %v1039_v48 = vor.u32 %v1037_v36, %v1036_v31 }
  0x7a   : > { %v4575_v13 = vpop.eup %4574 }
  0x7b   : > { %v4577_v33 = vpop.eup %4576  ;;  %4206 = vmatmul.mubr.bf16.gmra.mxu1 %v5244_v17  ;;  %v681_v53 = vmul.f32 %v4575_v13, %v4932_v42  ;;  %v1044_v42 = vshll.u32 %v5258_v20, 16 }
  0x7c   : > { %v4579_v50 = vpop.eup %4578  ;;  %4209 = vmatprep.mubr.bf16.mxu1 %v5253_v40  ;;  %3918 = vmatpush3.bf16.msra.mxu1 %v4415_v7  ;;  %v682_v4 = vmul.f32 %v4577_v33, %v5012_v59  ;;  %v1140_v59 = vrot.slane %v1037_v36, 1 }
  0x7d   : > { %3919 = vmatprep.subr.bf16.mxu1 %v4417_v46  ;;  %v683_v61 = vmul.f32 %v4579_v50, %v5027_v54  ;;  %v4581_v8 = vpop.eup %4580  ;;  %v4423_v54 = vld [vmem:[%s6115_s3 + $0x18] sm:$0xff]   ;;  %v1142_v25 = vrot.slane %v1044_v42, 1  ;;  %v5302_v46 = vsel %vm4939_vm2, 0, %v1039_v48  ;;  %v4429_v50 = vld [vmem:[%s6115_s3 + $0x48] sm:$0xff]  }
  0x7e   : > { %v3620_v14 = vpack.c.bf16 %v682_v4, %v681_v53  ;;  %v684_v37 = vmul.f32 %v4581_v8, %v5040_v38  ;;  %v1041_v38 = vshrl.u32 %v5258_v20, 16  ;;  %v1141_v24 = vor.u32 %v1140_v59, %v1034_v1  ;;  %v4432_v4 = vld [vmem:[%s6115_s3 + $0x40] sm:$0xff]  }
  0x7f   : > { %1532 = vmatmul.mubr.bf16.gmra.mxu0 %v5269_v27 }
  0x80   : > { %3920 = vmatpush3.bf16.msra.mxu1 %v4418_v57  ;;  %1539 = vmatprep.mubr.bf16.mxu0 %v5229_v47  ;;  %3755 = vst [vmem:[#allocation2 + $0x48] sm:$0xff] %v3620_v14   ;;  %v3625_v30 = vpack.c.bf16 %v684_v37, %v683_v61  ;;  %v1143_v13 = vor.u32 %v1142_v25, %v1041_v38  ;;  %v1043_v33 = vrot.slane %v1041_v38, 7  ;;  %v5315_v31 = vsel %vm5126_vm5, %v1141_v24, 0  ;;  %v4436_v38 = vld [vmem:[%s6115_s3 + $0x238] sm:$0xff]  }
  0x81   : > { %3921 = vmatprep.subr.bf16.mxu1 %v4422_v6 }
  0x82   : > { %3756 = vst [vmem:[#allocation2 + $0x50] sm:$0xff] %v3625_v30   ;;  %v4583_v7 = vpop.eup %4582 }
  0x83   : > { %4210 = vmatmul.mubr.bf16.gmra.mxu1 %v5281_v18  ;;  %v685_v53 = vmul.f32 %v4583_v7, %v5090_v19  ;;  %v5322_v19 = vsel %vm5126_vm5, %v1143_v13, 0 }
  0x84   : > { %4213 = vmatprep.mubr.bf16.mxu1 %v5285_v2  ;;  %3922 = vmatpush3.bf16.msra.mxu1 %v4423_v54  ;;  %v4585_v12 = vpop.eup %4584 }
  0x85   : > { %3923 = vmatprep.subr.bf16.mxu1 %v4427_v10  ;;  %v686_v1 = vmul.f32 %v4585_v12, %v5100_v45  ;;  %v1046_v45 = vor.u32 %v1044_v42, %v1043_v33  ;;  %v4433_v42 = vld [vmem:[%s6115_s3] sm:$0xff]  }
  0x87   : > { %1540 = vmatmul.mubr.bf16.gmra.mxu0 %v5302_v46  ;;  %v5317_v36 = vld [vmem:[#allocation2 + $0x48] sm:$0xff]   ;;  %v3630_v57 = vpack.c.bf16 %v686_v1, %v685_v53  ;;  %v5338_v37 = vsel %vm4939_vm2, 0, %v1046_v45  ;;  %v5370_v45 = vsel %vm5126_vm5, %v5108_v60, 0  ;;  %v5386_v60 = vsel %vm5126_vm5, %v5112_v15, 0 }
  0x88   : > { %3924 = vmatpush3.bf16.msra.mxu1 %v4428_v62  ;;  %1547 = vmatprep.mubr.bf16.mxu0 %v5258_v20  ;;  %v1048_v6 = vshrl.u32 %v5317_v36, 16  ;;  %v1051_v61 = vshll.u32 %v5317_v36, 16 }
  0x89   : > { %3925 = vmatprep.subr.bf16.mxu1 %v4429_v50  ;;  %v5330_v8 = vld [vmem:[#allocation2 + $0x50] sm:$0xff]   ;;  %3757 = vst [vmem:[#allocation2 + $0x58] sm:$0xff] %v3630_v57  }
  0x8a   : > { %v1144_v14 = vrot.slane %v1051_v61, 1  ;;  %v1055_v59 = vshrl.u32 %v5330_v8, 16  ;;  %v1058_v54 = vshll.u32 %v5330_v8, 16  ;;  %v1050_v48 = vrot.slane %v1048_v6, 7 }
  0x8b   : > { %4214 = vmatmul.mubr.bf16.gmra.mxu1 %v5315_v31 }
  0x8c   : > { %4217 = vmatprep.mubr.bf16.mxu1 %v5322_v19  ;;  %3926 = vmatpush3.bf16.msra.mxu1 %v4430_v55  ;;  %v1145_v25 = vor.u32 %v1144_v14, %v1048_v6  ;;  %v1146_v30 = vrot.slane %v1058_v54, 1  ;;  %v1053_v24 = vor.u32 %v1051_v61, %v1050_v48  ;;  %v1057_v12 = vrot.slane %v1055_v59, 7 }
  0x8d   : > { %3927 = vmatprep.subr.bf16.mxu1 %v4432_v4  ;;  %v1253_v14 = vrot.slane %v1248_v44, 1 }
  0x8e   : > { %v5348_v10 = vsel %vm5126_vm5, %v1145_v25, 0  ;;  %v1147_v7 = vor.u32 %v1146_v30, %v1055_v59  ;;  %v5363_v50 = vsel %vm4939_vm2, 0, %v1053_v24  ;;  %v1060_v57 = vor.u32 %v1058_v54, %v1057_v12  ;;  %v4438_v24 = vld [vmem:[%s6115_s3 + $0x1b0] sm:$0xff]   ;;  %v4588_v12 = vld [vmem:[#allocation2] sm:$0xff]  }
  0x8f   : > { %1548 = vmatmul.mubr.bf16.gmra.mxu0 %v5338_v37  ;;  %v4618_v54 = vmov 0   ;;  %v1254_v15 = vor.u32 %v1253_v14, %v1245_v9  ;;  %v4437_v9 = vld [vmem:[%s6115_s3 + $0x1f0] sm:$0xff]   ;;  %v4445_v14 = vld [vmem:[%s6115_s3 + $0x198] sm:$0xff]  }
  0x90   : > { %3928 = vmatpush3.bf16.msra.mxu1 %v4433_v42  ;;  %1555 = vmatprep.mubr.bf16.mxu0 %v5317_v36  ;;  %v5351_v62 = vld [vmem:[#allocation2 + $0x58] sm:$0xff]   ;;  %v5356_v13 = vsel %vm5126_vm5, %v1147_v7, 0  ;;  %v5380_v6 = vsel %vm4939_vm2, 0, %v1060_v57  ;;  %v5394_v42 = vsel %vm5126_vm5, %v5147_v16, 0  ;;  %v1124_v48 = vrot.slane %v4618_v54, 1  ;;  %v4451_v57 = vld [vmem:[%s6115_s3 + $0x220] sm:$0xff]  }
  0x91   : > { %4281 = vmatprep.subr.bf16.mxu1 %v4436_v38  ;;  %v1062_v33 = vshrl.u32 %v5351_v62, 16  ;;  %v1065_v53 = vshll.u32 %v5351_v62, 16  ;;  %v5410_v16 = vsel %vm5126_vm5, %v1254_v15, 0  ;;  %v980_v30 = vrot.slane %v4618_v54, 7  ;;  %v4449_v15 = vld [vmem:[%s6115_s3 + $0x1c8] sm:$0xff]  }
  0x92   : > { %v1175_v25 = vsel %vm5126_vm5, %v1124_v48, 0  ;;  %v4454_v48 = vld [vmem:[%s6115_s3 + $0x218] sm:$0xff]  }
  0x93   : > { %4218 = vmatmul.mubr.bf16.gmra.mxu1 %v5348_v10  ;;  %v1148_v1 = vrot.slane %v1065_v53, 1  ;;  %v1064_v61 = vrot.slane %v1062_v33, 7  ;;  %v1108_v7 = vsel %vm4939_vm2, 0, %v980_v30  ;;  %v4452_v30 = vld [vmem:[%s6115_s3 + $0x1c0] sm:$0xff]  }
  0x94   : > { %4221 = vmatprep.mubr.bf16.mxu1 %v5356_v13 }
  0x95   : > { %v1149_v55 = vor.u32 %v1148_v1, %v1062_v33  ;;  %v1067_v59 = vor.u32 %v1065_v53, %v1064_v61  ;;  %v4441_v33 = vld [vmem:[%s6115_s3 + $0x230] sm:$0xff]   ;;  %v4439_v53 = vld [vmem:[%s6115_s3 + $0x1e8] sm:$0xff]   ;;  %v4442_v1 = vld [vmem:[%s6115_s3 + $0x1e0] sm:$0xff]  }
  0x96   : > { %v4444_v61 = vld [vmem:[%s6115_s3 + $0x1d8] sm:$0xff]  }
  0x97   : > { %1556 = vmatmul.mubr.bf16.gmra.mxu0 %v5363_v50  ;;  %v5374_v4 = vsel %vm5126_vm5, %v1149_v55, 0  ;;  %v5403_v44 = vsel %vm4939_vm2, 0, %v1067_v59  ;;  %v4446_v55 = vld [vmem:[%s6115_s3 + $0x228] sm:$0xff]   ;;  %v4447_v59 = vld [vmem:[%s6115_s3 + $0x1d0] sm:$0xff]  }
  0x98   : > { %1563 = vmatprep.mubr.bf16.mxu0 %v5330_v8 }
  0x9b   : > { %4222 = vmatmul.mubr.bf16.gmra.mxu1 %v5374_v4 }
  0x9c   : > { %4225 = vmatprep.mubr.bf16.mxu1 %v5370_v45 }
  0x9f   : > { %1564 = vmatmul.mubr.bf16.gmra.mxu0 %v5380_v6 }
  0xa0   : > { %1571 = vmatprep.mubr.bf16.mxu0 %v5351_v62 }
  0xa3   : > { %4226 = vmatmul.mubr.bf16.gmra.mxu1 %v5386_v60 }
  0xa4   : > { %4229 = vmatprep.mubr.bf16.mxu1 %v5394_v42 }
  0xa7   : > { %1572 = vmatmul.mubr.bf16.gmra.mxu0 %v5403_v44 }
  0xa8   : > { %4249 = vmatprep.mubr.bf16.mxu0 %v1175_v25  ;;  %v4450_v25 = vld [vmem:[%s6115_s3 + $0x188] sm:$0xff]  }
  0xab   : > { %4230 = vmatmul.mubr.bf16.gmra.mxu1 %v5410_v16 }
  0xac   : > { %1949 = vmatprep.mubr.bf16.mxu1 %v4618_v54 }
  0xaf   : > { %4250 = vmatmul.mubr.bf16.vlgmr.msra.gmra.mxu0 %v5168_v49  ;;  %v4440_v49 = vld [vmem:[%s6115_s3 + $0x1a8] sm:$0xff]  }
  0xb0   : > { %4050 = vmatpush3.bf16.msra.mxu0 %v4435_v26  ;;  %4253 = vmatprep.mubr.bf16.mxu0 %v5201_v52  ;;  %v4456_v26 = vld [vmem:[%s6115_s3 + $0x208] sm:$0xff]  }
  0xb1   : > { %4051 = vmatprep.subr.bf16.mxu0 %v4437_v9  ;;  %v4453_v9 = vld [vmem:[%s6115_s3 + $0x180] sm:$0xff]  }
  0xb3   : > { %1950 = vmatmul.mubr.bf16.vlgmr.msra.gmra.mxu1 %v1108_v7  ;;  %v4457_v7 = vld [vmem:[%s6115_s3 + $0x200] sm:$0xff]  }
  0xb4   : > { %4282 = vmatpush3.bf16.msra.mxu1 %v4436_v38  ;;  %1957 = vmatprep.mubr.bf16.mxu1 %v4588_v12  ;;  %v4443_v38 = vld [vmem:[%s6115_s3 + $0x1a0] sm:$0xff]  }
  0xb5   : > { %4052 = vmatpush3.bf16.msra.mxu0 %v4438_v24  ;;  %4283 = vmatprep.subr.bf16.mxu1 %v4441_v33  ;;  %v4589_v24 = vld [vmem:[#allocation2 + $0x8] sm:$0xff]  }
  0xb6   : > { %4053 = vmatprep.subr.bf16.mxu0 %v4439_v53 }
  0xb7   : > { %4254 = vmatmul.mubr.bf16.gmra.mxu0 %v5205_v39 }
  0xb8   : > { %4284 = vmatpush3.bf16.msra.mxu1 %v4441_v33  ;;  %4257 = vmatprep.mubr.bf16.mxu0 %v5244_v17 }
  0xb9   : > { %4054 = vmatpush3.bf16.msra.mxu0 %v4440_v49  ;;  %4285 = vmatprep.subr.bf16.mxu1 %v4446_v55 }
  0xba   : > { %4055 = vmatprep.subr.bf16.mxu0 %v4442_v1 }
  0xbb   : > { %1958 = vmatmul.mubr.bf16.gmra.mxu1 %v4961_v3  ;;  %v4455_v3 = vld [vmem:[%s6115_s3 + $0x210] sm:$0xff]  }
  0xbc   : > { %1965 = vmatprep.mubr.bf16.mxu1 %v4945_v29  ;;  %4286 = vmatpush3.bf16.msra.mxu1 %v4446_v55  ;;  %v4448_v29 = vld [vmem:[%s6115_s3 + $0x190] sm:$0xff]  }
  0xbd   : > { %4056 = vmatpush3.bf16.msra.mxu0 %v4443_v38  ;;  %4287 = vmatprep.subr.bf16.mxu1 %v4451_v57 }
  0xbe   : > { %4057 = vmatprep.subr.bf16.mxu0 %v4444_v61 }
  0xbf   : > { %4258 = vmatmul.mubr.bf16.gmra.mxu0 %v5253_v40 }
  0xc0   : > { %4288 = vmatpush3.bf16.msra.mxu1 %v4451_v57  ;;  %4261 = vmatprep.mubr.bf16.mxu0 %v5281_v18 }
  0xc1   : > { %4058 = vmatpush3.bf16.msra.mxu0 %v4445_v14  ;;  %4289 = vmatprep.subr.bf16.mxu1 %v4454_v48 }
  0xc2   : > { %4059 = vmatprep.subr.bf16.mxu0 %v4447_v59  ;;  %v5547_v59 = vld [vmem:[#allocation2 + $0x68] sm:$0xff]  }
  0xc3   : > { %1966 = vmatmul.mubr.bf16.gmra.mxu1 %v5006_v28 }
  0xc4   : > { %1973 = vmatprep.mubr.bf16.mxu1 %v4989_v35  ;;  %4290 = vmatpush3.bf16.msra.mxu1 %v4454_v48 }
  0xc5   : > { %4060 = vmatpush3.bf16.msra.mxu0 %v4448_v29  ;;  %4291 = vmatprep.subr.bf16.mxu1 %v4455_v3 }
  0xc6   : > { %4061 = vmatprep.subr.bf16.mxu0 %v4449_v15 }
  0xc7   : > { %4262 = vmatmul.mubr.bf16.gmra.mxu0 %v5285_v2 }
  0xc8   : > { %4292 = vmatpush3.bf16.msra.mxu1 %v4455_v3  ;;  %4265 = vmatprep.mubr.bf16.mxu0 %v5315_v31 }
  0xc9   : > { %4062 = vmatpush3.bf16.msra.mxu0 %v4450_v25  ;;  %4293 = vmatprep.subr.bf16.mxu1 %v4456_v26 }
  0xca   : > { %4063 = vmatprep.subr.bf16.mxu0 %v4452_v30 }
  0xcb   : > { %1974 = vmatmul.mubr.bf16.gmra.mxu1 %v5048_v56 }
  0xcc   : > { %1981 = vmatprep.mubr.bf16.mxu1 %v5080_v43  ;;  %4294 = vmatpush3.bf16.msra.mxu1 %v4456_v26 }
  0xcd   : > { %4064 = vmatpush3.bf16.msra.mxu0 %v4453_v9  ;;  %4295 = vmatprep.subr.bf16.mxu1 %v4457_v7 }
  0xcf   : > { %4266 = vmatmul.mubr.bf16.gmra.mxu0 %v5322_v19 }
  0xd0   : > { %4296 = vmatpush3.bf16.msra.mxu1 %v4457_v7  ;;  %4269 = vmatprep.mubr.bf16.mxu0 %v5348_v10 }
  0xd3   : > { %1982 = vmatmul.mubr.bf16.gmra.mxu1 %v5153_v63 }
  0xd4   : > { %1989 = vmatprep.mubr.bf16.mxu1 %v5142_v41 }
  0xd7   : > { %4270 = vmatmul.mubr.bf16.gmra.mxu0 %v5356_v13 }
  0xd8   : > { %4273 = vmatprep.mubr.bf16.mxu0 %v5374_v4 }
  0xdb   : > { %1990 = vmatmul.mubr.bf16.gmra.mxu1 %v5194_v34 }
  0xdc   : > { %1997 = vmatprep.mubr.bf16.mxu1 %v5196_v58 }
  0xdf   : > { %4274 = vmatmul.mubr.bf16.gmra.mxu0 %v5370_v45 }
  0xe0   : > { %4277 = vmatprep.mubr.bf16.mxu0 %v5386_v60 }
  0xe3   : > { %1998 = vmatmul.mubr.bf16.gmra.mxu1 %v5239_v32 }
  0xe4   : > { %2005 = vmatprep.mubr.bf16.mxu1 %v5219_v11 }
  0xe7   : > { %4278 = vmatmul.mubr.bf16.gmra.mxu0 %v5394_v42 }
  0xe8   : > { %2481 = vmatprep.mubr.bf16.mxu0 %v4589_v24 }
  0xeb   : > { %2006 = vmatmul.mubr.bf16.gmra.mxu1 %v5269_v27 }
  0xec   : > { %2013 = vmatprep.mubr.bf16.mxu1 %v5229_v47 }
  0xef   : > { %2482 = vmatmul.mubr.bf16.vlgmr.msra.gmra.mxu0 %v5006_v28 }
  0xf0   : > { %2489 = vmatprep.mubr.bf16.mxu0 %v4989_v35 }
  0xf3   : > { %2014 = vmatmul.mubr.bf16.gmra.mxu1 %v5302_v46 }
  0xf4   : > { %2021 = vmatprep.mubr.bf16.mxu1 %v5258_v20 }
  0xf7   : > { %2490 = vmatmul.mubr.bf16.gmra.mxu0 %v5048_v56 }
  0xf8   : > { %2497 = vmatprep.mubr.bf16.mxu0 %v5080_v43 }
  0xfb   : > { %2022 = vmatmul.mubr.bf16.gmra.mxu1 %v5338_v37 }
  0xfc   : > { %2029 = vmatprep.mubr.bf16.mxu1 %v5317_v36 }
  0xff   : > { %2498 = vmatmul.mubr.bf16.gmra.mxu0 %v5153_v63 }
 0x100   : > { %2505 = vmatprep.mubr.bf16.mxu0 %v5142_v41 }
 0x103   : > { %2030 = vmatmul.mubr.bf16.gmra.mxu1 %v5363_v50 }
 0x104   : > { %2037 = vmatprep.mubr.bf16.mxu1 %v5330_v8 }
 0x107   : > { %2506 = vmatmul.mubr.bf16.gmra.mxu0 %v5194_v34 }
 0x108   : > { %2513 = vmatprep.mubr.bf16.mxu0 %v5196_v58  ;;  %v5535_v58 = vld [vmem:[#allocation2 + $0x60] sm:$0xff]  }
 0x10b   : > { %2038 = vmatmul.mubr.bf16.gmra.mxu1 %v5380_v6 }
 0x10c   : > { %2045 = vmatprep.mubr.bf16.mxu1 %v5351_v62 }
 0x10f   : > { %v3793_v35 = vpop.f32.mrf.mxu0  ;;  %2514 = vmatmul.mubr.bf16.gmra.mxu0 %v5239_v32 }
 0x110   : > { %2521 = vmatprep.mubr.bf16.mxu0 %v5219_v11 }
 0x111   : > { %v3865_v28 = vpop.f32.mrf.mxu1  ;;  %v3794_v56 = vpop.f32.mrf.mxu0 }
 0x112   : > { %v5530_v43 = vadd.f32 %v3794_v56, %v3793_v35  ;;  %v5557_v35 = vld [vmem:[#allocation2 + $0x70] sm:$0xff]  }
 0x113   : > { %2046 = vmatmul.mubr.bf16.gmra.mxu1 %v5403_v44  ;;  %v3866_v41 = vpop.f32.mrf.mxu1  ;;  %v3796_v63 = vpop.f32.mrf.mxu0 }
 0x114   : > { %v5533_v34 = vadd.f32 %v3866_v41, %v3865_v28  ;;  %2053 = vmatprep.mubr.bf16.mxu1 %v5535_v58 }
 0x115   : > { %v3868_v33 = vpop.f32.mrf.mxu1  ;;  %v3797_v53 = vpop.f32.mrf.mxu0 }
 0x116   : > { %v5538_v12 = vadd.f32 %v3797_v53, %v3796_v63 }
 0x117   : > { %v3869_v32 = vpop.f32.mrf.mxu1  ;;  %v3799_v49 = vpop.f32.mrf.mxu0  ;;  %2522 = vmatmul.mubr.bf16.gmra.mxu0 %v5269_v27 }
 0x118   : > { %v5540_v1 = vadd.f32 %v3869_v32, %v3868_v33  ;;  %2529 = vmatprep.mubr.bf16.mxu0 %v5229_v47 }
 0x119   : > { %v3871_v11 = vpop.f32.mrf.mxu1  ;;  %v3800_v55 = vpop.f32.mrf.mxu0 }
 0x11a   : > { %v3801_v38 = vadd.f32 %v3800_v55, %v3799_v49 }
 0x11b   : > { %2054 = vmatmul.mubr.bf16.gmra.mxu1 %v4978_v23  ;;  %v3872_v57 = vpop.f32.mrf.mxu1  ;;  %v3802_v61 = vpop.f32.mrf.mxu0 }
 0x11c   : > { %v5545_v14 = vadd.f32 %v3872_v57, %v3871_v11  ;;  %2061 = vmatprep.mubr.bf16.mxu1 %v5547_v59 }
 0x11d   : > { %v3874_v48 = vpop.f32.mrf.mxu1  ;;  %v3803_v29 = vpop.f32.mrf.mxu0 }
 0x11e   : > { %v3804_v3 = vadd.f32 %v3803_v29, %v3802_v61 }
 0x11f   : > { %v3875_v15 = vpop.f32.mrf.mxu1  ;;  %v3805_v27 = vpop.f32.mrf.mxu0  ;;  %2530 = vmatmul.mubr.bf16.gmra.mxu0 %v5302_v46 }
 0x120   : > { %v5550_v25 = vadd.f32 %v3875_v15, %v3874_v48  ;;  %2537 = vmatprep.mubr.bf16.mxu0 %v5258_v20 }
 0x121   : > { %v3877_v47 = vpop.f32.mrf.mxu1  ;;  %v3806_v30 = vpop.f32.mrf.mxu0 }
 0x122   : > { %v3807_v26 = vadd.f32 %v3806_v30, %v3805_v27 }
 0x123   : > { %2062 = vmatmul.mubr.bf16.gmra.mxu1 %v5016_v0  ;;  %v3878_v9 = vpop.f32.mrf.mxu1  ;;  %v3808_v7 = vpop.f32.mrf.mxu0 }
 0x124   : > { %v5555_v24 = vadd.f32 %v3878_v9, %v3877_v47  ;;  %2069 = vmatprep.mubr.bf16.mxu1 %v5557_v35 }
 0x125   : > { %v3880_v28 = vpop.f32.mrf.mxu1  ;;  %v3809_v56 = vpop.f32.mrf.mxu0 }
 0x126   : > { %v3810_v41 = vadd.f32 %v3809_v56, %v3808_v7 }
 0x127   : > { %v3881_v63 = vpop.f32.mrf.mxu1  ;;  %v3811_v33 = vpop.f32.mrf.mxu0  ;;  %2538 = vmatmul.mubr.bf16.gmra.mxu0 %v5338_v37 }
 0x128   : > { %v5560_v46 = vadd.f32 %v3881_v63, %v3880_v28  ;;  %2545 = vmatprep.mubr.bf16.mxu0 %v5317_v36 }
 0x129   : > { %v3812_v20 = vpop.f32.mrf.mxu0 }
 0x12a   : > { %v3813_v32 = vadd.f32 %v3812_v20, %v3811_v33 }
 0x12b   : > { %v3883_v53 = vpop.f32.mrf.mxu1  ;;  %2070 = vmatmul.mubr.bf16.gmra.mxu1 %v5068_v5  ;;  %v3814_v49 = vpop.f32.mrf.mxu0 }
 0x12c   : > { %4297 = vmatprep.mubr.bf16.mxu1 %v5201_v52 }
 0x12d   : > { %v3884_v11 = vpop.f32.mrf.mxu1  ;;  %v3815_v57 = vpop.f32.mrf.mxu0 }
 0x12e   : > { %v5566_v55 = vadd.f32 %v3884_v11, %v3883_v53  ;;  %v3816_v48 = vadd.f32 %v3815_v57, %v3814_v49 }
 0x12f   : > { %v3886_v61 = vpop.f32.mrf.mxu1  ;;  %v3817_v29 = vpop.f32.mrf.mxu0  ;;  %2546 = vmatmul.mubr.bf16.gmra.mxu0 %v5363_v50 }
 0x130   : > { %2553 = vmatprep.mubr.bf16.mxu0 %v5330_v8 }
 0x131   : > { %v3887_v37 = vpop.f32.mrf.mxu1  ;;  %v3818_v15 = vpop.f32.mrf.mxu0 }
 0x132   : > { %v5570_v36 = vadd.f32 %v3887_v37, %v3886_v61  ;;  %v3819_v47 = vadd.f32 %v3818_v15, %v3817_v29 }
 0x133   : > { %v4203_v27 = vpop.f32.mrf.mxu1  ;;  %4298 = vmatmul.mubr.bf16.vlgmr.msra.gmra.mxu1 %v5205_v39  ;;  %v3820_v30 = vpop.f32.mrf.mxu0 }
 0x134   : > { %v5573_v52 = vadd.f32 %v4203_v27, %v3801_v38  ;;  %4301 = vmatprep.mubr.bf16.mxu1 %v5244_v17 }
 0x135   : > { %v1646_v9 = vpop.f32.mrf.mxu1  ;;  %v3821_v50 = vpop.f32.mrf.mxu0 }
 0x136   : > { %v5577_v7 = vadd.f32 %v5530_v43, %v1646_v9  ;;  %v3822_v56 = vadd.f32 %v3821_v50, %v3820_v30 }
 0x137   : > { %v4204_v28 = vpop.f32.mrf.mxu1  ;;  %v3823_v63 = vpop.f32.mrf.mxu0  ;;  %2554 = vmatmul.mubr.bf16.gmra.mxu0 %v5380_v6 }
 0x138   : > { %v5579_v8 = vadd.f32 %v4204_v28, %v3804_v3  ;;  %2561 = vmatprep.mubr.bf16.mxu0 %v5351_v62 }
 0x139   : > { %v1649_v33 = vpop.f32.mrf.mxu1  ;;  %v3824_v38 = vpop.f32.mrf.mxu0 }
 0x13a   : > { %v5584_v39 = vadd.f32 %v5538_v12, %v1649_v33  ;;  %v3825_v43 = vadd.f32 %v3824_v38, %v3823_v63 }
 0x13b   : > { %v4207_v17 = vpop.f32.mrf.mxu1  ;;  %4302 = vmatmul.mubr.bf16.gmra.mxu1 %v5253_v40  ;;  %v3826_v53 = vpop.f32.mrf.mxu0 }
 0x13c   : > { %v5587_v20 = vadd.f32 %v4207_v17, %v3813_v32  ;;  %4305 = vmatprep.mubr.bf16.mxu1 %v5281_v18 }
 0x13d   : > { %v1662_v3 = vpop.f32.mrf.mxu1  ;;  %v3827_v6 = vpop.f32.mrf.mxu0 }
 0x13e   : > { %v5590_v49 = vadd.f32 %v3807_v26, %v1662_v3  ;;  %v3828_v57 = vadd.f32 %v3827_v6, %v3826_v53 }
 0x13f   : > { %v4208_v11 = vpop.f32.mrf.mxu1  ;;  %v3829_v12 = vpop.f32.mrf.mxu0  ;;  %2562 = vmatmul.mubr.bf16.gmra.mxu0 %v5403_v44 }
 0x140   : > { %v5592_v62 = vadd.f32 %v4208_v11, %v3816_v48  ;;  %2569 = vmatprep.mubr.bf16.mxu0 %v5535_v58 }
 0x141   : > { %v1665_v61 = vpop.f32.mrf.mxu1  ;;  %v3830_v32 = vpop.f32.mrf.mxu0 }
 0x142   : > { %v5596_v40 = vadd.f32 %v3810_v41, %v1665_v61  ;;  %v3831_v18 = vadd.f32 %v3830_v32, %v3829_v12  ;;  %v3333_v12 = vcombine.low %v4618_v54, %v4618_v54 }
 0x143   : > { %v4211_v29 = vpop.f32.mrf.mxu1  ;;  %4306 = vmatmul.mubr.bf16.gmra.mxu1 %v5285_v2  ;;  %v3832_v37 = vpop.f32.mrf.mxu0 }
 0x144   : > { %v5599_v26 = vadd.f32 %v4211_v29, %v3825_v43  ;;  %4309 = vmatprep.mubr.bf16.mxu1 %v5315_v31 }
 0x145   : > { %v1678_v48 = vpop.f32.mrf.mxu1  ;;  %v3833_v27 = vpop.f32.mrf.mxu0 }
 0x146   : > { %v5602_v15 = vadd.f32 %v3819_v47, %v1678_v48  ;;  %v3834_v30 = vadd.f32 %v3833_v27, %v3832_v37  ;;  %v4593_v37 = vld [vmem:[#allocation2 + $0x78] sm:$0xff]  }
 0x147   : > { %v4212_v44 = vpop.f32.mrf.mxu1  ;;  %v3835_v58 = vpop.f32.mrf.mxu0  ;;  %2570 = vmatmul.mubr.bf16.gmra.mxu0 %v4978_v23 }
 0x148   : > { %v5604_v9 = vadd.f32 %v4212_v44, %v3828_v57  ;;  %2577 = vmatprep.mubr.bf16.mxu0 %v5547_v59 }
 0x149   : > { %v1681_v41 = vpop.f32.mrf.mxu1  ;;  %v3836_v50 = vpop.f32.mrf.mxu0 }
 0x14a   : > { %v5608_v2 = vadd.f32 %v3822_v56, %v1681_v41  ;;  %v3837_v31 = vadd.f32 %v3836_v50, %v3835_v58 }
 0x14b   : > { %v4215_v28 = vpop.f32.mrf.mxu1  ;;  %4310 = vmatmul.mubr.bf16.gmra.mxu1 %v5322_v19  ;;  %v3838_v47 = vpop.f32.mrf.mxu0 }
 0x14c   : > { %4313 = vmatprep.mubr.bf16.mxu1 %v5348_v10  ;;  %v5612_v63 = vadd.f32 %v4215_v28, %v3837_v31 }
 0x14d   : > { %v1694_v33 = vpop.f32.mrf.mxu1  ;;  %v3839_v17 = vpop.f32.mrf.mxu0 }
 0x14e   : > { %v5614_v38 = vadd.f32 %v3831_v18, %v1694_v33  ;;  %v3840_v43 = vadd.f32 %v3839_v17, %v3838_v47 }
 0x14f   : > { %v4216_v23 = vpop.f32.mrf.mxu1  ;;  %v3841_v53 = vpop.f32.mrf.mxu0  ;;  %2578 = vmatmul.mubr.bf16.gmra.mxu0 %v5016_v0 }
 0x150   : > { %v5617_v59 = vadd.f32 %v4216_v23, %v3840_v43  ;;  %2585 = vmatprep.mubr.bf16.mxu0 %v5557_v35 }
 0x151   : > { %v1697_v56 = vpop.f32.mrf.mxu1  ;;  %v3842_v3 = vpop.f32.mrf.mxu0 }
 0x152   : > { %v5620_v19 = vadd.f32 %v3834_v30, %v1697_v56  ;;  %v3843_v6 = vadd.f32 %v3842_v3, %v3841_v53  ;;  %v2246_v30 = vshll.u32 %v3333_v12, 16 }
 0x153   : > { %v4219_v10 = vpop.f32.mrf.mxu1  ;;  %4314 = vmatmul.mubr.bf16.gmra.mxu1 %v5356_v13  ;;  %v3844_v11 = vpop.f32.mrf.mxu0  ;;  %v2243_v13 = vshrl.u32 %v3333_v12, 16 }
 0x154   : > { %4317 = vmatprep.mubr.bf16.mxu1 %v5374_v4  ;;  %v2251_v33 = vrot.slane %v2246_v30, 1 }
 0x155   : > { %v1710_v57 = vpop.f32.mrf.mxu1  ;;  %v3845_v61 = vpop.f32.mrf.mxu0  ;;  %v2245_v50 = vrot.slane %v2243_v13, 7 }
 0x156   : > { %v5626_v0 = vadd.f32 %v3843_v6, %v1710_v57  ;;  %v3846_v29 = vadd.f32 %v3845_v61, %v3844_v11 }
 0x157   : > { %v4220_v32 = vpop.f32.mrf.mxu1  ;;  %v3847_v35 = vpop.f32.mrf.mxu0  ;;  %2586 = vmatmul.mubr.bf16.gmra.mxu0 %v5068_v5 }
 0x158   : > { %2593 = vmatprep.mubr.bf16.mxu0 %v4593_v37 }
 0x159   : > { %v1713_v18 = vpop.f32.mrf.mxu1  ;;  %v3848_v27 = vpop.f32.mrf.mxu0 }
 0x15a   : > { %v5629_v48 = vadd.f32 %v3846_v29, %v1713_v18  ;;  %v3849_v44 = vadd.f32 %v3848_v27, %v3847_v35 }
 0x15b   : > { %v4223_v4 = vpop.f32.mrf.mxu1  ;;  %4318 = vmatmul.mubr.bf16.gmra.mxu1 %v5370_v45  ;;  %v3850_v54 = vpop.f32.mrf.mxu0  ;;  %v2248_v45 = vor.u32 %v2246_v30, %v2245_v50 }
 0x15c   : > { %4321 = vmatprep.mubr.bf16.mxu1 %v5386_v60  ;;  %v5633_v58 = vadd.f32 %v4219_v10, %v3849_v44  ;;  %v2252_v10 = vor.u32 %v2251_v33, %v2243_v13 }
 0x15d   : > { %v1726_v41 = vpop.f32.mrf.mxu1  ;;  %v3851_v5 = vpop.f32.mrf.mxu0  ;;  %v2250_v11 = vsel %vm4939_vm2, 0, %v2248_v45 }
 0x15e   : > { %v3852_v31 = vadd.f32 %v3851_v5, %v3850_v54 }
 0x15f   : > { %v4224_v28 = vpop.f32.mrf.mxu1  ;;  %v3853_v47 = vpop.f32.mrf.mxu0  ;;  %2594 = vmatmul.mubr.bf16.gmra.mxu0 %v5175_v21 }
 0x160   : > { %v5636_v17 = vadd.f32 %v4220_v32, %v3852_v31  ;;  %2601 = vmatprep.mubr.bf16.mxu0 %v3333_v12 }
 0x161   : > { %v1729_v23 = vpop.f32.mrf.mxu1  ;;  %v3854_v43 = vpop.f32.mrf.mxu0 }
 0x162   : > { %v3855_v60 = vadd.f32 %v3854_v43, %v3853_v47 }
 0x163   : > { %v4227_v53 = vpop.f32.mrf.mxu1  ;;  %4322 = vmatmul.mubr.bf16.gmra.mxu1 %v5394_v42  ;;  %v3856_v3 = vpop.f32.mrf.mxu0 }
 0x164   : > { %v5640_v56 = vadd.f32 %v4227_v53, %v5545_v14  ;;  %4325 = vmatprep.mubr.bf16.mxu1 %v5410_v16  ;;  %v5643_v6 = vadd.f32 %v3855_v60, %v1726_v41  ;;  %v2254_v16 = vsel %vm5126_vm5, %v2252_v10, 0 }
 0x165   : > { %v1742_v21 = vpop.f32.mrf.mxu1  ;;  %v3857_v12 = vpop.f32.mrf.mxu0 }
 0x166   : > { %v5648_v57 = vadd.f32 %v5533_v34, %v1742_v21  ;;  %v3858_v42 = vadd.f32 %v3857_v12, %v3856_v3 }
 0x167   : > { %v4228_v61 = vpop.f32.mrf.mxu1  ;;  %v3859_v14 = vpop.f32.mrf.mxu0  ;;  %2602 = vmatmul.mubr.bf16.gmra.mxu0 %v2250_v11 }
 0x168   : > { %v5651_v32 = vadd.f32 %v4228_v61, %v5550_v25  ;;  %v5655_v29 = vadd.f32 %v3858_v42, %v1729_v23 }
 0x169   : > { %v1745_v35 = vpop.f32.mrf.mxu1  ;;  %v3860_v18 = vpop.f32.mrf.mxu0 }
 0x16a   : > { %v5658_v22 = vadd.f32 %v5540_v1, %v1745_v35  ;;  %v3861_v37 = vadd.f32 %v3860_v18, %v3859_v14 }
 0x16b   : > { %v4231_v34 = vpop.f32.mrf.mxu1  ;;  %4326 = vmatmul.mubr.bf16.gmra.mxu1 %v2254_v16  ;;  %v3862_v25 = vpop.f32.mrf.mxu0 }
 0x16c   : > { %v5661_v13 = vadd.f32 %v4231_v34, %v5566_v55  ;;  %v5663_v27 = vadd.f32 %v4223_v4, %v3861_v37 }
 0x16d   : > { %v1758_v44 = vpop.f32.mrf.mxu1  ;;  %v3863_v54 = vpop.f32.mrf.mxu0 }
 0x16e   : > { %v5666_v51 = vadd.f32 %v5555_v24, %v1758_v44  ;;  %v3864_v41 = vadd.f32 %v3863_v54, %v3862_v25 }
 0x16f   : > { %v4232_v30 = vpop.f32.mrf.mxu1  ;;  %v4251_v50 = vpop.f32.mrf.mxu0 }
 0x170   : > { %v5669_v1 = vadd.f32 %v4232_v30, %v5570_v36  ;;  %v5671_v5 = vadd.f32 %v4224_v28, %v3864_v41 }
 0x171   : > { %v1761_v31 = vpop.f32.mrf.mxu1  ;;  %v2112_v47 = vpop.f32.mrf.mxu0 }
 0x172   : > { %6123 = vst [vmem:[#allocation3_spill] sm:$0xff] %v5669_v1  ;;  %v5674_v55 = vadd.f32 %v5560_v46, %v1761_v31 }
 0x173   : > { %v3929_v4 = vpop.f32.mrf.mxu1  ;;  %v4252_v33 = vpop.f32.mrf.mxu0 }
 0x175   : > { %v3930_v23 = vpop.f32.mrf.mxu1  ;;  %v2115_v24 = vpop.f32.mrf.mxu0 }
 0x176   : > { %v3931_v45 = vadd.f32 %v3930_v23, %v3929_v4 }
 0x177   : > { %v3932_v43 = vpop.f32.mrf.mxu1  ;;  %v4255_v60 = vpop.f32.mrf.mxu0 }
 0x178   : > { %v1952_v53 = vadd.f32 %v3931_v45, %v5577_v7 }
 0x179   : > { %v3933_v3 = vpop.f32.mrf.mxu1  ;;  %v2128_v28 = vpop.f32.mrf.mxu0 }
 0x17a   : > { %v5677_v36 = vadd.f32 %v2112_v47, %v1952_v53  ;;  %v3934_v10 = vadd.f32 %v3933_v3, %v3932_v43 }
 0x17b   : > { %v3935_v21 = vpop.f32.mrf.mxu1  ;;  %v4256_v46 = vpop.f32.mrf.mxu0 }
 0x17c   : > { %v1955_v11 = vadd.f32 %v3934_v10, %v5584_v39 }
 0x17d   : > { %v3936_v12 = vpop.f32.mrf.mxu1  ;;  %v2131_v14 = vpop.f32.mrf.mxu0 }
 0x17e   : > { %v5680_v61 = vadd.f32 %v2115_v24, %v1955_v11  ;;  %v3937_v42 = vadd.f32 %v3936_v12, %v3935_v21 }
 0x17f   : > { %v3938_v16 = vpop.f32.mrf.mxu1  ;;  %v4259_v18 = vpop.f32.mrf.mxu0 }
 0x180   : > { %v1960_v35 = vadd.f32 %v3937_v42, %v5573_v52 }
 0x181   : > { %v3939_v7 = vpop.f32.mrf.mxu1  ;;  %v2144_v37 = vpop.f32.mrf.mxu0 }
 0x182   : > { %v3940_v34 = vadd.f32 %v3939_v7, %v3938_v16  ;;  %v5683_v25 = vadd.f32 %v4251_v50, %v1960_v35 }
 0x183   : > { %v3941_v44 = vpop.f32.mrf.mxu1  ;;  %v4260_v30 = vpop.f32.mrf.mxu0 }
 0x184   : > { %v1963_v54 = vadd.f32 %v3940_v34, %v5579_v8 }
 0x185   : > { %v3942_v39 = vpop.f32.mrf.mxu1  ;;  %v2147_v31 = vpop.f32.mrf.mxu0 }
 0x186   : > { %v3943_v41 = vadd.f32 %v3942_v39, %v3941_v44  ;;  %v5686_v47 = vadd.f32 %v4252_v33, %v1963_v54 }
 0x187   : > { %v3944_v4 = vpop.f32.mrf.mxu1  ;;  %v5689_v45 = vpop.f32.mrf.mxu0 }
 0x188   : > { %v1968_v23 = vadd.f32 %v3943_v41, %v5590_v49 }
 0x189   : > { %v3945_v52 = vpop.f32.mrf.mxu1  ;;  %v2160_v43 = vpop.f32.mrf.mxu0 }
 0x18a   : > { %v3946_v24 = vadd.f32 %v3945_v52, %v3944_v4  ;;  %v5691_v53 = vadd.f32 %v2128_v28, %v1968_v23 }
 0x18b   : > { %v3947_v50 = vpop.f32.mrf.mxu1  ;;  %v5694_v8 = vpop.f32.mrf.mxu0 }
 0x18c   : > { %v1971_v3 = vadd.f32 %v3946_v24, %v5596_v40 }
 0x18d   : > { %v3948_v10 = vpop.f32.mrf.mxu1  ;;  %v2163_v11 = vpop.f32.mrf.mxu0 }
 0x18e   : > { %v3949_v21 = vadd.f32 %v3948_v10, %v3947_v50  ;;  %v5696_v33 = vadd.f32 %v2131_v14, %v1971_v3 }
 0x18f   : > { %v3950_v12 = vpop.f32.mrf.mxu1  ;;  %v5699_v42 = vpop.f32.mrf.mxu0 }
 0x190   : > { %v1976_v49 = vadd.f32 %v3949_v21, %v5587_v20 }
 0x191   : > { %v3951_v16 = vpop.f32.mrf.mxu1  ;;  %v5701_v7 = vpop.f32.mrf.mxu0 }
 0x192   : > { %v3952_v35 = vadd.f32 %v3951_v16, %v3950_v12  ;;  %v5703_v28 = vadd.f32 %v4255_v60, %v1976_v49 }
 0x193   : > { %v3953_v34 = vpop.f32.mrf.mxu1  ;;  %v5706_v44 = vpop.f32.mrf.mxu0 }
 0x194   : > { %v1979_v40 = vadd.f32 %v3952_v35, %v5592_v62 }
 0x195   : > { %v3954_v54 = vpop.f32.mrf.mxu1  ;;  %v5708_v14 = vpop.f32.mrf.mxu0 }
 0x196   : > { %v3955_v39 = vadd.f32 %v3954_v54, %v3953_v34  ;;  %v5710_v41 = vadd.f32 %v4256_v46, %v1979_v40 }
 0x197   : > { %v3956_v20 = vpop.f32.mrf.mxu1  ;;  %v5713_v23 = vpop.f32.mrf.mxu0 }
 0x198   : > { %v1984_v4 = vadd.f32 %v3955_v39, %v5602_v15 }
 0x199   : > { %v3957_v52 = vpop.f32.mrf.mxu1  ;;  %v5715_v60 = vpop.f32.mrf.mxu0 }
 0x19a   : > { %v3958_v24 = vadd.f32 %v3957_v52, %v3956_v20  ;;  %v5717_v50 = vadd.f32 %v2144_v37, %v1984_v4 }
 0x19b   : > { %v3959_v62 = vpop.f32.mrf.mxu1  ;;  %v5720_v10 = vpop.f32.mrf.mxu0 }
 0x19c   : > { %v1987_v3 = vadd.f32 %v3958_v24, %v5608_v2 }
 0x19d   : > { %v3960_v21 = vpop.f32.mrf.mxu1  ;;  %v5722_v46 = vpop.f32.mrf.mxu0 }
 0x19e   : > { %v3961_v12 = vadd.f32 %v3960_v21, %v3959_v62  ;;  %v5724_v49 = vadd.f32 %v2147_v31, %v1987_v3 }
 0x19f   : > { %v3962_v15 = vpop.f32.mrf.mxu1  ;;  %v5727_v35 = vpop.f32.mrf.mxu0 }
 0x1a0   : > { %v1992_v16 = vadd.f32 %v3961_v12, %v5599_v26 }
 0x1a1   : > { %v3963_v34 = vpop.f32.mrf.mxu1  ;;  %v5729_v37 = vpop.f32.mrf.mxu0 }
 0x1a2   : > { %v3964_v40 = vadd.f32 %v3963_v34, %v3962_v15  ;;  %v5731_v54 = vadd.f32 %v4259_v18, %v1992_v16 }
 0x1a3   : > { %v3965_v2 = vpop.f32.mrf.mxu1  ;;  %v5734_v20 = vpop.f32.mrf.mxu0 }
 0x1a4   : > { %v1995_v39 = vadd.f32 %v3964_v40, %v5604_v9 }
 0x1a5   : > { %v3966_v4 = vpop.f32.mrf.mxu1  ;;  %v5736_v31 = vpop.f32.mrf.mxu0 }
 0x1a6   : > { %v3967_v52 = vadd.f32 %v3966_v4, %v3965_v2  ;;  %v5738_v24 = vadd.f32 %v4260_v30, %v1995_v39 }
 0x1a7   : > { %v3968_v26 = vpop.f32.mrf.mxu1  ;;  %v5741_v3 = vpop.f32.mrf.mxu0 }
 0x1a8   : > { %v2000_v62 = vadd.f32 %v3967_v52, %v5614_v38  ;;  %6124 = vst [vmem:[#allocation4_spill] sm:$0xff] %v5741_v3 }
 0x1a9   : > { %v3969_v21 = vpop.f32.mrf.mxu1  ;;  %v5743_v18 = vpop.f32.mrf.mxu0 }
 0x1aa   : > { %v3970_v12 = vadd.f32 %v3969_v21, %v3968_v26  ;;  %v5745_v15 = vadd.f32 %v2160_v43, %v2000_v62 }
 0x1ab   : > { %v3971_v9 = vpop.f32.mrf.mxu1  ;;  %v5748_v34 = vpop.f32.mrf.mxu0 }
 0x1ac   : > { %v2003_v16 = vadd.f32 %v3970_v12, %v5620_v19  ;;  %6125 = vst [vmem:[#allocation5_spill] sm:$0xff] %v5748_v34 }
 0x1ad   : > { %v3972_v40 = vpop.f32.mrf.mxu1  ;;  %v5750_v30 = vpop.f32.mrf.mxu0 }
 0x1ae   : > { %v3973_v2 = vadd.f32 %v3972_v40, %v3971_v9  ;;  %v5752_v39 = vadd.f32 %v2163_v11, %v2003_v16 }
 0x1af   : > { %v3974_v38 = vpop.f32.mrf.mxu1  ;;  %v4065_v52 = vpop.f32.mrf.mxu0 }
 0x1b0   : > { %v2008_v4 = vadd.f32 %v3973_v2, %v5612_v63 }
 0x1b1   : > { %v3975_v26 = vpop.f32.mrf.mxu1  ;;  %v4066_v1 = vpop.f32.mrf.mxu0 }
 0x1b2   : > { %v3976_v21 = vadd.f32 %v3975_v26, %v3974_v38  ;;  %v5756_v43 = vadd.f32 %v5689_v45, %v2008_v4  ;;  %v5758_v19 = vadd.f32 %v4066_v1, %v4065_v52 }
 0x1b3   : > { %v3977_v62 = vpop.f32.mrf.mxu1  ;;  %v4068_v9 = vpop.f32.mrf.mxu0 }
 0x1b4   : > { %v2011_v12 = vadd.f32 %v3976_v21, %v5617_v59 }
 0x1b5   : > { %v3978_v40 = vpop.f32.mrf.mxu1  ;;  %v4069_v11 = vpop.f32.mrf.mxu0 }
 0x1b6   : > { %v3979_v34 = vadd.f32 %v3978_v40, %v3977_v62  ;;  %v5762_v16 = vadd.f32 %v5694_v8, %v2011_v12  ;;  %v5764_v2 = vadd.f32 %v4069_v11, %v4068_v9 }
 0x1b7   : > { %v3980_v63 = vpop.f32.mrf.mxu1  ;;  %v5767_v26 = vpop.f32.mrf.mxu0 }
 0x1b8   : > { %v2016_v38 = vadd.f32 %v3979_v34, %v5626_v0 }
 0x1b9   : > { %v3981_v45 = vpop.f32.mrf.mxu1  ;;  %v5769_v1 = vpop.f32.mrf.mxu0 }
 0x1ba   : > { %v3982_v4 = vadd.f32 %v3981_v45, %v3980_v63  ;;  %v5772_v59 = vadd.f32 %v5701_v7, %v2016_v38 }
 0x1bb   : > { %v3983_v52 = vpop.f32.mrf.mxu1  ;;  %v5775_v62 = vpop.f32.mrf.mxu0 }
 0x1bc   : > { %v2019_v21 = vadd.f32 %v3982_v4, %v5629_v48 }
 0x1bd   : > { %v3984_v8 = vpop.f32.mrf.mxu1  ;;  %v5777_v9 = vpop.f32.mrf.mxu0 }
 0x1be   : > { %v3985_v12 = vadd.f32 %v3984_v8, %v3983_v52  ;;  %v5780_v0 = vadd.f32 %v5708_v14, %v2019_v21 }
 0x1bf   : > { %v3986_v34 = vpop.f32.mrf.mxu1  ;;  %v5783_v11 = vpop.f32.mrf.mxu0 }
 0x1c0   : > { %6126 = vst [vmem:[#allocation6_spill] sm:$0xff] %v5780_v0  ;;  %v2024_v40 = vadd.f32 %v3985_v12, %v5633_v58 }
 0x1c1   : > { %v3987_v63 = vpop.f32.mrf.mxu1  ;;  %v5785_v38 = vpop.f32.mrf.mxu0 }
 0x1c2   : > { %v3988_v7 = vadd.f32 %v3987_v63, %v3986_v34  ;;  %v5788_v48 = vadd.f32 %v5699_v42, %v2024_v40 }
 0x1c3   : > { %v3989_v45 = vpop.f32.mrf.mxu1  ;;  %v5791_v52 = vpop.f32.mrf.mxu0 }
 0x1c4   : > { %v2027_v4 = vadd.f32 %v3988_v7, %v5636_v17 }
 0x1c5   : > { %v3990_v8 = vpop.f32.mrf.mxu1  ;;  %v5793_v21 = vpop.f32.mrf.mxu0 }
 0x1c6   : > { %v3991_v14 = vadd.f32 %v3990_v8, %v3989_v45  ;;  %v5796_v58 = vadd.f32 %v5706_v44, %v2027_v4 }
 0x1c7   : > { %v3992_v12 = vpop.f32.mrf.mxu1  ;;  %v5799_v63 = vpop.f32.mrf.mxu0 }
 0x1c8   : > { %6127 = vst [vmem:[#allocation7_spill] sm:$0xff] %v5796_v58  ;;  %v2032_v34 = vadd.f32 %v3991_v14, %v5643_v6 }
 0x1c9   : > { %v3993_v3 = vpop.f32.mrf.mxu1  ;;  %v5801_v40 = vpop.f32.mrf.mxu0 }
 0x1ca   : > { %v3994_v42 = vadd.f32 %v3993_v3, %v3992_v12  ;;  %v5804_v17 = vadd.f32 %v5715_v60, %v2032_v34 }
 0x1cb   : > { %v3995_v7 = vpop.f32.mrf.mxu1  ;;  %v5807_v8 = vpop.f32.mrf.mxu0 }
 0x1cc   : > { %6128 = vst [vmem:[#allocation8_spill] sm:$0xff] %v5804_v17  ;;  %v2035_v45 = vadd.f32 %v3994_v42, %v5655_v29 }
 0x1cd   : > { %v3996_v0 = vpop.f32.mrf.mxu1  ;;  %v5809_v4 = vpop.f32.mrf.mxu0 }
 0x1ce   : > { %v3997_v44 = vadd.f32 %v3996_v0, %v3995_v7  ;;  %v5812_v6 = vadd.f32 %v5722_v46, %v2035_v45 }
 0x1cf   : > { %v3998_v14 = vpop.f32.mrf.mxu1  ;;  %v5815_v12 = vpop.f32.mrf.mxu0 }
 0x1d0   : > { %6129 = vst [vmem:[#allocation9_spill] sm:$0xff] %v5812_v6  ;;  %v2040_v3 = vadd.f32 %v3997_v44, %v5663_v27 }
 0x1d1   : > { %v3999_v58 = vpop.f32.mrf.mxu1  ;;  %v5817_v34 = vpop.f32.mrf.mxu0 }
 0x1d2   : > { %v4000_v60 = vadd.f32 %v3999_v58, %v3998_v14  ;;  %v5820_v29 = vadd.f32 %v5713_v23, %v2040_v3 }
 0x1d3   : > { %v4001_v42 = vpop.f32.mrf.mxu1  ;;  %v5823_v7 = vpop.f32.mrf.mxu0 }
 0x1d4   : > { %6130 = vst [vmem:[#allocation10_spill] sm:$0xff] %v5820_v29  ;;  %v2043_v0 = vadd.f32 %v4000_v60, %v5671_v5 }
 0x1d5   : > { %v4002_v17 = vpop.f32.mrf.mxu1  ;;  %v5825_v45 = vpop.f32.mrf.mxu0 }
 0x1d6   : > { %v4003_v46 = vadd.f32 %v4002_v17, %v4001_v42  ;;  %v5828_v27 = vadd.f32 %v5720_v10, %v2043_v0 }
 0x1d7   : > { %v4004_v44 = vpop.f32.mrf.mxu1  ;;  %v5831_v14 = vpop.f32.mrf.mxu0 }
 0x1d8   : > { %6131 = vst [vmem:[#allocation11_spill] sm:$0xff] %v5828_v27  ;;  %v2048_v58 = vadd.f32 %v4003_v46, %v5648_v57 }
 0x1d9   : > { %v4005_v6 = vpop.f32.mrf.mxu1  ;;  %v5833_v3 = vpop.f32.mrf.mxu0 }
 0x1da   : > { %v4006_v23 = vadd.f32 %v4005_v6, %v4004_v44  ;;  %v5836_v5 = vadd.f32 %v5729_v37, %v2048_v58 }
 0x1db   : > { %v4007_v60 = vpop.f32.mrf.mxu1  ;;  %v5839_v42 = vpop.f32.mrf.mxu0 }
 0x1dc   : > { %6132 = vst [vmem:[#allocation12_spill] sm:$0xff] %v5836_v5  ;;  %v2051_v17 = vadd.f32 %v4006_v23, %v5658_v22 }
 0x1dd   : > { %v4008_v29 = vpop.f32.mrf.mxu1  ;;  %v5841_v0 = vpop.f32.mrf.mxu0 }
 0x1de   : > { %v4009_v10 = vadd.f32 %v4008_v29, %v4007_v60  ;;  %v5844_v57 = vadd.f32 %v5736_v31, %v2051_v17 }
 0x1df   : > { %v4010_v46 = vpop.f32.mrf.mxu1  ;;  %v5847_v44 = vpop.f32.mrf.mxu0 }
 0x1e0   : > { %6133 = vst [vmem:[#allocation13_spill] sm:$0xff] %v5844_v57  ;;  %v2056_v6 = vadd.f32 %v4009_v10, %v5640_v56 }
 0x1e1   : > { %v4011_v27 = vpop.f32.mrf.mxu1  ;;  %v5849_v58 = vpop.f32.mrf.mxu0 }
 0x1e2   : > { %v4012_v37 = vadd.f32 %v4011_v27, %v4010_v46  ;;  %v5852_v22 = vadd.f32 %v5727_v35, %v2056_v6 }
 0x1e3   : > { %v4013_v23 = vpop.f32.mrf.mxu1  ;;  %v5855_v60 = vpop.f32.mrf.mxu0 }
 0x1e4   : > { %v2059_v29 = vadd.f32 %v4012_v37, %v5651_v32 }
 0x1e5   : > { %v4014_v5 = vpop.f32.mrf.mxu1  ;;  %v5857_v17 = vpop.f32.mrf.mxu0 }
 0x1e6   : > { %v4015_v31 = vadd.f32 %v4014_v5, %v4013_v23  ;;  %v5860_v56 = vadd.f32 %v5734_v20, %v2059_v29 }
 0x1e7   : > { %v4016_v10 = vpop.f32.mrf.mxu1  ;;  %v5863_v46 = vpop.f32.mrf.mxu0 }
 0x1e8   : > { %6134 = vst [vmem:[#allocation14_spill] sm:$0xff] %v5860_v56  ;;  %v2064_v27 = vadd.f32 %v4015_v31, %v5666_v51 }
 0x1e9   : > { %v4017_v57 = vpop.f32.mrf.mxu1  ;;  %v5865_v6 = vpop.f32.mrf.mxu0 }
 0x1ea   : > { %v4018_v35 = vadd.f32 %v4017_v57, %v4016_v10  ;;  %v5868_v32 = vadd.f32 %v5743_v18, %v2064_v27 }
 0x1eb   : > { %v4019_v37 = vpop.f32.mrf.mxu1  ;;  %v5871_v23 = vpop.f32.mrf.mxu0 }
 0x1ec   : > { %6135 = vst [vmem:[#allocation15_spill] sm:$0xff] %v5868_v32  ;;  %v2067_v5 = vadd.f32 %v4018_v35, %v5674_v55  ;;  %v4073_v55 = vadd.f32 %v5769_v1, %v5767_v26 }
 0x1ed   : > { %v4020_v20 = vpop.f32.mrf.mxu1  ;;  %v5873_v56 = vpop.f32.mrf.mxu0 }
 0x1ee   : > { %v4021_v29 = vadd.f32 %v4020_v20, %v4019_v37  ;;  %v5876_v51 = vadd.f32 %v5750_v30, %v2067_v5  ;;  %v4076_v20 = vadd.f32 %v5777_v9, %v5775_v62 }
 0x1ef   : > { %v5878_v31 = vpop.f32.mrf.mxu1  ;;  %v5883_v10 = vpop.f32.mrf.mxu0 }
 0x1f0   : > { %6136 = vst [vmem:[#allocation16_spill] sm:$0xff] %v5876_v51  ;;  %6137 = vst [vmem:[#allocation17_spill] sm:$0xff] %v5878_v31  ;;  %v5881_v57 = vadd.f32 %v4021_v29, %v5661_v13  ;;  %v5900_v13 = vld [vmem:[%s6116_s4] ss:$0 sm:$0xff]  ;;  %v4085_v31 = vadd.f32 %v5801_v40, %v5799_v63 }
 0x1f1   : > { %v5885_v18 = vpop.f32.mrf.mxu1  ;;  %v5889_v27 = vpop.f32.mrf.mxu0  ;;  %v5908_v51 = vld [vmem:[%s347_s8] ss:$0 sm:$0xff] }
 0x1f2   : > { %6138 = vst [vmem:[#allocation18_spill] sm:$0xff] %v5881_v57  ;;  %6139 = vst [vmem:[#allocation19_spill] sm:$0xff] %v5885_v18 }
 0x1f3   : > { %v4299_v35 = vpop.f32.mrf.mxu1  ;;  %v5895_v37 = vpop.f32.mrf.mxu0 }
 0x1f4   : > { %v2653_v30 = vadd.f32 %v4299_v35, %v4073_v55 }
 0x1f5   : > { %v2644_v5 = vpop.f32.mrf.mxu1  ;;  %v5906_v29 = vpop.f32.mrf.mxu0 }
 0x1f6   : > { %v2773_v26 = vadd.f32 %v2653_v30, %v5683_v25  ;;  %v2645_v1 = vadd.f32 %v5758_v19, %v2644_v5 }
 0x1f7   : > { %v4300_v55 = vpop.f32.mrf.mxu1  ;;  %v5912_v18 = vpop.f32.mrf.mxu0 }
 0x1f8   : > { %v2812_v35 = vadd.f32 %v5900_v13, %v2773_v26  ;;  %v2771_v32 = vadd.f32 %v2645_v1, %v5677_v36  ;;  %v2656_v57 = vadd.f32 %v4300_v55, %v4076_v20  ;;  %v4079_v36 = vadd.f32 %v5785_v38, %v5783_v11 }
 0x1f9   : > { %v2647_v62 = vpop.f32.mrf.mxu1  ;;  %v5920_v5 = vpop.f32.mrf.mxu0  ;;  %v4082_v11 = vadd.f32 %v5793_v21, %v5791_v52  ;;  %v4088_v38 = vadd.f32 %v5809_v4, %v5807_v8  ;;  %v4097_v21 = vadd.f32 %v5833_v3, %v5831_v14 }
 0x1fa   : > { %v2851_v25 = vadd.f32 %v5908_v51, %v2812_v35  ;;  %v2810_v19 = vadd.f32 %v5900_v13, %v2771_v32  ;;  %v2774_v9 = vadd.f32 %v2656_v57, %v5686_v47  ;;  %v2648_v30 = vadd.f32 %v5764_v2, %v2647_v62 }
 0x1fb   : > { %v4303_v20 = vpop.f32.mrf.mxu1  ;;  %v5927_v55 = vpop.f32.mrf.mxu0 }
 0x1fc   : > { %v2849_v26 = vadd.f32 %v5908_v51, %v2810_v19  ;;  %v2813_v63 = vadd.f32 %v5900_v13, %v2774_v9  ;;  %v2772_v40 = vadd.f32 %v2648_v30, %v5680_v61  ;;  %v2669_v1 = vadd.f32 %v4303_v20, %v4085_v31 }
 0x1fd   : > { %v2660_v32 = vpop.f32.mrf.mxu1  ;;  %v5932_v62 = vpop.f32.mrf.mxu0 }
 0x1fe   : > { %v2852_v47 = vadd.f32 %v5908_v51, %v2813_v63  ;;  %v2811_v2 = vadd.f32 %v5900_v13, %v2772_v40  ;;  %v2777_v57 = vadd.f32 %v2669_v1, %v5703_v28  ;;  %v2661_v35 = vadd.f32 %v4079_v36, %v2660_v32 }
 0x1ff   : > { %v4304_v61 = vpop.f32.mrf.mxu1  ;;  %v5948_v52 = vpop.f32.mrf.mxu0 }
 0x200   : > { %v3660_v31 = vpack.c.bf16 %v2852_v47, %v2851_v25  ;;  %v2850_v28 = vadd.f32 %v5908_v51, %v2811_v2  ;;  %v2816_v19 = vadd.f32 %v5900_v13, %v2777_v57  ;;  %v2775_v9 = vadd.f32 %v2661_v35, %v5691_v53 }
 0x201   : > { %v2672_v8 = vadd.f32 %v4304_v61, %v4088_v38  ;;  %v2663_v4 = vpop.f32.mrf.mxu1  ;;  %v5955_v63 = vpop.f32.mrf.mxu0  ;;  %v4091_v53 = vadd.f32 %v5817_v34, %v5815_v12  ;;  %v4100_v57 = vadd.f32 %v5841_v0, %v5839_v42  ;;  %v4109_v0 = vadd.f32 %v5865_v6, %v5863_v46 }
 0x202   : > { %3762 = vst [vmem:[%s5943_s14 + $0x8] sm:$0xff] %v3660_v31   ;;  %v3655_v30 = vpack.c.bf16 %v2850_v28, %v2849_v26  ;;  %v2855_v36 = vadd.f32 %v5908_v51, %v2816_v19  ;;  %v2814_v25 = vadd.f32 %v5900_v13, %v2775_v9  ;;  %v2664_v20 = vadd.f32 %v4082_v11, %v2663_v4 }
 0x203   : > { %v2778_v40 = vadd.f32 %v2672_v8, %v5710_v41  ;;  %v4307_v1 = vpop.f32.mrf.mxu1  ;;  %v5963_v26 = vpop.f32.mrf.mxu0 }
 0x204   : > { %3656 = vst [vmem:[%s5943_s14] sm:$0xff] %v3655_v30   ;;  %v2853_v14 = vadd.f32 %v5908_v51, %v2814_v25  ;;  %v2776_v3 = vadd.f32 %v2664_v20, %v5696_v33  ;;  %v2685_v32 = vadd.f32 %v4307_v1, %v4097_v21 }
 0x205   : > { %v2817_v47 = vadd.f32 %v5900_v13, %v2778_v40  ;;  %v2676_v2 = vpop.f32.mrf.mxu1  ;;  %v5970_v12 = vpop.f32.mrf.mxu0  ;;  %v4103_v40 = vadd.f32 %v5849_v58, %v5847_v44 }
 0x206   : > { %v2815_v41 = vadd.f32 %v5900_v13, %v2776_v3  ;;  %v2781_v35 = vadd.f32 %v2685_v32, %v5731_v54  ;;  %v2677_v11 = vadd.f32 %v4091_v53, %v2676_v2  ;;  %v4094_v54 = vadd.f32 %v5825_v45, %v5823_v7 }
 0x207   : > { %v2856_v34 = vadd.f32 %v5908_v51, %v2817_v47  ;;  %v4308_v33 = vpop.f32.mrf.mxu1  ;;  %v5976_v42 = vpop.f32.mrf.mxu0  ;;  %v4106_v3 = vadd.f32 %v5857_v17, %v5855_v60 }
 0x208   : > { %v2854_v38 = vadd.f32 %v5908_v51, %v2815_v41  ;;  %v2820_v61 = vadd.f32 %v5900_v13, %v2781_v35  ;;  %v2779_v31 = vadd.f32 %v2677_v11, %v5717_v50  ;;  %v2688_v28 = vadd.f32 %v4308_v33, %v4100_v57 }
 0x209   : > { %v3670_v19 = vpack.c.bf16 %v2856_v34, %v2855_v36  ;;  %v2679_v9 = vpop.f32.mrf.mxu1  ;;  %v4132_v50 = vpop.f32.mrf.mxu0 }
 0x20a   : > { %v3665_v21 = vpack.c.bf16 %v2854_v38, %v2853_v14  ;;  %v2859_v8 = vadd.f32 %v5908_v51, %v2820_v61  ;;  %v2818_v4 = vadd.f32 %v5900_v13, %v2779_v31  ;;  %v2782_v30 = vadd.f32 %v2688_v28, %v5738_v24 }
 0x20b   : > { %3764 = vst [vmem:[%s5943_s14 + $0x18] sm:$0xff] %v3670_v19   ;;  %v2680_v25 = vadd.f32 %v4094_v54, %v2679_v9  ;;  %v4311_v20 = vpop.f32.mrf.mxu1  ;;  %v5991_v6 = vpop.f32.mrf.mxu0  ;;  %v4112_v24 = vadd.f32 %v5873_v56, %v5871_v23  ;;  %v4121_v23 = vadd.f32 %v5920_v5, %v5912_v18 }
 0x20c   : > { %3763 = vst [vmem:[%s5943_s14 + $0x10] sm:$0xff] %v3665_v21   ;;  %v2857_v7 = vadd.f32 %v5908_v51, %v2818_v4  ;;  %v2821_v45 = vadd.f32 %v5900_v13, %v2782_v30  ;;  %v2701_v46 = vadd.f32 %v4311_v20, %v4109_v0  ;;  %v4118_v21 = vadd.f32 %v5906_v29, %v5895_v37 }
 0x20d   : > { %v2780_v36 = vadd.f32 %v2680_v25, %v5724_v49  ;;  %v2692_v1 = vpop.f32.mrf.mxu1  ;;  %v4135_v58 = vpop.f32.mrf.mxu0 }
 0x20e   : > { %v2860_v53 = vadd.f32 %v5908_v51, %v2821_v45  ;;  %v2785_v14 = vadd.f32 %v2701_v46, %v5756_v43  ;;  %v2693_v44 = vadd.f32 %v4103_v40, %v2692_v1 }
 0x20f   : > { %v2819_v32 = vadd.f32 %v5900_v13, %v2780_v36  ;;  %v4312_v47 = vpop.f32.mrf.mxu1  ;;  %v6003_v56 = vpop.f32.mrf.mxu0  ;;  %v6140_v36 = vld [vmem:[#allocation7_spill] sm:$0xff] }
 0x210   : > { %v3680_v2 = vpack.c.bf16 %v2860_v53, %v2859_v8  ;;  %v2824_v49 = vadd.f32 %v5900_v13, %v2785_v14  ;;  %v2783_v57 = vadd.f32 %v2693_v44, %v5745_v15  ;;  %v2704_v41 = vadd.f32 %v4312_v47, %v4112_v24 }
 0x211   : > { %v2858_v43 = vadd.f32 %v5908_v51, %v2819_v32  ;;  %v2695_v35 = vpop.f32.mrf.mxu1  ;;  %v6012_v33 = vpop.f32.mrf.mxu0  ;;  %v4115_v15 = vadd.f32 %v5889_v27, %v5883_v10  ;;  %v4127_v53 = vadd.f32 %v5955_v63, %v5948_v52  ;;  %v4136_v47 = vadd.f32 %v4135_v58, %v5991_v6 }
 0x212   : > { %3766 = vst [vmem:[%s5943_s14 + $0x28] sm:$0xff] %v3680_v2   ;;  %v2863_v60 = vadd.f32 %v5908_v51, %v2824_v49  ;;  %v2822_v17 = vadd.f32 %v5900_v13, %v2783_v57  ;;  %v2786_v11 = vadd.f32 %v2704_v41, %v5762_v16  ;;  %v2696_v34 = vadd.f32 %v4106_v3, %v2695_v35  ;;  %v6142_v49 = vld [vmem:[#allocation10_spill] sm:$0xff] }
 0x213   : > { %v3675_v38 = vpack.c.bf16 %v2858_v43, %v2857_v7  ;;  %v4315_v61 = vpop.f32.mrf.mxu1  ;;  %v6019_v54 = vpop.f32.mrf.mxu0  ;;  %v4130_v6 = vadd.f32 %v5970_v12, %v5963_v26 }
 0x214   : > { %v2861_v18 = vadd.f32 %v5908_v51, %v2822_v17  ;;  %v2825_v5 = vadd.f32 %v5900_v13, %v2786_v11  ;;  %v2784_v31 = vadd.f32 %v2696_v34, %v5752_v39  ;;  %v2717_v28 = vadd.f32 %v4315_v61, %v4121_v23 }
 0x215   : > { %3765 = vst [vmem:[%s5943_s14 + $0x20] sm:$0xff] %v3675_v38   ;;  %v2708_v0 = vpop.f32.mrf.mxu1  ;;  %v6025_v9 = vpop.f32.mrf.mxu0  ;;  %v4124_v39 = vadd.f32 %v5932_v62, %v5927_v55 }
 0x216   : > { %v2864_v16 = vadd.f32 %v5908_v51, %v2825_v5  ;;  %v2823_v19 = vadd.f32 %v5900_v13, %v2784_v31  ;;  %v2789_v10 = vadd.f32 %v2717_v28, %v5788_v48  ;;  %v2709_v27 = vadd.f32 %v4115_v15, %v2708_v0  ;;  %v6144_v31 = vld [vmem:[#allocation11_spill] sm:$0xff] }
 0x217   : > { %v4316_v8 = vpop.f32.mrf.mxu1  ;;  %v4143_v40 = vpop.f32.mrf.mxu0  ;;  %v4133_v48 = vadd.f32 %v4132_v50, %v5976_v42  ;;  %v6141_v42 = vld [vmem:[#allocation6_spill] sm:$0xff] }
 0x218   : > { %v3690_v4 = vpack.c.bf16 %v2864_v16, %v2863_v60  ;;  %v2862_v30 = vadd.f32 %v5908_v51, %v2823_v19  ;;  %v2828_v25 = vadd.f32 %v5900_v13, %v2789_v10  ;;  %v2787_v20 = vadd.f32 %v2709_v27, %v5772_v59  ;;  %v6143_v60 = vld [vmem:[#allocation8_spill] sm:$0xff] }
 0x219   : > { %v2720_v7 = vadd.f32 %v4316_v8, %v4124_v39  ;;  %v2711_v45 = vpop.f32.mrf.mxu1  ;;  %v4144_v62 = vpop.f32.mrf.mxu0  ;;  %v4139_v10 = vadd.f32 %v6012_v33, %v6003_v56  ;;  %v6145_v39 = vld [vmem:[#allocation9_spill] sm:$0xff]  ;;  %v4142_v56 = vadd.f32 %v6025_v9, %v6019_v54 }
 0x21a   : > { %3768 = vst [vmem:[%s5943_s14 + $0x38] sm:$0xff] %v3690_v4   ;;  %v3685_v46 = vpack.c.bf16 %v2862_v30, %v2861_v18  ;;  %v2867_v37 = vadd.f32 %v5908_v51, %v2828_v25  ;;  %v2826_v29 = vadd.f32 %v5900_v13, %v2787_v20  ;;  %v2712_v55 = vadd.f32 %v4118_v21, %v2711_v45 }
 0x21b   : > { %v2790_v1 = vadd.f32 %v2720_v7, %v6140_v36  ;;  %v4319_v24 = vpop.f32.mrf.mxu1  ;;  %v4146_v44 = vpop.f32.mrf.mxu0  ;;  %v4145_v15 = vadd.f32 %v4144_v62, %v4143_v40  ;;  %v6147_v36 = vld [vmem:[#allocation17_spill] sm:$0xff] }
 0x21c   : > { %3767 = vst [vmem:[%s5943_s14 + $0x30] sm:$0xff] %v3685_v46   ;;  %v2865_v59 = vadd.f32 %v5908_v51, %v2826_v29  ;;  %v2788_v50 = vadd.f32 %v2712_v55, %v6141_v42  ;;  %v2733_v14 = vadd.f32 %v4319_v24, %v4133_v48 }
 0x21d   : > { %v2829_v3 = vadd.f32 %v5900_v13, %v2790_v1  ;;  %v2724_v32 = vpop.f32.mrf.mxu1  ;;  %v4147_v23 = vpop.f32.mrf.mxu0  ;;  %v6148_v1 = vld [vmem:[#allocation19_spill] sm:$0xff] }
 0x21e   : > { %v2827_v2 = vadd.f32 %v5900_v13, %v2788_v50  ;;  %v2793_v57 = vadd.f32 %v2733_v14, %v6142_v49  ;;  %v2725_v41 = vadd.f32 %v4127_v53, %v2724_v32  ;;  %v4148_v25 = vadd.f32 %v4147_v23, %v4146_v44 }
 0x21f   : > { %v2868_v52 = vadd.f32 %v5908_v51, %v2829_v3  ;;  %v4320_v63 = vpop.f32.mrf.mxu1  ;;  %v4149_v34 = vpop.f32.mrf.mxu0  ;;  %v4024_v24 = vadd.f32 %v6148_v1, %v6147_v36 }
 0x220   : > { %v2866_v43 = vadd.f32 %v5908_v51, %v2827_v2  ;;  %v2832_v35 = vadd.f32 %v5900_v13, %v2793_v57  ;;  %v2791_v17 = vadd.f32 %v2725_v41, %v6143_v60  ;;  %v2736_v11 = vadd.f32 %v4320_v63, %v4136_v47  ;;  %v6150_v57 = vld [vmem:[#allocation13_spill] sm:$0xff]  ;;  %v6152_v63 = vld [vmem:[#allocation4_spill] sm:$0xff] }
 0x221   : > { %v3700_v58 = vpack.c.bf16 %v2868_v52, %v2867_v37  ;;  %v2727_v38 = vpop.f32.mrf.mxu1  ;;  %v4150_v0 = vpop.f32.mrf.mxu0  ;;  %v6146_v37 = vld [vmem:[#allocation12_spill] sm:$0xff]  ;;  %v6151_v52 = vld [vmem:[#allocation18_spill] sm:$0xff] }
 0x222   : > { %v3695_v61 = vpack.c.bf16 %v2866_v43, %v2865_v59  ;;  %v2871_v18 = vadd.f32 %v5908_v51, %v2832_v35  ;;  %v2830_v5 = vadd.f32 %v5900_v13, %v2791_v17  ;;  %v2794_v28 = vadd.f32 %v2736_v11, %v6144_v31  ;;  %v6149_v59 = vld [vmem:[#allocation14_spill] sm:$0xff]  ;;  %v6153_v35 = vld [vmem:[#allocation3_spill] sm:$0xff] }
 0x223   : > { %3770 = vst [vmem:[%s5943_s14 + $0x48] sm:$0xff] %v3700_v58   ;;  %v2728_v16 = vadd.f32 %v4130_v6, %v2727_v38  ;;  %v4323_v19 = vpop.f32.mrf.mxu1  ;;  %v4152_v21 = vpop.f32.mrf.mxu0  ;;  %v4151_v47 = vadd.f32 %v4150_v0, %v4149_v34  ;;  %v2233_v43 = vadd.f32 %v6152_v63, %v6151_v52  ;;  %v2075_v60 = vadd.f32 %v4024_v24, %v6153_v35  ;;  %v6154_v0 = vld [vmem:[#allocation15_spill] sm:$0xff] }
 0x224   : > { %3769 = vst [vmem:[%s5943_s14 + $0x40] sm:$0xff] %v3695_v61   ;;  %v2869_v26 = vadd.f32 %v5908_v51, %v2830_v5  ;;  %v2833_v12 = vadd.f32 %v5900_v13, %v2794_v28  ;;  %v2749_v27 = vadd.f32 %v4323_v19, %v4145_v15  ;;  %v6155_v19 = vld [vmem:[#allocation5_spill] sm:$0xff] }
 0x225   : > { %v2792_v8 = vadd.f32 %v2728_v16, %v6145_v39  ;;  %v2740_v4 = vpop.f32.mrf.mxu1  ;;  %v4153_v48 = vpop.f32.mrf.mxu0 }
 0x226   : > { %v2872_v30 = vadd.f32 %v5908_v51, %v2833_v12  ;;  %v2797_v20 = vadd.f32 %v2749_v27, %v5852_v22  ;;  %v2741_v40 = vadd.f32 %v4139_v10, %v2740_v4  ;;  %v4154_v31 = vadd.f32 %v4153_v48, %v4152_v21 }
 0x227   : > { %v2831_v33 = vadd.f32 %v5900_v13, %v2792_v8  ;;  %v4324_v7 = vpop.f32.mrf.mxu1  ;;  %v4155_v62 = vpop.f32.mrf.mxu0  ;;  %v2236_v10 = vadd.f32 %v6155_v19, %v2075_v60 }
 0x228   : > { %v3710_v45 = vpack.c.bf16 %v2872_v30, %v2871_v18  ;;  %v2836_v46 = vadd.f32 %v5900_v13, %v2797_v20  ;;  %v2795_v29 = vadd.f32 %v2741_v40, %v6146_v37  ;;  %v2752_v55 = vadd.f32 %v4324_v7, %v4148_v25  ;;  %v6156_v20 = vld [vmem:[#allocation16_spill] sm:$0xff] }
 0x229   : > { %v2870_v22 = vadd.f32 %v5908_v51, %v2831_v33  ;;  %v2743_v53 = vpop.f32.mrf.mxu1  ;;  %v4156_v14 = vpop.f32.mrf.mxu0 }
 0x22a   : > { %3772 = vst [vmem:[%s5943_s14 + $0x58] sm:$0xff] %v3710_v45   ;;  %v2875_v54 = vadd.f32 %v5908_v51, %v2836_v46  ;;  %v2834_v9 = vadd.f32 %v5900_v13, %v2795_v29  ;;  %v2798_v42 = vadd.f32 %v2752_v55, %v6149_v59  ;;  %v2744_v50 = vadd.f32 %v4142_v56, %v2743_v53 }
 0x22b   : > { %v3705_v44 = vpack.c.bf16 %v2870_v22, %v2869_v26  ;;  %v4327_v3 = vpop.f32.mrf.mxu1  ;;  %v4157_v32 = vadd.f32 %v4156_v14, %v4155_v62  ;;  %v4158_v23 = vpop.f32.mrf.mxu0 }
 0x22c   : > { %v2873_v2 = vadd.f32 %v5908_v51, %v2834_v9  ;;  %v2837_v49 = vadd.f32 %v5900_v13, %v2798_v42  ;;  %v2796_v41 = vadd.f32 %v2744_v50, %v6150_v57 }
 0x22d   : > { %3771 = vst [vmem:[%s5943_s14 + $0x50] sm:$0xff] %v3705_v44   ;;  %v2765_v17 = vadd.f32 %v4327_v3, %v4157_v32  ;;  %v2756_v11 = vpop.f32.mrf.mxu1  ;;  %v4159_v15 = vpop.f32.mrf.mxu0 }
 0x22e   : > { %v2876_v6 = vadd.f32 %v5908_v51, %v2837_v49  ;;  %v2835_v34 = vadd.f32 %v5900_v13, %v2796_v41  ;;  %v2757_v58 = vadd.f32 %v4151_v47, %v2756_v11  ;;  %v4160_v18 = vadd.f32 %v4159_v15, %v4158_v23 }
 0x22f   : > { %v2801_v38 = vadd.f32 %v2765_v17, %v2233_v43  ;;  %v4328_v61 = vpop.f32.mrf.mxu1 }
 0x230   : > { %v3720_v5 = vpack.c.bf16 %v2876_v6, %v2875_v54  ;;  %v2874_v28 = vadd.f32 %v5908_v51, %v2835_v34  ;;  %v2799_v16 = vadd.f32 %v2757_v58, %v6154_v0  ;;  %v2768_v12 = vadd.f32 %v4328_v61, %v4160_v18 }
 0x231   : > { %v2840_v26 = vadd.f32 %v5900_v13, %v2801_v38  ;;  %v2759_v27 = vpop.f32.mrf.mxu1 }
 0x232   : > { %3774 = vst [vmem:[%s5943_s14 + $0x68] sm:$0xff] %v3720_v5   ;;  %v3715_v39 = vpack.c.bf16 %v2874_v28, %v2873_v2  ;;  %v2838_v8 = vadd.f32 %v5900_v13, %v2799_v16  ;;  %v2760_v4 = vadd.f32 %v4154_v31, %v2759_v27  ;;  %v2802_v21 = vadd.f32 %v2768_v12, %v2236_v10 }
 0x233   : > { %v2879_v30 = vadd.f32 %v5908_v51, %v2840_v26 }
 0x234   : > { %3773 = vst [vmem:[%s5943_s14 + $0x60] sm:$0xff] %v3715_v39   ;;  %v2877_v25 = vadd.f32 %v5908_v51, %v2838_v8  ;;  %v2800_v40 = vadd.f32 %v2760_v4, %v6156_v20  ;;  %v2841_v48 = vadd.f32 %v5900_v13, %v2802_v21 }
 0x236   : > { %v2839_v56 = vadd.f32 %v5900_v13, %v2800_v40  ;;  %v2880_v33 = vadd.f32 %v5908_v51, %v2841_v48 }
 0x238   : > { %v2878_v7 = vadd.f32 %v5908_v51, %v2839_v56  ;;  %v3730_v45 = vpack.c.bf16 %v2880_v33, %v2879_v30 }
 0x23a   : > { %v3725_v46 = vpack.c.bf16 %v2878_v7, %v2877_v25  ;;  %3776 = vst [vmem:[%s5943_s14 + $0x78] sm:$0xff] %v3730_v45  }
 0x23c   : > { %3775 = vst [vmem:[%s5943_s14 + $0x70] sm:$0xff] %v3725_v46  }
 0x23d PF: > { %s16_s23 = sadd.s32 1, %s4616_s23   ;;  %s6157_s21 = smov %s4612_s22 }
 0x23e   : > { %p13_p5 = scmp.ge.s32.totalorder %s16_s23, 4   ;;  %s6158_s22 = smov %s6160_s24 }
 0x240   :  { %15 = sbr.rel (!%p13_p5) target bundleno = 2 (0x2), region = 95 }

// kernel: down_block_2d.17
= control target key start
LH: loop header
LB: loop body
LE: loop exit
PB: predicated region body
PF: predicated region fallthrough
CT: control target
= control target key end

     0   :  { %s2349_s12 = smov 0   ;;  %s2351_s13 = smov 0   ;;  %s2841_s0 = inlined_call_operand.vmem [shape: bf16[2,16,8,256], index: 0, kind: input, shape index: {}]   ;;  %s2842_s1 = inlined_call_operand.vmem [shape: bf16[3,384,128], index: 1, kind: input, shape index: {}]   ;;  %s2843_s2 = inlined_call_operand.vmem [shape: f32[1,128], index: 2, kind: input, shape index: {}]   ;;  %s2844_s3 = inlined_call_operand.vmem [shape: bf16[2,8,8,128], index: 3, kind: output, shape index: {}]  }
   0x1   :  { %s2353_s14 = smov 0  }
   0x2 LB: > { %s25_s15 = sadd.s32 1, %s2322_s13  ;;  %p1685_p0 = scmp.ge.s32.totalorder %s2326_s14, 1  ;;  %s2326_s14 = sphi %s2353_s14, %s13_s14   ;;  %s2322_s13 = sphi %s2351_s13, %s2850_s13   ;;  %s2318_s12 = sphi %s2349_s12, %s2849_s12  }
   0x3   : > { %p27_p1 = scmp.ge.s32.totalorder %s25_s15, 2  ;;  %p168_p2 = scmp.lt.s32.totalorder %s2326_s14, 3 }
   0x5   : > { %s2852_s15 = smov (%p27_p1, %s25_s15), 0  ;;  %p169_p3 = pnand %p1685_p0, %p168_p2 }
   0x6   : > { %p202_p4 = scmp.lt.s32.totalorder (!%p169_p3), %s2318_s12, 1 }
   0x7   : > { %172 = sbr.rel (%p169_p3) target bundleno = 343 (0x157), region = 32 }
   0xc   : > { %v2194_v0 = vld [vmem:[%s2842_s1 + $0x138] sm:$0xff]   ;;  %v2197_v3 = vld [vmem:[%s2842_s1 + $0x130] sm:$0xff]   ;;  %v2200_v6 = vld [vmem:[%s2842_s1 + $0x128] sm:$0xff]   ;;  %s2854_s12 = smov (!%p202_p4, %s2318_s12), 1  ;;  %vm331_vm0 = vcmask 1040384   ;;  %vm1914_vm3 = vcmask 1043456 }
   0xd   : > { %v2195_v1 = vld [vmem:[%s2842_s1 + $0xf8] sm:$0xff]   ;;  %1941 = vmatprep.subr.bf16.mxu0 %v2194_v0  ;;  %v2198_v4 = vld [vmem:[%s2842_s1 + $0xf0] sm:$0xff]   ;;  %v2201_v7 = vld [vmem:[%s2842_s1 + $0xe8] sm:$0xff]   ;;  %s1912_s27 = sshll.u32 %s2854_s12, 7  ;;  %vm332_vm1 = vsmask.f32 256 }
   0xe   : > { %v2196_v2 = vld [vmem:[%s2842_s1 + $0x178] sm:$0xff]   ;;  %1942 = vmatpush3.bf16.msra.mxu0 %v2195_v1  ;;  %v2199_v5 = vld [vmem:[%s2842_s1 + $0x170] sm:$0xff]   ;;  %v2202_v8 = vld [vmem:[%s2842_s1 + $0x168] sm:$0xff]   ;;  %s2437_s9 = scalar_lea.vmem %s2841_s0, %s1912_s27  ;;  %s1913_s4 = sshll.u32 %s2854_s12, 5 }
   0xf   : > { %2097 = vmatprep.subr.bf16.mxu1 %v2196_v2  ;;  %1943 = vmatprep.subr.bf16.mxu0 %v2197_v3  ;;  %v2203_v9 = vld [vmem:[%s2842_s1 + $0x120] sm:$0xff]   ;;  %v2206_v12 = vld [vmem:[%s2842_s1 + $0x118] sm:$0xff]   ;;  %v2209_v15 = vld [vmem:[%s2842_s1 + $0x110] sm:$0xff]   ;;  %s2802_s7 = scalar_lea.vmem %s2844_s3, %s1913_s4 }
  0x10   : > { %2098 = vmatpush3.bf16.msra.mxu1 %v2196_v2  ;;  %v2204_v10 = vld [vmem:[%s2842_s1 + $0xe0] sm:$0xff]   ;;  %v2208_v13 = vld [vmem:[%s2842_s1 + $0x158] sm:$0xff]   ;;  %v2211_v16 = vld [vmem:[%s2842_s1 + $0x150] sm:$0xff]  }
  0x11   : > { %2099 = vmatprep.subr.bf16.mxu1 %v2199_v5  ;;  %v2205_v11 = vld [vmem:[%s2842_s1 + $0x160] sm:$0xff]   ;;  %v2207_v14 = vld [vmem:[%s2842_s1 + $0xd8] sm:$0xff]   ;;  %v2210_v17 = vld [vmem:[%s2842_s1 + $0xd0] sm:$0xff]  }
  0x12   : > { %1944 = vmatpush3.bf16.msra.mxu0 %v2198_v4  ;;  %v2212_v18 = vld [vmem:[%s2842_s1 + $0x108] sm:$0xff]   ;;  %v2215_v21 = vld [vmem:[%s2842_s1 + $0x100] sm:$0xff]   ;;  %v225_v23 = vld [vmem:[%s2437_s9 + $0x10] sm:$0xff] }
  0x13   : > { %1945 = vmatprep.subr.bf16.mxu0 %v2200_v6  ;;  %v2213_v19 = vld [vmem:[%s2842_s1 + $0xc8] sm:$0xff]   ;;  %v223_v22 = vld [vmem:[%s2437_s9] sm:$0xff]  ;;  %v1698_v27 = vcombine.high %v225_v23, %v225_v23  ;;  %v229_v35 = vld [vmem:[%s2437_s9 + $0x30] sm:$0xff] }
  0x14   : > { %2100 = vmatpush3.bf16.msra.mxu1 %v2199_v5  ;;  %v2214_v20 = vld [vmem:[%s2842_s1 + $0x148] sm:$0xff]   ;;  %v2216_v24 = vld [vmem:[%s2842_s1 + $0xc0] sm:$0xff]   ;;  %v1697_v26 = vcombine.high %v223_v22, %v223_v22  ;;  %v1754_v28 = vcombine.low %v223_v22, %v225_v23  ;;  %v1755_v29 = vcombine.high %v223_v22, %v225_v23  ;;  %v2221_v36 = vld [vmem:[%s2842_s1 + $0x78] sm:$0xff]   ;;  %v1700_v38 = vcombine.high %v229_v35, %v229_v35 }
  0x15   : > { %2101 = vmatprep.subr.bf16.mxu1 %v2202_v8  ;;  %v2217_v25 = vld [vmem:[%s2842_s1 + $0x140] sm:$0xff]   ;;  %v440_v32 = vshrl.u32 %v1698_v27, 16  ;;  %v443_v33 = vshll.u32 %v1698_v27, 16  ;;  %vm2460_vm2 = vmand %vm331_vm0, %vm332_vm1  ;;  %v2227_v42 = vld [vmem:[%s2842_s1 + $0xb8] sm:$0xff]  }
  0x16   : > { %1946 = vmatpush3.bf16.msra.mxu0 %v2201_v7  ;;  %v433_v30 = vshrl.u32 %v1697_v26, 16  ;;  %v436_v31 = vshll.u32 %v1697_v26, 16  ;;  %777 = vmatprep.mubr.bf16.mxu0 %v1754_v28  ;;  %v227_v34 = vld [vmem:[%s2437_s9 + $0x20] sm:$0xff]  ;;  %v454_v49 = vshrl.u32 %v1700_v38, 16  ;;  %v457_v50 = vshll.u32 %v1700_v38, 16  ;;  %v2223_v53 = vld [vmem:[%s2842_s1 + $0x38] sm:$0xff]   ;;  %vm2523_vm4 = vmneg %vm1914_vm3 }
  0x17   : > { %1947 = vmatprep.subr.bf16.mxu0 %v2203_v9  ;;  %2113 = vmatprep.mubr.bf16.mxu1 %v1755_v29  ;;  %v1699_v37 = vcombine.high %v227_v34, %v227_v34  ;;  %v442_v40 = vrot.slane %v440_v32, 7  ;;  %v1758_v47 = vcombine.high %v227_v34, %v229_v35  ;;  %v2228_v54 = vld [vmem:[%s2842_s1 + $0x70] sm:$0xff]   ;;  %v1757_v59 = vcombine.low %v227_v34, %v229_v35  ;;  %v2232_v63 = vld [vmem:[%s2842_s1 + $0x68] sm:$0xff]   ;;  %v231_v2 = vld [vmem:[%s2437_s9 + $0x40] sm:$0xff] }
  0x18   : > { %2102 = vmatpush3.bf16.msra.mxu1 %v2202_v8  ;;  %v435_v39 = vrot.slane %v433_v30, 7  ;;  %v2230_v56 = vld [vmem:[%s2842_s1 + $0xb0] sm:$0xff]   ;;  %v456_v58 = vrot.slane %v454_v49, 7  ;;  %v2234_v1 = vld [vmem:[%s2842_s1 + $0xa8] sm:$0xff]   ;;  %v1701_v5 = vcombine.high %v231_v2, %v231_v2  ;;  %v2235_v7 = vld [vmem:[%s2842_s1 + $0x60] sm:$0xff]  }
  0x19   : > { %2103 = vmatprep.subr.bf16.mxu1 %v2205_v11  ;;  %v447_v43 = vshrl.u32 %v1699_v37, 16  ;;  %v445_v45 = vor.u32 %v443_v33, %v442_v40  ;;  %v450_v46 = vshll.u32 %v1699_v37, 16  ;;  %v2229_v60 = vld [vmem:[%s2842_s1 + $0x30] sm:$0xff]   ;;  %v2233_v3 = vld [vmem:[%s2842_s1 + $0x28] sm:$0xff]   ;;  %v2236_v22 = vld [vmem:[%s2842_s1 + $0x20] sm:$0xff]  }
  0x1a   : > { %1948 = vmatpush3.bf16.msra.mxu0 %v2204_v10  ;;  %v438_v44 = vor.u32 %v436_v31, %v435_v39  ;;  %v459_v61 = vor.u32 %v457_v50, %v456_v58  ;;  %v233_v4 = vld [vmem:[%s2437_s9 + $0x50] sm:$0xff]  ;;  %v2237_v10 = vld [vmem:[%s2842_s1 + $0xa0] sm:$0xff]   ;;  %v2247_v28 = vld [vmem:[%s2842_s1 + $0x98] sm:$0xff]  }
  0x1b   : > { %1949 = vmatprep.subr.bf16.mxu0 %v2206_v12  ;;  %v449_v48 = vrot.slane %v447_v43, 7  ;;  %v497_v52 = vsel %vm2460_vm2, 0, %v445_v45  ;;  %v1702_v8 = vcombine.high %v233_v4, %v233_v4  ;;  %v1761_v9 = vcombine.high %v231_v2, %v233_v4  ;;  %v2243_v33 = vld [vmem:[%s2842_s1 + $0x18] sm:$0xff]   ;;  %v2248_v39 = vld [vmem:[%s2842_s1 + $0x50] sm:$0xff]   ;;  %v2252_v49 = vld [vmem:[%s2842_s1 + $0x48] sm:$0xff]  }
  0x1c   : > { %2104 = vmatpush3.bf16.msra.mxu1 %v2205_v11  ;;  %v496_v51 = vsel %vm2460_vm2, 0, %v438_v44  ;;  %v499_v0 = vsel %vm2460_vm2, 0, %v459_v61  ;;  %v461_v11 = vshrl.u32 %v1701_v5, 16  ;;  %v464_v12 = vshll.u32 %v1701_v5, 16  ;;  %v2249_v44 = vld [vmem:[%s2842_s1 + $0x10] sm:$0xff]   ;;  %v2558_v58 = vld [vmem:[%s2437_s9 + $0x18] sm:$0xff] }
  0x1d   : > { %2105 = vmatprep.subr.bf16.mxu1 %v2208_v13  ;;  %v1753_v55 = vcombine.low %v496_v51, %v497_v52  ;;  %v452_v57 = vor.u32 %v450_v46, %v449_v48  ;;  %v2328_v46 = vmov 0   ;;  %v2544_v51 = vld [vmem:[%s2437_s9 + $0x8] sm:$0xff]  ;;  %v2293_v41 = vld [vmem:[%s2842_s1 + $0x180] sm:$0xff]  }
  0x1e   : > { %1950 = vmatpush3.bf16.msra.mxu0 %v2207_v14  ;;  %v237_v14 = vld [vmem:[%s2437_s9 + $0x70] sm:$0xff]  ;;  %v2254_v52 = vld [vmem:[%s2842_s1 + $0x88] sm:$0xff]  }
  0x1f   : > { %1951 = vmatprep.subr.bf16.mxu0 %v2209_v15  ;;  %v498_v62 = vsel %vm2460_vm2, 0, %v452_v57  ;;  %v468_v15 = vshrl.u32 %v1702_v8, 16  ;;  %v2636_v37 = vld [vmem:[%s2437_s9 + $0x68] sm:$0xff] }
  0x20   : > { %2106 = vmatpush3.bf16.msra.mxu1 %v2208_v13  ;;  %v1756_v6 = vcombine.low %v498_v62, %v499_v0  ;;  %v235_v13 = vld [vmem:[%s2437_s9 + $0x60] sm:$0xff]  ;;  %v1691_v62 = vcombine.high %v2558_v58, %v2558_v58 }
  0x21   : > { %2107 = vmatprep.subr.bf16.mxu1 %v2211_v16  ;;  %v470_v23 = vrot.slane %v468_v15, 7  ;;  %v1763_v45 = vcombine.low %v235_v13, %v237_v14  ;;  %v2260_v15 = vld [vmem:[%s2842_s1 + $0x1b8] sm:$0xff]  }
  0x22   : > { %1952 = vmatpush3.bf16.msra.mxu0 %v2210_v17  ;;  %v1703_v17 = vcombine.high %v235_v13, %v235_v13 }
  0x23   : > { %1953 = vmatprep.subr.bf16.mxu0 %v2212_v18  ;;  %v1704_v18 = vcombine.high %v237_v14, %v237_v14 }
  0x24   : > { %2108 = vmatpush3.bf16.msra.mxu1 %v2211_v16  ;;  %v471_v16 = vshll.u32 %v1702_v8, 16  ;;  %v475_v26 = vshrl.u32 %v1703_v17, 16  ;;  %v478_v29 = vshll.u32 %v1703_v17, 16  ;;  %v285_v8 = vshll.u32 %v1691_v62, 16  ;;  %v2263_v17 = vld [vmem:[%s2842_s1 + $0x1f0] sm:$0xff]  }
  0x25   : > { %2109 = vmatprep.subr.bf16.mxu1 %v2214_v20  ;;  %v482_v30 = vshrl.u32 %v1704_v18, 16  ;;  %v485_v31 = vshll.u32 %v1704_v18, 16 }
  0x26   : > { %1954 = vmatpush3.bf16.msra.mxu0 %v2213_v19  ;;  %v1760_v19 = vcombine.low %v231_v2, %v233_v4  ;;  %v473_v27 = vor.u32 %v471_v16, %v470_v23  ;;  %v477_v34 = vrot.slane %v475_v26, 7  ;;  %v2256_v2 = vld [vmem:[%s2842_s1] sm:$0xff]   ;;  %v282_v4 = vshrl.u32 %v1691_v62, 16  ;;  %v2269_v26 = vld [vmem:[%s2842_s1 + $0x1e8] sm:$0xff]   ;;  %v2278_v62 = vld [vmem:[%s2842_s1 + $0x1d8] sm:$0xff]  }
  0x27   : > { %1955 = vmatprep.subr.bf16.mxu0 %v2215_v21  ;;  %v1764_v21 = vcombine.high %v235_v13, %v237_v14 }
  0x28   : > { %2110 = vmatpush3.bf16.msra.mxu1 %v2214_v20  ;;  %v463_v20 = vrot.slane %v461_v11, 7  ;;  %v501_v35 = vsel %vm2460_vm2, 0, %v473_v27  ;;  %v480_v40 = vor.u32 %v478_v29, %v477_v34  ;;  %v2271_v27 = vld [vmem:[%s2842_s1 + $0x228] sm:$0xff]  }
  0x29   : > { %2111 = vmatprep.subr.bf16.mxu1 %v2217_v25 }
  0x2a   : > { %1956 = vmatpush3.bf16.msra.mxu0 %v2216_v24  ;;  %v466_v24 = vor.u32 %v464_v12, %v463_v20  ;;  %v502_v48 = vsel %vm2460_vm2, 0, %v480_v40  ;;  %v2265_v20 = vld [vmem:[%s2842_s1 + $0x230] sm:$0xff]  }
  0x2b   : > { %1993 = vmatprep.subr.bf16.mxu0 %v2221_v36  ;;  %v484_v36 = vrot.slane %v482_v30, 7 }
  0x2c   : > { %2112 = vmatpush3.bf16.msra.mxu1 %v2217_v25  ;;  %v2241_v25 = vld [vmem:[%s2842_s1 + $0x58] sm:$0xff]   ;;  %v500_v32 = vsel %vm2460_vm2, 0, %v466_v24  ;;  %v2610_v24 = vld [vmem:[%s2437_s9 + $0x48] sm:$0xff] }
  0x2d   : > { %2121 = vmatprep.subr.bf16.mxu1 %v2227_v42  ;;  %778 = vmatmul.mubr.bf16.vlgmr.msra.gmra.mxu0 %v1753_v55  ;;  %v1759_v38 = vcombine.low %v500_v32, %v501_v35  ;;  %v487_v43 = vor.u32 %v485_v31, %v484_v36  ;;  %v2253_v55 = vld [vmem:[%s2842_s1 + $0x8] sm:$0xff]   ;;  %v2633_v36 = vld [vmem:[%s2437_s9 + $0x58] sm:$0xff] }
  0x2e   : > { %1994 = vmatpush3.bf16.msra.mxu0 %v2223_v53  ;;  %785 = vmatprep.mubr.bf16.mxu0 %v1757_v59  ;;  %v1690_v53 = vcombine.high %v2544_v51, %v2544_v51  ;;  %v2561_v59 = vld [vmem:[%s2437_s9 + $0x28] sm:$0xff] }
  0x2f   : > { %2114 = vmatmul.mubr.bf16.vlgmr.msra.gmra.mxu1 %v1758_v47  ;;  %1995 = vmatprep.subr.bf16.mxu0 %v2228_v54  ;;  %v270_v47 = vrot.slane %v2328_v46, 7  ;;  %v503_v50 = vsel %vm2460_vm2, 0, %v487_v43  ;;  %v1793_v16 = vcombine.high %v2558_v58, %v2561_v59  ;;  %v1792_v23 = vcombine.low %v2558_v58, %v2561_v59 }
  0x30   : > { %2122 = vmatpush3.bf16.msra.mxu1 %v2227_v42  ;;  %2117 = vmatprep.mubr.bf16.mxu1 %v1761_v9  ;;  %v2250_v42 = vld [vmem:[%s2842_s1 + $0x90] sm:$0xff]   ;;  %v1762_v54 = vcombine.low %v502_v48, %v503_v50  ;;  %v278_v57 = vshll.u32 %v1690_v53, 16  ;;  %v1799_v43 = vcombine.high %v2633_v36, %v2636_v37  ;;  %v2272_v48 = vld [vmem:[%s2842_s1 + $0x1e0] sm:$0xff]  }
  0x31   : > { %2123 = vmatprep.subr.bf16.mxu1 %v2230_v56  ;;  %v334_v61 = vsel %vm2460_vm2, 0, %v270_v47 }
  0x32   : > { %1996 = vmatpush3.bf16.msra.mxu0 %v2229_v60  ;;  %v2255_v60 = vld [vmem:[%s2842_s1 + $0x40] sm:$0xff]  }
  0x33   : > { %1997 = vmatprep.subr.bf16.mxu0 %v2232_v63  ;;  %v2257_v63 = vld [vmem:[%s2842_s1 + $0x80] sm:$0xff]  }
  0x34   : > { %2124 = vmatpush3.bf16.msra.mxu1 %v2230_v56  ;;  %v275_v56 = vshrl.u32 %v1690_v53, 16  ;;  %v2273_v53 = vld [vmem:[%s2842_s1 + $0x1a0] sm:$0xff]  }
  0x35   : > { %2125 = vmatprep.subr.bf16.mxu1 %v2234_v1  ;;  %786 = vmatmul.mubr.bf16.gmra.mxu0 %v1756_v6  ;;  %v2259_v6 = vld [vmem:[%s2842_s1 + $0x1f8] sm:$0xff]  }
  0x36   : > { %1998 = vmatpush3.bf16.msra.mxu0 %v2233_v3  ;;  %793 = vmatprep.mubr.bf16.mxu0 %v1760_v19  ;;  %v277_v0 = vrot.slane %v275_v56, 7  ;;  %v1790_v3 = vcombine.low %v2328_v46, %v2544_v51 }
  0x37   : > { %1999 = vmatprep.subr.bf16.mxu0 %v2235_v7  ;;  %2118 = vmatmul.mubr.bf16.gmra.mxu1 %v1764_v21  ;;  %v2261_v7 = vld [vmem:[%s2842_s1 + $0x238] sm:$0xff]  }
  0x38   : > { %2126 = vmatpush3.bf16.msra.mxu1 %v2234_v1  ;;  %2137 = vmatprep.mubr.msk.bf16.mxu1 %vm2523_vm4, %v2544_v51  ;;  %v1692_v1 = vcombine.high %v2561_v59, %v2561_v59  ;;  %v280_v5 = vor.u32 %v278_v57, %v277_v0  ;;  %v2602_v21 = vld [vmem:[%s2437_s9 + $0x38] sm:$0xff]  ;;  %v1875_v57 = vcombine.high %v2544_v51, %v2558_v58 }
  0x39   : > { %2127 = vmatprep.subr.bf16.mxu1 %v2237_v10  ;;  %v1796_v29 = vcombine.high %v2602_v21, %v2610_v24 }
  0x3a   : > { %2000 = vmatpush3.bf16.msra.mxu0 %v2236_v22  ;;  %v289_v9 = vshrl.u32 %v1692_v1, 16  ;;  %v292_v11 = vshll.u32 %v1692_v1, 16  ;;  %v2587_v12 = vsel %vm2460_vm2, 0, %v280_v5  ;;  %v2264_v22 = vld [vmem:[%s2842_s1 + $0x1b0] sm:$0xff]   ;;  %v2280_v1 = vld [vmem:[%s2842_s1 + $0x218] sm:$0xff]  }
  0x3b   : > { %2001 = vmatprep.subr.bf16.mxu0 %v2241_v25  ;;  %v1789_v14 = vcombine.low %v334_v61, %v2587_v12  ;;  %v1693_v25 = vcombine.high %v2602_v21, %v2602_v21 }
  0x3c   : > { %2128 = vmatpush3.bf16.msra.mxu1 %v2237_v10  ;;  %v284_v10 = vrot.slane %v282_v4, 7  ;;  %v291_v13 = vrot.slane %v289_v9, 7  ;;  %v2279_v4 = vld [vmem:[%s2842_s1 + $0x198] sm:$0xff]   ;;  %v2285_v9 = vld [vmem:[%s2842_s1 + $0x210] sm:$0xff]  }
  0x3d   : > { %2129 = vmatprep.subr.bf16.mxu1 %v2247_v28  ;;  %794 = vmatmul.mubr.bf16.gmra.mxu0 %v1759_v38  ;;  %v296_v32 = vshrl.u32 %v1693_v25, 16 }
  0x3e   : > { %2002 = vmatpush3.bf16.msra.mxu0 %v2243_v33  ;;  %801 = vmatprep.mubr.bf16.mxu0 %v1763_v45  ;;  %v287_v18 = vor.u32 %v285_v8, %v284_v10  ;;  %v294_v19 = vor.u32 %v292_v11, %v291_v13  ;;  %v299_v33 = vshll.u32 %v1693_v25, 16  ;;  %v2270_v45 = vld [vmem:[%s2842_s1 + $0x1a8] sm:$0xff]   ;;  %v2283_v8 = vld [vmem:[%s2842_s1 + $0x1d0] sm:$0xff]   ;;  %v1798_v10 = vcombine.low %v2633_v36, %v2636_v37 }
  0x3f   : > { %2003 = vmatprep.subr.bf16.mxu0 %v2248_v39  ;;  %v298_v38 = vrot.slane %v296_v32, 7  ;;  %v1695_v39 = vcombine.high %v2633_v36, %v2633_v36  ;;  %v1878_v32 = vcombine.high %v2561_v59, %v2602_v21 }
  0x40   : > { %2130 = vmatpush3.bf16.msra.mxu1 %v2247_v28  ;;  %v1694_v28 = vcombine.high %v2610_v24, %v2610_v24  ;;  %v2626_v30 = vsel %vm2460_vm2, 0, %v287_v18  ;;  %v2630_v31 = vsel %vm2460_vm2, 0, %v294_v19  ;;  %v2289_v18 = vld [vmem:[%s2842_s1 + $0x1c8] sm:$0xff]  }
  0x41   : > { %2131 = vmatprep.subr.bf16.mxu1 %v2250_v42  ;;  %v1791_v40 = vcombine.low %v2626_v30, %v2630_v31  ;;  %v301_v46 = vor.u32 %v299_v33, %v298_v38  ;;  %v310_v47 = vshrl.u32 %v1695_v39, 16  ;;  %v2291_v19 = vld [vmem:[%s2842_s1 + $0x208] sm:$0xff]  }
  0x42   : > { %2004 = vmatpush3.bf16.msra.mxu0 %v2249_v44  ;;  %v303_v34 = vshrl.u32 %v1694_v28, 16  ;;  %v306_v35 = vshll.u32 %v1694_v28, 16  ;;  %v1696_v44 = vcombine.high %v2636_v37, %v2636_v37  ;;  %v1874_v28 = vcombine.low %v2544_v51, %v2558_v58 }
  0x43   : > { %2005 = vmatprep.subr.bf16.mxu0 %v2252_v49  ;;  %v2274_v49 = vld [vmem:[%s2842_s1 + $0x220] sm:$0xff]   ;;  %v1877_v51 = vcombine.low %v2561_v59, %v2602_v21  ;;  %v1881_v58 = vcombine.high %v2610_v24, %v2633_v36 }
  0x44   : > { %2132 = vmatpush3.bf16.msra.mxu1 %v2250_v42  ;;  %v305_v42 = vrot.slane %v303_v34, 7  ;;  %v320_v56 = vshll.u32 %v1696_v44, 16 }
  0x45   : > { %2133 = vmatprep.subr.bf16.mxu1 %v2254_v52  ;;  %802 = vmatmul.mubr.bf16.gmra.mxu0 %v1762_v54  ;;  %v1795_v54 = vcombine.low %v2602_v21, %v2610_v24 }
  0x46   : > { %2006 = vmatpush3.bf16.msra.mxu0 %v2253_v55  ;;  %1075 = vmatprep.mubr.bf16.mxu0 %v1790_v3  ;;  %v308_v50 = vor.u32 %v306_v35, %v305_v42  ;;  %v313_v55 = vshll.u32 %v1695_v39, 16  ;;  %v2679_v3 = vld [vmem:[%s2437_s9 + $0x78] sm:$0xff] }
  0x47   : > { %2007 = vmatprep.subr.bf16.mxu0 %v2255_v60  ;;  %v2664_v60 = vsel %vm2460_vm2, 0, %v301_v46  ;;  %v1883_v21 = vcombine.low %v2636_v37, %v2679_v3 }
  0x48   : > { %2134 = vmatpush3.bf16.msra.mxu1 %v2254_v52  ;;  %v317_v52 = vshrl.u32 %v1696_v44, 16  ;;  %v2668_v61 = vsel %vm2460_vm2, 0, %v308_v50  ;;  %v1876_v33 = vcombine.low %v2630_v31, %v2664_v60 }
  0x49   : > { %2135 = vmatprep.subr.bf16.mxu1 %v2257_v63 }
  0x4a   : > { %2008 = vmatpush3.bf16.msra.mxu0 %v2256_v2  ;;  %v319_v0 = vrot.slane %v317_v52, 7  ;;  %v1794_v2 = vcombine.low %v2664_v60, %v2668_v61 }
  0x4b   : > { %2045 = vmatprep.subr.bf16.mxu0 %v2259_v6 }
  0x4c   : > { %2136 = vmatpush3.bf16.msra.mxu1 %v2257_v63  ;;  %v312_v63 = vrot.slane %v310_v47, 7  ;;  %v322_v6 = vor.u32 %v320_v56, %v319_v0 }
  0x4d   : > { %2145 = vmatprep.subr.bf16.mxu1 %v2261_v7  ;;  %1076 = vmatmul.mubr.bf16.vlgmr.msra.gmra.mxu0 %v1789_v14  ;;  %v2284_v14 = vld [vmem:[%s2842_s1 + $0x190] sm:$0xff]  }
  0x4e   : > { %2046 = vmatpush3.bf16.msra.mxu0 %v2260_v15  ;;  %1083 = vmatprep.mubr.bf16.mxu0 %v1792_v23  ;;  %v315_v5 = vor.u32 %v313_v55, %v312_v63  ;;  %v2290_v23 = vld [vmem:[%s2842_s1 + $0x188] sm:$0xff]  }
  0x4f   : > { %2138 = vmatmul.mubr.bf16.vlgmr.msra.gmra.mxu1 %v1793_v16  ;;  %2047 = vmatprep.subr.bf16.mxu0 %v2263_v17  ;;  %v341_v16 = vsel %vm2460_vm2, 0, %v322_v6 }
  0x50   : > { %2146 = vmatpush3.bf16.msra.mxu1 %v2261_v7  ;;  %2141 = vmatprep.mubr.bf16.mxu1 %v1796_v29  ;;  %v1824_v7 = vcombine.high %v2679_v3, %v2679_v3  ;;  %v340_v15 = vsel %vm2460_vm2, 0, %v315_v5  ;;  %v1873_v29 = vcombine.low %v2587_v12, %v2626_v30  ;;  %v1884_v12 = vcombine.high %v2636_v37, %v2679_v3 }
  0x51   : > { %2147 = vmatprep.subr.bf16.mxu1 %v2265_v20  ;;  %v1880_v30 = vcombine.low %v2610_v24, %v2633_v36  ;;  %v1879_v59 = vcombine.low %v2668_v61, %v340_v15 }
  0x52   : > { %2048 = vmatpush3.bf16.msra.mxu0 %v2264_v22  ;;  %v1177_v11 = vshrl.u32 %v1824_v7, 16  ;;  %v1180_v13 = vshll.u32 %v1824_v7, 16  ;;  %v1797_v22 = vcombine.low %v340_v15, %v341_v16 }
  0x53   : > { %2049 = vmatprep.subr.bf16.mxu0 %v2269_v26  ;;  %v2292_v26 = vld [vmem:[%s2842_s1 + $0x1c0] sm:$0xff]  }
  0x54   : > { %2148 = vmatpush3.bf16.msra.mxu1 %v2265_v20  ;;  %v1179_v17 = vrot.slane %v1177_v11, 7 }
  0x55   : > { %2149 = vmatprep.subr.bf16.mxu1 %v2271_v27  ;;  %1084 = vmatmul.mubr.bf16.gmra.mxu0 %v1791_v40 }
  0x56   : > { %2050 = vmatpush3.bf16.msra.mxu0 %v2270_v45  ;;  %1091 = vmatprep.mubr.bf16.mxu0 %v1795_v54  ;;  %v1182_v20 = vor.u32 %v1180_v13, %v1179_v17 }
  0x57   : > { %2142 = vmatmul.mubr.bf16.gmra.mxu1 %v1799_v43  ;;  %2051 = vmatprep.subr.bf16.mxu0 %v2272_v48 }
  0x58   : > { %2150 = vmatpush3.bf16.msra.mxu1 %v2271_v27  ;;  %2161 = vmatprep.mubr.bf16.mxu1 %v1875_v57  ;;  %v1184_v25 = vsel %vm2460_vm2, 0, %v1182_v20  ;;  %v2294_v27 = vld [vmem:[%s2842_s1 + $0x200] sm:$0xff]  }
  0x59   : > { %2151 = vmatprep.subr.bf16.mxu1 %v2274_v49  ;;  %v1882_v34 = vcombine.low %v341_v16, %v1184_v25 }
  0x5a   : > { %2052 = vmatpush3.bf16.msra.mxu0 %v2273_v53 }
  0x5b   : > { %2053 = vmatprep.subr.bf16.mxu0 %v2278_v62 }
  0x5c   : > { %2152 = vmatpush3.bf16.msra.mxu1 %v2274_v49 }
  0x5d   : > { %2153 = vmatprep.subr.bf16.mxu1 %v2280_v1  ;;  %1092 = vmatmul.mubr.bf16.gmra.mxu0 %v1794_v2 }
  0x5e   : > { %2054 = vmatpush3.bf16.msra.mxu0 %v2279_v4  ;;  %1099 = vmatprep.mubr.bf16.mxu0 %v1798_v10 }
  0x5f   : > { %2055 = vmatprep.subr.bf16.mxu0 %v2283_v8 }
  0x60   : > { %2154 = vmatpush3.bf16.msra.mxu1 %v2280_v1 }
  0x61   : > { %2155 = vmatprep.subr.bf16.mxu1 %v2285_v9 }
  0x62   : > { %2056 = vmatpush3.bf16.msra.mxu0 %v2284_v14 }
  0x63   : > { %2057 = vmatprep.subr.bf16.mxu0 %v2289_v18 }
  0x64   : > { %2156 = vmatpush3.bf16.msra.mxu1 %v2285_v9 }
  0x65   : > { %2157 = vmatprep.subr.bf16.mxu1 %v2291_v19  ;;  %1100 = vmatmul.mubr.bf16.gmra.mxu0 %v1797_v22 }
  0x66   : > { %2058 = vmatpush3.bf16.msra.mxu0 %v2290_v23  ;;  %1437 = vmatprep.mubr.bf16.mxu0 %v1874_v28 }
  0x67   : > { %2059 = vmatprep.subr.bf16.mxu0 %v2292_v26 }
  0x68   : > { %2158 = vmatpush3.bf16.msra.mxu1 %v2291_v19 }
  0x69   : > { %2159 = vmatprep.subr.bf16.mxu1 %v2294_v27 }
  0x6a   : > { %2060 = vmatpush3.bf16.msra.mxu0 %v2293_v41 }
  0x6c   : > { %2160 = vmatpush3.bf16.msra.mxu1 %v2294_v27 }
  0x6d   : > { %1438 = vmatmul.mubr.bf16.vlgmr.msra.gmra.mxu0 %v1873_v29 }
  0x6e   : > { %1445 = vmatprep.mubr.bf16.mxu0 %v1877_v51 }
  0x6f   : > { %2162 = vmatmul.mubr.bf16.vlgmr.msra.gmra.mxu1 %v1878_v32 }
  0x70   : > { %2165 = vmatprep.mubr.bf16.mxu1 %v1881_v58 }
  0x75   : > { %1446 = vmatmul.mubr.bf16.gmra.mxu0 %v1876_v33 }
  0x76   : > { %1453 = vmatprep.mubr.bf16.mxu0 %v1880_v30 }
  0x77   : > { %2166 = vmatmul.mubr.bf16.gmra.mxu1 %v1884_v12 }
  0x7d   : > { %1454 = vmatmul.mubr.bf16.gmra.mxu0 %v1879_v59 }
  0x7e   : > { %1461 = vmatprep.mubr.bf16.mxu0 %v1883_v21 }
  0x85   : > { %1462 = vmatmul.mubr.bf16.gmra.mxu0 %v1882_v34 }
  0xed   : > { %v1957_v35 = vpop.f32.mrf.mxu0 }
  0xef   : > { %v1958_v31 = vpop.f32.mrf.mxu0  ;;  %v2740_v42 = vpop.f32.mrf.mxu1 }
  0xf0   : > { %v1959_v38 = vadd.f32 %v1958_v31, %v1957_v35 }
  0xf1   : > { %v1960_v39 = vpop.f32.mrf.mxu0  ;;  %v844_v44 = vpop.f32.mrf.mxu1 }
  0xf2   : > { %v845_v51 = vadd.f32 %v1959_v38, %v844_v44 }
  0xf3   : > { %v1961_v40 = vpop.f32.mrf.mxu0  ;;  %v2744_v47 = vpop.f32.mrf.mxu1 }
  0xf4   : > { %v1962_v28 = vadd.f32 %v1961_v40, %v1960_v39 }
  0xf5   : > { %v1963_v24 = vpop.f32.mrf.mxu0  ;;  %v847_v50 = vpop.f32.mrf.mxu1 }
  0xf6   : > { %v848_v30 = vadd.f32 %v1962_v28, %v847_v50 }
  0xf7   : > { %v1964_v36 = vpop.f32.mrf.mxu0  ;;  %v2750_v53 = vpop.f32.mrf.mxu1 }
  0xf8   : > { %v2742_v43 = vadd.f32 %v1964_v36, %v1963_v24 }
  0xf9   : > { %v1966_v45 = vpop.f32.mrf.mxu0  ;;  %v2754_v56 = vpop.f32.mrf.mxu1 }
  0xfa   : > { %v853_v38 = vadd.f32 %v2740_v42, %v2742_v43 }
  0xfb   : > { %v1967_v46 = vpop.f32.mrf.mxu0  ;;  %v2760_v62 = vpop.f32.mrf.mxu1 }
  0xfd   : > { %v1969_v37 = vpop.f32.mrf.mxu0  ;;  %v2764_v1 = vpop.f32.mrf.mxu1 }
  0xff   : > { %v1970_v48 = vpop.f32.mrf.mxu0 }
 0x100   : > { %v2746_v49 = vadd.f32 %v1970_v48, %v1969_v37  ;;  %v1968_v48 = vadd.f32 %v1967_v46, %v1966_v45 }
 0x101   : > { %v2748_v52 = vpop.f32.mrf.mxu0 }
 0x102   : > { %v856_v45 = vadd.f32 %v2744_v47, %v1968_v48 }
 0x103   : > { %v2752_v54 = vpop.f32.mrf.mxu0 }
 0x105   : > { %v1975_v55 = vpop.f32.mrf.mxu0 }
 0x107   : > { %v1976_v57 = vpop.f32.mrf.mxu0 }
 0x108   : > { %v2756_v60 = vadd.f32 %v1976_v57, %v1975_v55 }
 0x109   : > { %v2758_v61 = vpop.f32.mrf.mxu0 }
 0x10b   : > { %v2762_v63 = vpop.f32.mrf.mxu0 }
 0x10d   : > { %v2009_v0 = vpop.f32.mrf.mxu0 }
 0x10f   : > { %v2010_v2 = vpop.f32.mrf.mxu0  ;;  %v2766_v4 = vpop.f32.mrf.mxu1 }
 0x110   : > { %v2011_v41 = vadd.f32 %v2010_v2, %v2009_v0 }
 0x111   : > { %v2012_v3 = vpop.f32.mrf.mxu0  ;;  %v1142_v6 = vpop.f32.mrf.mxu1 }
 0x112   : > { %v1078_v59 = vadd.f32 %v2011_v41, %v845_v51 }
 0x113   : > { %v2013_v5 = vpop.f32.mrf.mxu0  ;;  %v2768_v9 = vpop.f32.mrf.mxu1 }
 0x114   : > { %v2014_v58 = vadd.f32 %v2013_v5, %v2012_v3  ;;  %v1143_v55 = vadd.f32 %v1142_v6, %v1078_v59  ;;  %v2791_v3 = vld [vmem:[%s2843_s2] ss:$0 sm:$0xff] }
 0x115   : > { %v2015_v7 = vpop.f32.mrf.mxu0  ;;  %v1145_v13 = vpop.f32.mrf.mxu1 }
 0x116   : > { %v1081_v31 = vadd.f32 %v2014_v58, %v848_v30 }
 0x117   : > { %v2016_v8 = vpop.f32.mrf.mxu0  ;;  %v2770_v16 = vpop.f32.mrf.mxu1 }
 0x118   : > { %v2017_v39 = vadd.f32 %v2016_v8, %v2015_v7  ;;  %v1146_v57 = vadd.f32 %v1145_v13, %v1081_v31  ;;  %v1974_v13 = vadd.f32 %v2752_v54, %v2748_v52 }
 0x119   : > { %v2018_v10 = vpop.f32.mrf.mxu0  ;;  %v2772_v19 = vpop.f32.mrf.mxu1 }
 0x11a   : > { %v1086_v46 = vadd.f32 %v2017_v39, %v853_v38  ;;  %v864_v31 = vadd.f32 %v1974_v13, %v2764_v1  ;;  %v869_v39 = vadd.f32 %v2750_v53, %v2756_v60 }
 0x11b   : > { %v2019_v11 = vpop.f32.mrf.mxu0  ;;  %v2776_v22 = vpop.f32.mrf.mxu1 }
 0x11c   : > { %v2020_v0 = vadd.f32 %v2019_v11, %v2018_v10 }
 0x11d   : > { %v2021_v14 = vpop.f32.mrf.mxu0  ;;  %v2782_v26 = vpop.f32.mrf.mxu1 }
 0x11e   : > { %v1089_v42 = vadd.f32 %v2020_v0, %v856_v45 }
 0x11f   : > { %v2022_v15 = vpop.f32.mrf.mxu0 }
 0x120   : > { %v2023_v51 = vadd.f32 %v2022_v15, %v2021_v14  ;;  %v1154_v30 = vadd.f32 %v2768_v9, %v1089_v42  ;;  %v1980_v9 = vadd.f32 %v2762_v63, %v2758_v61 }
 0x121   : > { %v2024_v17 = vpop.f32.mrf.mxu0 }
 0x123   : > { %v2025_v18 = vpop.f32.mrf.mxu0 }
 0x124   : > { %v2026_v52 = vadd.f32 %v2025_v18, %v2024_v17 }
 0x125   : > { %v2774_v20 = vpop.f32.mrf.mxu0 }
 0x126   : > { %v1097_v15 = vadd.f32 %v2026_v52, %v864_v31 }
 0x127   : > { %v2778_v23 = vpop.f32.mrf.mxu0 }
 0x128   : > { %v2029_v1 = vadd.f32 %v2778_v23, %v2774_v20  ;;  %v1162_v38 = vadd.f32 %v2782_v26, %v1097_v15 }
 0x129   : > { %v2780_v25 = vpop.f32.mrf.mxu0 }
 0x12a   : > { %v1102_v0 = vadd.f32 %v2029_v1, %v869_v39 }
 0x12b   : > { %v2784_v27 = vpop.f32.mrf.mxu0 }
 0x12d   : > { %v2061_v29 = vpop.f32.mrf.mxu0 }
 0x12f   : > { %v2163_v32 = vpop.f32.mrf.mxu1  ;;  %v2062_v33 = vpop.f32.mrf.mxu0 }
 0x130   : > { %v2063_v21 = vadd.f32 %v2062_v33, %v2061_v29  ;;  %v1151_v29 = vadd.f32 %v2766_v4, %v1086_v46 }
 0x131   : > { %v1504_v12 = vpop.f32.mrf.mxu1  ;;  %v2064_v34 = vpop.f32.mrf.mxu0 }
 0x132   : > { %v1505_v24 = vadd.f32 %v2063_v21, %v1504_v12  ;;  %v861_v12 = vadd.f32 %v2746_v49, %v2754_v56 }
 0x133   : > { %v2164_v35 = vpop.f32.mrf.mxu1  ;;  %v2065_v36 = vpop.f32.mrf.mxu0 }
 0x134   : > { %v2066_v40 = vadd.f32 %v2065_v36, %v2064_v34  ;;  %v1535_v50 = vadd.f32 %v1505_v24, %v1143_v55  ;;  %v1094_v24 = vadd.f32 %v2023_v51, %v861_v12 }
 0x135   : > { %v1507_v37 = vpop.f32.mrf.mxu1  ;;  %v2067_v44 = vpop.f32.mrf.mxu0 }
 0x136   : > { %v1508_v2 = vadd.f32 %v2066_v40, %v1507_v37  ;;  %v1550_v43 = vadd.f32 %v2791_v3, %v1535_v50 }
 0x137   : > { %v2068_v5 = vpop.f32.mrf.mxu0  ;;  %v2167_v28 = vpop.f32.mrf.mxu1 }
 0x138   : > { %v1536_v6 = vadd.f32 %v1508_v2, %v1146_v57  ;;  %v2069_v7 = vadd.f32 %v2068_v5, %v2067_v44  ;;  %v2032_v44 = vadd.f32 %v2784_v27, %v2780_v25  ;;  %v1167_v25 = vadd.f32 %v2770_v16, %v1102_v0 }
 0x139   : > { %v2070_v8 = vpop.f32.mrf.mxu0  ;;  %v1520_v41 = vpop.f32.mrf.mxu1 }
 0x13a   : > { %v1551_v10 = vadd.f32 %v2791_v3, %v1536_v6  ;;  %v1513_v11 = vadd.f32 %v2163_v32, %v2069_v7 }
 0x13b   : > { %v2071_v47 = vpop.f32.mrf.mxu0  ;;  %v2168_v34 = vpop.f32.mrf.mxu1 }
 0x13c   : > { %v1921_v58 = vpack.c.bf16 %v1551_v10, %v1550_v43  ;;  %v2072_v33 = vadd.f32 %v2071_v47, %v2070_v8  ;;  %v1537_v54 = vadd.f32 %v1513_v11, %v1151_v29 }
 0x13d   : > { %v2073_v32 = vpop.f32.mrf.mxu0  ;;  %v1523_v18 = vpop.f32.mrf.mxu1 }
 0x13e   : > { %1922 = vst [vmem:[%s2802_s7] sm:$0xff] %v1921_v58   ;;  %v1516_v59 = vadd.f32 %v2164_v35, %v2072_v33  ;;  %v1552_v37 = vadd.f32 %v2791_v3, %v1537_v54  ;;  %v1159_v35 = vadd.f32 %v2772_v19, %v1094_v24  ;;  %v872_v19 = vadd.f32 %v2760_v62, %v1980_v9 }
 0x13f   : > { %v2074_v21 = vpop.f32.mrf.mxu0 }
 0x140   : > { %v1538_v36 = vadd.f32 %v1516_v59, %v1154_v30  ;;  %v2075_v4 = vadd.f32 %v2074_v21, %v2073_v32  ;;  %v1105_v2 = vadd.f32 %v2032_v44, %v872_v19 }
 0x141   : > { %v2076_v14 = vpop.f32.mrf.mxu0 }
 0x142   : > { %v1553_v49 = vadd.f32 %v2791_v3, %v1538_v36  ;;  %v1521_v56 = vadd.f32 %v2075_v4, %v1520_v41  ;;  %v1170_v46 = vadd.f32 %v2776_v22, %v1105_v2 }
 0x143   : > { %v2077_v17 = vpop.f32.mrf.mxu0 }
 0x144   : > { %v1926_v48 = vpack.c.bf16 %v1553_v49, %v1552_v37  ;;  %v2078_v55 = vadd.f32 %v2077_v17, %v2076_v14  ;;  %v1539_v61 = vadd.f32 %v1521_v56, %v1159_v35 }
 0x145   : > { %v2079_v40 = vpop.f32.mrf.mxu0 }
 0x146   : > { %1938 = vst [vmem:[%s2802_s7 + $0x8] sm:$0xff] %v1926_v48   ;;  %v1524_v63 = vadd.f32 %v2078_v55, %v1523_v18  ;;  %v1554_v53 = vadd.f32 %v2791_v3, %v1539_v61 }
 0x147   : > { %v2080_v57 = vpop.f32.mrf.mxu0 }
 0x148   : > { %v1540_v20 = vadd.f32 %v1524_v63, %v1162_v38  ;;  %v2081_v23 = vadd.f32 %v2080_v57, %v2079_v40 }
 0x149   : > { %v2082_v50 = vpop.f32.mrf.mxu0 }
 0x14a   : > { %v1555_v60 = vadd.f32 %v2791_v3, %v1540_v20  ;;  %v1529_v26 = vadd.f32 %v2167_v28, %v2081_v23 }
 0x14b   : > { %v2083_v5 = vpop.f32.mrf.mxu0 }
 0x14c   : > { %v1931_v27 = vpack.c.bf16 %v1555_v60, %v1554_v53  ;;  %v2084_v45 = vadd.f32 %v2083_v5, %v2082_v50  ;;  %v1541_v62 = vadd.f32 %v1529_v26, %v1167_v25 }
 0x14e   : > { %1939 = vst [vmem:[%s2802_s7 + $0x10] sm:$0xff] %v1931_v27   ;;  %v1532_v6 = vadd.f32 %v2168_v34, %v2084_v45  ;;  %v1556_v8 = vadd.f32 %v2791_v3, %v1541_v62 }
 0x150   : > { %v1542_v7 = vadd.f32 %v1532_v6, %v1170_v46 }
 0x152   : > { %v1557_v42 = vadd.f32 %v2791_v3, %v1542_v7 }
 0x154   : > { %v1936_v43 = vpack.c.bf16 %v1557_v42, %v1556_v8 }
 0x156   : > { %1940 = vst [vmem:[%s2802_s7 + $0x18] sm:$0xff] %v1936_v43  }
 0x157 PF: > { %s13_s14 = sadd.s32 1, %s2326_s14   ;;  %s2849_s12 = smov %s2322_s13 }
 0x158   : > { %p10_p5 = scmp.ge.s32.totalorder %s13_s14, 4   ;;  %s2850_s13 = smov %s2852_s15 }
 0x15a   :  { %12 = sbr.rel (!%p10_p5) target bundleno = 2 (0x2), region = 70 }

// kernel: down_block_2d.12
= control target key start
LH: loop header
LB: loop body
LE: loop exit
PB: predicated region body
PF: predicated region fallthrough
CT: control target
= control target key end

     0   :  { %s4804_s21 = smov 0   ;;  %s4806_s22 = smov 0   ;;  %s6239_s0 = inlined_call_operand.vmem [shape: bf16[2,16,16,128], index: 0, kind: input, shape index: {}]   ;;  %s6240_s1 = inlined_call_operand.vmem [shape: f32[2,1,128], index: 1, kind: input, shape index: {}]   ;;  %s6241_s2 = inlined_call_operand.vmem [shape: f32[2,1,128], index: 2, kind: input, shape index: {}]   ;;  %s6242_s3 = inlined_call_operand.vmem [shape: bf16[3,384,128], index: 3, kind: input, shape index: {}]   ;;  %s6243_s4 = inlined_call_operand.vmem [shape: f32[1,128], index: 4, kind: input, shape index: {}]   ;;  %s6244_s5 = inlined_call_operand.vmem [shape: bf16[2,16,16,128], index: 5, kind: input, shape index: {}]   ;;  %s6245_s6 = inlined_call_operand.vmem [shape: bf16[2,16,16,128], index: 6, kind: output, shape index: {}]  }
   0x1   :  { %s4808_s23 = smov 0  }
   0x2 LB: > { %s28_s24 = sadd.s32 1, %s4762_s22  ;;  %p3251_p0 = scmp.ge.s32.totalorder %s4766_s23, 1  ;;  %s4766_s23 = sphi %s4808_s23, %s16_s23   ;;  %s4762_s22 = sphi %s4806_s22, %s6289_s22   ;;  %s4758_s21 = sphi %s4804_s21, %s6288_s21  }
   0x3   : > { %p30_p1 = scmp.ge.s32.totalorder %s28_s24, 2  ;;  %p274_p2 = scmp.lt.s32.totalorder %s4766_s23, 3 }
   0x5   : > { %s6291_s24 = smov (%p30_p1, %s28_s24), 0  ;;  %p275_p3 = pnand %p3251_p0, %p274_p2 }
   0x7   : > { %278 = sbr.rel (%p275_p3) target bundleno = 572 (0x23c), region = 44 }
   0xc   : > { %v4520_v0 = vld [vmem:[%s6242_s3 + $0x138] sm:$0xff]   ;;  %v4522_v2 = vld [vmem:[%s6242_s3 + $0x130] sm:$0xff]   ;;  %p328_p4 = scmp.lt.s32.totalorder %s4758_s21, 1  ;;  %v4524_v4 = vld [vmem:[%s6242_s3 + $0x128] sm:$0xff]   ;;  %vm1112_vm0 = vsmask.f32 256 }
   0xd   : > { %v4521_v1 = vld [vmem:[%s6242_s3 + $0xf8] sm:$0xff]   ;;  %3927 = vmatprep.subr.bf16.mxu0 %v4520_v0  ;;  %4479 = vmatprep.subr.bf16.mxu1 %v4520_v0  ;;  %v4523_v3 = vld [vmem:[%s6242_s3 + $0xf0] sm:$0xff]   ;;  %v4525_v5 = vld [vmem:[%s6242_s3 + $0xe8] sm:$0xff]   ;;  %vm1111_vm1 = vcmask 1040384   ;;  %vm1178_vm3 = vcmask 1047552  }
   0xe   : > { %3928 = vmatpush3.bf16.msra.mxu0 %v4521_v1  ;;  %4487 = vmatpush3.bf16.msra.mxu1 %v4521_v1  ;;  %s6293_s21 = smov (!%p328_p4, %s4758_s21), 1  ;;  %v4526_v6 = vld [vmem:[%s6242_s3 + $0x120] sm:$0xff]   ;;  %v4528_v8 = vld [vmem:[%s6242_s3 + $0x118] sm:$0xff]   ;;  %v4530_v10 = vld [vmem:[%s6242_s3 + $0x110] sm:$0xff]   ;;  %vm1179_vm4 = vsmask.f32 7424 }
   0xf   : > { %3929 = vmatprep.subr.bf16.mxu0 %v4522_v2  ;;  %4480 = vmatprep.subr.bf16.mxu1 %v4522_v2  ;;  %s4843_s15 = sshll.u32 %s6293_s21, 7  ;;  %v4527_v7 = vld [vmem:[%s6242_s3 + $0xe0] sm:$0xff]   ;;  %s4860_s29 = scalar_lea.vmem %s6240_s1, %s6293_s21  ;;  %v4529_v9 = vld [vmem:[%s6242_s3 + $0xd8] sm:$0xff]   ;;  %v4531_v19 = vld [vmem:[%s6242_s3 + $0xd0] sm:$0xff]  }
  0x10   : > { %s4855_s26 = scalar_lea.vmem %s6239_s0, %s4843_s15  ;;  %s4868_s10 = scalar_lea.vmem %s6241_s2, %s6293_s21  ;;  %v4875_v12 = vld [vmem:[%s4860_s29] ss:$0 sm:$0xff]  ;;  %v4532_v22 = vld [vmem:[%s6242_s3 + $0x108] sm:$0xff]   ;;  %v4938_v55 = vld [vmem:[%s6242_s3 + $0xb8] sm:$0xff]  }
  0x11   : > { %v3580_v11 = vld [vmem:[%s4855_s26] sm:$0xff]   ;;  %v3867_v25 = vld [vmem:[%s4855_s26 + $0x8] sm:$0xff]   ;;  %v3868_v45 = vld [vmem:[%s4855_s26 + $0x10] sm:$0xff]   ;;  %s6033_s19 = scalar_lea.vmem %s6244_s5, %s4843_s15  ;;  %s6079_s30 = scalar_lea.vmem %s6245_s6, %s4843_s15 }
  0x12   : > { %3930 = vmatpush3.bf16.msra.mxu0 %v4523_v3  ;;  %4488 = vmatpush3.bf16.msra.mxu1 %v4523_v3  ;;  %v3581_v13 = vunpack.c.l.bf16 %v3580_v11  ;;  %v3582_v14 = vunpack.c.h.bf16 %v3580_v11  ;;  %v3878_v15 = vld [vmem:[%s4855_s26 + $0x60] sm:$0xff]   ;;  %v3585_v28 = vunpack.c.l.bf16 %v3867_v25  ;;  %v3586_v29 = vunpack.c.h.bf16 %v3867_v25  ;;  %v3879_v30 = vld [vmem:[%s4855_s26 + $0x68] sm:$0xff]   ;;  %v4943_v56 = vld [vmem:[%s6242_s3 + $0x178] sm:$0xff]  }
  0x13   : > { %3931 = vmatprep.subr.bf16.mxu0 %v4524_v4  ;;  %4481 = vmatprep.subr.bf16.mxu1 %v4524_v4  ;;  %v4879_v16 = vld [vmem:[%s4868_s10] ss:$0 sm:$0xff]  ;;  %v3629_v17 = vunpack.c.l.bf16 %v3878_v15  ;;  %v3630_v18 = vunpack.c.h.bf16 %v3878_v15  ;;  %v3633_v33 = vunpack.c.l.bf16 %v3879_v30  ;;  %v3634_v34 = vunpack.c.h.bf16 %v3879_v30  ;;  %v4533_v35 = vld [vmem:[%s6242_s3 + $0xc8] sm:$0xff]   ;;  %v3880_v63 = vld [vmem:[%s4855_s26 + $0x70] sm:$0xff]  }
  0x14   : > { %v438_v20 = vmul.f32 %v3581_v13, %v4875_v12  ;;  %v439_v21 = vmul.f32 %v3582_v14, %v4875_v12  ;;  %v440_v38 = vmul.f32 %v3585_v28, %v4875_v12  ;;  %v441_v39 = vmul.f32 %v3586_v29, %v4875_v12  ;;  %v4534_v40 = vld [vmem:[%s6242_s3 + $0x100] sm:$0xff]   ;;  %v3869_v0 = vld [vmem:[%s4855_s26 + $0x18] sm:$0xff]   ;;  %vm5080_vm2 = vmand %vm1111_vm1, %vm1112_vm0 }
  0x15   : > { %v462_v23 = vmul.f32 %v3629_v17, %v4875_v12  ;;  %v463_v24 = vmul.f32 %v3630_v18, %v4875_v12  ;;  %v464_v43 = vmul.f32 %v3633_v33, %v4875_v12  ;;  %v465_v44 = vmul.f32 %v3634_v34, %v4875_v12  ;;  %v4535_v46 = vld [vmem:[%s6242_s3 + $0xc0] sm:$0xff]   ;;  %v3881_v14 = vld [vmem:[%s4855_s26 + $0x78] sm:$0xff]   ;;  %vm5284_vm5 = vmand %vm1178_vm3, %vm1179_vm4 }
  0x16   : > { %3932 = vmatpush3.bf16.msra.mxu0 %v4525_v5  ;;  %4489 = vmatpush3.bf16.msra.mxu1 %v4525_v5  ;;  %v4893_v26 = vadd.f32 %v4879_v16, %v438_v20  ;;  %v4896_v27 = vadd.f32 %v4879_v16, %v439_v21  ;;  %v4924_v49 = vadd.f32 %v4879_v16, %v440_v38  ;;  %v3589_v59 = vunpack.c.l.bf16 %v3868_v45  ;;  %v3870_v28 = vld [vmem:[%s4855_s26 + $0x20] sm:$0xff]  }
  0x17   : > { %3933 = vmatprep.subr.bf16.mxu0 %v4526_v6  ;;  %4482 = vmatprep.subr.bf16.mxu1 %v4526_v6  ;;  %v4900_v31 = vadd.f32 %v4879_v16, %v462_v23  ;;  %v4903_v32 = vadd.f32 %v4879_v16, %v463_v24  ;;  %v4927_v50 = vadd.f32 %v4879_v16, %v441_v39  ;;  %v3590_v62 = vunpack.c.h.bf16 %v3868_v45 }
  0x18   : > { %v509_v36 = vsub.f32 0.0, %v4893_v26  ;;  %v510_v37 = vsub.f32 0.0, %v4896_v27  ;;  %v4930_v53 = vadd.f32 %v4879_v16, %v464_v43  ;;  %v4933_v54 = vadd.f32 %v4879_v16, %v465_v44 }
  0x19   : > { %v533_v41 = vsub.f32 0.0, %v4900_v31  ;;  %v534_v42 = vsub.f32 0.0, %v4903_v32  ;;  %v511_v57 = vsub.f32 0.0, %v4924_v49  ;;  %v512_v58 = vsub.f32 0.0, %v4927_v50 }
  0x1a   : > { %3934 = vmatpush3.bf16.msra.mxu0 %v4527_v7  ;;  %4490 = vmatpush3.bf16.msra.mxu1 %v4527_v7  ;;  %v541_v47 = vmul.f32 1.442695, %v509_v36  ;;  %v543_v48 = vmul.f32 1.442695, %v510_v37  ;;  %v535_v60 = vsub.f32 0.0, %v4930_v53  ;;  %v536_v61 = vsub.f32 0.0, %v4933_v54 }
  0x1b   : > { %3935 = vmatprep.subr.bf16.mxu0 %v4528_v8  ;;  %4483 = vmatprep.subr.bf16.mxu1 %v4528_v8  ;;  %v589_v51 = vmul.f32 1.442695, %v533_v41  ;;  %v591_v52 = vmul.f32 1.442695, %v534_v42  ;;  %v545_v1 = vmul.f32 1.442695, %v511_v57  ;;  %v442_v3 = vmul.f32 %v3589_v59, %v4875_v12 }
  0x1c   : > { %4608 = vpow2.f32 %v541_v47  ;;  %v547_v2 = vmul.f32 1.442695, %v512_v58  ;;  %v593_v4 = vmul.f32 1.442695, %v535_v60  ;;  %v595_v5 = vmul.f32 1.442695, %v536_v61 }
  0x1d   : > { %4610 = vpow2.f32 %v543_v48  ;;  %v443_v6 = vmul.f32 %v3590_v62, %v4875_v12  ;;  %v4954_v7 = vadd.f32 %v4879_v16, %v442_v3  ;;  %v3637_v8 = vunpack.c.l.bf16 %v3880_v63 }
  0x1e   : > { %3936 = vmatpush3.bf16.msra.mxu0 %v4529_v9  ;;  %4491 = vmatpush3.bf16.msra.mxu1 %v4529_v9  ;;  %4612 = vpow2.f32 %v589_v51  ;;  %v3638_v9 = vunpack.c.h.bf16 %v3880_v63  ;;  %v3593_v11 = vunpack.c.l.bf16 %v3869_v0  ;;  %v3594_v13 = vunpack.c.h.bf16 %v3869_v0  ;;  %v3871_v63 = vld [vmem:[%s4855_s26 + $0x28] sm:$0xff]  }
  0x1f   : > { %3937 = vmatprep.subr.bf16.mxu0 %v4530_v10  ;;  %4484 = vmatprep.subr.bf16.mxu1 %v4530_v10  ;;  %4614 = vpow2.f32 %v591_v52  ;;  %v4959_v10 = vadd.f32 %v4879_v16, %v443_v6  ;;  %v513_v15 = vsub.f32 0.0, %v4954_v7  ;;  %v466_v17 = vmul.f32 %v3637_v8, %v4875_v12 }
  0x20   : > { %4616 = vpow2.f32 %v545_v1  ;;  %v467_v18 = vmul.f32 %v3638_v9, %v4875_v12  ;;  %v444_v20 = vmul.f32 %v3593_v11, %v4875_v12  ;;  %v445_v21 = vmul.f32 %v3594_v13, %v4875_v12 }
  0x21   : > { %4618 = vpow2.f32 %v547_v2  ;;  %v4969_v23 = vadd.f32 %v4879_v16, %v466_v17  ;;  %v3641_v25 = vunpack.c.l.bf16 %v3881_v14  ;;  %v3642_v34 = vunpack.c.h.bf16 %v3881_v14 }
  0x22   : > { %3938 = vmatpush3.bf16.msra.mxu0 %v4531_v19  ;;  %4492 = vmatpush3.bf16.msra.mxu1 %v4531_v19  ;;  %4620 = vpow2.f32 %v593_v4  ;;  %v514_v19 = vsub.f32 0.0, %v4959_v10  ;;  %v4972_v24 = vadd.f32 %v4879_v16, %v467_v18  ;;  %v4976_v30 = vadd.f32 %v4879_v16, %v444_v20  ;;  %v3872_v20 = vld [vmem:[%s4855_s26 + $0x30] sm:$0xff]  }
  0x23   : > { %3939 = vmatprep.subr.bf16.mxu0 %v4532_v22  ;;  %4485 = vmatprep.subr.bf16.mxu1 %v4532_v22  ;;  %4622 = vpow2.f32 %v595_v5  ;;  %v549_v22 = vmul.f32 1.442695, %v513_v15  ;;  %v4979_v33 = vadd.f32 %v4879_v16, %v445_v21  ;;  %v468_v37 = vmul.f32 %v3641_v25, %v4875_v12 }
  0x24   : > { %v551_v29 = vmul.f32 1.442695, %v514_v19  ;;  %v538_v36 = vsub.f32 0.0, %v4972_v24  ;;  %v515_v38 = vsub.f32 0.0, %v4976_v30  ;;  %v3597_v44 = vunpack.c.l.bf16 %v3870_v28 }
  0x25   : > { %4624 = vpow2.f32 %v549_v22  ;;  %v516_v39 = vsub.f32 0.0, %v4979_v33  ;;  %v4988_v43 = vadd.f32 %v4879_v16, %v468_v37  ;;  %v3598_v48 = vunpack.c.h.bf16 %v3870_v28 }
  0x26   : > { %3940 = vmatpush3.bf16.msra.mxu0 %v4533_v35  ;;  %4493 = vmatpush3.bf16.msra.mxu1 %v4533_v35  ;;  %v537_v35 = vsub.f32 0.0, %v4969_v23  ;;  %4626 = vpow2.f32 %v551_v29  ;;  %v599_v42 = vmul.f32 1.442695, %v538_v36  ;;  %v446_v58 = vmul.f32 %v3597_v44, %v4875_v12  ;;  %v3873_v29 = vld [vmem:[%s4855_s26 + $0x38] sm:$0xff]  }
  0x27   : > { %3941 = vmatprep.subr.bf16.mxu0 %v4534_v40  ;;  %4486 = vmatprep.subr.bf16.mxu1 %v4534_v40  ;;  %v469_v40 = vmul.f32 %v3642_v34, %v4875_v12  ;;  %v539_v57 = vsub.f32 0.0, %v4988_v43  ;;  %v447_v62 = vmul.f32 %v3598_v48, %v4875_v12  ;;  %v555_v2 = vmul.f32 1.442695, %v516_v39 }
  0x28   : > { %v597_v41 = vmul.f32 1.442695, %v537_v35  ;;  %v4999_v3 = vadd.f32 %v4879_v16, %v446_v58  ;;  %v3601_v14 = vunpack.c.l.bf16 %v3871_v63  ;;  %v3602_v19 = vunpack.c.h.bf16 %v3871_v63 }
  0x29   : > { %v4609_v45 = vpop.eup %4608  ;;  %v4991_v47 = vadd.f32 %v4879_v16, %v469_v40  ;;  %v601_v6 = vmul.f32 1.442695, %v539_v57  ;;  %v5002_v8 = vadd.f32 %v4879_v16, %v447_v62  ;;  %v3606_v39 = vunpack.c.h.bf16 %v3872_v20 }
  0x2a   : > { %3942 = vmatpush3.bf16.msra.mxu0 %v4535_v46  ;;  %4494 = vmatpush3.bf16.msra.mxu1 %v4535_v46  ;;  %v553_v46 = vmul.f32 1.442695, %v515_v38  ;;  %v4611_v51 = vpop.eup %4610  ;;  %v605_v52 = vadd.f32 1.0, %v4609_v45  ;;  %4628 = vpow2.f32 %v597_v41  ;;  %v517_v13 = vsub.f32 0.0, %v4999_v3 }
  0x2b   : > { %4383 = vmatprep.subr.bf16.mxu0 %v4938_v55  ;;  %4335 = vmatprep.subr.bf16.mxu1 %v4943_v56  ;;  %v4613_v59 = vpop.eup %4612  ;;  %v606_v60 = vadd.f32 1.0, %v4611_v51  ;;  %4630 = vpow2.f32 %v599_v42  ;;  %v540_v61 = vsub.f32 0.0, %v4991_v47  ;;  %v518_v25 = vsub.f32 0.0, %v5002_v8 }
  0x2c   : > { %v4615_v0 = vpop.eup %4614  ;;  %4632 = vrcp.f32 %v605_v52  ;;  %v629_v1 = vadd.f32 1.0, %v4613_v59  ;;  %v448_v28 = vmul.f32 %v3601_v14, %v4875_v12  ;;  %v557_v35 = vmul.f32 1.442695, %v517_v13 }
  0x2d   : > { %v4617_v4 = vpop.eup %4616  ;;  %4634 = vrcp.f32 %v606_v60  ;;  %v630_v5 = vadd.f32 1.0, %v4615_v0  ;;  %v603_v18 = vmul.f32 1.442695, %v540_v61  ;;  %v449_v36 = vmul.f32 %v3602_v19, %v4875_v12 }
  0x2e   : > { %v4619_v9 = vpop.eup %4618  ;;  %4636 = vrcp.f32 %v629_v1  ;;  %v607_v11 = vadd.f32 1.0, %v4617_v4  ;;  %v5011_v37 = vadd.f32 %v4879_v16, %v448_v28  ;;  %v3605_v38 = vunpack.c.l.bf16 %v3872_v20 }
  0x2f   : > { %v4621_v15 = vpop.eup %4620  ;;  %4638 = vrcp.f32 %v630_v5  ;;  %v608_v17 = vadd.f32 1.0, %v4619_v9  ;;  %v5014_v41 = vadd.f32 %v4879_v16, %v449_v36  ;;  %v3609_v42 = vunpack.c.l.bf16 %v3873_v29  ;;  %v3874_v9 = vld [vmem:[%s4855_s26 + $0x40] sm:$0xff]  }
  0x30   : > { %v4623_v21 = vpop.eup %4622  ;;  %4640 = vrcp.f32 %v607_v11  ;;  %v631_v22 = vadd.f32 1.0, %v4621_v15  ;;  %v3610_v44 = vunpack.c.h.bf16 %v3873_v29  ;;  %v450_v51 = vmul.f32 %v3605_v38, %v4875_v12 }
  0x31   : > { %4642 = vrcp.f32 %v608_v17  ;;  %v632_v34 = vadd.f32 1.0, %v4623_v21  ;;  %v519_v57 = vsub.f32 0.0, %v5011_v37  ;;  %v451_v58 = vmul.f32 %v3606_v39, %v4875_v12 }
  0x32   : > { %4644 = vrcp.f32 %v631_v22  ;;  %v4625_v40 = vpop.eup %4624  ;;  %v520_v59 = vsub.f32 0.0, %v5014_v41  ;;  %v5021_v60 = vadd.f32 %v4879_v16, %v450_v51  ;;  %v452_v61 = vmul.f32 %v3609_v42, %v4875_v12 }
  0x33   : > { %4646 = vrcp.f32 %v632_v34  ;;  %v4627_v45 = vpop.eup %4626  ;;  %v609_v48 = vadd.f32 1.0, %v4625_v40  ;;  %v5025_v63 = vadd.f32 %v4879_v16, %v451_v58  ;;  %v453_v0 = vmul.f32 %v3610_v44, %v4875_v12 }
  0x34   : > { %4648 = vpow2.f32 %v553_v46  ;;  %v610_v52 = vadd.f32 1.0, %v4627_v45  ;;  %v559_v46 = vmul.f32 1.442695, %v518_v25  ;;  %v521_v4 = vsub.f32 0.0, %v5021_v60 }
  0x35   : > { %4650 = vpow2.f32 %v555_v2  ;;  %v5030_v5 = vadd.f32 %v4879_v16, %v452_v61  ;;  %v522_v14 = vsub.f32 0.0, %v5025_v63  ;;  %v5035_v15 = vadd.f32 %v4879_v16, %v453_v0 }
  0x36   : > { %4652 = vrcp.f32 %v609_v48  ;;  %v561_v20 = vmul.f32 1.442695, %v519_v57  ;;  %v565_v25 = vmul.f32 1.442695, %v521_v4  ;;  %v3613_v36 = vunpack.c.l.bf16 %v3874_v9 }
  0x37   : > { %v4629_v62 = vpop.eup %4628  ;;  %4654 = vrcp.f32 %v610_v52  ;;  %v523_v28 = vsub.f32 0.0, %v5030_v5  ;;  %v567_v34 = vmul.f32 1.442695, %v522_v14  ;;  %v524_v40 = vsub.f32 0.0, %v5035_v15 }
  0x38   : > { %v4631_v1 = vpop.eup %4630  ;;  %v633_v2 = vadd.f32 1.0, %v4629_v62  ;;  %4656 = vpow2.f32 %v601_v6  ;;  %v563_v6 = vmul.f32 1.442695, %v520_v59  ;;  %v3614_v44 = vunpack.c.h.bf16 %v3874_v9 }
  0x39   : > { %v4633_v11 = vpop.eup %4632  ;;  %v634_v13 = vadd.f32 1.0, %v4631_v1  ;;  %4658 = vpow2.f32 %v603_v18  ;;  %v454_v45 = vmul.f32 %v3613_v36, %v4875_v12  ;;  %v3875_v1 = vld [vmem:[%s4855_s26 + $0x48] sm:$0xff]  }
  0x3a   : > { %v4635_v17 = vpop.eup %4634  ;;  %v669_v19 = vmul.f32 %v4633_v11, %v4893_v26  ;;  %4660 = vrcp.f32 %v633_v2  ;;  %v455_v57 = vmul.f32 %v3614_v44, %v4875_v12 }
  0x3b   : > { %v4637_v21 = vpop.eup %4636  ;;  %v670_v22 = vmul.f32 %v4635_v17, %v4896_v27  ;;  %4662 = vrcp.f32 %v634_v13 }
  0x3c   : > { %v4639_v29 = vpop.eup %4638  ;;  %v693_v18 = vmul.f32 %v4637_v21, %v4900_v31  ;;  %4664 = vpow2.f32 %v557_v35  ;;  %v569_v35 = vmul.f32 1.442695, %v523_v28  ;;  %v5053_v0 = vadd.f32 %v4879_v16, %v455_v57 }
  0x3d   : > { %v4641_v38 = vpop.eup %4640  ;;  %v3646_v39 = vpack.c.bf16 %v670_v22, %v669_v19  ;;  %v694_v26 = vmul.f32 %v4639_v29, %v4903_v32  ;;  %4666 = vpow2.f32 %v559_v46 }
  0x3e   : > { %v4643_v42 = vpop.eup %4642  ;;  %v671_v27 = vmul.f32 %v4641_v38, %v4924_v49  ;;  %4668 = vpow2.f32 %v561_v20  ;;  %v5049_v49 = vadd.f32 %v4879_v16, %v454_v45  ;;  %v526_v13 = vsub.f32 0.0, %v5053_v0 }
  0x3f   : > { %v4645_v48 = vpop.eup %4644  ;;  %3647 = vst [vmem:[#allocation2] sm:$0xff] %v3646_v39   ;;  %v3706_v51 = vpack.c.bf16 %v694_v26, %v693_v18  ;;  %v672_v31 = vmul.f32 %v4643_v42, %v4927_v50  ;;  %4670 = vpow2.f32 %v563_v6  ;;  %v571_v50 = vmul.f32 1.442695, %v524_v40 }
  0x40   : > { %v4647_v52 = vpop.eup %4646  ;;  %v695_v32 = vmul.f32 %v4645_v48, %v4930_v53  ;;  %4672 = vpow2.f32 %v565_v25  ;;  %v525_v53 = vsub.f32 0.0, %v5049_v49  ;;  %v3617_v20 = vunpack.c.l.bf16 %v3875_v1 }
  0x41   : > { %v4649_v58 = vpop.eup %4648  ;;  %3893 = vst [vmem:[#allocation2 + $0x60] sm:$0xff] %v3706_v51   ;;  %v3651_v59 = vpack.c.bf16 %v672_v31, %v671_v27  ;;  %v696_v61 = vmul.f32 %v4647_v52, %v4933_v54  ;;  %4674 = vpow2.f32 %v567_v34  ;;  %v3618_v25 = vunpack.c.h.bf16 %v3875_v1  ;;  %v3876_v27 = vld [vmem:[%s4855_s26 + $0x50] sm:$0xff]  }
  0x42   : > { %v4651_v62 = vpop.eup %4650  ;;  %v611_v46 = vadd.f32 1.0, %v4649_v58  ;;  %4676 = vpow2.f32 %v569_v35  ;;  %v573_v14 = vmul.f32 1.442695, %v525_v53  ;;  %v575_v18 = vmul.f32 1.442695, %v526_v13  ;;  %v4544_v31 = vld [vmem:[%s6242_s3 + $0xb0] sm:$0xff]  }
  0x43   : > { %v4653_v2 = vpop.eup %4652  ;;  %3882 = vst [vmem:[#allocation2 + $0x8] sm:$0xff] %v3651_v59   ;;  %v3711_v4 = vpack.c.bf16 %v696_v61, %v695_v32  ;;  %v612_v9 = vadd.f32 1.0, %v4651_v62  ;;  %v456_v42 = vmul.f32 %v3617_v20, %v4875_v12  ;;  %v457_v57 = vmul.f32 %v3618_v25, %v4875_v12 }
  0x44   : > { %v4655_v11 = vpop.eup %4654  ;;  %v673_v54 = vmul.f32 %v4653_v2, %v4954_v7  ;;  %4678 = vrcp.f32 %v611_v46  ;;  %v3621_v62 = vunpack.c.l.bf16 %v3876_v27  ;;  %v3622_v46 = vunpack.c.h.bf16 %v3876_v27 }
  0x45   : > { %v4657_v17 = vpop.eup %4656  ;;  %3894 = vst [vmem:[#allocation2 + $0x68] sm:$0xff] %v3711_v4   ;;  %v674_v19 = vmul.f32 %v4655_v11, %v4959_v10  ;;  %4680 = vrcp.f32 %v612_v9  ;;  %v5097_v4 = vadd.f32 %v4879_v16, %v456_v42 }
  0x46   : > { %v4659_v6 = vpop.eup %4658  ;;  %v5060_v21 = vld [vmem:[#allocation2] sm:$0xff]   ;;  %v635_v22 = vadd.f32 1.0, %v4657_v17  ;;  %4682 = vpow2.f32 %v571_v50 }
  0x47   : > { %v4661_v28 = vpop.eup %4660  ;;  %v3656_v29 = vpack.c.bf16 %v674_v19, %v673_v54  ;;  %v636_v7 = vadd.f32 1.0, %v4659_v6  ;;  %4684 = vpow2.f32 %v573_v14  ;;  %1489 = vmatprep.mubr.bf16.mxu0 %v5060_v21  ;;  %v991_v10 = vshrl.u32 %v5060_v21, 16  ;;  %v4540_v19 = vld [vmem:[%s6242_s3 + $0x170] sm:$0xff]   ;;  %v5116_v6 = vld [vmem:[%s6242_s3 + $0xa8] sm:$0xff]  }
  0x48   : > { %v4663_v34 = vpop.eup %4662  ;;  %v5063_v36 = vld [vmem:[#allocation2 + $0x60] sm:$0xff]   ;;  %v697_v38 = vmul.f32 %v4661_v28, %v4969_v23  ;;  %4686 = vrcp.f32 %v635_v22  ;;  %v994_v26 = vshll.u32 %v5060_v21, 16  ;;  %v5119_v22 = vadd.f32 %v4879_v16, %v457_v57 }
  0x49   : > { %v4665_v39 = vpop.eup %4664  ;;  %3883 = vst [vmem:[#allocation2 + $0x10] sm:$0xff] %v3656_v29   ;;  %v698_v40 = vmul.f32 %v4663_v34, %v4972_v24  ;;  %4688 = vrcp.f32 %v636_v7  ;;  %1585 = vmatprep.mubr.bf16.mxu1 %v5063_v36  ;;  %v993_v45 = vrot.slane %v991_v10, 7  ;;  %v1075_v48 = vshrl.u32 %v5063_v36, 16  ;;  %v5132_v34 = vld [vmem:[%s4855_s26 + $0x58] sm:$0xff]  }
  0x4a   : > { %v4667_v44 = vpop.eup %4666  ;;  %v1078_v23 = vshll.u32 %v5063_v36, 16  ;;  %v5076_v51 = vld [vmem:[#allocation2 + $0x8] sm:$0xff]   ;;  %4690 = vpow2.f32 %v575_v18  ;;  %v613_v52 = vadd.f32 1.0, %v4665_v39  ;;  %v458_v7 = vmul.f32 %v3621_v62, %v4875_v12 }
  0x4b   : > { %v3716_v35 = vpack.c.bf16 %v698_v40, %v697_v38  ;;  %v614_v32 = vadd.f32 1.0, %v4667_v44  ;;  %v4669_v58 = vpop.eup %4668  ;;  %v996_v59 = vor.u32 %v994_v26, %v993_v45  ;;  %v1077_v61 = vrot.slane %v1075_v48, 7 }
  0x4c   : > { %v5092_v50 = vld [vmem:[#allocation2 + $0x68] sm:$0xff]   ;;  %v4671_v53 = vpop.eup %4670  ;;  %v998_v1 = vshrl.u32 %v5076_v51, 16  ;;  %v1001_v2 = vshll.u32 %v5076_v51, 16  ;;  %4692 = vrcp.f32 %v613_v52  ;;  %v459_v18 = vmul.f32 %v3622_v46, %v4875_v12 }
  0x4d   : > { %3895 = vst [vmem:[#allocation2 + $0x70] sm:$0xff] %v3716_v35   ;;  %v4673_v9 = vpop.eup %4672  ;;  %v5101_v11 = vsel %vm5080_vm2, 0, %v996_v59  ;;  %v1080_v54 = vor.u32 %v1078_v23, %v1077_v61  ;;  %v1082_v13 = vshrl.u32 %v5092_v50, 16  ;;  %v1085_v14 = vshll.u32 %v5092_v50, 16 }
  0x4e   : > { %v4675_v17 = vpop.eup %4674  ;;  %1490 = vmatmul.mubr.bf16.vlgmr.msra.gmra.mxu0 %v5101_v11  ;;  %v1000_v20 = vrot.slane %v998_v1, 7  ;;  %4694 = vrcp.f32 %v614_v32  ;;  %v616_v42 = vadd.f32 1.0, %v4671_v53  ;;  %v527_v27 = vsub.f32 0.0, %v5097_v4 }
  0x4f   : > { %v4677_v25 = vpop.eup %4676  ;;  %v5123_v28 = vsel %vm5080_vm2, 0, %v1080_v54  ;;  %4384 = vmatpush3.bf16.msra.mxu0 %v4938_v55  ;;  %1497 = vmatprep.mubr.bf16.mxu0 %v5076_v51  ;;  %v1084_v29 = vrot.slane %v1082_v13, 7  ;;  %v615_v55 = vadd.f32 1.0, %v4669_v58  ;;  %v5147_v52 = vrot.slane %v994_v26, 1  ;;  %v4543_v58 = vld [vmem:[%s6242_s3 + $0x168] sm:$0xff]  }
  0x50   : > { %1586 = vmatmul.mubr.bf16.vlgmr.msra.gmra.mxu1 %v5123_v28  ;;  %v1003_v39 = vor.u32 %v1001_v2, %v1000_v20  ;;  %4385 = vmatprep.subr.bf16.mxu0 %v4544_v31  ;;  %v5137_v40 = vld [vmem:[#allocation2 + $0x10] sm:$0xff]   ;;  %v617_v32 = vadd.f32 1.0, %v4673_v9  ;;  %v618_v62 = vadd.f32 1.0, %v4675_v17  ;;  %v5162_v53 = vadd.f32 %v4879_v16, %v458_v7 }
  0x51   : > { %v4679_v38 = vpop.eup %4678  ;;  %4336 = vmatpush3.bf16.msra.mxu1 %v4943_v56  ;;  %1593 = vmatprep.mubr.bf16.mxu1 %v5092_v50  ;;  %v1087_v45 = vor.u32 %v1085_v14, %v1084_v29  ;;  %v1005_v56 = vshrl.u32 %v5137_v40, 16  ;;  %v1008_v59 = vshll.u32 %v5137_v40, 16  ;;  %4696 = vrcp.f32 %v615_v55  ;;  %v4545_v55 = vld [vmem:[%s6242_s3 + $0x160] sm:$0xff]  }
  0x52   : > { %v4681_v44 = vpop.eup %4680  ;;  %v675_v35 = vmul.f32 %v4679_v38, %v4976_v30  ;;  %4337 = vmatprep.subr.bf16.mxu1 %v4540_v19  ;;  %v5157_v30 = vsel %vm5080_vm2, 0, %v1003_v39  ;;  %v5165_v9 = vadd.f32 %v4879_v16, %v459_v18  ;;  %4698 = vrcp.f32 %v616_v42 }
  0x53   : > { %v4683_v57 = vpop.eup %4682  ;;  %v676_v61 = vmul.f32 %v4681_v44, %v4979_v33  ;;  %4386 = vmatpush3.bf16.msra.mxu0 %v4544_v31  ;;  %v1007_v33 = vrot.slane %v1005_v56, 7  ;;  %v4558_v31 = vld [vmem:[%s6242_s3 + $0xa0] sm:$0xff]   ;;  %v3625_v20 = vunpack.c.l.bf16 %v5132_v34  ;;  %v5176_v16 = vsel %vm5080_vm2, 0, %v1087_v45 }
  0x54   : > { %v4685_v46 = vpop.eup %4684  ;;  %v5159_v26 = vld [vmem:[#allocation2 + $0x70] sm:$0xff]   ;;  %4387 = vmatprep.subr.bf16.mxu0 %v5116_v6  ;;  %4700 = vrcp.f32 %v617_v32  ;;  %v619_v44 = vadd.f32 1.0, %v4677_v25  ;;  %v620_v45 = vadd.f32 1.0, %v4683_v57 }
  0x55   : > { %v4687_v54 = vpop.eup %4686  ;;  %v3661_v17 = vpack.c.bf16 %v676_v61, %v675_v35  ;;  %4338 = vmatpush3.bf16.msra.mxu1 %v4540_v19  ;;  %v1089_v7 = vshrl.u32 %v5159_v26, 16  ;;  %v1092_v18 = vshll.u32 %v5159_v26, 16  ;;  %v1010_v19 = vor.u32 %v1008_v59, %v1007_v33 }
  0x56   : > { %v4689_v29 = vpop.eup %4688  ;;  %v699_v38 = vmul.f32 %v4687_v54, %v4988_v43  ;;  %1498 = vmatmul.mubr.bf16.gmra.mxu0 %v5157_v30  ;;  %4339 = vmatprep.subr.bf16.mxu1 %v4543_v58  ;;  %4702 = vrcp.f32 %v618_v62  ;;  %v3626_v35 = vunpack.c.h.bf16 %v5132_v34  ;;  %v621_v25 = vadd.f32 1.0, %v4685_v46  ;;  %v4548_v62 = vld [vmem:[%s6242_s3 + $0x158] sm:$0xff]  }
  0x57   : > { %v4691_v39 = vpop.eup %4690  ;;  %3884 = vst [vmem:[#allocation2 + $0x18] sm:$0xff] %v3661_v17   ;;  %v700_v42 = vmul.f32 %v4689_v29, %v4991_v47  ;;  %1505 = vmatprep.mubr.bf16.mxu0 %v5137_v40  ;;  %v1091_v43 = vrot.slane %v1089_v7, 7  ;;  %4388 = vmatpush3.bf16.msra.mxu0 %v5116_v6  ;;  %v4563_v47 = vld [vmem:[%s6242_s3 + $0x98] sm:$0xff]   ;;  %4704 = vrcp.f32 %v619_v44  ;;  %v460_v32 = vmul.f32 %v3625_v20, %v4875_v12  ;;  %v4549_v29 = vld [vmem:[%s6242_s3 + $0x150] sm:$0xff]   ;;  %v4737_v44 = vld [vmem:[%s4868_s10] ss:$0 sm:$0xff] }
  0x58   : > { %1594 = vmatmul.mubr.bf16.gmra.mxu1 %v5176_v16  ;;  %4389 = vmatprep.subr.bf16.mxu0 %v4558_v31  ;;  %v5201_v6 = vsel %vm5080_vm2, 0, %v1010_v19  ;;  %4706 = vrcp.f32 %v620_v45  ;;  %v622_v57 = vadd.f32 1.0, %v4691_v39  ;;  %v577_v46 = vmul.f32 1.442695, %v527_v27  ;;  %v4569_v27 = vld [vmem:[%s6242_s3 + $0x90] sm:$0xff]  }
  0x59   : > { %v3721_v61 = vpack.c.bf16 %v700_v42, %v699_v38  ;;  %v4693_v54 = vpop.eup %4692  ;;  %4340 = vmatpush3.bf16.msra.mxu1 %v4543_v58  ;;  %1601 = vmatprep.mubr.bf16.mxu1 %v5159_v26  ;;  %v1094_v34 = vor.u32 %v1092_v18, %v1091_v43  ;;  %4708 = vrcp.f32 %v621_v25  ;;  %v528_v58 = vsub.f32 0.0, %v5119_v22  ;;  %v4736_v19 = vld [vmem:[%s4860_s29] ss:$0 sm:$0xff] }
  0x5a   : > { %4341 = vmatprep.subr.bf16.mxu1 %v4545_v55  ;;  %v677_v12 = vmul.f32 %v4693_v54, %v4999_v3  ;;  %4710 = vrcp.f32 %v622_v57  ;;  %v529_v20 = vsub.f32 0.0, %v5162_v53  ;;  %v530_v3 = vsub.f32 0.0, %v5165_v9  ;;  %v4575_v57 = vld [vmem:[%s6242_s3 + $0x88] sm:$0xff]  }
  0x5b   : > { %3896 = vst [vmem:[#allocation2 + $0x78] sm:$0xff] %v3721_v61   ;;  %v4695_v33 = vpop.eup %4694  ;;  %v5214_v17 = vsel %vm5080_vm2, 0, %v1094_v34  ;;  %4390 = vmatpush3.bf16.msra.mxu0 %v4558_v31  ;;  %4712 = vpow2.f32 %v577_v46  ;;  %v579_v39 = vmul.f32 1.442695, %v528_v58  ;;  %v461_v31 = vmul.f32 %v4736_v19, %v3626_v35 }
  0x5c   : > { %v678_v38 = vmul.f32 %v4695_v33, %v5002_v8  ;;  %4391 = vmatprep.subr.bf16.mxu0 %v4563_v47  ;;  %v5229_v43 = vadd.f32 %v4737_v44, %v460_v32  ;;  %v1156_v45 = vrot.slane %v1078_v23, 1  ;;  %v581_v61 = vmul.f32 1.442695, %v529_v20  ;;  %v5244_v23 = vld [vmem:[%s6242_s3 + $0x148] sm:$0xff]  }
  0x5d   : > { %4342 = vmatpush3.bf16.msra.mxu1 %v4545_v55  ;;  %4714 = vpow2.f32 %v579_v39  ;;  %v583_v25 = vmul.f32 1.442695, %v530_v3  ;;  %v5237_v54 = vadd.f32 %v4737_v44, %v461_v31  ;;  %v1134_v31 = vrot.slane %v1001_v2, 1 }
  0x5e   : > { %v5226_v42 = vld [vmem:[#allocation2 + $0x18] sm:$0xff]   ;;  %1506 = vmatmul.mubr.bf16.gmra.mxu0 %v5201_v6  ;;  %4343 = vmatprep.subr.bf16.mxu1 %v4548_v62  ;;  %v3666_v8 = vpack.c.bf16 %v678_v38, %v677_v12  ;;  %v531_v32 = vsub.f32 0.0, %v5229_v43  ;;  %v4697_v34 = vpop.eup %4696  ;;  %4716 = vpow2.f32 %v581_v61  ;;  %v1158_v12 = vrot.slane %v1085_v14, 1 }
  0x5f   : > { %1513 = vmatprep.mubr.bf16.mxu0 %v5226_v42  ;;  %v1012_v35 = vshrl.u32 %v5226_v42, 16  ;;  %v1015_v55 = vshll.u32 %v5226_v42, 16  ;;  %4392 = vmatpush3.bf16.msra.mxu0 %v4563_v47  ;;  %v5251_v47 = vor.u32 %v1156_v45, %v1075_v48  ;;  %v4699_v58 = vpop.eup %4698  ;;  %v679_v20 = vmul.f32 %v4697_v34, %v5011_v37  ;;  %v4581_v45 = vld [vmem:[%s6242_s3 + $0x80] sm:$0xff]  }
  0x60   : > { %1602 = vmatmul.mubr.bf16.gmra.mxu1 %v5214_v17  ;;  %3885 = vst [vmem:[#allocation2 + $0x20] sm:$0xff] %v3666_v8   ;;  %4393 = vmatprep.subr.bf16.mxu0 %v4569_v27  ;;  %4718 = vpow2.f32 %v583_v25  ;;  %v680_v3 = vmul.f32 %v4699_v58, %v5014_v41  ;;  %v532_v36 = vsub.f32 0.0, %v5237_v54  ;;  %v585_v48 = vmul.f32 1.442695, %v531_v32 }
  0x61   : > { %4344 = vmatpush3.bf16.msra.mxu1 %v4548_v62  ;;  %v1014_v33 = vrot.slane %v1012_v35, 7  ;;  %v1160_v38 = vrot.slane %v1092_v18, 1  ;;  %v4701_v14 = vpop.eup %4700  ;;  %v1133_v41 = vor.u32 %v5147_v52, %v991_v10  ;;  %v1136_v61 = vrot.slane %v1008_v59, 1 }
  0x62   : > { %v5255_v46 = vld [vmem:[#allocation2 + $0x78] sm:$0xff]   ;;  %4345 = vmatprep.subr.bf16.mxu1 %v4549_v29  ;;  %v3671_v18 = vpack.c.bf16 %v680_v3, %v679_v20  ;;  %v681_v44 = vmul.f32 %v4701_v14, %v5021_v60  ;;  %4720 = vpow2.f32 %v585_v48  ;;  %v587_v52 = vmul.f32 1.442695, %v532_v36 }
  0x63   : > { %1609 = vmatprep.mubr.bf16.mxu1 %v5255_v46  ;;  %v1017_v62 = vor.u32 %v1015_v55, %v1014_v33  ;;  %v1251_v39 = vshrl.u32 %v5255_v46, 16  ;;  %v1254_v37 = vshll.u32 %v5255_v46, 16  ;;  %4394 = vmatpush3.bf16.msra.mxu0 %v4569_v27  ;;  %v4703_v19 = vpop.eup %4702  ;;  %v5299_v32 = vor.u32 %v1158_v12, %v1082_v13  ;;  %v4556_v3 = vld [vmem:[%s6242_s3 + $0x78] sm:$0xff]  }
  0x64   : > { %4395 = vmatprep.subr.bf16.mxu0 %v4575_v57  ;;  %v4705_v8 = vpop.eup %4704  ;;  %v682_v60 = vmul.f32 %v4703_v19, %v5025_v63  ;;  %3886 = vst [vmem:[#allocation2 + $0x28] sm:$0xff] %v3671_v18   ;;  %v5303_v63 = vor.u32 %v1160_v38, %v1089_v7  ;;  %4722 = vpow2.f32 %v587_v52  ;;  %v1135_v50 = vor.u32 %v1134_v31, %v998_v1  ;;  %v4584_v7 = vld [vmem:[%s6242_s3 + $0x1f8] sm:$0xff]  }
  0x65   : > { %4346 = vmatpush3.bf16.msra.mxu1 %v4549_v29  ;;  %v5280_v21 = vsel %vm5080_vm2, 0, %v1017_v62  ;;  %v1253_v10 = vrot.slane %v1251_v39, 7  ;;  %v4707_v27 = vpop.eup %4706  ;;  %v4554_v29 = vld [vmem:[%s6242_s3 + $0x140] sm:$0xff]   ;;  %v683_v25 = vmul.f32 %v4705_v8, %v5030_v5  ;;  %v5310_v5 = vsel %vm5284_vm5, %v1133_v41, 0 }
  0x66   : > { %1514 = vmatmul.mubr.bf16.gmra.mxu0 %v5280_v21  ;;  %4347 = vmatprep.subr.bf16.mxu1 %v5244_v23  ;;  %v4709_v34 = vpop.eup %4708  ;;  %v3676_v33 = vpack.c.bf16 %v682_v60, %v681_v44  ;;  %v684_v20 = vmul.f32 %v4707_v27, %v5035_v15  ;;  %v1259_v26 = vrot.slane %v1254_v37, 1  ;;  %v1137_v36 = vor.u32 %v1136_v61, %v1005_v56  ;;  %v4560_v27 = vld [vmem:[%s6242_s3 + $0x70] sm:$0xff]  }
  0x67   : > { %v1256_v58 = vor.u32 %v1254_v37, %v1253_v10  ;;  %v5305_v46 = vld [vmem:[#allocation2 + $0x20] sm:$0xff]   ;;  %4396 = vmatpush3.bf16.msra.mxu0 %v4575_v57  ;;  %v4711_v59 = vpop.eup %4710  ;;  %v685_v13 = vmul.f32 %v4709_v34, %v5049_v49  ;;  %v5338_v56 = vsel %vm5284_vm5, %v1135_v50, 0  ;;  %v1138_v44 = vrot.slane %v1015_v55, 1  ;;  %v4557_v10 = vld [vmem:[%s6242_s3 + $0x38] sm:$0xff]  }
  0x68   : > { %4397 = vmatprep.subr.bf16.mxu0 %v4581_v45  ;;  %v4713_v12 = vpop.eup %4712  ;;  %1521 = vmatprep.mubr.bf16.mxu0 %v5305_v46  ;;  %v1019_v57 = vshrl.u32 %v5305_v46, 16  ;;  %v1022_v1 = vshll.u32 %v5305_v46, 16  ;;  %3887 = vst [vmem:[#allocation2 + $0x30] sm:$0xff] %v3676_v33   ;;  %v3681_v49 = vpack.c.bf16 %v684_v20, %v683_v25  ;;  %v5333_v38 = vor.u32 %v1259_v26, %v1251_v39 }
  0x69   : > { %v5320_v15 = vsel %vm5080_vm2, 0, %v1256_v58  ;;  %4348 = vmatpush3.bf16.msra.mxu1 %v5244_v23  ;;  %v686_v23 = vmul.f32 %v4711_v59, %v5053_v0  ;;  %v623_v48 = vadd.f32 1.0, %v4713_v12  ;;  %v5344_v18 = vsel %vm5284_vm5, %v1137_v36, 0  ;;  %v4561_v59 = vld [vmem:[%s6242_s3 + $0x30] sm:$0xff]  }
  0x6a   : > { %1610 = vmatmul.mubr.bf16.gmra.mxu1 %v5320_v15  ;;  %4349 = vmatprep.subr.bf16.mxu1 %v4554_v29  ;;  %v4715_v14 = vpop.eup %4714  ;;  %v1021_v62 = vrot.slane %v1019_v57, 7  ;;  %3888 = vst [vmem:[#allocation2 + $0x38] sm:$0xff] %v3681_v49   ;;  %v1140_v55 = vrot.slane %v1022_v1, 1  ;;  %v1139_v20 = vor.u32 %v1138_v44, %v1012_v35 }
  0x6b   : > { %4351 = vmatprep.mubr.bf16.mxu1 %v5310_v5  ;;  %4398 = vmatpush3.bf16.msra.mxu0 %v4581_v45  ;;  %v3686_v37 = vpack.c.bf16 %v686_v23, %v685_v13  ;;  %v624_v41 = vadd.f32 1.0, %v4715_v14  ;;  %4724 = vrcp.f32 %v623_v48  ;;  %v4717_v19 = vpop.eup %4716  ;;  %v5340_v0 = vld [vmem:[#allocation2 + $0x28] sm:$0xff]  }
  0x6c   : > { %4199 = vmatprep.subr.bf16.mxu0 %v4584_v7  ;;  %v1024_v31 = vor.u32 %v1022_v1, %v1021_v62  ;;  %v625_v45 = vadd.f32 1.0, %v4717_v19  ;;  %v1026_v60 = vshrl.u32 %v5340_v0, 16  ;;  %v1029_v52 = vshll.u32 %v5340_v0, 16  ;;  %v4564_v7 = vld [vmem:[%s6242_s3 + $0x68] sm:$0xff]   ;;  %v4567_v62 = vld [vmem:[%s6242_s3 + $0x60] sm:$0xff]  }
  0x6d   : > { %4350 = vmatpush3.bf16.msra.mxu1 %v4554_v29  ;;  %v4719_v39 = vpop.eup %4718  ;;  %3889 = vst [vmem:[#allocation2 + $0x40] sm:$0xff] %v3686_v37   ;;  %4726 = vrcp.f32 %v624_v41  ;;  %v1141_v26 = vor.u32 %v1140_v55, %v1019_v57  ;;  %v5384_v36 = vsel %vm5284_vm5, %v1139_v20, 0  ;;  %v4565_v23 = vld [vmem:[%s6242_s3 + $0x28] sm:$0xff]  }
  0x6e   : > { %4063 = vmatprep.subr.bf16.mxu1 %v4556_v3  ;;  %v5350_v8 = vsel %vm5080_vm2, 0, %v1024_v31  ;;  %v626_v61 = vadd.f32 1.0, %v4719_v39  ;;  %4728 = vrcp.f32 %v625_v45  ;;  %v1028_v34 = vrot.slane %v1026_v60, 7 }
  0x6f   : > { %1522 = vmatmul.mubr.bf16.gmra.mxu0 %v5350_v8  ;;  %v5361_v29 = vld [vmem:[#allocation2 + $0x30] sm:$0xff]   ;;  %v4721_v25 = vpop.eup %4720  ;;  %v1142_v57 = vrot.slane %v1029_v52, 1  ;;  %v5392_v48 = vsel %vm5284_vm5, %v1141_v26, 0 }
  0x70   : > { %1529 = vmatprep.mubr.bf16.mxu0 %v5340_v0  ;;  %v1033_v58 = vshrl.u32 %v5361_v29, 16  ;;  %4730 = vrcp.f32 %v626_v61  ;;  %v1031_v33 = vor.u32 %v1029_v52, %v1028_v34  ;;  %v627_v50 = vadd.f32 1.0, %v4721_v25  ;;  %v4568_v52 = vld [vmem:[%s6242_s3 + $0x20] sm:$0xff]  }
  0x71   : > { %v4723_v13 = vpop.eup %4722  ;;  %v1036_v49 = vshll.u32 %v5361_v29, 16  ;;  %v5380_v35 = vld [vmem:[#allocation2 + $0x38] sm:$0xff]   ;;  %v1143_v45 = vor.u32 %v1142_v57, %v1026_v60 }
  0x72   : > { %4352 = vmatmul.mubr.bf16.vlgmr.msra.gmra.mxu1 %v5338_v56  ;;  %v5377_v12 = vsel %vm5080_vm2, 0, %v1031_v33  ;;  %v1035_v1 = vrot.slane %v1033_v58, 7  ;;  %v628_v3 = vadd.f32 1.0, %v4723_v13  ;;  %4732 = vrcp.f32 %v627_v50 }
  0x73   : > { %4064 = vmatpush3.bf16.msra.mxu1 %v4557_v10  ;;  %4355 = vmatprep.mubr.bf16.mxu1 %v5344_v18  ;;  %v1144_v14 = vrot.slane %v1036_v49, 1  ;;  %v1040_v31 = vshrl.u32 %v5380_v35, 16  ;;  %v1043_v10 = vshll.u32 %v5380_v35, 16 }
  0x74   : > { %4065 = vmatprep.subr.bf16.mxu1 %v4560_v27  ;;  %v5397_v37 = vld [vmem:[#allocation2 + $0x40] sm:$0xff]   ;;  %v1038_v19 = vor.u32 %v1036_v49, %v1035_v1  ;;  %4734 = vrcp.f32 %v628_v3  ;;  %v4577_v1 = vld [vmem:[%s6242_s3 + $0x50] sm:$0xff]  }
  0x75   : > { %v1145_v27 = vor.u32 %v1144_v14, %v1033_v58  ;;  %v1050_v55 = vshll.u32 %v5397_v37, 16  ;;  %v1042_v34 = vrot.slane %v1040_v31, 7  ;;  %v5420_v58 = vsel %vm5284_vm5, %v1143_v45, 0  ;;  %v4578_v14 = vld [vmem:[%s6242_s3 + $0x10] sm:$0xff]  }
  0x76   : > { %v5415_v60 = vsel %vm5080_vm2, 0, %v1038_v19  ;;  %v1146_v50 = vrot.slane %v1043_v10, 1  ;;  %v1047_v26 = vshrl.u32 %v5397_v37, 16 }
  0x77   : > { %4066 = vmatpush3.bf16.msra.mxu1 %v4561_v59  ;;  %1530 = vmatmul.mubr.bf16.gmra.mxu0 %v5377_v12  ;;  %v5428_v13 = vsel %vm5284_vm5, %v1145_v27, 0  ;;  %v1045_v49 = vor.u32 %v1043_v10, %v1042_v34  ;;  %v4583_v34 = vld [vmem:[%s6242_s3] sm:$0xff]  }
  0x78   : > { %4067 = vmatprep.subr.bf16.mxu1 %v4564_v7  ;;  %v4725_v41 = vpop.eup %4724  ;;  %1537 = vmatprep.mubr.bf16.mxu0 %v5361_v29 }
  0x79   : > { %v687_v39 = vmul.f32 %v4725_v41, %v5097_v4  ;;  %v4572_v4 = vld [vmem:[%s6242_s3 + $0x58] sm:$0xff]   ;;  %v4579_v41 = vld [vmem:[%s6242_s3 + $0x48] sm:$0xff]   ;;  %v5446_v19 = vsel %vm5080_vm2, 0, %v1045_v49 }
  0x7a   : > { %4356 = vmatmul.mubr.bf16.gmra.mxu1 %v5384_v36  ;;  %v4727_v44 = vpop.eup %4726 }
  0x7b   : > { %4359 = vmatprep.mubr.bf16.mxu1 %v5392_v48  ;;  %4068 = vmatpush3.bf16.msra.mxu1 %v4565_v23  ;;  %v688_v61 = vmul.f32 %v4727_v44, %v5119_v22  ;;  %v4729_v25 = vpop.eup %4728  ;;  %v4573_v22 = vld [vmem:[%s6242_s3 + $0x18] sm:$0xff]   ;;  %v1147_v23 = vor.u32 %v1146_v50, %v1040_v31  ;;  %v4580_v44 = vld [vmem:[%s6242_s3 + $0x8] sm:$0xff]  }
  0x7c   : > { %4069 = vmatprep.subr.bf16.mxu1 %v4567_v62  ;;  %v689_v20 = vmul.f32 %v4729_v25, %v5162_v53  ;;  %v1148_v53 = vrot.slane %v1050_v55, 1  ;;  %v1049_v62 = vrot.slane %v1047_v26, 7 }
  0x7d   : > { %v3691_v33 = vpack.c.bf16 %v688_v61, %v687_v39  ;;  %v4731_v59 = vpop.eup %4730  ;;  %v5454_v45 = vsel %vm5284_vm5, %v1147_v23, 0  ;;  %v4582_v61 = vld [vmem:[%s6242_s3 + $0x40] sm:$0xff]  }
  0x7e   : > { %v690_v7 = vmul.f32 %v4731_v59, %v5165_v9  ;;  %v1149_v9 = vor.u32 %v1148_v53, %v1047_v26  ;;  %v4586_v59 = vld [vmem:[%s6242_s3 + $0x238] sm:$0xff]  }
  0x7f   : > { %4070 = vmatpush3.bf16.msra.mxu1 %v4568_v52  ;;  %1538 = vmatmul.mubr.bf16.gmra.mxu0 %v5415_v60  ;;  %3890 = vst [vmem:[#allocation2 + $0x48] sm:$0xff] %v3691_v33   ;;  %v4733_v57 = vpop.eup %4732 }
  0x80   : > { %4071 = vmatprep.subr.bf16.mxu1 %v4572_v4  ;;  %1545 = vmatprep.mubr.bf16.mxu0 %v5380_v35  ;;  %v3696_v3 = vpack.c.bf16 %v690_v7, %v689_v20  ;;  %v691_v39 = vmul.f32 %v4733_v57, %v5229_v43  ;;  %v5462_v27 = vsel %vm5284_vm5, %v1149_v9, 0  ;;  %v1052_v43 = vor.u32 %v1050_v55, %v1049_v62 }
  0x81   : > { %v4735_v31 = vpop.eup %4734 }
  0x82   : > { %4360 = vmatmul.mubr.bf16.gmra.mxu1 %v5420_v58  ;;  %3891 = vst [vmem:[#allocation2 + $0x50] sm:$0xff] %v3696_v3   ;;  %v692_v52 = vmul.f32 %v4735_v31, %v5237_v54  ;;  %v5479_v20 = vsel %vm5080_vm2, 0, %v1052_v43 }
  0x83   : > { %4363 = vmatprep.mubr.bf16.mxu1 %v5428_v13  ;;  %4072 = vmatpush3.bf16.msra.mxu1 %v4573_v22 }
  0x84   : > { %4073 = vmatprep.subr.bf16.mxu1 %v4577_v1  ;;  %v3701_v54 = vpack.c.bf16 %v692_v52, %v691_v39 }
  0x86   : > { %v5456_v10 = vld [vmem:[#allocation2 + $0x48] sm:$0xff]   ;;  %3892 = vst [vmem:[#allocation2 + $0x58] sm:$0xff] %v3701_v54  }
  0x87   : > { %4074 = vmatpush3.bf16.msra.mxu1 %v4578_v14  ;;  %1546 = vmatmul.mubr.bf16.gmra.mxu0 %v5446_v19  ;;  %v1054_v4 = vshrl.u32 %v5456_v10, 16  ;;  %v1057_v25 = vshll.u32 %v5456_v10, 16 }
  0x88   : > { %4075 = vmatprep.subr.bf16.mxu1 %v4579_v41  ;;  %1553 = vmatprep.mubr.bf16.mxu0 %v5397_v37 }
  0x89   : > { %v1150_v55 = vrot.slane %v1057_v25, 1  ;;  %v5475_v33 = vld [vmem:[#allocation2 + $0x50] sm:$0xff]   ;;  %v1056_v53 = vrot.slane %v1054_v4, 7 }
  0x8a   : > { %4364 = vmatmul.mubr.bf16.gmra.mxu1 %v5454_v45  ;;  %v1061_v22 = vshrl.u32 %v5475_v33, 16  ;;  %v1064_v26 = vshll.u32 %v5475_v33, 16 }
  0x8b   : > { %4367 = vmatprep.mubr.bf16.mxu1 %v5462_v27  ;;  %4076 = vmatpush3.bf16.msra.mxu1 %v4580_v44  ;;  %v1151_v50 = vor.u32 %v1150_v55, %v1054_v4  ;;  %v1059_v3 = vor.u32 %v1057_v25, %v1056_v53  ;;  %v5511_v44 = vsel %vm5284_vm5, %v5251_v47, 0  ;;  %v5527_v47 = vsel %vm5284_vm5, %v5299_v32, 0  ;;  %v4587_v53 = vld [vmem:[%s6242_s3 + $0x1f0] sm:$0xff]  }
  0x8c   : > { %4077 = vmatprep.subr.bf16.mxu1 %v4582_v61  ;;  %v1152_v1 = vrot.slane %v1064_v26, 1  ;;  %v1063_v41 = vrot.slane %v1061_v22, 7  ;;  %v5533_v25 = vsel %vm5284_vm5, %v5303_v63, 0  ;;  %v5548_v63 = vsel %vm5284_vm5, %v5333_v38, 0  ;;  %v4588_v38 = vld [vmem:[%s6242_s3 + $0x1b0] sm:$0xff]  }
  0x8d   : > { %v5488_v7 = vsel %vm5284_vm5, %v1151_v50, 0  ;;  %v5493_v57 = vld [vmem:[#allocation2 + $0x58] sm:$0xff]   ;;  %v5504_v62 = vsel %vm5080_vm2, 0, %v1059_v3  ;;  %v4589_v3 = vld [vmem:[%s6242_s3 + $0x1e8] sm:$0xff]  }
  0x8e   : > { %v1153_v49 = vor.u32 %v1152_v1, %v1061_v22  ;;  %v1068_v14 = vshrl.u32 %v5493_v57, 16  ;;  %v1071_v9 = vshll.u32 %v5493_v57, 16  ;;  %v1066_v52 = vor.u32 %v1064_v26, %v1063_v41  ;;  %v4585_v26 = vld [vmem:[%s6242_s3 + $0x1b8] sm:$0xff]   ;;  %v4596_v41 = vld [vmem:[%s6242_s3 + $0x228] sm:$0xff]  }
  0x8f   : > { %4078 = vmatpush3.bf16.msra.mxu1 %v4583_v34  ;;  %1554 = vmatmul.mubr.bf16.gmra.mxu0 %v5479_v20  ;;  %v4768_v34 = vmov 0  }
  0x90   : > { %4431 = vmatprep.subr.bf16.mxu1 %v4586_v59  ;;  %1561 = vmatprep.mubr.bf16.mxu0 %v5456_v10  ;;  %v5497_v23 = vsel %vm5284_vm5, %v1153_v49, 0  ;;  %v1154_v39 = vrot.slane %v1071_v9, 1  ;;  %v5521_v61 = vsel %vm5080_vm2, 0, %v1066_v52  ;;  %v1070_v4 = vrot.slane %v1068_v14, 7  ;;  %v4591_v49 = vld [vmem:[%s6242_s3 + $0x230] sm:$0xff]   ;;  %v4595_v52 = vld [vmem:[%s6242_s3 + $0x198] sm:$0xff]  }
  0x91   : > { %v1130_v55 = vrot.slane %v4768_v34, 1  ;;  %v986_v22 = vrot.slane %v4768_v34, 7 }
  0x92   : > { %4368 = vmatmul.mubr.bf16.gmra.mxu1 %v5488_v7  ;;  %v1155_v31 = vor.u32 %v1154_v39, %v1068_v14  ;;  %v1073_v54 = vor.u32 %v1071_v9, %v1070_v4  ;;  %v4738_v14 = vld [vmem:[#allocation2] sm:$0xff]   ;;  %v4597_v4 = vld [vmem:[%s6242_s3 + $0x1d0] sm:$0xff]  }
  0x93   : > { %4371 = vmatprep.mubr.bf16.mxu1 %v5497_v23  ;;  %v1181_v32 = vsel %vm5284_vm5, %v1130_v55, 0  ;;  %v1114_v1 = vsel %vm5080_vm2, 0, %v986_v22  ;;  %v4592_v9 = vld [vmem:[%s6242_s3 + $0x1e0] sm:$0xff]   ;;  %v4599_v55 = vld [vmem:[%s6242_s3 + $0x1c8] sm:$0xff]  }
  0x94   : > { %v5515_v43 = vsel %vm5284_vm5, %v1155_v31, 0  ;;  %v5540_v50 = vsel %vm5080_vm2, 0, %v1073_v54  ;;  %v4601_v39 = vld [vmem:[%s6242_s3 + $0x220] sm:$0xff]   ;;  %v4594_v31 = vld [vmem:[%s6242_s3 + $0x1d8] sm:$0xff]  }
  0x95   : > { %v4604_v54 = vld [vmem:[%s6242_s3 + $0x218] sm:$0xff]   ;;  %v4602_v22 = vld [vmem:[%s6242_s3 + $0x1c0] sm:$0xff]  }
  0x97   : > { %1562 = vmatmul.mubr.bf16.gmra.mxu0 %v5504_v62 }
  0x98   : > { %1569 = vmatprep.mubr.bf16.mxu0 %v5475_v33 }
  0x9a   : > { %4372 = vmatmul.mubr.bf16.gmra.mxu1 %v5515_v43 }
  0x9b   : > { %4375 = vmatprep.mubr.bf16.mxu1 %v5511_v44 }
  0x9f   : > { %1570 = vmatmul.mubr.bf16.gmra.mxu0 %v5521_v61 }
  0xa0   : > { %1577 = vmatprep.mubr.bf16.mxu0 %v5493_v57 }
  0xa2   : > { %4376 = vmatmul.mubr.bf16.gmra.mxu1 %v5527_v47 }
  0xa3   : > { %4379 = vmatprep.mubr.bf16.mxu1 %v5533_v25 }
  0xa7   : > { %1578 = vmatmul.mubr.bf16.gmra.mxu0 %v5540_v50 }
  0xa8   : > { %4399 = vmatprep.mubr.bf16.mxu0 %v1181_v32  ;;  %v4600_v32 = vld [vmem:[%s6242_s3 + $0x188] sm:$0xff]  }
  0xaa   : > { %4380 = vmatmul.mubr.bf16.gmra.mxu1 %v5548_v63 }
  0xab   : > { %1955 = vmatprep.mubr.bf16.mxu1 %v4768_v34 }
  0xaf   : > { %4400 = vmatmul.mubr.bf16.vlgmr.msra.gmra.mxu0 %v5310_v5  ;;  %v4590_v5 = vld [vmem:[%s6242_s3 + $0x1a8] sm:$0xff]  }
  0xb0   : > { %4200 = vmatpush3.bf16.msra.mxu0 %v4585_v26  ;;  %4403 = vmatprep.mubr.bf16.mxu0 %v5338_v56  ;;  %v4606_v26 = vld [vmem:[%s6242_s3 + $0x208] sm:$0xff]  }
  0xb1   : > { %4201 = vmatprep.subr.bf16.mxu0 %v4587_v53  ;;  %v4603_v53 = vld [vmem:[%s6242_s3 + $0x180] sm:$0xff]  }
  0xb2   : > { %1956 = vmatmul.mubr.bf16.vlgmr.msra.gmra.mxu1 %v1114_v1  ;;  %v4607_v1 = vld [vmem:[%s6242_s3 + $0x200] sm:$0xff]  }
  0xb3   : > { %4432 = vmatpush3.bf16.msra.mxu1 %v4586_v59  ;;  %1963 = vmatprep.mubr.bf16.mxu1 %v4738_v14  ;;  %v4593_v59 = vld [vmem:[%s6242_s3 + $0x1a0] sm:$0xff]  }
  0xb4   : > { %4202 = vmatpush3.bf16.msra.mxu0 %v4588_v38  ;;  %4433 = vmatprep.subr.bf16.mxu1 %v4591_v49  ;;  %v4739_v38 = vld [vmem:[#allocation2 + $0x8] sm:$0xff]  }
  0xb5   : > { %4203 = vmatprep.subr.bf16.mxu0 %v4589_v3  ;;  %v5673_v3 = vld [vmem:[#allocation2 + $0x60] sm:$0xff]  }
  0xb7   : > { %4404 = vmatmul.mubr.bf16.gmra.mxu0 %v5344_v18  ;;  %4434 = vmatpush3.bf16.msra.mxu1 %v4591_v49 }
  0xb8   : > { %4407 = vmatprep.mubr.bf16.mxu0 %v5384_v36  ;;  %4204 = vmatpush3.bf16.msra.mxu0 %v4590_v5 }
  0xb9   : > { %4205 = vmatprep.subr.bf16.mxu0 %v4592_v9  ;;  %4435 = vmatprep.subr.bf16.mxu1 %v4596_v41 }
  0xba   : > { %1964 = vmatmul.mubr.bf16.gmra.mxu1 %v5101_v11  ;;  %v4605_v11 = vld [vmem:[%s6242_s3 + $0x210] sm:$0xff]  }
  0xbb   : > { %1971 = vmatprep.mubr.bf16.mxu1 %v5076_v51  ;;  %4436 = vmatpush3.bf16.msra.mxu1 %v4596_v41  ;;  %v4598_v51 = vld [vmem:[%s6242_s3 + $0x190] sm:$0xff]  }
  0xbc   : > { %4206 = vmatpush3.bf16.msra.mxu0 %v4593_v59  ;;  %4437 = vmatprep.subr.bf16.mxu1 %v4601_v39 }
  0xbd   : > { %4207 = vmatprep.subr.bf16.mxu0 %v4594_v31 }
  0xbf   : > { %4408 = vmatmul.mubr.bf16.gmra.mxu0 %v5392_v48  ;;  %4438 = vmatpush3.bf16.msra.mxu1 %v4601_v39 }
  0xc0   : > { %4411 = vmatprep.mubr.bf16.mxu0 %v5420_v58  ;;  %4208 = vmatpush3.bf16.msra.mxu0 %v4595_v52 }
  0xc1   : > { %4209 = vmatprep.subr.bf16.mxu0 %v4597_v4  ;;  %4439 = vmatprep.subr.bf16.mxu1 %v4604_v54 }
  0xc2   : > { %1972 = vmatmul.mubr.bf16.gmra.mxu1 %v5157_v30 }
  0xc3   : > { %1979 = vmatprep.mubr.bf16.mxu1 %v5137_v40  ;;  %4440 = vmatpush3.bf16.msra.mxu1 %v4604_v54 }
  0xc4   : > { %4210 = vmatpush3.bf16.msra.mxu0 %v4598_v51  ;;  %4441 = vmatprep.subr.bf16.mxu1 %v4605_v11  ;;  %v5685_v51 = vld [vmem:[#allocation2 + $0x68] sm:$0xff]  }
  0xc5   : > { %4211 = vmatprep.subr.bf16.mxu0 %v4599_v55 }
  0xc7   : > { %4412 = vmatmul.mubr.bf16.gmra.mxu0 %v5428_v13  ;;  %4442 = vmatpush3.bf16.msra.mxu1 %v4605_v11 }
  0xc8   : > { %4415 = vmatprep.mubr.bf16.mxu0 %v5454_v45  ;;  %4212 = vmatpush3.bf16.msra.mxu0 %v4600_v32 }
  0xc9   : > { %4213 = vmatprep.subr.bf16.mxu0 %v4602_v22  ;;  %4443 = vmatprep.subr.bf16.mxu1 %v4606_v26 }
  0xca   : > { %1980 = vmatmul.mubr.bf16.gmra.mxu1 %v5201_v6 }
  0xcb   : > { %1987 = vmatprep.mubr.bf16.mxu1 %v5226_v42  ;;  %4444 = vmatpush3.bf16.msra.mxu1 %v4606_v26 }
  0xcc   : > { %4214 = vmatpush3.bf16.msra.mxu0 %v4603_v53  ;;  %4445 = vmatprep.subr.bf16.mxu1 %v4607_v1 }
  0xcf   : > { %4416 = vmatmul.mubr.bf16.gmra.mxu0 %v5462_v27  ;;  %4446 = vmatpush3.bf16.msra.mxu1 %v4607_v1 }
  0xd0   : > { %4419 = vmatprep.mubr.bf16.mxu0 %v5488_v7 }
  0xd2   : > { %1988 = vmatmul.mubr.bf16.gmra.mxu1 %v5280_v21 }
  0xd3   : > { %1995 = vmatprep.mubr.bf16.mxu1 %v5305_v46 }
  0xd7   : > { %4420 = vmatmul.mubr.bf16.gmra.mxu0 %v5497_v23 }
  0xd8   : > { %4423 = vmatprep.mubr.bf16.mxu0 %v5515_v43 }
  0xda   : > { %1996 = vmatmul.mubr.bf16.gmra.mxu1 %v5350_v8 }
  0xdb   : > { %2003 = vmatprep.mubr.bf16.mxu1 %v5340_v0 }
  0xdf   : > { %4424 = vmatmul.mubr.bf16.gmra.mxu0 %v5511_v44 }
  0xe0   : > { %4427 = vmatprep.mubr.bf16.mxu0 %v5527_v47 }
  0xe2   : > { %2004 = vmatmul.mubr.bf16.gmra.mxu1 %v5377_v12 }
  0xe3   : > { %2011 = vmatprep.mubr.bf16.mxu1 %v5361_v29 }
  0xe7   : > { %4428 = vmatmul.mubr.bf16.gmra.mxu0 %v5533_v25 }
  0xe8   : > { %2487 = vmatprep.mubr.bf16.mxu0 %v4739_v38 }
  0xea   : > { %2012 = vmatmul.mubr.bf16.gmra.mxu1 %v5415_v60 }
  0xeb   : > { %2019 = vmatprep.mubr.bf16.mxu1 %v5380_v35 }
  0xef   : > { %2488 = vmatmul.mubr.bf16.vlgmr.msra.gmra.mxu0 %v5157_v30 }
  0xf0   : > { %2495 = vmatprep.mubr.bf16.mxu0 %v5137_v40 }
  0xf2   : > { %2020 = vmatmul.mubr.bf16.gmra.mxu1 %v5446_v19 }
  0xf3   : > { %2027 = vmatprep.mubr.bf16.mxu1 %v5397_v37 }
  0xf7   : > { %2496 = vmatmul.mubr.bf16.gmra.mxu0 %v5201_v6 }
  0xf8   : > { %2503 = vmatprep.mubr.bf16.mxu0 %v5226_v42 }
  0xfa   : > { %2028 = vmatmul.mubr.bf16.gmra.mxu1 %v5479_v20 }
  0xfb   : > { %2035 = vmatprep.mubr.bf16.mxu1 %v5456_v10 }
  0xff   : > { %2504 = vmatmul.mubr.bf16.gmra.mxu0 %v5280_v21 }
 0x100   : > { %2511 = vmatprep.mubr.bf16.mxu0 %v5305_v46 }
 0x102   : > { %2036 = vmatmul.mubr.bf16.gmra.mxu1 %v5504_v62 }
 0x103   : > { %2043 = vmatprep.mubr.bf16.mxu1 %v5475_v33 }
 0x107   : > { %2512 = vmatmul.mubr.bf16.gmra.mxu0 %v5350_v8 }
 0x108   : > { %2519 = vmatprep.mubr.bf16.mxu0 %v5340_v0 }
 0x10a   : > { %2044 = vmatmul.mubr.bf16.gmra.mxu1 %v5521_v61 }
 0x10b   : > { %2051 = vmatprep.mubr.bf16.mxu1 %v5493_v57 }
 0x10e   : > { %v3943_v40 = vpop.f32.mrf.mxu0 }
 0x10f   : > { %2520 = vmatmul.mubr.bf16.gmra.mxu0 %v5377_v12 }
 0x110   : > { %v4015_v30 = vpop.f32.mrf.mxu1  ;;  %v3944_v6 = vpop.f32.mrf.mxu0  ;;  %2527 = vmatprep.mubr.bf16.mxu0 %v5361_v29 }
 0x111   : > { %v5667_v42 = vadd.f32 %v3944_v6, %v3943_v40  ;;  %v5695_v6 = vld [vmem:[#allocation2 + $0x70] sm:$0xff]  }
 0x112   : > { %v4016_v21 = vpop.f32.mrf.mxu1  ;;  %v3946_v46 = vpop.f32.mrf.mxu0  ;;  %2052 = vmatmul.mubr.bf16.gmra.mxu1 %v5540_v50 }
 0x113   : > { %v5671_v8 = vadd.f32 %v4016_v21, %v4015_v30  ;;  %2059 = vmatprep.mubr.bf16.mxu1 %v5673_v3 }
 0x114   : > { %v4018_v0 = vpop.f32.mrf.mxu1  ;;  %v3947_v49 = vpop.f32.mrf.mxu0 }
 0x115   : > { %v5676_v14 = vadd.f32 %v3947_v49, %v3946_v46 }
 0x116   : > { %v4019_v12 = vpop.f32.mrf.mxu1  ;;  %v3949_v5 = vpop.f32.mrf.mxu0 }
 0x117   : > { %v5678_v9 = vadd.f32 %v4019_v12, %v4018_v0  ;;  %2528 = vmatmul.mubr.bf16.gmra.mxu0 %v5415_v60 }
 0x118   : > { %v4021_v41 = vpop.f32.mrf.mxu1  ;;  %v3950_v29 = vpop.f32.mrf.mxu0  ;;  %2535 = vmatprep.mubr.bf16.mxu0 %v5380_v35 }
 0x119   : > { %v3951_v59 = vadd.f32 %v3950_v29, %v3949_v5 }
 0x11a   : > { %v4022_v39 = vpop.f32.mrf.mxu1  ;;  %v3952_v31 = vpop.f32.mrf.mxu0  ;;  %2060 = vmatmul.mubr.bf16.gmra.mxu1 %v5123_v28 }
 0x11b   : > { %v5683_v52 = vadd.f32 %v4022_v39, %v4021_v41  ;;  %2067 = vmatprep.mubr.bf16.mxu1 %v5685_v51 }
 0x11c   : > { %v4024_v4 = vpop.f32.mrf.mxu1  ;;  %v3953_v54 = vpop.f32.mrf.mxu0 }
 0x11d   : > { %v3954_v11 = vadd.f32 %v3953_v54, %v3952_v31 }
 0x11e   : > { %v4025_v55 = vpop.f32.mrf.mxu1  ;;  %v3955_v32 = vpop.f32.mrf.mxu0 }
 0x11f   : > { %v5688_v60 = vadd.f32 %v4025_v55, %v4024_v4  ;;  %2536 = vmatmul.mubr.bf16.gmra.mxu0 %v5446_v19 }
 0x120   : > { %v4027_v22 = vpop.f32.mrf.mxu1  ;;  %v3956_v35 = vpop.f32.mrf.mxu0  ;;  %2543 = vmatprep.mubr.bf16.mxu0 %v5397_v37 }
 0x121   : > { %v3957_v26 = vadd.f32 %v3956_v35, %v3955_v32 }
 0x122   : > { %v4028_v53 = vpop.f32.mrf.mxu1  ;;  %v3958_v1 = vpop.f32.mrf.mxu0  ;;  %2068 = vmatmul.mubr.bf16.gmra.mxu1 %v5176_v16 }
 0x123   : > { %v5693_v38 = vadd.f32 %v4028_v53, %v4027_v22  ;;  %2075 = vmatprep.mubr.bf16.mxu1 %v5695_v6 }
 0x124   : > { %v4030_v40 = vpop.f32.mrf.mxu1  ;;  %v3959_v30 = vpop.f32.mrf.mxu0 }
 0x125   : > { %v3960_v21 = vadd.f32 %v3959_v30, %v3958_v1 }
 0x126   : > { %v4031_v46 = vpop.f32.mrf.mxu1  ;;  %v3961_v0 = vpop.f32.mrf.mxu0 }
 0x127   : > { %v5698_v19 = vadd.f32 %v4031_v46, %v4030_v40  ;;  %2544 = vmatmul.mubr.bf16.gmra.mxu0 %v5479_v20 }
 0x128   : > { %v3962_v37 = vpop.f32.mrf.mxu0  ;;  %2551 = vmatprep.mubr.bf16.mxu0 %v5456_v10 }
 0x129   : > { %v3963_v49 = vadd.f32 %v3962_v37, %v3961_v0 }
 0x12a   : > { %v4033_v12 = vpop.f32.mrf.mxu1  ;;  %v3964_v5 = vpop.f32.mrf.mxu0  ;;  %2076 = vmatmul.mubr.bf16.gmra.mxu1 %v5214_v17 }
 0x12b   : > { %4447 = vmatprep.mubr.bf16.mxu1 %v5338_v56 }
 0x12c   : > { %v4034_v41 = vpop.f32.mrf.mxu1  ;;  %v3965_v29 = vpop.f32.mrf.mxu0 }
 0x12d   : > { %v5704_v39 = vadd.f32 %v4034_v41, %v4033_v12  ;;  %v3966_v31 = vadd.f32 %v3965_v29, %v3964_v5 }
 0x12e   : > { %v4036_v4 = vpop.f32.mrf.mxu1 }
 0x12f   : > { %v3967_v55 = vpop.f32.mrf.mxu0  ;;  %2552 = vmatmul.mubr.bf16.gmra.mxu0 %v5504_v62 }
 0x130   : > { %v4037_v54 = vpop.f32.mrf.mxu1  ;;  %2559 = vmatprep.mubr.bf16.mxu0 %v5475_v33 }
 0x131   : > { %v5707_v20 = vadd.f32 %v4037_v54, %v4036_v4  ;;  %v3968_v32 = vpop.f32.mrf.mxu0 }
 0x132   : > { %v4353_v10 = vpop.f32.mrf.mxu1  ;;  %4448 = vmatmul.mubr.bf16.vlgmr.msra.gmra.mxu1 %v5344_v18  ;;  %v3969_v35 = vadd.f32 %v3968_v32, %v3967_v55 }
 0x133   : > { %v5710_v22 = vadd.f32 %v4353_v10, %v3951_v59  ;;  %v3970_v53 = vpop.f32.mrf.mxu0  ;;  %4451 = vmatprep.mubr.bf16.mxu1 %v5384_v36 }
 0x134   : > { %v1652_v56 = vpop.f32.mrf.mxu1 }
 0x135   : > { %v5715_v1 = vadd.f32 %v5667_v42, %v1652_v56  ;;  %v3971_v62 = vpop.f32.mrf.mxu0 }
 0x136   : > { %v4354_v40 = vpop.f32.mrf.mxu1  ;;  %v3972_v46 = vadd.f32 %v3971_v62, %v3970_v53 }
 0x137   : > { %v5717_v30 = vadd.f32 %v4354_v40, %v3954_v11  ;;  %v3973_v0 = vpop.f32.mrf.mxu0  ;;  %2560 = vmatmul.mubr.bf16.gmra.mxu0 %v5521_v61 }
 0x138   : > { %v1655_v33 = vpop.f32.mrf.mxu1  ;;  %2567 = vmatprep.mubr.bf16.mxu0 %v5493_v57 }
 0x139   : > { %v5721_v59 = vadd.f32 %v5676_v14, %v1655_v33  ;;  %v3974_v37 = vpop.f32.mrf.mxu0 }
 0x13a   : > { %v4357_v18 = vpop.f32.mrf.mxu1  ;;  %4452 = vmatmul.mubr.bf16.gmra.mxu1 %v5392_v48  ;;  %v3975_v42 = vadd.f32 %v3974_v37, %v3973_v0 }
 0x13b   : > { %v5724_v36 = vadd.f32 %v4357_v18, %v3963_v49  ;;  %v3976_v11 = vpop.f32.mrf.mxu0  ;;  %4455 = vmatprep.mubr.bf16.mxu1 %v5420_v58 }
 0x13c   : > { %v1668_v12 = vpop.f32.mrf.mxu1 }
 0x13d   : > { %v5728_v5 = vadd.f32 %v3957_v26, %v1668_v12  ;;  %v3977_v61 = vpop.f32.mrf.mxu0 }
 0x13e   : > { %v4358_v41 = vpop.f32.mrf.mxu1  ;;  %v3978_v14 = vadd.f32 %v3977_v61, %v3976_v11 }
 0x13f   : > { %v5730_v29 = vadd.f32 %v4358_v41, %v3966_v31  ;;  %v3979_v57 = vpop.f32.mrf.mxu0  ;;  %2568 = vmatmul.mubr.bf16.gmra.mxu0 %v5540_v50 }
 0x140   : > { %v1671_v4 = vpop.f32.mrf.mxu1  ;;  %2575 = vmatprep.mubr.bf16.mxu0 %v5673_v3 }
 0x141   : > { %v5733_v49 = vadd.f32 %v3960_v21, %v1671_v4  ;;  %v3980_v54 = vpop.f32.mrf.mxu0 }
 0x142   : > { %v4361_v48 = vpop.f32.mrf.mxu1  ;;  %4456 = vmatmul.mubr.bf16.gmra.mxu1 %v5428_v13  ;;  %v3981_v58 = vadd.f32 %v3980_v54, %v3979_v57 }
 0x143   : > { %v5736_v55 = vadd.f32 %v4361_v48, %v3975_v42  ;;  %v3982_v10 = vpop.f32.mrf.mxu0  ;;  %4459 = vmatprep.mubr.bf16.mxu1 %v5454_v45 }
 0x144   : > { %v1684_v26 = vpop.f32.mrf.mxu1 }
 0x145   : > { %v5740_v31 = vadd.f32 %v3969_v35, %v1684_v26  ;;  %v3983_v56 = vpop.f32.mrf.mxu0 }
 0x146   : > { %v4362_v32 = vpop.f32.mrf.mxu1  ;;  %v3984_v21 = vadd.f32 %v3983_v56, %v3982_v10 }
 0x147   : > { %v5742_v50 = vadd.f32 %v4362_v32, %v3978_v14  ;;  %v3985_v3 = vpop.f32.mrf.mxu0  ;;  %2576 = vmatmul.mubr.bf16.gmra.mxu0 %v5123_v28 }
 0x148   : > { %v1687_v53 = vpop.f32.mrf.mxu1  ;;  %2583 = vmatprep.mubr.bf16.mxu0 %v5685_v51 }
 0x149   : > { %v5745_v40 = vadd.f32 %v3972_v46, %v1687_v53  ;;  %v3986_v62 = vpop.f32.mrf.mxu0 }
 0x14a   : > { %v4365_v13 = vpop.f32.mrf.mxu1  ;;  %4460 = vmatmul.mubr.bf16.gmra.mxu1 %v5462_v27  ;;  %v3987_v45 = vadd.f32 %v3986_v62, %v3985_v3 }
 0x14b   : > { %v3988_v33 = vpop.f32.mrf.mxu0  ;;  %4463 = vmatprep.mubr.bf16.mxu1 %v5488_v7 }
 0x14c   : > { %v1700_v35 = vpop.f32.mrf.mxu1  ;;  %v5750_v0 = vadd.f32 %v4365_v13, %v3987_v45 }
 0x14d   : > { %v5752_v18 = vadd.f32 %v3981_v58, %v1700_v35  ;;  %v3989_v42 = vpop.f32.mrf.mxu0 }
 0x14e   : > { %v4366_v37 = vpop.f32.mrf.mxu1  ;;  %v3990_v28 = vadd.f32 %v3989_v42, %v3988_v33 }
 0x14f   : > { %v3991_v12 = vpop.f32.mrf.mxu0  ;;  %2584 = vmatmul.mubr.bf16.gmra.mxu0 %v5176_v16  ;;  %v3404_v16 = vcombine.low %v4768_v34, %v4768_v34 }
 0x150   : > { %v1703_v46 = vpop.f32.mrf.mxu1  ;;  %v5755_v51 = vadd.f32 %v4366_v37, %v3990_v28  ;;  %2591 = vmatprep.mubr.bf16.mxu0 %v5695_v6 }
 0x151   : > { %v5757_v11 = vadd.f32 %v3984_v21, %v1703_v46  ;;  %v3992_v41 = vpop.f32.mrf.mxu0  ;;  %v2249_v10 = vshrl.u32 %v3404_v16, 16  ;;  %v2252_v34 = vshll.u32 %v3404_v16, 16 }
 0x152   : > { %v4369_v27 = vpop.f32.mrf.mxu1  ;;  %4464 = vmatmul.mubr.bf16.gmra.mxu1 %v5497_v23  ;;  %v3993_v7 = vadd.f32 %v3992_v41, %v3991_v12  ;;  %v4743_v23 = vld [vmem:[#allocation2 + $0x78] sm:$0xff]  }
 0x153   : > { %v3994_v14 = vpop.f32.mrf.mxu0  ;;  %4467 = vmatprep.mubr.bf16.mxu1 %v5515_v43  ;;  %v2251_v13 = vrot.slane %v2249_v10, 7  ;;  %v2257_v33 = vrot.slane %v2252_v34, 1 }
 0x154   : > { %v1716_v61 = vpop.f32.mrf.mxu1 }
 0x155   : > { %v5762_v4 = vadd.f32 %v3993_v7, %v1716_v61  ;;  %v3995_v48 = vpop.f32.mrf.mxu0  ;;  %v2258_v41 = vor.u32 %v2257_v33, %v2249_v10 }
 0x156   : > { %v4370_v57 = vpop.f32.mrf.mxu1  ;;  %v3996_v54 = vadd.f32 %v3995_v48, %v3994_v14 }
 0x157   : > { %v3997_v26 = vpop.f32.mrf.mxu0  ;;  %2592 = vmatmul.mubr.bf16.gmra.mxu0 %v5214_v17 }
 0x158   : > { %v1719_v58 = vpop.f32.mrf.mxu1  ;;  %2599 = vmatprep.mubr.bf16.mxu0 %v4743_v23 }
 0x159   : > { %v5767_v6 = vadd.f32 %v3996_v54, %v1719_v58  ;;  %v3998_v32 = vpop.f32.mrf.mxu0 }
 0x15a   : > { %v4373_v56 = vpop.f32.mrf.mxu1  ;;  %4468 = vmatmul.mubr.bf16.gmra.mxu1 %v5511_v44  ;;  %v3999_v43 = vadd.f32 %v3998_v32, %v3997_v26  ;;  %v2254_v44 = vor.u32 %v2252_v34, %v2251_v13 }
 0x15b   : > { %v4000_v21 = vpop.f32.mrf.mxu0  ;;  %4471 = vmatprep.mubr.bf16.mxu1 %v5527_v47 }
 0x15c   : > { %v5771_v53 = vadd.f32 %v4369_v27, %v3999_v43  ;;  %v1732_v3 = vpop.f32.mrf.mxu1  ;;  %v2256_v61 = vsel %vm5080_vm2, 0, %v2254_v44 }
 0x15d   : > { %v4001_v62 = vpop.f32.mrf.mxu0 }
 0x15e   : > { %v4374_v17 = vpop.f32.mrf.mxu1  ;;  %v4002_v45 = vadd.f32 %v4001_v62, %v4000_v21 }
 0x15f   : > { %v4003_v35 = vpop.f32.mrf.mxu0  ;;  %2600 = vmatmul.mubr.bf16.gmra.mxu0 %v5320_v15 }
 0x160   : > { %v5774_v37 = vadd.f32 %v4370_v57, %v4002_v45  ;;  %v1735_v42 = vpop.f32.mrf.mxu1  ;;  %2607 = vmatprep.mubr.bf16.mxu0 %v3404_v16 }
 0x161   : > { %v4004_v28 = vpop.f32.mrf.mxu0 }
 0x162   : > { %v4377_v46 = vpop.f32.mrf.mxu1  ;;  %4472 = vmatmul.mubr.bf16.gmra.mxu1 %v5533_v25  ;;  %v4005_v47 = vadd.f32 %v4004_v28, %v4003_v35 }
 0x163   : > { %v5778_v12 = vadd.f32 %v4377_v46, %v5683_v52  ;;  %v4006_v27 = vpop.f32.mrf.mxu0  ;;  %4475 = vmatprep.mubr.bf16.mxu1 %v5548_v63  ;;  %v2260_v63 = vsel %vm5284_vm5, %v2258_v41, 0 }
 0x164   : > { %v5781_v7 = vadd.f32 %v4005_v47, %v1732_v3  ;;  %v1748_v15 = vpop.f32.mrf.mxu1 }
 0x165   : > { %v5786_v14 = vadd.f32 %v5671_v8, %v1748_v15  ;;  %v4007_v16 = vpop.f32.mrf.mxu0 }
 0x166   : > { %v4378_v57 = vpop.f32.mrf.mxu1  ;;  %v4008_v25 = vadd.f32 %v4007_v16, %v4006_v27 }
 0x167   : > { %v5789_v48 = vadd.f32 %v4378_v57, %v5688_v60  ;;  %v4009_v52 = vpop.f32.mrf.mxu0  ;;  %2608 = vmatmul.mubr.bf16.gmra.mxu0 %v2256_v61 }
 0x168   : > { %v5793_v54 = vadd.f32 %v4008_v25, %v1735_v42  ;;  %v1751_v58 = vpop.f32.mrf.mxu1 }
 0x169   : > { %v5796_v24 = vadd.f32 %v5678_v9, %v1751_v58  ;;  %v4010_v26 = vpop.f32.mrf.mxu0 }
 0x16a   : > { %v4381_v8 = vpop.f32.mrf.mxu1  ;;  %4476 = vmatmul.mubr.bf16.gmra.mxu1 %v2260_v63  ;;  %v4011_v23 = vadd.f32 %v4010_v26, %v4009_v52 }
 0x16b   : > { %v5799_v10 = vadd.f32 %v4381_v8, %v5704_v39  ;;  %v4012_v60 = vpop.f32.mrf.mxu0 }
 0x16c   : > { %v5801_v32 = vadd.f32 %v4373_v56, %v4011_v23  ;;  %v1764_v43 = vpop.f32.mrf.mxu1 }
 0x16d   : > { %v5804_v2 = vadd.f32 %v5693_v38, %v1764_v43  ;;  %v4013_v21 = vpop.f32.mrf.mxu0 }
 0x16e   : > { %v4382_v34 = vpop.f32.mrf.mxu1  ;;  %v4014_v3 = vadd.f32 %v4013_v21, %v4012_v60 }
 0x16f   : > { %v5807_v9 = vadd.f32 %v4382_v34, %v5707_v20  ;;  %v4401_v13 = vpop.f32.mrf.mxu0 }
 0x170   : > { %v5809_v62 = vadd.f32 %v4374_v17, %v4014_v3  ;;  %v1767_v45 = vpop.f32.mrf.mxu1 }
 0x171   : > { %6250 = vst [vmem:[#allocation3_spill] sm:$0xff] %v5807_v9  ;;  %v5812_v39 = vadd.f32 %v5698_v19, %v1767_v45  ;;  %v2118_v35 = vpop.f32.mrf.mxu0 }
 0x172   : > { %v4079_v56 = vpop.f32.mrf.mxu1 }
 0x173   : > { %v4402_v33 = vpop.f32.mrf.mxu0 }
 0x174   : > { %v4080_v42 = vpop.f32.mrf.mxu1 }
 0x175   : > { %v4081_v44 = vadd.f32 %v4080_v42, %v4079_v56  ;;  %v2121_v38 = vpop.f32.mrf.mxu0 }
 0x176   : > { %v4082_v28 = vpop.f32.mrf.mxu1 }
 0x177   : > { %v1958_v46 = vadd.f32 %v4081_v44, %v5715_v1  ;;  %v4405_v47 = vpop.f32.mrf.mxu0 }
 0x178   : > { %v4083_v27 = vpop.f32.mrf.mxu1 }
 0x179   : > { %v5815_v20 = vadd.f32 %v2118_v35, %v1958_v46  ;;  %v4084_v41 = vadd.f32 %v4083_v27, %v4082_v28  ;;  %v2134_v17 = vpop.f32.mrf.mxu0 }
 0x17a   : > { %v4085_v15 = vpop.f32.mrf.mxu1 }
 0x17b   : > { %v1961_v61 = vadd.f32 %v4084_v41, %v5721_v59  ;;  %v4406_v19 = vpop.f32.mrf.mxu0 }
 0x17c   : > { %v4086_v16 = vpop.f32.mrf.mxu1 }
 0x17d   : > { %v5818_v57 = vadd.f32 %v2121_v38, %v1961_v61  ;;  %v4087_v25 = vadd.f32 %v4086_v16, %v4085_v15  ;;  %v2137_v52 = vpop.f32.mrf.mxu0 }
 0x17e   : > { %v4088_v63 = vpop.f32.mrf.mxu1 }
 0x17f   : > { %v1966_v58 = vadd.f32 %v4087_v25, %v5710_v22  ;;  %v4409_v26 = vpop.f32.mrf.mxu0 }
 0x180   : > { %v4089_v1 = vpop.f32.mrf.mxu1 }
 0x181   : > { %v4090_v8 = vadd.f32 %v4089_v1, %v4088_v63  ;;  %v2150_v23 = vpop.f32.mrf.mxu0  ;;  %v5821_v60 = vadd.f32 %v4401_v13, %v1966_v58 }
 0x182   : > { %v4091_v43 = vpop.f32.mrf.mxu1 }
 0x183   : > { %v1969_v21 = vadd.f32 %v4090_v8, %v5717_v30  ;;  %v4410_v34 = vpop.f32.mrf.mxu0 }
 0x184   : > { %v4092_v59 = vpop.f32.mrf.mxu1 }
 0x185   : > { %v4093_v3 = vadd.f32 %v4092_v59, %v4091_v43  ;;  %v2153_v45 = vpop.f32.mrf.mxu0  ;;  %v5824_v35 = vadd.f32 %v4402_v33, %v1969_v21 }
 0x186   : > { %v4094_v56 = vpop.f32.mrf.mxu1 }
 0x187   : > { %v1974_v42 = vadd.f32 %v4093_v3, %v5728_v5  ;;  %v5827_v44 = vpop.f32.mrf.mxu0 }
 0x188   : > { %v4095_v22 = vpop.f32.mrf.mxu1 }
 0x189   : > { %v4096_v38 = vadd.f32 %v4095_v22, %v4094_v56  ;;  %v2166_v28 = vpop.f32.mrf.mxu0  ;;  %v5829_v46 = vadd.f32 %v2134_v17, %v1974_v42 }
 0x18a   : > { %v4097_v13 = vpop.f32.mrf.mxu1 }
 0x18b   : > { %v1977_v27 = vadd.f32 %v4096_v38, %v5733_v49  ;;  %v5832_v30 = vpop.f32.mrf.mxu0 }
 0x18c   : > { %v4098_v41 = vpop.f32.mrf.mxu1 }
 0x18d   : > { %v4099_v15 = vadd.f32 %v4098_v41, %v4097_v13  ;;  %v2169_v61 = vpop.f32.mrf.mxu0  ;;  %v5834_v33 = vadd.f32 %v2137_v52, %v1977_v27 }
 0x18e   : > { %v4100_v16 = vpop.f32.mrf.mxu1 }
 0x18f   : > { %v1982_v5 = vadd.f32 %v4099_v15, %v5724_v36  ;;  %v5837_v25 = vpop.f32.mrf.mxu0 }
 0x190   : > { %v4101_v63 = vpop.f32.mrf.mxu1 }
 0x191   : > { %v4102_v58 = vadd.f32 %v4101_v63, %v4100_v16  ;;  %v5839_v1 = vpop.f32.mrf.mxu0  ;;  %v5841_v17 = vadd.f32 %v4405_v47, %v1982_v5 }
 0x192   : > { %v4103_v8 = vpop.f32.mrf.mxu1 }
 0x193   : > { %v1985_v49 = vadd.f32 %v4102_v58, %v5730_v29  ;;  %v5844_v43 = vpop.f32.mrf.mxu0 }
 0x194   : > { %v4104_v21 = vpop.f32.mrf.mxu1 }
 0x195   : > { %v4105_v59 = vadd.f32 %v4104_v21, %v4103_v8  ;;  %v5846_v52 = vpop.f32.mrf.mxu0  ;;  %v5848_v3 = vadd.f32 %v4406_v19, %v1985_v49 }
 0x196   : > { %v4106_v36 = vpop.f32.mrf.mxu1 }
 0x197   : > { %v1990_v56 = vadd.f32 %v4105_v59, %v5740_v31  ;;  %v5851_v42 = vpop.f32.mrf.mxu0 }
 0x198   : > { %v4107_v22 = vpop.f32.mrf.mxu1 }
 0x199   : > { %v4108_v38 = vadd.f32 %v4107_v22, %v4106_v36  ;;  %v5853_v47 = vpop.f32.mrf.mxu0  ;;  %v5855_v13 = vadd.f32 %v2150_v23, %v1990_v56 }
 0x19a   : > { %v4109_v29 = vpop.f32.mrf.mxu1 }
 0x19b   : > { %v1993_v27 = vadd.f32 %v4108_v38, %v5745_v40  ;;  %v5858_v41 = vpop.f32.mrf.mxu0 }
 0x19c   : > { %v4110_v15 = vpop.f32.mrf.mxu1 }
 0x19d   : > { %v4111_v16 = vadd.f32 %v4110_v15, %v4109_v29  ;;  %v5860_v19 = vpop.f32.mrf.mxu0  ;;  %v5862_v5 = vadd.f32 %v2153_v45, %v1993_v27 }
 0x19e   : > { %v4112_v31 = vpop.f32.mrf.mxu1 }
 0x19f   : > { %v1998_v63 = vadd.f32 %v4111_v16, %v5736_v55  ;;  %v5865_v58 = vpop.f32.mrf.mxu0 }
 0x1a0   : > { %v4113_v8 = vpop.f32.mrf.mxu1 }
 0x1a1   : > { %v4114_v49 = vadd.f32 %v4113_v8, %v4112_v31  ;;  %v5867_v23 = vpop.f32.mrf.mxu0  ;;  %v5869_v21 = vadd.f32 %v4409_v26, %v1998_v63 }
 0x1a2   : > { %v4115_v40 = vpop.f32.mrf.mxu1 }
 0x1a3   : > { %v2001_v59 = vadd.f32 %v4114_v49, %v5742_v50  ;;  %v5872_v36 = vpop.f32.mrf.mxu0 }
 0x1a4   : > { %v4116_v56 = vpop.f32.mrf.mxu1 }
 0x1a5   : > { %v4117_v22 = vadd.f32 %v4116_v56, %v4115_v40  ;;  %v5874_v45 = vpop.f32.mrf.mxu0  ;;  %v5876_v38 = vadd.f32 %v4410_v34, %v2001_v59 }
 0x1a6   : > { %v4118_v55 = vpop.f32.mrf.mxu1 }
 0x1a7   : > { %v2006_v29 = vadd.f32 %v4117_v22, %v5752_v18  ;;  %v5879_v27 = vpop.f32.mrf.mxu0 }
 0x1a8   : > { %6251 = vst [vmem:[#allocation4_spill] sm:$0xff] %v5879_v27  ;;  %v4119_v15 = vpop.f32.mrf.mxu1 }
 0x1a9   : > { %v4120_v16 = vadd.f32 %v4119_v15, %v4118_v55  ;;  %v5881_v26 = vpop.f32.mrf.mxu0  ;;  %v5883_v31 = vadd.f32 %v2166_v28, %v2006_v29 }
 0x1aa   : > { %v4121_v50 = vpop.f32.mrf.mxu1 }
 0x1ab   : > { %v2009_v63 = vadd.f32 %v4120_v16, %v5757_v11  ;;  %v5886_v8 = vpop.f32.mrf.mxu0 }
 0x1ac   : > { %6252 = vst [vmem:[#allocation5_spill] sm:$0xff] %v5886_v8  ;;  %v4122_v49 = vpop.f32.mrf.mxu1 }
 0x1ad   : > { %v4123_v40 = vadd.f32 %v4122_v49, %v4121_v50  ;;  %v5888_v34 = vpop.f32.mrf.mxu0  ;;  %v5890_v59 = vadd.f32 %v2169_v61, %v2009_v63 }
 0x1ae   : > { %v4124_v18 = vpop.f32.mrf.mxu1 }
 0x1af   : > { %v2014_v56 = vadd.f32 %v4123_v40, %v5750_v0  ;;  %v4215_v22 = vpop.f32.mrf.mxu0 }
 0x1b0   : > { %v4125_v55 = vpop.f32.mrf.mxu1 }
 0x1b1   : > { %v4126_v15 = vadd.f32 %v4125_v55, %v4124_v18  ;;  %v4216_v9 = vpop.f32.mrf.mxu0  ;;  %v5894_v28 = vadd.f32 %v5827_v44, %v2014_v56 }
 0x1b2   : > { %v4127_v29 = vpop.f32.mrf.mxu1  ;;  %v5896_v11 = vadd.f32 %v4216_v9, %v4215_v22 }
 0x1b3   : > { %v2017_v16 = vadd.f32 %v4126_v15, %v5755_v51  ;;  %v4218_v50 = vpop.f32.mrf.mxu0 }
 0x1b4   : > { %v4128_v49 = vpop.f32.mrf.mxu1 }
 0x1b5   : > { %v4129_v8 = vadd.f32 %v4128_v49, %v4127_v29  ;;  %v4219_v61 = vpop.f32.mrf.mxu0  ;;  %v5900_v63 = vadd.f32 %v5832_v30, %v2017_v16 }
 0x1b6   : > { %v4130_v0 = vpop.f32.mrf.mxu1  ;;  %v5902_v40 = vadd.f32 %v4219_v61, %v4218_v50 }
 0x1b7   : > { %v2022_v18 = vadd.f32 %v4129_v8, %v5762_v4  ;;  %v5905_v55 = vpop.f32.mrf.mxu0 }
 0x1b8   : > { %v4131_v44 = vpop.f32.mrf.mxu1 }
 0x1b9   : > { %v4132_v56 = vadd.f32 %v4131_v44, %v4130_v0  ;;  %v5907_v9 = vpop.f32.mrf.mxu0  ;;  %v5910_v51 = vadd.f32 %v5839_v1, %v2022_v18 }
 0x1ba   : > { %v4133_v22 = vpop.f32.mrf.mxu1 }
 0x1bb   : > { %6253 = vst [vmem:[#allocation6_spill] sm:$0xff] %v5910_v51  ;;  %v2025_v15 = vadd.f32 %v4132_v56, %v5767_v6  ;;  %v5913_v29 = vpop.f32.mrf.mxu0 }
 0x1bc   : > { %v4134_v30 = vpop.f32.mrf.mxu1 }
 0x1bd   : > { %v4135_v16 = vadd.f32 %v4134_v30, %v4133_v22  ;;  %v5915_v50 = vpop.f32.mrf.mxu0  ;;  %v5918_v4 = vadd.f32 %v5846_v52, %v2025_v15 }
 0x1be   : > { %v4136_v8 = vpop.f32.mrf.mxu1 }
 0x1bf   : > { %6254 = vst [vmem:[#allocation7_spill] sm:$0xff] %v5918_v4  ;;  %v2030_v49 = vadd.f32 %v4135_v16, %v5771_v53  ;;  %v5921_v61 = vpop.f32.mrf.mxu0 }
 0x1c0   : > { %v4137_v0 = vpop.f32.mrf.mxu1 }
 0x1c1   : > { %v4138_v1 = vadd.f32 %v4137_v0, %v4136_v8  ;;  %v5923_v18 = vpop.f32.mrf.mxu0  ;;  %v5926_v6 = vadd.f32 %v5837_v25, %v2030_v49 }
 0x1c2   : > { %v4139_v44 = vpop.f32.mrf.mxu1 }
 0x1c3   : > { %v2033_v56 = vadd.f32 %v4138_v1, %v5774_v37  ;;  %v5929_v22 = vpop.f32.mrf.mxu0 }
 0x1c4   : > { %v4140_v30 = vpop.f32.mrf.mxu1 }
 0x1c5   : > { %v4141_v52 = vadd.f32 %v4140_v30, %v4139_v44  ;;  %v5931_v15 = vpop.f32.mrf.mxu0  ;;  %v5934_v53 = vadd.f32 %v5844_v43, %v2033_v56 }
 0x1c6   : > { %v4142_v16 = vpop.f32.mrf.mxu1 }
 0x1c7   : > { %6255 = vst [vmem:[#allocation8_spill] sm:$0xff] %v5934_v53  ;;  %v2038_v8 = vadd.f32 %v4141_v52, %v5781_v7  ;;  %v5937_v0 = vpop.f32.mrf.mxu0 }
 0x1c8   : > { %v4143_v27 = vpop.f32.mrf.mxu1 }
 0x1c9   : > { %v4144_v25 = vadd.f32 %v4143_v27, %v4142_v16  ;;  %v5939_v49 = vpop.f32.mrf.mxu0  ;;  %v5942_v37 = vadd.f32 %v5853_v47, %v2038_v8 }
 0x1ca   : > { %v4145_v1 = vpop.f32.mrf.mxu1 }
 0x1cb   : > { %6256 = vst [vmem:[#allocation9_spill] sm:$0xff] %v5942_v37  ;;  %v2041_v44 = vadd.f32 %v4144_v25, %v5793_v54  ;;  %v5945_v30 = vpop.f32.mrf.mxu0 }
 0x1cc   : > { %v4146_v4 = vpop.f32.mrf.mxu1 }
 0x1cd   : > { %v4147_v43 = vadd.f32 %v4146_v4, %v4145_v1  ;;  %v5947_v56 = vpop.f32.mrf.mxu0  ;;  %v5950_v7 = vadd.f32 %v5860_v19, %v2041_v44 }
 0x1ce   : > { %v4148_v52 = vpop.f32.mrf.mxu1 }
 0x1cf   : > { %6257 = vst [vmem:[#allocation10_spill] sm:$0xff] %v5950_v7  ;;  %v2046_v27 = vadd.f32 %v4147_v43, %v5801_v32  ;;  %v5953_v16 = vpop.f32.mrf.mxu0 }
 0x1d0   : > { %v4149_v53 = vpop.f32.mrf.mxu1 }
 0x1d1   : > { %v4150_v47 = vadd.f32 %v4149_v53, %v4148_v52  ;;  %v5955_v8 = vpop.f32.mrf.mxu0  ;;  %v5958_v54 = vadd.f32 %v5851_v42, %v2046_v27 }
 0x1d2   : > { %v4151_v25 = vpop.f32.mrf.mxu1 }
 0x1d3   : > { %6258 = vst [vmem:[#allocation11_spill] sm:$0xff] %v5958_v54  ;;  %v2049_v4 = vadd.f32 %v4150_v47, %v5809_v62  ;;  %v5961_v1 = vpop.f32.mrf.mxu0 }
 0x1d4   : > { %v4152_v37 = vpop.f32.mrf.mxu1 }
 0x1d5   : > { %v4153_v19 = vadd.f32 %v4152_v37, %v4151_v25  ;;  %v5963_v44 = vpop.f32.mrf.mxu0  ;;  %v5966_v32 = vadd.f32 %v5858_v41, %v2049_v4 }
 0x1d6   : > { %v4154_v43 = vpop.f32.mrf.mxu1 }
 0x1d7   : > { %6259 = vst [vmem:[#allocation12_spill] sm:$0xff] %v5966_v32  ;;  %v2054_v53 = vadd.f32 %v4153_v19, %v5786_v14  ;;  %v5969_v52 = vpop.f32.mrf.mxu0 }
 0x1d8   : > { %v4155_v7 = vpop.f32.mrf.mxu1 }
 0x1d9   : > { %v4156_v42 = vadd.f32 %v4155_v7, %v4154_v43  ;;  %v5971_v27 = vpop.f32.mrf.mxu0  ;;  %v5974_v62 = vadd.f32 %v5867_v23, %v2054_v53 }
 0x1da   : > { %v4157_v47 = vpop.f32.mrf.mxu1 }
 0x1db   : > { %6260 = vst [vmem:[#allocation13_spill] sm:$0xff] %v5974_v62  ;;  %v2057_v37 = vadd.f32 %v4156_v42, %v5796_v24  ;;  %v5977_v25 = vpop.f32.mrf.mxu0 }
 0x1dc   : > { %v4158_v54 = vpop.f32.mrf.mxu1 }
 0x1dd   : > { %v4159_v41 = vadd.f32 %v4158_v54, %v4157_v47  ;;  %v5979_v4 = vpop.f32.mrf.mxu0  ;;  %v5982_v14 = vadd.f32 %v5874_v45, %v2057_v37 }
 0x1de   : > { %v4160_v19 = vpop.f32.mrf.mxu1 }
 0x1df   : > { %6261 = vst [vmem:[#allocation14_spill] sm:$0xff] %v5982_v14  ;;  %v2062_v7 = vadd.f32 %v4159_v41, %v5778_v12  ;;  %v5985_v43 = vpop.f32.mrf.mxu0 }
 0x1e0   : > { %v4161_v32 = vpop.f32.mrf.mxu1 }
 0x1e1   : > { %v4162_v23 = vadd.f32 %v4161_v32, %v4160_v19  ;;  %v5987_v53 = vpop.f32.mrf.mxu0  ;;  %v5990_v24 = vadd.f32 %v5865_v58, %v2062_v7 }
 0x1e2   : > { %v4163_v42 = vpop.f32.mrf.mxu1 }
 0x1e3   : > { %6262 = vst [vmem:[#allocation15_spill] sm:$0xff] %v5990_v24  ;;  %v2065_v54 = vadd.f32 %v4162_v23, %v5789_v48  ;;  %v5993_v47 = vpop.f32.mrf.mxu0 }
 0x1e4   : > { %v4164_v62 = vpop.f32.mrf.mxu1 }
 0x1e5   : > { %v4165_v45 = vadd.f32 %v4164_v62, %v4163_v42  ;;  %v5995_v37 = vpop.f32.mrf.mxu0  ;;  %v5998_v12 = vadd.f32 %v5872_v36, %v2065_v54 }
 0x1e6   : > { %v4166_v41 = vpop.f32.mrf.mxu1 }
 0x1e7   : > { %6263 = vst [vmem:[#allocation16_spill] sm:$0xff] %v5998_v12  ;;  %v2070_v32 = vadd.f32 %v4165_v45, %v5804_v2  ;;  %v6001_v19 = vpop.f32.mrf.mxu0 }
 0x1e8   : > { %v4167_v14 = vpop.f32.mrf.mxu1 }
 0x1e9   : > { %v4168_v58 = vadd.f32 %v4167_v14, %v4166_v41  ;;  %v6003_v7 = vpop.f32.mrf.mxu0  ;;  %v6006_v48 = vadd.f32 %v5881_v26, %v2070_v32 }
 0x1ea   : > { %v4169_v23 = vpop.f32.mrf.mxu1 }
 0x1eb   : > { %6264 = vst [vmem:[#allocation17_spill] sm:$0xff] %v6006_v48  ;;  %v2073_v62 = vadd.f32 %v4168_v58, %v5812_v39  ;;  %v6009_v42 = vpop.f32.mrf.mxu0  ;;  %v4223_v39 = vadd.f32 %v5907_v9, %v5905_v55  ;;  %v3897_v55 = vld [vmem:[%s6033_s19 + $0x8] sm:$0xff]  }
 0x1ec   : > { %v4170_v36 = vpop.f32.mrf.mxu1 }
 0x1ed   : > { %v4171_v54 = vadd.f32 %v4170_v36, %v4169_v23  ;;  %v6011_v12 = vpop.f32.mrf.mxu0  ;;  %v6014_v2 = vadd.f32 %v5888_v34, %v2073_v62  ;;  %v4226_v62 = vadd.f32 %v5915_v50, %v5913_v29  ;;  %v3729_v29 = vunpack.c.l.bf16 %v3897_v55 }
 0x1ee   : > { %v6016_v45 = vpop.f32.mrf.mxu1  ;;  %v3730_v50 = vunpack.c.h.bf16 %v3897_v55 }
 0x1ef   : > { %6265 = vst [vmem:[#allocation18_spill] sm:$0xff] %v6014_v2  ;;  %6266 = vst [vmem:[#allocation19_spill] sm:$0xff] %v6016_v45  ;;  %v6019_v14 = vadd.f32 %v4171_v54, %v5799_v10  ;;  %v6021_v41 = vpop.f32.mrf.mxu0  ;;  %v6047_v2 = vld [vmem:[%s6243_s4] ss:$0 sm:$0xff] }
 0x1f0   : > { %v6023_v26 = vpop.f32.mrf.mxu1 }
 0x1f1   : > { %6267 = vst [vmem:[#allocation20_spill] sm:$0xff] %v6019_v14  ;;  %6268 = vst [vmem:[#allocation21_spill] sm:$0xff] %v6023_v26  ;;  %v6027_v32 = vpop.f32.mrf.mxu0 }
 0x1f2   : > { %v4449_v34 = vpop.f32.mrf.mxu1 }
 0x1f3   : > { %v2659_v58 = vadd.f32 %v4449_v34, %v4223_v39  ;;  %v6035_v10 = vpop.f32.mrf.mxu0  ;;  %v3724_v34 = vld [vmem:[%s6033_s19] sm:$0xff]  }
 0x1f4   : > { %v2650_v23 = vpop.f32.mrf.mxu1 }
 0x1f5   : > { %v2779_v36 = vadd.f32 %v2659_v58, %v5821_v60  ;;  %v2651_v9 = vadd.f32 %v5896_v11, %v2650_v23  ;;  %v6042_v54 = vpop.f32.mrf.mxu0  ;;  %v4235_v11 = vadd.f32 %v5939_v49, %v5937_v0 }
 0x1f6   : > { %v4450_v48 = vpop.f32.mrf.mxu1 }
 0x1f7   : > { %v2777_v39 = vadd.f32 %v2651_v9, %v5815_v20  ;;  %v2662_v14 = vadd.f32 %v4450_v48, %v4226_v62  ;;  %v6051_v26 = vpop.f32.mrf.mxu0  ;;  %v2818_v58 = vadd.f32 %v6047_v2, %v2779_v36  ;;  %v4229_v20 = vadd.f32 %v5923_v18, %v5921_v61  ;;  %v3899_v61 = vld [vmem:[%s6033_s19 + $0x18] sm:$0xff]  }
 0x1f8   : > { %v2653_v60 = vpop.f32.mrf.mxu1  ;;  %v3725_v48 = vunpack.c.l.bf16 %v3724_v34  ;;  %v3726_v62 = vunpack.c.h.bf16 %v3724_v34 }
 0x1f9   : > { %v2780_v23 = vadd.f32 %v2662_v14, %v5824_v35  ;;  %v2654_v45 = vadd.f32 %v5902_v40, %v2653_v60  ;;  %v6058_v24 = vpop.f32.mrf.mxu0  ;;  %v2816_v9 = vadd.f32 %v6047_v2, %v2777_v39  ;;  %v2914_v36 = vadd.f32 %v3729_v29, %v2818_v58 }
 0x1fa   : > { %v4453_v55 = vpop.f32.mrf.mxu1  ;;  %v4232_v39 = vadd.f32 %v5931_v15, %v5929_v22  ;;  %v3737_v22 = vunpack.c.l.bf16 %v3899_v61 }
 0x1fb   : > { %v2819_v0 = vadd.f32 %v6047_v2, %v2780_v23  ;;  %v2778_v49 = vadd.f32 %v2654_v45, %v5818_v57  ;;  %v2675_v35 = vadd.f32 %v4453_v55, %v4235_v11  ;;  %v6065_v14 = vpop.f32.mrf.mxu0  ;;  %v4238_v23 = vadd.f32 %v5947_v56, %v5945_v30  ;;  %v3898_v45 = vld [vmem:[%s6033_s19 + $0x10] sm:$0xff]  }
 0x1fc   : > { %v2666_v40 = vpop.f32.mrf.mxu1  ;;  %v4247_v56 = vadd.f32 %v5971_v27, %v5969_v52 }
 0x1fd   : > { %v2915_v60 = vadd.f32 %v3730_v50, %v2819_v0  ;;  %v2817_v51 = vadd.f32 %v6047_v2, %v2778_v49  ;;  %v2667_v18 = vadd.f32 %v4229_v20, %v2666_v40  ;;  %v6069_v34 = vpop.f32.mrf.mxu0  ;;  %v2783_v57 = vadd.f32 %v2675_v35, %v5841_v17 }
 0x1fe   : > { %v4454_v29 = vpop.f32.mrf.mxu1  ;;  %v2912_v50 = vadd.f32 %v3725_v48, %v2816_v9  ;;  %v3733_v17 = vunpack.c.l.bf16 %v3898_v45  ;;  %v3738_v48 = vunpack.c.h.bf16 %v3899_v61  ;;  %v4241_v40 = vadd.f32 %v5955_v8, %v5953_v16 }
 0x1ff   : > { %v3795_v11 = vpack.c.bf16 %v2915_v60, %v2914_v36  ;;  %v2913_v58 = vadd.f32 %v3726_v62, %v2817_v51  ;;  %v2781_v20 = vadd.f32 %v2667_v18, %v5829_v46  ;;  %v6084_v55 = vpop.f32.mrf.mxu0  ;;  %v2678_v15 = vadd.f32 %v4454_v29, %v4238_v23 }
 0x200   : > { %v2669_v30 = vpop.f32.mrf.mxu1  ;;  %v2822_v51 = vadd.f32 %v6047_v2, %v2783_v57  ;;  %v3734_v62 = vunpack.c.h.bf16 %v3898_v45 }
 0x201   : > { %3912 = vst [vmem:[%s6079_s30 + $0x8] sm:$0xff] %v3795_v11   ;;  %v3790_v0 = vpack.c.bf16 %v2913_v58, %v2912_v50  ;;  %v2670_v49 = vadd.f32 %v4232_v39, %v2669_v30  ;;  %v6089_v35 = vpop.f32.mrf.mxu0  ;;  %v2784_v46 = vadd.f32 %v2678_v15, %v5848_v3  ;;  %v2820_v52 = vadd.f32 %v6047_v2, %v2781_v20  ;;  %v3901_v39 = vld [vmem:[%s6033_s19 + $0x28] sm:$0xff]   ;;  %v3900_v30 = vld [vmem:[%s6033_s19 + $0x20] sm:$0xff]  }
 0x202   : > { %v4457_v9 = vpop.f32.mrf.mxu1  ;;  %v4250_v3 = vadd.f32 %v5979_v4, %v5977_v25  ;;  %v2918_v45 = vadd.f32 %v3737_v22, %v2822_v51  ;;  %v3745_v58 = vunpack.c.l.bf16 %v3901_v39  ;;  %v4244_v25 = vadd.f32 %v5963_v44, %v5961_v1 }
 0x203   : > { %3791 = vst [vmem:[%s6079_s30] sm:$0xff] %v3790_v0   ;;  %v2782_v27 = vadd.f32 %v2670_v49, %v5834_v33  ;;  %v2691_v36 = vadd.f32 %v4457_v9, %v4247_v56  ;;  %v6098_v60 = vpop.f32.mrf.mxu0  ;;  %v2823_v18 = vadd.f32 %v6047_v2, %v2784_v46  ;;  %v2916_v50 = vadd.f32 %v3733_v17, %v2820_v52 }
 0x204   : > { %v2682_v23 = vpop.f32.mrf.mxu1  ;;  %v3746_v56 = vunpack.c.h.bf16 %v3901_v39  ;;  %v4259_v22 = vadd.f32 %v6003_v7, %v6001_v19  ;;  %v3741_v44 = vunpack.c.l.bf16 %v3900_v30  ;;  %v4262_v7 = vadd.f32 %v6011_v12, %v6009_v42 }
 0x205   : > { %v2821_v61 = vadd.f32 %v6047_v2, %v2782_v27  ;;  %v2787_v16 = vadd.f32 %v2691_v36, %v5869_v21  ;;  %v2683_v8 = vadd.f32 %v4241_v40, %v2682_v23  ;;  %v6106_v57 = vpop.f32.mrf.mxu0  ;;  %v2919_v33 = vadd.f32 %v3738_v48, %v2823_v18 }
 0x206   : > { %v4458_v29 = vpop.f32.mrf.mxu1  ;;  %v3742_v52 = vunpack.c.h.bf16 %v3900_v30  ;;  %v4256_v12 = vadd.f32 %v5995_v37, %v5993_v47 }
 0x207   : > { %v2917_v11 = vadd.f32 %v3734_v62, %v2821_v61  ;;  %v2694_v20 = vadd.f32 %v4458_v29, %v4250_v3  ;;  %v6108_v15 = vpop.f32.mrf.mxu0  ;;  %v3805_v4 = vpack.c.bf16 %v2919_v33, %v2918_v45  ;;  %v2785_v21 = vadd.f32 %v2683_v8, %v5855_v13 }
 0x208   : > { %v2685_v0 = vpop.f32.mrf.mxu1  ;;  %v2826_v49 = vadd.f32 %v6047_v2, %v2787_v16  ;;  %v4253_v13 = vadd.f32 %v5987_v53, %v5985_v43  ;;  %v3903_v53 = vld [vmem:[%s6033_s19 + $0x38] sm:$0xff]   ;;  %v3902_v16 = vld [vmem:[%s6033_s19 + $0x30] sm:$0xff]  }
 0x209   : > { %v3800_v17 = vpack.c.bf16 %v2917_v11, %v2916_v50  ;;  %v2788_v51 = vadd.f32 %v2694_v20, %v5876_v38  ;;  %v6118_v46 = vpop.f32.mrf.mxu0  ;;  %3914 = vst [vmem:[%s6079_s30 + $0x18] sm:$0xff] %v3805_v4   ;;  %v2686_v48 = vadd.f32 %v4244_v25, %v2685_v0  ;;  %v2824_v38 = vadd.f32 %v6047_v2, %v2785_v21 }
 0x20a   : > { %v4461_v1 = vpop.f32.mrf.mxu1  ;;  %v2922_v36 = vadd.f32 %v3745_v58, %v2826_v49  ;;  %v3753_v29 = vunpack.c.l.bf16 %v3903_v53  ;;  %v3754_v50 = vunpack.c.h.bf16 %v3903_v53  ;;  %v4271_v58 = vadd.f32 %v6058_v24, %v6051_v26 }
 0x20b   : > { %3913 = vst [vmem:[%s6079_s30 + $0x10] sm:$0xff] %v3800_v17   ;;  %v2827_v62 = vadd.f32 %v6047_v2, %v2788_v51  ;;  %v2707_v9 = vadd.f32 %v4461_v1, %v4259_v22  ;;  %v6125_v19 = vpop.f32.mrf.mxu0  ;;  %v2786_v40 = vadd.f32 %v2686_v48, %v5862_v5  ;;  %v2920_v33 = vadd.f32 %v3741_v44, %v2824_v38 }
 0x20c   : > { %v2698_v27 = vpop.f32.mrf.mxu1  ;;  %v4265_v25 = vadd.f32 %v6027_v32, %v6021_v41  ;;  %v3749_v21 = vunpack.c.l.bf16 %v3902_v16  ;;  %v3750_v30 = vunpack.c.h.bf16 %v3902_v16  ;;  %v3905_v32 = vld [vmem:[%s6033_s19 + $0x48] sm:$0xff]   ;;  %v4277_v16 = vadd.f32 %v6089_v35, %v6084_v55 }
 0x20d   : > { %v2923_v18 = vadd.f32 %v3746_v56, %v2827_v62  ;;  %v2791_v43 = vadd.f32 %v2707_v9, %v5894_v28  ;;  %v2699_v39 = vadd.f32 %v4253_v13, %v2698_v27  ;;  %v6133_v23 = vpop.f32.mrf.mxu0  ;;  %v2825_v3 = vadd.f32 %v6047_v2, %v2786_v40  ;;  %v3904_v62 = vld [vmem:[%s6033_s19 + $0x40] sm:$0xff]  }
 0x20e   : > { %v4462_v61 = vpop.f32.mrf.mxu1  ;;  %v4268_v13 = vadd.f32 %v6042_v54, %v6035_v10  ;;  %v4283_v10 = vadd.f32 %v6118_v46, %v6108_v15  ;;  %v6271_v15 = vld [vmem:[#allocation7_spill] sm:$0xff] }
 0x20f   : > { %v3815_v42 = vpack.c.bf16 %v2923_v18, %v2922_v36  ;;  %v2789_v5 = vadd.f32 %v2699_v39, %v5883_v31  ;;  %v2710_v8 = vadd.f32 %v4462_v61, %v4262_v7  ;;  %v6140_v45 = vpop.f32.mrf.mxu0  ;;  %v2921_v28 = vadd.f32 %v3742_v52, %v2825_v3  ;;  %v6269_v52 = vld [vmem:[#allocation6_spill] sm:$0xff]  ;;  %v6270_v3 = vld [vmem:[#allocation8_spill] sm:$0xff] }
 0x210   : > { %v2701_v11 = vpop.f32.mrf.mxu1  ;;  %v2830_v20 = vadd.f32 %v6047_v2, %v2791_v43  ;;  %v3761_v18 = vunpack.c.l.bf16 %v3905_v32 }
 0x211   : > { %3916 = vst [vmem:[%s6079_s30 + $0x28] sm:$0xff] %v3815_v42   ;;  %v2792_v47 = vadd.f32 %v2710_v8, %v5900_v63  ;;  %v2702_v37 = vadd.f32 %v4256_v12, %v2701_v11  ;;  %v6147_v31 = vpop.f32.mrf.mxu0  ;;  %v3810_v4 = vpack.c.bf16 %v2921_v28, %v2920_v33  ;;  %v2828_v0 = vadd.f32 %v6047_v2, %v2789_v5 }
 0x212   : > { %v4465_v56 = vpop.f32.mrf.mxu1  ;;  %v2926_v49 = vadd.f32 %v3753_v29, %v2830_v20  ;;  %v3762_v12 = vunpack.c.h.bf16 %v3905_v32  ;;  %v3758_v42 = vunpack.c.h.bf16 %v3904_v62 }
 0x213   : > { %v2831_v24 = vadd.f32 %v6047_v2, %v2792_v47  ;;  %v2790_v26 = vadd.f32 %v2702_v37, %v5890_v59  ;;  %v2723_v22 = vadd.f32 %v4465_v56, %v4271_v58  ;;  %v6154_v63 = vpop.f32.mrf.mxu0  ;;  %3915 = vst [vmem:[%s6079_s30 + $0x20] sm:$0xff] %v3810_v4   ;;  %v4274_v59 = vadd.f32 %v6069_v34, %v6065_v14  ;;  %v6272_v47 = vld [vmem:[#allocation11_spill] sm:$0xff] }
 0x214   : > { %v2714_v17 = vpop.f32.mrf.mxu1  ;;  %v2924_v7 = vadd.f32 %v3749_v21, %v2828_v0  ;;  %v3757_v14 = vunpack.c.l.bf16 %v3904_v62  ;;  %v4286_v58 = vadd.f32 %v6133_v23, %v6125_v19  ;;  %v4280_v19 = vadd.f32 %v6106_v57, %v6098_v60 }
 0x215   : > { %v2927_v51 = vadd.f32 %v3754_v50, %v2831_v24  ;;  %v2829_v41 = vadd.f32 %v6047_v2, %v2790_v26  ;;  %v2715_v48 = vadd.f32 %v4265_v25, %v2714_v17  ;;  %v6159_v1 = vpop.f32.mrf.mxu0  ;;  %v2795_v44 = vadd.f32 %v2723_v22, %v5926_v6  ;;  %v3907_v50 = vld [vmem:[%s6033_s19 + $0x58] sm:$0xff]   ;;  %v6273_v22 = vld [vmem:[#allocation9_spill] sm:$0xff] }
 0x216   : > { %v4466_v9 = vpop.f32.mrf.mxu1  ;;  %v3769_v0 = vunpack.c.l.bf16 %v3907_v50  ;;  %v4289_v60 = vadd.f32 %v6147_v31, %v6140_v45 }
 0x217   : > { %v3825_v38 = vpack.c.bf16 %v2927_v51, %v2926_v49  ;;  %v2925_v40 = vadd.f32 %v3750_v30, %v2829_v41  ;;  %v2793_v27 = vadd.f32 %v2715_v48, %v6269_v52  ;;  %v4293_v36 = vpop.f32.mrf.mxu0  ;;  %v2726_v43 = vadd.f32 %v4466_v9, %v4274_v59  ;;  %v3906_v49 = vld [vmem:[%s6033_s19 + $0x50] sm:$0xff]   ;;  %v6274_v59 = vld [vmem:[#allocation12_spill] sm:$0xff] }
 0x218   : > { %v2717_v53 = vpop.f32.mrf.mxu1  ;;  %v2834_v39 = vadd.f32 %v6047_v2, %v2795_v44  ;;  %v3770_v51 = vunpack.c.h.bf16 %v3907_v50  ;;  %v3765_v57 = vunpack.c.l.bf16 %v3906_v49 }
 0x219   : > { %3918 = vst [vmem:[%s6079_s30 + $0x38] sm:$0xff] %v3825_v38   ;;  %v3820_v54 = vpack.c.bf16 %v2925_v40, %v2924_v7  ;;  %v2718_v6 = vadd.f32 %v4268_v13, %v2717_v53  ;;  %v4294_v34 = vpop.f32.mrf.mxu0  ;;  %v2796_v61 = vadd.f32 %v2726_v43, %v6270_v3  ;;  %v2832_v8 = vadd.f32 %v6047_v2, %v2793_v27 }
 0x21a   : > { %v4469_v5 = vpop.f32.mrf.mxu1  ;;  %v2930_v25 = vadd.f32 %v3761_v18, %v2834_v39  ;;  %v4295_v13 = vadd.f32 %v4294_v34, %v4293_v36  ;;  %v6275_v18 = vld [vmem:[#allocation10_spill] sm:$0xff]  ;;  %v3766_v53 = vunpack.c.h.bf16 %v3906_v49  ;;  %v3909_v39 = vld [vmem:[%s6033_s19 + $0x68] sm:$0xff]  }
 0x21b   : > { %3917 = vst [vmem:[%s6079_s30 + $0x30] sm:$0xff] %v3820_v54   ;;  %v2794_v46 = vadd.f32 %v2718_v6, %v6271_v15  ;;  %v2739_v33 = vadd.f32 %v4469_v5, %v4283_v10  ;;  %v4296_v28 = vpop.f32.mrf.mxu0  ;;  %v2835_v29 = vadd.f32 %v6047_v2, %v2796_v61  ;;  %v2928_v30 = vadd.f32 %v3757_v14, %v2832_v8  ;;  %v6276_v6 = vld [vmem:[#allocation15_spill] sm:$0xff]  ;;  %v6277_v5 = vld [vmem:[#allocation13_spill] sm:$0xff]  ;;  %v6282_v49 = vld [vmem:[#allocation20_spill] sm:$0xff] }
 0x21c   : > { %v2730_v11 = vpop.f32.mrf.mxu1  ;;  %v3908_v8 = vld [vmem:[%s6033_s19 + $0x60] sm:$0xff]  }
 0x21d   : > { %v2833_v20 = vadd.f32 %v6047_v2, %v2794_v46  ;;  %v2799_v37 = vadd.f32 %v2739_v33, %v6272_v47  ;;  %v2731_v55 = vadd.f32 %v4277_v16, %v2730_v11  ;;  %v4297_v35 = vpop.f32.mrf.mxu0  ;;  %v2931_v4 = vadd.f32 %v3762_v12, %v2835_v29  ;;  %v6278_v33 = vld [vmem:[#allocation19_spill] sm:$0xff] }
 0x21e   : > { %v4470_v21 = vpop.f32.mrf.mxu1  ;;  %v4298_v36 = vadd.f32 %v4297_v35, %v4296_v28  ;;  %v4292_v12 = vadd.f32 %v6159_v1, %v6154_v63  ;;  %v6279_v28 = vld [vmem:[#allocation21_spill] sm:$0xff]  ;;  %v3778_v63 = vunpack.c.h.bf16 %v3909_v39 }
 0x21f   : > { %v2929_v56 = vadd.f32 %v3758_v42, %v2833_v20  ;;  %v2742_v24 = vadd.f32 %v4470_v21, %v4286_v58  ;;  %v4299_v26 = vpop.f32.mrf.mxu0  ;;  %v3835_v23 = vpack.c.bf16 %v2931_v4, %v2930_v25  ;;  %v2797_v17 = vadd.f32 %v2731_v55, %v6273_v22 }
 0x220   : > { %v2733_v41 = vpop.f32.mrf.mxu1  ;;  %v2838_v48 = vadd.f32 %v6047_v2, %v2799_v37  ;;  %v4174_v29 = vadd.f32 %v6279_v28, %v6278_v33  ;;  %v3777_v58 = vunpack.c.l.bf16 %v3909_v39  ;;  %v6280_v37 = vld [vmem:[#allocation16_spill] sm:$0xff]  ;;  %v3773_v4 = vunpack.c.l.bf16 %v3908_v8 }
 0x221   : > { %v3830_v32 = vpack.c.bf16 %v2929_v56, %v2928_v30  ;;  %v2800_v44 = vadd.f32 %v2742_v24, %v6274_v59  ;;  %v4300_v62 = vpop.f32.mrf.mxu0  ;;  %3920 = vst [vmem:[%s6079_s30 + $0x48] sm:$0xff] %v3835_v23   ;;  %v2734_v9 = vadd.f32 %v4280_v19, %v2733_v41  ;;  %v2836_v27 = vadd.f32 %v6047_v2, %v2797_v17  ;;  %v6281_v23 = vld [vmem:[#allocation14_spill] sm:$0xff] }
 0x222   : > { %v4473_v7 = vpop.f32.mrf.mxu1  ;;  %v2934_v54 = vadd.f32 %v3769_v0, %v2838_v48  ;;  %v3774_v21 = vunpack.c.h.bf16 %v3908_v8  ;;  %v4301_v0 = vadd.f32 %v4300_v62, %v4299_v26 }
 0x223   : > { %3919 = vst [vmem:[%s6079_s30 + $0x40] sm:$0xff] %v3830_v32   ;;  %v2839_v38 = vadd.f32 %v6047_v2, %v2800_v44  ;;  %v2755_v40 = vadd.f32 %v4473_v7, %v4295_v13  ;;  %v4302_v52 = vpop.f32.mrf.mxu0  ;;  %v2798_v43 = vadd.f32 %v2734_v9, %v6275_v18  ;;  %v2932_v50 = vadd.f32 %v3765_v57, %v2836_v27  ;;  %v6284_v32 = vld [vmem:[#allocation3_spill] sm:$0xff] }
 0x224   : > { %v2746_v10 = vpop.f32.mrf.mxu1  ;;  %v2081_v48 = vadd.f32 %v4174_v29, %v6284_v32 }
 0x225   : > { %v2935_v14 = vadd.f32 %v3770_v51, %v2839_v38  ;;  %v2803_v34 = vadd.f32 %v2755_v40, %v6276_v6  ;;  %v2747_v45 = vadd.f32 %v4289_v60, %v2746_v10  ;;  %v4303_v31 = vpop.f32.mrf.mxu0  ;;  %v2837_v3 = vadd.f32 %v6047_v2, %v2798_v43  ;;  %v6283_v51 = vld [vmem:[#allocation4_spill] sm:$0xff]  ;;  %v3911_v43 = vld [vmem:[%s6033_s19 + $0x78] sm:$0xff]   ;;  %v3910_v6 = vld [vmem:[%s6033_s19 + $0x70] sm:$0xff]  }
 0x226   : > { %v4474_v61 = vpop.f32.mrf.mxu1  ;;  %v2239_v41 = vadd.f32 %v6283_v51, %v6282_v49  ;;  %v4304_v60 = vadd.f32 %v4303_v31, %v4302_v52  ;;  %v3785_v31 = vunpack.c.l.bf16 %v3911_v43 }
 0x227   : > { %v3845_v42 = vpack.c.bf16 %v2935_v14, %v2934_v54  ;;  %v2801_v16 = vadd.f32 %v2747_v45, %v6277_v5  ;;  %v2758_v15 = vadd.f32 %v4474_v61, %v4298_v36  ;;  %v4305_v46 = vpop.f32.mrf.mxu0  ;;  %v2933_v11 = vadd.f32 %v3766_v53, %v2837_v3  ;;  %v6285_v53 = vld [vmem:[#allocation17_spill] sm:$0xff] }
 0x228   : > { %v2749_v20 = vpop.f32.mrf.mxu1  ;;  %v2842_v47 = vadd.f32 %v6047_v2, %v2803_v34  ;;  %v6286_v54 = vld [vmem:[#allocation5_spill] sm:$0xff]  ;;  %v3781_v5 = vunpack.c.l.bf16 %v3910_v6 }
 0x229   : > { %3922 = vst [vmem:[%s6079_s30 + $0x58] sm:$0xff] %v3845_v42   ;;  %v2804_v55 = vadd.f32 %v2758_v15, %v6280_v37  ;;  %v2750_v1 = vadd.f32 %v4292_v12, %v2749_v20  ;;  %v4306_v35 = vpop.f32.mrf.mxu0  ;;  %v3840_v25 = vpack.c.bf16 %v2933_v11, %v2932_v50  ;;  %v2840_v24 = vadd.f32 %v6047_v2, %v2801_v16  ;;  %v6287_v16 = vld [vmem:[#allocation18_spill] sm:$0xff] }
 0x22a   : > { %v4477_v30 = vpop.f32.mrf.mxu1  ;;  %v4307_v56 = vadd.f32 %v4306_v35, %v4305_v46  ;;  %v2938_v44 = vadd.f32 %v3777_v58, %v2842_v47  ;;  %v2242_v14 = vadd.f32 %v6286_v54, %v2081_v48  ;;  %v3786_v12 = vunpack.c.h.bf16 %v3911_v43 }
 0x22b   : > { %v2843_v19 = vadd.f32 %v6047_v2, %v2804_v55  ;;  %v2802_v22 = vadd.f32 %v2750_v1, %v6281_v23  ;;  %v4308_v17 = vpop.f32.mrf.mxu0  ;;  %3921 = vst [vmem:[%s6079_s30 + $0x50] sm:$0xff] %v3840_v25   ;;  %v2936_v27 = vadd.f32 %v3773_v4, %v2840_v24  ;;  %v3782_v15 = vunpack.c.h.bf16 %v3910_v6 }
 0x22c   : > { %v2771_v13 = vadd.f32 %v4477_v30, %v4307_v56  ;;  %v2762_v59 = vpop.f32.mrf.mxu1 }
 0x22d   : > { %v2939_v9 = vadd.f32 %v3778_v63, %v2843_v19  ;;  %v2841_v26 = vadd.f32 %v6047_v2, %v2802_v22  ;;  %v2763_v62 = vadd.f32 %v4301_v0, %v2762_v59  ;;  %v4309_v7 = vpop.f32.mrf.mxu0 }
 0x22e   : > { %v2807_v57 = vadd.f32 %v2771_v13, %v2239_v41  ;;  %v4478_v38 = vpop.f32.mrf.mxu1  ;;  %v4310_v40 = vadd.f32 %v4309_v7, %v4308_v17 }
 0x22f   : > { %v3855_v36 = vpack.c.bf16 %v2939_v9, %v2938_v44  ;;  %v2937_v18 = vadd.f32 %v3774_v21, %v2841_v26  ;;  %v2805_v10 = vadd.f32 %v2763_v62, %v6285_v53 }
 0x230   : > { %v2774_v34 = vadd.f32 %v4478_v38, %v4310_v40  ;;  %v2765_v39 = vpop.f32.mrf.mxu1  ;;  %v2846_v52 = vadd.f32 %v6047_v2, %v2807_v57 }
 0x231   : > { %3924 = vst [vmem:[%s6079_s30 + $0x68] sm:$0xff] %v3855_v36   ;;  %v3850_v45 = vpack.c.bf16 %v2937_v18, %v2936_v27  ;;  %v2766_v3 = vadd.f32 %v4304_v60, %v2765_v39  ;;  %v2844_v42 = vadd.f32 %v6047_v2, %v2805_v10 }
 0x232   : > { %v2808_v61 = vadd.f32 %v2774_v34, %v2242_v14  ;;  %v2942_v28 = vadd.f32 %v3785_v31, %v2846_v52 }
 0x233   : > { %3923 = vst [vmem:[%s6079_s30 + $0x60] sm:$0xff] %v3850_v45   ;;  %v2806_v8 = vadd.f32 %v2766_v3, %v6287_v16  ;;  %v2940_v50 = vadd.f32 %v3781_v5, %v2844_v42 }
 0x234   : > { %v2847_v46 = vadd.f32 %v6047_v2, %v2808_v61 }
 0x235   : > { %v2845_v33 = vadd.f32 %v6047_v2, %v2806_v8 }
 0x236   : > { %v2943_v29 = vadd.f32 %v3786_v12, %v2847_v46 }
 0x237   : > { %v2941_v11 = vadd.f32 %v3782_v15, %v2845_v33 }
 0x238   : > { %v3865_v58 = vpack.c.bf16 %v2943_v29, %v2942_v28 }
 0x239   : > { %v3860_v20 = vpack.c.bf16 %v2941_v11, %v2940_v50 }
 0x23a   : > { %3926 = vst [vmem:[%s6079_s30 + $0x78] sm:$0xff] %v3865_v58  }
 0x23b   : > { %3925 = vst [vmem:[%s6079_s30 + $0x70] sm:$0xff] %v3860_v20  }
 0x23c PF: > { %s16_s23 = sadd.s32 1, %s4766_s23   ;;  %s6288_s21 = smov %s4762_s22 }
 0x23d   : > { %p13_p5 = scmp.ge.s32.totalorder %s16_s23, 4   ;;  %s6289_s22 = smov %s6291_s24 }
 0x23f   :  { %15 = sbr.rel (!%p13_p5) target bundleno = 2 (0x2), region = 95 }

</bundles_post_ra>
